<compile_context>
chip_gen: v6e
topology: v6e:2x2x1
jax: 0.10.0
libtpu: 0.0.40
codegen_flags: <defaults>
</compile_context>

<pallas_src>
import functools
import math

import jax
import jax.numpy as jnp
from jax.experimental import pallas as pl
from jax.experimental.pallas import tpu as pltpu

_VMEM = pl.BlockSpec(memory_space=pltpu.MemorySpace.VMEM)


# ------------------------------ CNN branch kernel ------------------------------

def _cnn_branch_kernel(x_ref, w1_ref, s1_ref, b1_ref, w2_ref, s2_ref, b2_ref,
                       w3_ref, s3_ref, b3_ref, o_ref, *, batch, length):
    """Fused conv(3,pad=1)+BN+ReLU x3 then MaxPool1d(2), channels-last tokens in VMEM."""
    n_rows = batch * length

    def shifted(x):
        # previous / next row per token, zero-padded at each per-sequence boundary
        row = jax.lax.broadcasted_iota(jnp.int32, x.shape, 0) % length
        zero = jnp.zeros((1, x.shape[1]), jnp.float32)
        prev = jnp.concatenate([zero, x[:-1, :]], axis=0)
        prev = jnp.where(row == 0, 0.0, prev)
        nxt = jnp.concatenate([x[1:, :], zero], axis=0)
        nxt = jnp.where(row == length - 1, 0.0, nxt)
        return prev, nxt

    def conv_bn_relu(x, w_ref, scale_ref, shift_ref):
        prev, nxt = shifted(x)
        cols = jnp.concatenate([prev, x, nxt], axis=-1)          # in-kernel im2col (k=3)
        y = jnp.dot(cols.astype(jnp.bfloat16), w_ref[...],
                    preferred_element_type=jnp.float32)
        return jnp.maximum(y * scale_ref[...] + shift_ref[...], 0.0)

    h = conv_bn_relu(x_ref[...], w1_ref, s1_ref, b1_ref)          # (B*L, 64)
    h = conv_bn_relu(h, w2_ref, s2_ref, b2_ref)                   # (B*L, 128)
    h = conv_bn_relu(h, w3_ref, s3_ref, b3_ref)                   # (B*L, 256)

    # MaxPool1d(kernel_size=2) along length: max over consecutive row pairs (static loop).
    pooled = [jnp.max(h[2 * i:2 * i + 2, :], axis=0, keepdims=True)
              for i in range(n_rows // 2)]
    o_ref[...] = jnp.concatenate(pooled, axis=0)                  # (B*(L//2), 256)


def run_cnn_branch(x_ncl, cnn_params):
    B, Cin, L = x_ncl.shape
    assert L % 2 == 0, "MaxPool1d(2) requires an even history length"
    x_tokens = jnp.transpose(x_ncl, (0, 2, 1)).reshape(B * L, Cin)
    (w1, s1, b1), (w2, s2, b2), (w3, s3, b3) = cnn_params
    c_out = w3.shape[-1]
    pooled = pl.pallas_call(
        functools.partial(_cnn_branch_kernel, batch=B, length=L),
        out_shape=jax.ShapeDtypeStruct((B * (L // 2), c_out), jnp.float32),
        in_specs=[_VMEM] * 10,
        out_specs=_VMEM,
    )(x_tokens, w1, s1, b1, w2, s2, b2, w3, s3, b3)
    # channels-last flatten per batch (index = l*c_out + c); fc1 rows are permuted to match.
    return pooled.reshape(B, (L // 2) * c_out)


# --------------------------- embedding + positional enc ------------------------

def _embed_pe_kernel(x_ref, w_ref, b_ref, pe_ref, o_ref, *, batch):
    pe = pe_ref[...]                                              # (S, D)
    pe_full = jnp.concatenate([pe] * batch, axis=0) if batch > 1 else pe
    o_ref[...] = (jnp.dot(x_ref[...], w_ref[...], preferred_element_type=jnp.float32)
                  + b_ref[...] + pe_full)


def run_embed(b_str, emb_w, emb_b, pe):
    B, S, F = b_str.shape
    D = emb_w.shape[1]
    return pl.pallas_call(
        functools.partial(_embed_pe_kernel, batch=B),
        out_shape=jax.ShapeDtypeStruct((B * S, D), jnp.float32),
        in_specs=[_VMEM] * 4,
        out_specs=_VMEM,
    )(b_str.reshape(B * S, F), emb_w, emb_b, pe)


# --------------------------- fused transformer encoder layer -------------------

def _encoder_layer_kernel(x_ref, wqkv_ref, bqkv_ref, wo_ref, bo_ref,
                          g1_ref, b1_ref, wf1_ref, bf1_ref, wf2_ref, bf2_ref,
                          g2_ref, b2_ref, o_ref, *, batch, seq, nheads, eps):
    d_model = x_ref.shape[-1]
    hd = d_model // nheads
    inv_sqrt = 1.0 / math.sqrt(hd)

    x = x_ref[...]                                                # (B*S, D) f32, batch-major
    xb = x.astype(jnp.bfloat16)

    # --- self attention (PyTorch MHA: softmax(QK^T/sqrt(hd)) V, per batch & head) ---
    qkv = jnp.dot(xb, wqkv_ref[...], preferred_element_type=jnp.float32) + bqkv_ref[...]
    q = qkv[:, 0:d_model] * inv_sqrt                              # fold scale into q
    k = qkv[:, d_model:2 * d_model]
    v = qkv[:, 2 * d_model:3 * d_model]

    batch_outs = []
    for b in range(batch):
        r0, r1 = b * seq, (b + 1) * seq
        head_outs = []
        for h in range(nheads):
            c0, c1 = h * hd, (h + 1) * hd
            qh, kh, vh = q[r0:r1, c0:c1], k[r0:r1, c0:c1], v[r0:r1, c0:c1]
            s = jax.lax.dot_general(qh, kh, (((1,), (1,)), ((), ())),
                                    preferred_element_type=jnp.float32)   # (S, S)
            s = s - jnp.max(s, axis=-1, keepdims=True)
            p = jnp.exp(s)
            p = p * pl.reciprocal(jnp.sum(p, axis=-1, keepdims=True), approx=True)
            head_outs.append(jnp.dot(p, vh, preferred_element_type=jnp.float32))
        batch_outs.append(jnp.concatenate(head_outs, axis=-1))    # (S, D)
    attn = jnp.concatenate(batch_outs, axis=0)                    # (B*S, D)

    attn = jnp.dot(attn.astype(jnp.bfloat16), wo_ref[...],
                   preferred_element_type=jnp.float32) + bo_ref[...]

    def layer_norm(y, g_ref, beta_ref):
        mean = jnp.mean(y, axis=-1, keepdims=True)
        var = jnp.mean(jnp.square(y - mean), axis=-1, keepdims=True)
        return (y - mean) * jax.lax.rsqrt(var + eps) * g_ref[...] + beta_ref[...]

    y = layer_norm(x + attn, g1_ref, b1_ref)                      # post-norm residual

    # --- feed forward (ReLU) ---
    hidden = jnp.dot(y.astype(jnp.bfloat16), wf1_ref[...],
                     preferred_element_type=jnp.float32) + bf1_ref[...]
    hidden = jnp.maximum(hidden, 0.0)
    ff = jnp.dot(hidden.astype(jnp.bfloat16), wf2_ref[...],
                 preferred_element_type=jnp.float32) + bf2_ref[...]
    o_ref[...] = layer_norm(y + ff, g2_ref, b2_ref)


def run_encoder_layer(tokens, lp, batch, seq, nheads):
    n, D = tokens.shape
    return pl.pallas_call(
        functools.partial(_encoder_layer_kernel, batch=batch, seq=seq,
                          nheads=nheads, eps=1e-5),
        out_shape=jax.ShapeDtypeStruct((n, D), jnp.float32),
        in_specs=[_VMEM] * 13,
        out_specs=_VMEM,
    )(tokens, lp['in_proj_w'], lp['in_proj_b'], lp['out_proj_w'], lp['out_proj_b'],
      lp['ln1_g'], lp['ln1_b'], lp['ff1_w'], lp['ff1_b'], lp['ff2_w'], lp['ff2_b'],
      lp['ln2_g'], lp['ln2_b'])


# ------------------------------------ head -------------------------------------

def _head_kernel(cnn_ref, enc_ref, wt_ref, bt_ref, w1c_ref, w1t_ref, b1_ref,
                 w2_ref, b2_ref, w3_ref, b3_ref, o_ref, *, batch, seq):
    enc = enc_ref[...]                                            # (B*S, D) batch-major
    pooled = jnp.concatenate(
        [jnp.mean(enc[b * seq:(b + 1) * seq, :], axis=0, keepdims=True)
         for b in range(batch)], axis=0)                          # (B, D) mean over seq
    tout = jnp.dot(pooled.astype(jnp.bfloat16), wt_ref[...],
                   preferred_element_type=jnp.float32) + bt_ref[...]
    tout = jnp.maximum(tout, 0.0)                                 # (B, 128)

    # fc1 on concat([cnn_flat, tout]) expressed as a split matmul (no in-kernel concat)
    h = (jnp.dot(cnn_ref[...].astype(jnp.bfloat16), w1c_ref[...],
                 preferred_element_type=jnp.float32)
         + jnp.dot(tout.astype(jnp.bfloat16), w1t_ref[...],
                   preferred_element_type=jnp.float32)
         + b1_ref[...])
    h = jnp.maximum(h, 0.0)                                       # (B, 512)
    h = jnp.maximum(jnp.dot(h.astype(jnp.bfloat16), w2_ref[...],
                            preferred_element_type=jnp.float32) + b2_ref[...], 0.0)
    o_ref[...] = jnp.dot(h.astype(jnp.bfloat16), w3_ref[...],
                         preferred_element_type=jnp.float32) + b3_ref[...]


def run_head(cnn_flat, enc_tokens, p, batch, seq):
    future = p['fc3_b'].shape[-1]
    return pl.pallas_call(
        functools.partial(_head_kernel, batch=batch, seq=seq),
        out_shape=jax.ShapeDtypeStruct((batch, future), jnp.float32),
        in_specs=[_VMEM] * 11,
        out_specs=_VMEM,
    )(cnn_flat, enc_tokens, p['tfc_w'], p['tfc_b'], p['fc1_w_cnn'], p['fc1_w_t'],
      p['fc1_b'], p['fc2_w'], p['fc2_b'], p['fc3_w'], p['fc3_b'])


# ------------------------------- full forward -----------------------------------

def cnn_transformer_forward(params, x_ncl, b_str):
    B = x_ncl.shape[0]
    S = b_str.shape[1]
    cnn_flat = run_cnn_branch(x_ncl, params['cnn'])               # (B, 256*(L//2))
    tokens = run_embed(b_str, params['emb_w'], params['emb_b'], params['pe'][:S])
    for lp in params['layers']:
        tokens = run_encoder_layer(tokens, lp, B, S, params['nheads'])
    return run_head(cnn_flat, tokens, params, B, S)               # (B, future_target)


# ----------------------- deterministic params + kernel prep ---------------------

def positional_encoding(max_len, d_model):
    position = jnp.arange(max_len, dtype=jnp.float32)[:, None]
    div_term = jnp.exp(jnp.arange(0, d_model, 2, dtype=jnp.float32)
                       * (-math.log(10000.0) / d_model))
    pe = jnp.zeros((max_len, d_model), jnp.float32)
    pe = pe.at[:, 0::2].set(jnp.sin(position * div_term))
    pe = pe.at[:, 1::2].set(jnp.cos(position * div_term))
    return pe


def init_params(key, history_size, structured_feature_size, future_target,
                num_features, transformer_dim=128, transformer_heads=4,
                transformer_layers=2, dim_feedforward=2048):
    """Raw parameters in PyTorch-equivalent layouts (linear weights stored as (in, out))."""
    keys = iter(jax.random.split(key, 64))

    def w(shape, s=0.05):
        return (s * jax.random.normal(next(keys), shape)).astype(jnp.float32)

    def conv_bn(cin, cout):
        return dict(conv_w=w((cout, cin, 3)), conv_b=w((cout,)),
                    gamma=1.0 + w((cout,)), beta=w((cout,)),
                    mean=w((cout,)), var=1.0 + jnp.abs(w((cout,))))

    D = transformer_dim
    params = {
        'conv1': conv_bn(num_features, 64),
        'conv2': conv_bn(64, 128),
        'conv3': conv_bn(128, 256),
        'emb_w': w((structured_feature_size, D)), 'emb_b': w((D,)),
        'pe': positional_encoding(history_size, D),
        'nheads': transformer_heads,
        'layers': [],
        'tfc_w': w((D, 128)), 'tfc_b': w((128,)),
        'fc1_w': w((256 * (history_size // 2) + 128, 512)), 'fc1_b': w((512,)),
        'fc2_w': w((512, 256)), 'fc2_b': w((256,)),
        'fc3_w': w((256, future_target)), 'fc3_b': w((future_target,)),
    }
    for _ in range(transformer_layers):
        params['layers'].append({
            'in_proj_w': w((D, 3 * D)), 'in_proj_b': w((3 * D,)),
            'out_proj_w': w((D, D)), 'out_proj_b': w((D,)),
            'ln1_g': jnp.ones((D,), jnp.float32), 'ln1_b': jnp.zeros((D,), jnp.float32),
            'ff1_w': w((D, dim_feedforward)), 'ff1_b': w((dim_feedforward,)),
            'ff2_w': w((dim_feedforward, D)), 'ff2_b': w((D,)),
            'ln2_g': jnp.ones((D,), jnp.float32), 'ln2_b': jnp.zeros((D,), jnp.float32),
        })
    # TODO(synk): dropout (p=0.1) layers are identity here (eval-mode semantics).
    return params


def prepare_params(raw, history_size, eps=1e-5):
    """One-time conversion to kernel layouts: fold BN, stack conv taps, bf16 matmul weights,
    (1, N) f32 biases/affines, and permute fc1's CNN rows to the channels-last flatten order."""
    def bf16(a):
        return a.astype(jnp.bfloat16)

    def row(b):
        return b.reshape(1, -1).astype(jnp.float32)

    def fold_conv(c):
        cout, cin, _ = c['conv_w'].shape
        w_mat = jnp.transpose(c['conv_w'], (2, 1, 0)).reshape(3 * cin, cout)
        scale = c['gamma'] * jax.lax.rsqrt(c['var'] + eps)
        shift = c['beta'] + (c['conv_b'] - c['mean']) * scale
        return (bf16(w_mat), row(scale), row(shift))

    half = history_size // 2
    # PyTorch flattens the pooled CNN map channel-major (c*half + l); the kernel produces
    # it length-major (l*256 + c), so permute fc1's CNN rows accordingly (exact same math).
    fc1_cnn = raw['fc1_w'][:256 * half]
    fc1_cnn = fc1_cnn.reshape(256, half, -1).transpose(1, 0, 2).reshape(256 * half, -1)
    fc1_t = raw['fc1_w'][256 * half:]

    p = {
        'cnn': (fold_conv(raw['conv1']), fold_conv(raw['conv2']), fold_conv(raw['conv3'])),
        'emb_w': raw['emb_w'].astype(jnp.float32),
        'emb_b': row(raw['emb_b']),
        'pe': raw['pe'],
        'nheads': raw['nheads'],
        'layers': [],
        'tfc_w': bf16(raw['tfc_w']), 'tfc_b': row(raw['tfc_b']),
        'fc1_w_cnn': bf16(fc1_cnn), 'fc1_w_t': bf16(fc1_t), 'fc1_b': row(raw['fc1_b']),
        'fc2_w': bf16(raw['fc2_w']), 'fc2_b': row(raw['fc2_b']),
        'fc3_w': bf16(raw['fc3_w']), 'fc3_b': row(raw['fc3_b']),
    }
    for lp in raw['layers']:
        p['layers'].append({
            'in_proj_w': bf16(lp['in_proj_w']), 'in_proj_b': row(lp['in_proj_b']),
            'out_proj_w': bf16(lp['out_proj_w']), 'out_proj_b': row(lp['out_proj_b']),
            'ln1_g': row(lp['ln1_g']), 'ln1_b': row(lp['ln1_b']),
            'ff1_w': bf16(lp['ff1_w']), 'ff1_b': row(lp['ff1_b']),
            'ff2_w': bf16(lp['ff2_w']), 'ff2_b': row(lp['ff2_b']),
            'ln2_g': row(lp['ln2_g']), 'ln2_b': row(lp['ln2_b']),
        })
    return p


# --------------------------------- main ------------------------------------------

if __name__ == "__main__":
    history_size = 16
    structured_feature_size = 8
    future_target = 4
    num_features = 1   # x is (batch, 1, history) per the module docstring
    batch = 2

    key = jax.random.PRNGKey(0)
    kp, kx, kb = jax.random.split(key, 3)
    raw = init_params(kp, history_size, structured_feature_size,
                      future_target, num_features)
    params = prepare_params(raw, history_size)

    x = jax.random.normal(kx, (batch, num_features, history_size), jnp.float32)
    b_str = jax.random.normal(kb, (batch, history_size, structured_feature_size),
                              jnp.float32)

    fwd = jax.jit(lambda xx, bb: cnn_transformer_forward(params, xx, bb))
    out = jax.block_until_ready(fwd(x, b_str))
    assert out.shape == (batch, future_target)
    assert bool(jnp.all(jnp.isfinite(out)))
    print("KERNEL_OK")
</pallas_src>

<mosaic_0001>
module attributes {stable_mosaic.version = 11 : i64} {
  func.func @_embed_pe_kernel(%arg0: memref<32x8xf32, #tpu.memory_space<vmem>>, %arg1: memref<8x128xf32, #tpu.memory_space<vmem>>, %arg2: memref<1x128xf32, #tpu.memory_space<vmem>>, %arg3: memref<16x128xf32, #tpu.memory_space<vmem>>, %arg4: memref<32x128xf32, #tpu.memory_space<vmem>>) attributes {dimension_semantics = [], scalar_prefetch = 0 : i64, scratch_operands = 0 : i64, tpu.core_type = #tpu.core_type<tc>} {
    %c0 = arith.constant 0 : index
    %c0_0 = arith.constant 0 : index
    %0 = vector.load %arg3[%c0, %c0_0] : memref<16x128xf32, #tpu.memory_space<vmem>>, vector<16x128xf32>
    %1 = tpu.concatenate %0, %0 in 0 : vector<16x128xf32>, vector<16x128xf32> -> vector<32x128xf32>
    %c0_1 = arith.constant 0 : index
    %c0_2 = arith.constant 0 : index
    %2 = vector.load %arg0[%c0_1, %c0_2] : memref<32x8xf32, #tpu.memory_space<vmem>>, vector<32x8xf32>
    %c0_3 = arith.constant 0 : index
    %c0_4 = arith.constant 0 : index
    %3 = vector.load %arg1[%c0_3, %c0_4] : memref<8x128xf32, #tpu.memory_space<vmem>>, vector<8x128xf32>
    %cst = arith.constant dense<0.000000e+00> : vector<32x128xf32>
    %4 = tpu.matmul %2, %3, %cst {dimension_numbers = #tpu.dot_dimension_numbers<[1], [0], [0], [1], [0, 0, 1, 1], [], []>} : vector<32x8xf32>, vector<8x128xf32>, vector<32x128xf32> -> vector<32x128xf32>
    %c0_5 = arith.constant 0 : index
    %c0_6 = arith.constant 0 : index
    %5 = vector.load %arg2[%c0_5, %c0_6] : memref<1x128xf32, #tpu.memory_space<vmem>>, vector<1x128xf32>
    %6 = vector.broadcast %5 : vector<1x128xf32> to vector<32x128xf32>
    %7 = arith.addf %4, %6 : vector<32x128xf32>
    %8 = arith.addf %7, %1 : vector<32x128xf32>
    %c0_7 = arith.constant 0 : index
    %c0_8 = arith.constant 0 : index
    %9 = vector.load %arg4[%c0_7, %c0_8] : memref<32x128xf32, #tpu.memory_space<vmem>>, vector<32x128xf32>
    tpu.vector_store %arg4[%c0_7, %c0_8], %8 {strides = array<i32>} : memref<32x128xf32, #tpu.memory_space<vmem>>, vector<32x128xf32>,
    return
  }
}

module attributes {stable_mosaic.version = 11 : i64} {
  func.func @_encoder_layer_kernel(%arg0: memref<32x128xf32, #tpu.memory_space<vmem>>, %arg1: memref<128x384xbf16, #tpu.memory_space<vmem>>, %arg2: memref<1x384xf32, #tpu.memory_space<vmem>>, %arg3: memref<128x128xbf16, #tpu.memory_space<vmem>>, %arg4: memref<1x128xf32, #tpu.memory_space<vmem>>, %arg5: memref<1x128xf32, #tpu.memory_space<vmem>>, %arg6: memref<1x128xf32, #tpu.memory_space<vmem>>, %arg7: memref<128x2048xbf16, #tpu.memory_space<vmem>>, %arg8: memref<1x2048xf32, #tpu.memory_space<vmem>>, %arg9: memref<2048x128xbf16, #tpu.memory_space<vmem>>, %arg10: memref<1x128xf32, #tpu.memory_space<vmem>>, %arg11: memref<1x128xf32, #tpu.memory_space<vmem>>, %arg12: memref<1x128xf32, #tpu.memory_space<vmem>>, %arg13: memref<32x128xf32, #tpu.memory_space<vmem>>) attributes {dimension_semantics = [], scalar_prefetch = 0 : i64, scratch_operands = 0 : i64, tpu.core_type = #tpu.core_type<tc>} {
    %c0 = arith.constant 0 : index
    %c0_0 = arith.constant 0 : index
    %0 = vector.load %arg0[%c0, %c0_0] : memref<32x128xf32, #tpu.memory_space<vmem>>, vector<32x128xf32>
    %1 = arith.truncf %0 : vector<32x128xf32> to vector<32x128xbf16>
    %c0_1 = arith.constant 0 : index
    %c0_2 = arith.constant 0 : index
    %2 = vector.load %arg1[%c0_1, %c0_2] : memref<128x384xbf16, #tpu.memory_space<vmem>>, vector<128x384xbf16>
    %cst = arith.constant dense<0.000000e+00> : vector<32x384xf32>
    %3 = tpu.matmul %1, %2, %cst {dimension_numbers = #tpu.dot_dimension_numbers<[1], [0], [0], [1], [0, 0, 1, 1], [], []>} : vector<32x128xbf16>, vector<128x384xbf16>, vector<32x384xf32> -> vector<32x384xf32>
    %c0_3 = arith.constant 0 : index
    %c0_4 = arith.constant 0 : index
    %4 = vector.load %arg2[%c0_3, %c0_4] : memref<1x384xf32, #tpu.memory_space<vmem>>, vector<1x384xf32>
    %5 = vector.broadcast %4 : vector<1x384xf32> to vector<32x384xf32>
    %6 = arith.addf %3, %5 : vector<32x384xf32>
    %7 = vector.extract_strided_slice %6 {offsets = [0, 0], sizes = [32, 128], strides = [1, 1]} : vector<32x384xf32> to vector<32x128xf32>
    %cst_5 = arith.constant 0.176776692 : f32
    %8 = vector.broadcast %cst_5 : f32 to vector<32x128xf32>
    %9 = arith.mulf %7, %8 : vector<32x128xf32>
    %10 = vector.extract_strided_slice %6 {offsets = [0, 128], sizes = [32, 128], strides = [1, 1]} : vector<32x384xf32> to vector<32x128xf32>
    %11 = vector.extract_strided_slice %6 {offsets = [0, 256], sizes = [32, 128], strides = [1, 1]} : vector<32x384xf32> to vector<32x128xf32>
    %12 = vector.extract_strided_slice %9 {offsets = [0, 0], sizes = [16, 32], strides = [1, 1]} : vector<32x128xf32> to vector<16x32xf32>
    %13 = vector.extract_strided_slice %10 {offsets = [0, 0], sizes = [16, 32], strides = [1, 1]} : vector<32x128xf32> to vector<16x32xf32>
    %14 = vector.extract_strided_slice %11 {offsets = [0, 0], sizes = [16, 32], strides = [1, 1]} : vector<32x128xf32> to vector<16x32xf32>
    %cst_6 = arith.constant dense<0.000000e+00> : vector<16x16xf32>
    %15 = tpu.matmul %12, %13, %cst_6 {dimension_numbers = #tpu.dot_dimension_numbers<[1], [1], [0], [0], [0, 0, 1, 0], [], []>} : vector<16x32xf32>, vector<16x32xf32>, vector<16x16xf32> -> vector<16x16xf32>
    %cst_7 = arith.constant dense<0xFF800000> : vector<16xf32>
    %16 = vector.multi_reduction <maximumf>, %15, %cst_7 [1] : vector<16x16xf32> to vector<16xf32>
    %17 = vector.shape_cast %16 : vector<16xf32> to vector<16x1xf32>
    %18 = vector.broadcast %17 : vector<16x1xf32> to vector<16x16xf32>
    %19 = arith.subf %15, %18 : vector<16x16xf32>
    %20 = math.exp %19 : vector<16x16xf32>
    %cst_8 = arith.constant dense<0.000000e+00> : vector<16xf32>
    %21 = vector.multi_reduction <add>, %20, %cst_8 [1] : vector<16x16xf32> to vector<16xf32>
    %22 = vector.shape_cast %21 : vector<16xf32> to vector<16x1xf32>
    %23 = tpu.reciprocal %22 {approx = true} : vector<16x1xf32> -> vector<16x1xf32>
    %24 = vector.broadcast %23 : vector<16x1xf32> to vector<16x16xf32>
    %25 = arith.mulf %20, %24 : vector<16x16xf32>
    %cst_9 = arith.constant dense<0.000000e+00> : vector<16x32xf32>
    %26 = tpu.matmul %25, %14, %cst_9 {dimension_numbers = #tpu.dot_dimension_numbers<[1], [0], [0], [1], [0, 0, 1, 1], [], []>} : vector<16x16xf32>, vector<16x32xf32>, vector<16x32xf32> -> vector<16x32xf32>
    %27 = vector.extract_strided_slice %9 {offsets = [0, 32], sizes = [16, 32], strides = [1, 1]} : vector<32x128xf32> to vector<16x32xf32>
    %28 = vector.extract_strided_slice %10 {offsets = [0, 32], sizes = [16, 32], strides = [1, 1]} : vector<32x128xf32> to vector<16x32xf32>
    %29 = vector.extract_strided_slice %11 {offsets = [0, 32], sizes = [16, 32], strides = [1, 1]} : vector<32x128xf32> to vector<16x32xf32>
    %cst_10 = arith.constant dense<0.000000e+00> : vector<16x16xf32>
    %30 = tpu.matmul %27, %28, %cst_10 {dimension_numbers = #tpu.dot_dimension_numbers<[1], [1], [0], [0], [0, 0, 1, 0], [], []>} : vector<16x32xf32>, vector<16x32xf32>, vector<16x16xf32> -> vector<16x16xf32>
    %cst_11 = arith.constant dense<0xFF800000> : vector<16xf32>
    %31 = vector.multi_reduction <maximumf>, %30, %cst_11 [1] : vector<16x16xf32> to vector<16xf32>
    %32 = vector.shape_cast %31 : vector<16xf32> to vector<16x1xf32>
    %33 = vector.broadcast %32 : vector<16x1xf32> to vector<16x16xf32>
    %34 = arith.subf %30, %33 : vector<16x16xf32>
    %35 = math.exp %34 : vector<16x16xf32>
    %cst_12 = arith.constant dense<0.000000e+00> : vector<16xf32>
    %36 = vector.multi_reduction <add>, %35, %cst_12 [1] : vector<16x16xf32> to vector<16xf32>
    %37 = vector.shape_cast %36 : vector<16xf32> to vector<16x1xf32>
    %38 = tpu.reciprocal %37 {approx = true} : vector<16x1xf32> -> vector<16x1xf32>
    %39 = vector.broadcast %38 : vector<16x1xf32> to vector<16x16xf32>
    %40 = arith.mulf %35, %39 : vector<16x16xf32>
    %cst_13 = arith.constant dense<0.000000e+00> : vector<16x32xf32>
    %41 = tpu.matmul %40, %29, %cst_13 {dimension_numbers = #tpu.dot_dimension_numbers<[1], [0], [0], [1], [0, 0, 1, 1], [], []>} : vector<16x16xf32>, vector<16x32xf32>, vector<16x32xf32> -> vector<16x32xf32>
    %42 = vector.extract_strided_slice %9 {offsets = [0, 64], sizes = [16, 32], strides = [1, 1]} : vector<32x128xf32> to vector<16x32xf32>
    %43 = vector.extract_strided_slice %10 {offsets = [0, 64], sizes = [16, 32], strides = [1, 1]} : vector<32x128xf32> to vector<16x32xf32>
    %44 = vector.extract_strided_slice %11 {offsets = [0, 64], sizes = [16, 32], strides = [1, 1]} : vector<32x128xf32> to vector<16x32xf32>
    %cst_14 = arith.constant dense<0.000000e+00> : vector<16x16xf32>
    %45 = tpu.matmul %42, %43, %cst_14 {dimension_numbers = #tpu.dot_dimension_numbers<[1], [1], [0], [0], [0, 0, 1, 0], [], []>} : vector<16x32xf32>, vector<16x32xf32>, vector<16x16xf32> -> vector<16x16xf32>
    %cst_15 = arith.constant dense<0xFF800000> : vector<16xf32>
    %46 = vector.multi_reduction <maximumf>, %45, %cst_15 [1] : vector<16x16xf32> to vector<16xf32>
    %47 = vector.shape_cast %46 : vector<16xf32> to vector<16x1xf32>
    %48 = vector.broadcast %47 : vector<16x1xf32> to vector<16x16xf32>
    %49 = arith.subf %45, %48 : vector<16x16xf32>
    %50 = math.exp %49 : vector<16x16xf32>
    %cst_16 = arith.constant dense<0.000000e+00> : vector<16xf32>
    %51 = vector.multi_reduction <add>, %50, %cst_16 [1] : vector<16x16xf32> to vector<16xf32>
    %52 = vector.shape_cast %51 : vector<16xf32> to vector<16x1xf32>
    %53 = tpu.reciprocal %52 {approx = true} : vector<16x1xf32> -> vector<16x1xf32>
    %54 = vector.broadcast %53 : vector<16x1xf32> to vector<16x16xf32>
    %55 = arith.mulf %50, %54 : vector<16x16xf32>
    %cst_17 = arith.constant dense<0.000000e+00> : vector<16x32xf32>
    %56 = tpu.matmul %55, %44, %cst_17 {dimension_numbers = #tpu.dot_dimension_numbers<[1], [0], [0], [1], [0, 0, 1, 1], [], []>} : vector<16x16xf32>, vector<16x32xf32>, vector<16x32xf32> -> vector<16x32xf32>
    %57 = vector.extract_strided_slice %9 {offsets = [0, 96], sizes = [16, 32], strides = [1, 1]} : vector<32x128xf32> to vector<16x32xf32>
    %58 = vector.extract_strided_slice %10 {offsets = [0, 96], sizes = [16, 32], strides = [1, 1]} : vector<32x128xf32> to vector<16x32xf32>
    %59 = vector.extract_strided_slice %11 {offsets = [0, 96], sizes = [16, 32], strides = [1, 1]} : vector<32x128xf32> to vector<16x32xf32>
    %cst_18 = arith.constant dense<0.000000e+00> : vector<16x16xf32>
    %60 = tpu.matmul %57, %58, %cst_18 {dimension_numbers = #tpu.dot_dimension_numbers<[1], [1], [0], [0], [0, 0, 1, 0], [], []>} : vector<16x32xf32>, vector<16x32xf32>, vector<16x16xf32> -> vector<16x16xf32>
    %cst_19 = arith.constant dense<0xFF800000> : vector<16xf32>
    %61 = vector.multi_reduction <maximumf>, %60, %cst_19 [1] : vector<16x16xf32> to vector<16xf32>
    %62 = vector.shape_cast %61 : vector<16xf32> to vector<16x1xf32>
    %63 = vector.broadcast %62 : vector<16x1xf32> to vector<16x16xf32>
    %64 = arith.subf %60, %63 : vector<16x16xf32>
    %65 = math.exp %64 : vector<16x16xf32>
    %cst_20 = arith.constant dense<0.000000e+00> : vector<16xf32>
    %66 = vector.multi_reduction <add>, %65, %cst_20 [1] : vector<16x16xf32> to vector<16xf32>
    %67 = vector.shape_cast %66 : vector<16xf32> to vector<16x1xf32>
    %68 = tpu.reciprocal %67 {approx = true} : vector<16x1xf32> -> vector<16x1xf32>
    %69 = vector.broadcast %68 : vector<16x1xf32> to vector<16x16xf32>
    %70 = arith.mulf %65, %69 : vector<16x16xf32>
    %cst_21 = arith.constant dense<0.000000e+00> : vector<16x32xf32>
    %71 = tpu.matmul %70, %59, %cst_21 {dimension_numbers = #tpu.dot_dimension_numbers<[1], [0], [0], [1], [0, 0, 1, 1], [], []>} : vector<16x16xf32>, vector<16x32xf32>, vector<16x32xf32> -> vector<16x32xf32>
    %72 = tpu.concatenate %26, %41, %56, %71 in 1 : vector<16x32xf32>, vector<16x32xf32>, vector<16x32xf32>, vector<16x32xf32> -> vector<16x128xf32>
    %73 = vector.extract_strided_slice %9 {offsets = [16, 0], sizes = [16, 32], strides = [1, 1]} : vector<32x128xf32> to vector<16x32xf32>
    %74 = vector.extract_strided_slice %10 {offsets = [16, 0], sizes = [16, 32], strides = [1, 1]} : vector<32x128xf32> to vector<16x32xf32>
    %75 = vector.extract_strided_slice %11 {offsets = [16, 0], sizes = [16, 32], strides = [1, 1]} : vector<32x128xf32> to vector<16x32xf32>
    %cst_22 = arith.constant dense<0.000000e+00> : vector<16x16xf32>
    %76 = tpu.matmul %73, %74, %cst_22 {dimension_numbers = #tpu.dot_dimension_numbers<[1], [1], [0], [0], [0, 0, 1, 0], [], []>} : vector<16x32xf32>, vector<16x32xf32>, vector<16x16xf32> -> vector<16x16xf32>
    %cst_23 = arith.constant dense<0xFF800000> : vector<16xf32>
    %77 = vector.multi_reduction <maximumf>, %76, %cst_23 [1] : vector<16x16xf32> to vector<16xf32>
    %78 = vector.shape_cast %77 : vector<16xf32> to vector<16x1xf32>
    %79 = vector.broadcast %78 : vector<16x1xf32> to vector<16x16xf32>
    %80 = arith.subf %76, %79 : vector<16x16xf32>
    %81 = math.exp %80 : vector<16x16xf32>
    %cst_24 = arith.constant dense<0.000000e+00> : vector<16xf32>
    %82 = vector.multi_reduction <add>, %81, %cst_24 [1] : vector<16x16xf32> to vector<16xf32>
    %83 = vector.shape_cast %82 : vector<16xf32> to vector<16x1xf32>
    %84 = tpu.reciprocal %83 {approx = true} : vector<16x1xf32> -> vector<16x1xf32>
    %85 = vector.broadcast %84 : vector<16x1xf32> to vector<16x16xf32>
    %86 = arith.mulf %81, %85 : vector<16x16xf32>
    %cst_25 = arith.constant dense<0.000000e+00> : vector<16x32xf32>
    %87 = tpu.matmul %86, %75, %cst_25 {dimension_numbers = #tpu.dot_dimension_numbers<[1], [0], [0], [1], [0, 0, 1, 1], [], []>} : vector<16x16xf32>, vector<16x32xf32>, vector<16x32xf32> -> vector<16x32xf32>
    %88 = vector.extract_strided_slice %9 {offsets = [16, 32], sizes = [16, 32], strides = [1, 1]} : vector<32x128xf32> to vector<16x32xf32>
    %89 = vector.extract_strided_slice %10 {offsets = [16, 32], sizes = [16, 32], strides = [1, 1]} : vector<32x128xf32> to vector<16x32xf32>
    %90 = vector.extract_strided_slice %11 {offsets = [16, 32], sizes = [16, 32], strides = [1, 1]} : vector<32x128xf32> to vector<16x32xf32>
    %cst_26 = arith.constant dense<0.000000e+00> : vector<16x16xf32>
    %91 = tpu.matmul %88, %89, %cst_26 {dimension_numbers = #tpu.dot_dimension_numbers<[1], [1], [0], [0], [0, 0, 1, 0], [], []>} : vector<16x32xf32>, vector<16x32xf32>, vector<16x16xf32> -> vector<16x16xf32>
    %cst_27 = arith.constant dense<0xFF800000> : vector<16xf32>
    %92 = vector.multi_reduction <maximumf>, %91, %cst_27 [1] : vector<16x16xf32> to vector<16xf32>
    %93 = vector.shape_cast %92 : vector<16xf32> to vector<16x1xf32>
    %94 = vector.broadcast %93 : vector<16x1xf32> to vector<16x16xf32>
    %95 = arith.subf %91, %94 : vector<16x16xf32>
    %96 = math.exp %95 : vector<16x16xf32>
    %cst_28 = arith.constant dense<0.000000e+00> : vector<16xf32>
    %97 = vector.multi_reduction <add>, %96, %cst_28 [1] : vector<16x16xf32> to vector<16xf32>
    %98 = vector.shape_cast %97 : vector<16xf32> to vector<16x1xf32>
    %99 = tpu.reciprocal %98 {approx = true} : vector<16x1xf32> -> vector<16x1xf32>
    %100 = vector.broadcast %99 : vector<16x1xf32> to vector<16x16xf32>
    %101 = arith.mulf %96, %100 : vector<16x16xf32>
    %cst_29 = arith.constant dense<0.000000e+00> : vector<16x32xf32>
    %102 = tpu.matmul %101, %90, %cst_29 {dimension_numbers = #tpu.dot_dimension_numbers<[1], [0], [0], [1], [0, 0, 1, 1], [], []>} : vector<16x16xf32>, vector<16x32xf32>, vector<16x32xf32> -> vector<16x32xf32>
    %103 = vector.extract_strided_slice %9 {offsets = [16, 64], sizes = [16, 32], strides = [1, 1]} : vector<32x128xf32> to vector<16x32xf32>
    %104 = vector.extract_strided_slice %10 {offsets = [16, 64], sizes = [16, 32], strides = [1, 1]} : vector<32x128xf32> to vector<16x32xf32>
    %105 = vector.extract_strided_slice %11 {offsets = [16, 64], sizes = [16, 32], strides = [1, 1]} : vector<32x128xf32> to vector<16x32xf32>
    %cst_30 = arith.constant dense<0.000000e+00> : vector<16x16xf32>
    %106 = tpu.matmul %103, %104, %cst_30 {dimension_numbers = #tpu.dot_dimension_numbers<[1], [1], [0], [0], [0, 0, 1, 0], [], []>} : vector<16x32xf32>, vector<16x32xf32>, vector<16x16xf32> -> vector<16x16xf32>
    %cst_31 = arith.constant dense<0xFF800000> : vector<16xf32>
    %107 = vector.multi_reduction <maximumf>, %106, %cst_31 [1] : vector<16x16xf32> to vector<16xf32>
    %108 = vector.shape_cast %107 : vector<16xf32> to vector<16x1xf32>
    %109 = vector.broadcast %108 : vector<16x1xf32> to vector<16x16xf32>
    %110 = arith.subf %106, %109 : vector<16x16xf32>
    %111 = math.exp %110 : vector<16x16xf32>
    %cst_32 = arith.constant dense<0.000000e+00> : vector<16xf32>
    %112 = vector.multi_reduction <add>, %111, %cst_32 [1] : vector<16x16xf32> to vector<16xf32>
    %113 = vector.shape_cast %112 : vector<16xf32> to vector<16x1xf32>
    %114 = tpu.reciprocal %113 {approx = true} : vector<16x1xf32> -> vector<16x1xf32>
    %115 = vector.broadcast %114 : vector<16x1xf32> to vector<16x16xf32>
    %116 = arith.mulf %111, %115 : vector<16x16xf32>
    %cst_33 = arith.constant dense<0.000000e+00> : vector<16x32xf32>
    %117 = tpu.matmul %116, %105, %cst_33 {dimension_numbers = #tpu.dot_dimension_numbers<[1], [0], [0], [1], [0, 0, 1, 1], [], []>} : vector<16x16xf32>, vector<16x32xf32>, vector<16x32xf32> -> vector<16x32xf32>
    %118 = vector.extract_strided_slice %9 {offsets = [16, 96], sizes = [16, 32], strides = [1, 1]} : vector<32x128xf32> to vector<16x32xf32>
    %119 = vector.extract_strided_slice %10 {offsets = [16, 96], sizes = [16, 32], strides = [1, 1]} : vector<32x128xf32> to vector<16x32xf32>
    %120 = vector.extract_strided_slice %11 {offsets = [16, 96], sizes = [16, 32], strides = [1, 1]} : vector<32x128xf32> to vector<16x32xf32>
    %cst_34 = arith.constant dense<0.000000e+00> : vector<16x16xf32>
    %121 = tpu.matmul %118, %119, %cst_34 {dimension_numbers = #tpu.dot_dimension_numbers<[1], [1], [0], [0], [0, 0, 1, 0], [], []>} : vector<16x32xf32>, vector<16x32xf32>, vector<16x16xf32> -> vector<16x16xf32>
    %cst_35 = arith.constant dense<0xFF800000> : vector<16xf32>
    %122 = vector.multi_reduction <maximumf>, %121, %cst_35 [1] : vector<16x16xf32> to vector<16xf32>
    %123 = vector.shape_cast %122 : vector<16xf32> to vector<16x1xf32>
    %124 = vector.broadcast %123 : vector<16x1xf32> to vector<16x16xf32>
    %125 = arith.subf %121, %124 : vector<16x16xf32>
    %126 = math.exp %125 : vector<16x16xf32>
    %cst_36 = arith.constant dense<0.000000e+00> : vector<16xf32>
    %127 = vector.multi_reduction <add>, %126, %cst_36 [1] : vector<16x16xf32> to vector<16xf32>
    %128 = vector.shape_cast %127 : vector<16xf32> to vector<16x1xf32>
    %129 = tpu.reciprocal %128 {approx = true} : vector<16x1xf32> -> vector<16x1xf32>
    %130 = vector.broadcast %129 : vector<16x1xf32> to vector<16x16xf32>
    %131 = arith.mulf %126, %130 : vector<16x16xf32>
    %cst_37 = arith.constant dense<0.000000e+00> : vector<16x32xf32>
    %132 = tpu.matmul %131, %120, %cst_37 {dimension_numbers = #tpu.dot_dimension_numbers<[1], [0], [0], [1], [0, 0, 1, 1], [], []>} : vector<16x16xf32>, vector<16x32xf32>, vector<16x32xf32> -> vector<16x32xf32>
    %133 = tpu.concatenate %87, %102, %117, %132 in 1 : vector<16x32xf32>, vector<16x32xf32>, vector<16x32xf32>, vector<16x32xf32> -> vector<16x128xf32>
    %134 = tpu.concatenate %72, %133 in 0 : vector<16x128xf32>, vector<16x128xf32> -> vector<32x128xf32>
    %135 = arith.truncf %134 : vector<32x128xf32> to vector<32x128xbf16>
    %c0_38 = arith.constant 0 : index
    %c0_39 = arith.constant 0 : index
    %136 = vector.load %arg3[%c0_38, %c0_39] : memref<128x128xbf16, #tpu.memory_space<vmem>>, vector<128x128xbf16>
    %cst_40 = arith.constant dense<0.000000e+00> : vector<32x128xf32>
    %137 = tpu.matmul %135, %136, %cst_40 {dimension_numbers = #tpu.dot_dimension_numbers<[1], [0], [0], [1], [0, 0, 1, 1], [], []>} : vector<32x128xbf16>, vector<128x128xbf16>, vector<32x128xf32> -> vector<32x128xf32>
    %c0_41 = arith.constant 0 : index
    %c0_42 = arith.constant 0 : index
    %138 = vector.load %arg4[%c0_41, %c0_42] : memref<1x128xf32, #tpu.memory_space<vmem>>, vector<1x128xf32>
    %139 = vector.broadcast %138 : vector<1x128xf32> to vector<32x128xf32>
    %140 = arith.addf %137, %139 : vector<32x128xf32>
    %141 = arith.addf %0, %140 : vector<32x128xf32>
    %cst_43 = arith.constant dense<0.000000e+00> : vector<32xf32>
    %142 = vector.multi_reduction <add>, %141, %cst_43 [1] : vector<32x128xf32> to vector<32xf32>
    %143 = vector.shape_cast %142 : vector<32xf32> to vector<32x1xf32>
    %cst_44 = arith.constant 1.280000e+02 : f32
    %144 = vector.broadcast %cst_44 : f32 to vector<32x1xf32>
    %145 = arith.divf %143, %144 : vector<32x1xf32>
    %146 = vector.broadcast %145 : vector<32x1xf32> to vector<32x128xf32>
    %147 = arith.subf %141, %146 : vector<32x128xf32>
    %148 = arith.mulf %147, %147 : vector<32x128xf32>
    %cst_45 = arith.constant dense<0.000000e+00> : vector<32xf32>
    %149 = vector.multi_reduction <add>, %148, %cst_45 [1] : vector<32x128xf32> to vector<32xf32>
    %150 = vector.shape_cast %149 : vector<32xf32> to vector<32x1xf32>
    %cst_46 = arith.constant 1.280000e+02 : f32
    %151 = vector.broadcast %cst_46 : f32 to vector<32x1xf32>
    %152 = arith.divf %150, %151 : vector<32x1xf32>
    %153 = vector.broadcast %145 : vector<32x1xf32> to vector<32x128xf32>
    %154 = arith.subf %141, %153 : vector<32x128xf32>
    %cst_47 = arith.constant 9.99999974E-6 : f32
    %155 = vector.broadcast %cst_47 : f32 to vector<32x1xf32>
    %156 = arith.addf %152, %155 : vector<32x1xf32>
    %157 = math.rsqrt %156 : vector<32x1xf32>
    %158 = vector.broadcast %157 : vector<32x1xf32> to vector<32x128xf32>
    %159 = arith.mulf %154, %158 : vector<32x128xf32>
    %c0_48 = arith.constant 0 : index
    %c0_49 = arith.constant 0 : index
    %160 = vector.load %arg5[%c0_48, %c0_49] : memref<1x128xf32, #tpu.memory_space<vmem>>, vector<1x128xf32>
    %161 = vector.broadcast %160 : vector<1x128xf32> to vector<32x128xf32>
    %162 = arith.mulf %159, %161 : vector<32x128xf32>
    %c0_50 = arith.constant 0 : index
    %c0_51 = arith.constant 0 : index
    %163 = vector.load %arg6[%c0_50, %c0_51] : memref<1x128xf32, #tpu.memory_space<vmem>>, vector<1x128xf32>
    %164 = vector.broadcast %163 : vector<1x128xf32> to vector<32x128xf32>
    %165 = arith.addf %162, %164 : vector<32x128xf32>
    %166 = arith.truncf %165 : vector<32x128xf32> to vector<32x128xbf16>
    %c0_52 = arith.constant 0 : index
    %c0_53 = arith.constant 0 : index
    %167 = vector.load %arg7[%c0_52, %c0_53] : memref<128x2048xbf16, #tpu.memory_space<vmem>>, vector<128x2048xbf16>
    %cst_54 = arith.constant dense<0.000000e+00> : vector<32x2048xf32>
    %168 = tpu.matmul %166, %167, %cst_54 {dimension_numbers = #tpu.dot_dimension_numbers<[1], [0], [0], [1], [0, 0, 1, 1], [], []>} : vector<32x128xbf16>, vector<128x2048xbf16>, vector<32x2048xf32> -> vector<32x2048xf32>
    %c0_55 = arith.constant 0 : index
    %c0_56 = arith.constant 0 : index
    %169 = vector.load %arg8[%c0_55, %c0_56] : memref<1x2048xf32, #tpu.memory_space<vmem>>, vector<1x2048xf32>
    %170 = vector.broadcast %169 : vector<1x2048xf32> to vector<32x2048xf32>
    %171 = arith.addf %168, %170 : vector<32x2048xf32>
    %cst_57 = arith.constant 0.000000e+00 : f32
    %172 = vector.broadcast %cst_57 : f32 to vector<32x2048xf32>
    %173 = arith.maximumf %171, %172 : vector<32x2048xf32>
    %174 = arith.truncf %173 : vector<32x2048xf32> to vector<32x2048xbf16>
    %c0_58 = arith.constant 0 : index
    %c0_59 = arith.constant 0 : index
    %175 = vector.load %arg9[%c0_58, %c0_59] : memref<2048x128xbf16, #tpu.memory_space<vmem>>, vector<2048x128xbf16>
    %cst_60 = arith.constant dense<0.000000e+00> : vector<32x128xf32>
    %176 = tpu.matmul %174, %175, %cst_60 {dimension_numbers = #tpu.dot_dimension_numbers<[1], [0], [0], [1], [0, 0, 1, 1], [], []>} : vector<32x2048xbf16>, vector<2048x128xbf16>, vector<32x128xf32> -> vector<32x128xf32>
    %c0_61 = arith.constant 0 : index
    %c0_62 = arith.constant 0 : index
    %177 = vector.load %arg10[%c0_61, %c0_62] : memref<1x128xf32, #tpu.memory_space<vmem>>, vector<1x128xf32>
    %178 = vector.broadcast %177 : vector<1x128xf32> to vector<32x128xf32>
    %179 = arith.addf %176, %178 : vector<32x128xf32>
    %180 = arith.addf %165, %179 : vector<32x128xf32>
    %cst_63 = arith.constant dense<0.000000e+00> : vector<32xf32>
    %181 = vector.multi_reduction <add>, %180, %cst_63 [1] : vector<32x128xf32> to vector<32xf32>
    %182 = vector.shape_cast %181 : vector<32xf32> to vector<32x1xf32>
    %cst_64 = arith.constant 1.280000e+02 : f32
    %183 = vector.broadcast %cst_64 : f32 to vector<32x1xf32>
    %184 = arith.divf %182, %183 : vector<32x1xf32>
    %185 = vector.broadcast %184 : vector<32x1xf32> to vector<32x128xf32>
    %186 = arith.subf %180, %185 : vector<32x128xf32>
    %187 = arith.mulf %186, %186 : vector<32x128xf32>
    %cst_65 = arith.constant dense<0.000000e+00> : vector<32xf32>
    %188 = vector.multi_reduction <add>, %187, %cst_65 [1] : vector<32x128xf32> to vector<32xf32>
    %189 = vector.shape_cast %188 : vector<32xf32> to vector<32x1xf32>
    %cst_66 = arith.constant 1.280000e+02 : f32
    %190 = vector.broadcast %cst_66 : f32 to vector<32x1xf32>
    %191 = arith.divf %189, %190 : vector<32x1xf32>
    %192 = vector.broadcast %184 : vector<32x1xf32> to vector<32x128xf32>
    %193 = arith.subf %180, %192 : vector<32x128xf32>
    %cst_67 = arith.constant 9.99999974E-6 : f32
    %194 = vector.broadcast %cst_67 : f32 to vector<32x1xf32>
    %195 = arith.addf %191, %194 : vector<32x1xf32>
    %196 = math.rsqrt %195 : vector<32x1xf32>
    %197 = vector.broadcast %196 : vector<32x1xf32> to vector<32x128xf32>
    %198 = arith.mulf %193, %197 : vector<32x128xf32>
    %c0_68 = arith.constant 0 : index
    %c0_69 = arith.constant 0 : index
    %199 = vector.load %arg11[%c0_68, %c0_69] : memref<1x128xf32, #tpu.memory_space<vmem>>, vector<1x128xf32>
    %200 = vector.broadcast %199 : vector<1x128xf32> to vector<32x128xf32>
    %201 = arith.mulf %198, %200 : vector<32x128xf32>
    %c0_70 = arith.constant 0 : index
    %c0_71 = arith.constant 0 : index
    %202 = vector.load %arg12[%c0_70, %c0_71] : memref<1x128xf32, #tpu.memory_space<vmem>>, vector<1x128xf32>
    %203 = vector.broadcast %202 : vector<1x128xf32> to vector<32x128xf32>
    %204 = arith.addf %201, %203 : vector<32x128xf32>
    %c0_72 = arith.constant 0 : index
    %c0_73 = arith.constant 0 : index
    %205 = vector.load %arg13[%c0_72, %c0_73] : memref<32x128xf32, #tpu.memory_space<vmem>>, vector<32x128xf32>
    tpu.vector_store %arg13[%c0_72, %c0_73], %204 {strides = array<i32>} : memref<32x128xf32, #tpu.memory_space<vmem>>, vector<32x128xf32>,
    return
  }
}

module attributes {stable_mosaic.version = 11 : i64} {
  func.func @_cnn_branch_kernel(%arg0: memref<32x1xf32, #tpu.memory_space<vmem>>, %arg1: memref<3x64xbf16, #tpu.memory_space<vmem>>, %arg2: memref<1x64xf32, #tpu.memory_space<vmem>>, %arg3: memref<1x64xf32, #tpu.memory_space<vmem>>, %arg4: memref<192x128xbf16, #tpu.memory_space<vmem>>, %arg5: memref<1x128xf32, #tpu.memory_space<vmem>>, %arg6: memref<1x128xf32, #tpu.memory_space<vmem>>, %arg7: memref<384x256xbf16, #tpu.memory_space<vmem>>, %arg8: memref<1x256xf32, #tpu.memory_space<vmem>>, %arg9: memref<1x256xf32, #tpu.memory_space<vmem>>, %arg10: memref<16x256xf32, #tpu.memory_space<vmem>>) attributes {dimension_semantics = [], scalar_prefetch = 0 : i64, scratch_operands = 0 : i64, tpu.core_type = #tpu.core_type<tc>} {
    %c0 = arith.constant 0 : index
    %c0_0 = arith.constant 0 : index
    %0 = vector.load %arg0[%c0, %c0_0] : memref<32x1xf32, #tpu.memory_space<vmem>>, vector<32x1xf32>
    %1 = tpu.iota {dimensions = array<i32: 0>} : vector<32x1xi32>
    %c16_i32 = arith.constant 16 : i32
    %c0_i32 = arith.constant 0 : i32
    %2 = arith.cmpi eq, %c16_i32, %c0_i32 : i32
    %c1_i32 = arith.constant 1 : i32
    %3 = arith.select %2, %c1_i32, %c16_i32 : i32
    %4 = vector.broadcast %3 : i32 to vector<32x1xi32>
    %5 = arith.remsi %1, %4 : vector<32x1xi32>
    %c0_i32_1 = arith.constant 0 : i32
    %6 = vector.broadcast %c0_i32_1 : i32 to vector<32x1xi32>
    %7 = arith.cmpi ne, %5, %6 : vector<32x1xi32>
    %c0_i32_2 = arith.constant 0 : i32
    %8 = vector.broadcast %c0_i32_2 : i32 to vector<32x1xi32>
    %9 = arith.cmpi slt, %5, %8 : vector<32x1xi32>
    %c0_i32_3 = arith.constant 0 : i32
    %10 = arith.cmpi slt, %3, %c0_i32_3 : i32
    %11 = vector.broadcast %10 : i1 to vector<32x1xi1>
    %12 = vector.broadcast %11 : vector<32x1xi1> to vector<32x1xi1>
    %13 = arith.xori %9, %12 : vector<32x1xi1>
    %14 = arith.andi %13, %7 : vector<32x1xi1>
    %15 = vector.broadcast %3 : i32 to vector<32x1xi32>
    %16 = arith.addi %5, %15 : vector<32x1xi32>
    %17 = arith.select %14, %16, %5 : vector<32x1xi1>, vector<32x1xi32>
    %cst = arith.constant 0.000000e+00 : f32
    %18 = vector.broadcast %cst : f32 to vector<1x1xf32>
    %19 = vector.extract_strided_slice %0 {offsets = [0, 0], sizes = [31, 1], strides = [1, 1]} : vector<32x1xf32> to vector<31x1xf32>
    %20 = tpu.concatenate %18, %19 in 0 : vector<1x1xf32>, vector<31x1xf32> -> vector<32x1xf32>
    %c0_i32_4 = arith.constant 0 : i32
    %21 = vector.broadcast %c0_i32_4 : i32 to vector<32x1xi32>
    %22 = arith.cmpi eq, %17, %21 : vector<32x1xi32>
    %cst_5 = arith.constant 0.000000e+00 : f32
    %23 = vector.broadcast %cst_5 : f32 to vector<32x1xf32>
    %24 = arith.select %22, %23, %20 : vector<32x1xi1>, vector<32x1xf32>
    %25 = vector.extract_strided_slice %0 {offsets = [1, 0], sizes = [31, 1], strides = [1, 1]} : vector<32x1xf32> to vector<31x1xf32>
    %26 = tpu.concatenate %25, %18 in 0 : vector<31x1xf32>, vector<1x1xf32> -> vector<32x1xf32>
    %c15_i32 = arith.constant 15 : i32
    %27 = vector.broadcast %c15_i32 : i32 to vector<32x1xi32>
    %28 = arith.cmpi eq, %17, %27 : vector<32x1xi32>
    %cst_6 = arith.constant 0.000000e+00 : f32
    %29 = vector.broadcast %cst_6 : f32 to vector<32x1xf32>
    %30 = arith.select %28, %29, %26 : vector<32x1xi1>, vector<32x1xf32>
    %31 = tpu.concatenate %24, %0, %30 in 1 : vector<32x1xf32>, vector<32x1xf32>, vector<32x1xf32> -> vector<32x3xf32>
    %32 = arith.truncf %31 : vector<32x3xf32> to vector<32x3xbf16>
    %c0_7 = arith.constant 0 : index
    %c0_8 = arith.constant 0 : index
    %33 = vector.load %arg1[%c0_7, %c0_8] : memref<3x64xbf16, #tpu.memory_space<vmem>>, vector<3x64xbf16>
    %cst_9 = arith.constant dense<0.000000e+00> : vector<32x64xf32>
    %34 = tpu.matmul %32, %33, %cst_9 {dimension_numbers = #tpu.dot_dimension_numbers<[1], [0], [0], [1], [0, 0, 1, 1], [], []>} : vector<32x3xbf16>, vector<3x64xbf16>, vector<32x64xf32> -> vector<32x64xf32>
    %c0_10 = arith.constant 0 : index
    %c0_11 = arith.constant 0 : index
    %35 = vector.load %arg2[%c0_10, %c0_11] : memref<1x64xf32, #tpu.memory_space<vmem>>, vector<1x64xf32>
    %36 = vector.broadcast %35 : vector<1x64xf32> to vector<32x64xf32>
    %37 = arith.mulf %34, %36 : vector<32x64xf32>
    %c0_12 = arith.constant 0 : index
    %c0_13 = arith.constant 0 : index
    %38 = vector.load %arg3[%c0_12, %c0_13] : memref<1x64xf32, #tpu.memory_space<vmem>>, vector<1x64xf32>
    %39 = vector.broadcast %38 : vector<1x64xf32> to vector<32x64xf32>
    %40 = arith.addf %37, %39 : vector<32x64xf32>
    %cst_14 = arith.constant 0.000000e+00 : f32
    %41 = vector.broadcast %cst_14 : f32 to vector<32x64xf32>
    %42 = arith.maximumf %40, %41 : vector<32x64xf32>
    %43 = tpu.iota {dimensions = array<i32: 0>} : vector<32x64xi32>
    %c16_i32_15 = arith.constant 16 : i32
    %c0_i32_16 = arith.constant 0 : i32
    %44 = arith.cmpi eq, %c16_i32_15, %c0_i32_16 : i32
    %c1_i32_17 = arith.constant 1 : i32
    %45 = arith.select %44, %c1_i32_17, %c16_i32_15 : i32
    %46 = vector.broadcast %45 : i32 to vector<32x64xi32>
    %47 = arith.remsi %43, %46 : vector<32x64xi32>
    %c0_i32_18 = arith.constant 0 : i32
    %48 = vector.broadcast %c0_i32_18 : i32 to vector<32x64xi32>
    %49 = arith.cmpi ne, %47, %48 : vector<32x64xi32>
    %c0_i32_19 = arith.constant 0 : i32
    %50 = vector.broadcast %c0_i32_19 : i32 to vector<32x64xi32>
    %51 = arith.cmpi slt, %47, %50 : vector<32x64xi32>
    %c0_i32_20 = arith.constant 0 : i32
    %52 = arith.cmpi slt, %45, %c0_i32_20 : i32
    %53 = vector.broadcast %52 : i1 to vector<32x64xi1>
    %54 = vector.broadcast %53 : vector<32x64xi1> to vector<32x64xi1>
    %55 = arith.xori %51, %54 : vector<32x64xi1>
    %56 = arith.andi %55, %49 : vector<32x64xi1>
    %57 = vector.broadcast %45 : i32 to vector<32x64xi32>
    %58 = arith.addi %47, %57 : vector<32x64xi32>
    %59 = arith.select %56, %58, %47 : vector<32x64xi1>, vector<32x64xi32>
    %cst_21 = arith.constant 0.000000e+00 : f32
    %60 = vector.broadcast %cst_21 : f32 to vector<1x64xf32>
    %61 = vector.extract_strided_slice %42 {offsets = [0, 0], sizes = [31, 64], strides = [1, 1]} : vector<32x64xf32> to vector<31x64xf32>
    %62 = tpu.concatenate %60, %61 in 0 : vector<1x64xf32>, vector<31x64xf32> -> vector<32x64xf32>
    %c0_i32_22 = arith.constant 0 : i32
    %63 = vector.broadcast %c0_i32_22 : i32 to vector<32x64xi32>
    %64 = arith.cmpi eq, %59, %63 : vector<32x64xi32>
    %cst_23 = arith.constant 0.000000e+00 : f32
    %65 = vector.broadcast %cst_23 : f32 to vector<32x64xf32>
    %66 = arith.select %64, %65, %62 : vector<32x64xi1>, vector<32x64xf32>
    %67 = vector.extract_strided_slice %42 {offsets = [1, 0], sizes = [31, 64], strides = [1, 1]} : vector<32x64xf32> to vector<31x64xf32>
    %68 = tpu.concatenate %67, %60 in 0 : vector<31x64xf32>, vector<1x64xf32> -> vector<32x64xf32>
    %c15_i32_24 = arith.constant 15 : i32
    %69 = vector.broadcast %c15_i32_24 : i32 to vector<32x64xi32>
    %70 = arith.cmpi eq, %59, %69 : vector<32x64xi32>
    %cst_25 = arith.constant 0.000000e+00 : f32
    %71 = vector.broadcast %cst_25 : f32 to vector<32x64xf32>
    %72 = arith.select %70, %71, %68 : vector<32x64xi1>, vector<32x64xf32>
    %73 = tpu.concatenate %66, %42, %72 in 1 : vector<32x64xf32>, vector<32x64xf32>, vector<32x64xf32> -> vector<32x192xf32>
    %74 = arith.truncf %73 : vector<32x192xf32> to vector<32x192xbf16>
    %c0_26 = arith.constant 0 : index
    %c0_27 = arith.constant 0 : index
    %75 = vector.load %arg4[%c0_26, %c0_27] : memref<192x128xbf16, #tpu.memory_space<vmem>>, vector<192x128xbf16>
    %cst_28 = arith.constant dense<0.000000e+00> : vector<32x128xf32>
    %76 = tpu.matmul %74, %75, %cst_28 {dimension_numbers = #tpu.dot_dimension_numbers<[1], [0], [0], [1], [0, 0, 1, 1], [], []>} : vector<32x192xbf16>, vector<192x128xbf16>, vector<32x128xf32> -> vector<32x128xf32>
    %c0_29 = arith.constant 0 : index
    %c0_30 = arith.constant 0 : index
    %77 = vector.load %arg5[%c0_29, %c0_30] : memref<1x128xf32, #tpu.memory_space<vmem>>, vector<1x128xf32>
    %78 = vector.broadcast %77 : vector<1x128xf32> to vector<32x128xf32>
    %79 = arith.mulf %76, %78 : vector<32x128xf32>
    %c0_31 = arith.constant 0 : index
    %c0_32 = arith.constant 0 : index
    %80 = vector.load %arg6[%c0_31, %c0_32] : memref<1x128xf32, #tpu.memory_space<vmem>>, vector<1x128xf32>
    %81 = vector.broadcast %80 : vector<1x128xf32> to vector<32x128xf32>
    %82 = arith.addf %79, %81 : vector<32x128xf32>
    %cst_33 = arith.constant 0.000000e+00 : f32
    %83 = vector.broadcast %cst_33 : f32 to vector<32x128xf32>
    %84 = arith.maximumf %82, %83 : vector<32x128xf32>
    %85 = tpu.iota {dimensions = array<i32: 0>} : vector<32x128xi32>
    %c16_i32_34 = arith.constant 16 : i32
    %c0_i32_35 = arith.constant 0 : i32
    %86 = arith.cmpi eq, %c16_i32_34, %c0_i32_35 : i32
    %c1_i32_36 = arith.constant 1 : i32
    %87 = arith.select %86, %c1_i32_36, %c16_i32_34 : i32
    %88 = vector.broadcast %87 : i32 to vector<32x128xi32>
    %89 = arith.remsi %85, %88 : vector<32x128xi32>
    %c0_i32_37 = arith.constant 0 : i32
    %90 = vector.broadcast %c0_i32_37 : i32 to vector<32x128xi32>
    %91 = arith.cmpi ne, %89, %90 : vector<32x128xi32>
    %c0_i32_38 = arith.constant 0 : i32
    %92 = vector.broadcast %c0_i32_38 : i32 to vector<32x128xi32>
    %93 = arith.cmpi slt, %89, %92 : vector<32x128xi32>
    %c0_i32_39 = arith.constant 0 : i32
    %94 = arith.cmpi slt, %87, %c0_i32_39 : i32
    %95 = vector.broadcast %94 : i1 to vector<32x128xi1>
    %96 = vector.broadcast %95 : vector<32x128xi1> to vector<32x128xi1>
    %97 = arith.xori %93, %96 : vector<32x128xi1>
    %98 = arith.andi %97, %91 : vector<32x128xi1>
    %99 = vector.broadcast %87 : i32 to vector<32x128xi32>
    %100 = arith.addi %89, %99 : vector<32x128xi32>
    %101 = arith.select %98, %100, %89 : vector<32x128xi1>, vector<32x128xi32>
    %cst_40 = arith.constant 0.000000e+00 : f32
    %102 = vector.broadcast %cst_40 : f32 to vector<1x128xf32>
    %103 = vector.extract_strided_slice %84 {offsets = [0, 0], sizes = [31, 128], strides = [1, 1]} : vector<32x128xf32> to vector<31x128xf32>
    %104 = tpu.concatenate %102, %103 in 0 : vector<1x128xf32>, vector<31x128xf32> -> vector<32x128xf32>
    %c0_i32_41 = arith.constant 0 : i32
    %105 = vector.broadcast %c0_i32_41 : i32 to vector<32x128xi32>
    %106 = arith.cmpi eq, %101, %105 : vector<32x128xi32>
    %cst_42 = arith.constant 0.000000e+00 : f32
    %107 = vector.broadcast %cst_42 : f32 to vector<32x128xf32>
    %108 = arith.select %106, %107, %104 : vector<32x128xi1>, vector<32x128xf32>
    %109 = vector.extract_strided_slice %84 {offsets = [1, 0], sizes = [31, 128], strides = [1, 1]} : vector<32x128xf32> to vector<31x128xf32>
    %110 = tpu.concatenate %109, %102 in 0 : vector<31x128xf32>, vector<1x128xf32> -> vector<32x128xf32>
    %c15_i32_43 = arith.constant 15 : i32
    %111 = vector.broadcast %c15_i32_43 : i32 to vector<32x128xi32>
    %112 = arith.cmpi eq, %101, %111 : vector<32x128xi32>
    %cst_44 = arith.constant 0.000000e+00 : f32
    %113 = vector.broadcast %cst_44 : f32 to vector<32x128xf32>
    %114 = arith.select %112, %113, %110 : vector<32x128xi1>, vector<32x128xf32>
    %115 = tpu.concatenate %108, %84, %114 in 1 : vector<32x128xf32>, vector<32x128xf32>, vector<32x128xf32> -> vector<32x384xf32>
    %116 = arith.truncf %115 : vector<32x384xf32> to vector<32x384xbf16>
    %c0_45 = arith.constant 0 : index
    %c0_46 = arith.constant 0 : index
    %117 = vector.load %arg7[%c0_45, %c0_46] : memref<384x256xbf16, #tpu.memory_space<vmem>>, vector<384x256xbf16>
    %cst_47 = arith.constant dense<0.000000e+00> : vector<32x256xf32>
    %118 = tpu.matmul %116, %117, %cst_47 {dimension_numbers = #tpu.dot_dimension_numbers<[1], [0], [0], [1], [0, 0, 1, 1], [], []>} : vector<32x384xbf16>, vector<384x256xbf16>, vector<32x256xf32> -> vector<32x256xf32>
    %c0_48 = arith.constant 0 : index
    %c0_49 = arith.constant 0 : index
    %119 = vector.load %arg8[%c0_48, %c0_49] : memref<1x256xf32, #tpu.memory_space<vmem>>, vector<1x256xf32>
    %120 = vector.broadcast %119 : vector<1x256xf32> to vector<32x256xf32>
    %121 = arith.mulf %118, %120 : vector<32x256xf32>
    %c0_50 = arith.constant 0 : index
    %c0_51 = arith.constant 0 : index
    %122 = vector.load %arg9[%c0_50, %c0_51] : memref<1x256xf32, #tpu.memory_space<vmem>>, vector<1x256xf32>
    %123 = vector.broadcast %122 : vector<1x256xf32> to vector<32x256xf32>
    %124 = arith.addf %121, %123 : vector<32x256xf32>
    %cst_52 = arith.constant 0.000000e+00 : f32
    %125 = vector.broadcast %cst_52 : f32 to vector<32x256xf32>
    %126 = arith.maximumf %124, %125 : vector<32x256xf32>
    %127 = vector.extract_strided_slice %126 {offsets = [0, 0], sizes = [2, 256], strides = [1, 1]} : vector<32x256xf32> to vector<2x256xf32>
    %cst_53 = arith.constant dense<0xFF800000> : vector<256xf32>
    %128 = vector.multi_reduction <maximumf>, %127, %cst_53 [0] : vector<2x256xf32> to vector<256xf32>
    %129 = vector.shape_cast %128 : vector<256xf32> to vector<1x256xf32>
    %130 = vector.extract_strided_slice %126 {offsets = [2, 0], sizes = [2, 256], strides = [1, 1]} : vector<32x256xf32> to vector<2x256xf32>
    %cst_54 = arith.constant dense<0xFF800000> : vector<256xf32>
    %131 = vector.multi_reduction <maximumf>, %130, %cst_54 [0] : vector<2x256xf32> to vector<256xf32>
    %132 = vector.shape_cast %131 : vector<256xf32> to vector<1x256xf32>
    %133 = vector.extract_strided_slice %126 {offsets = [4, 0], sizes = [2, 256], strides = [1, 1]} : vector<32x256xf32> to vector<2x256xf32>
    %cst_55 = arith.constant dense<0xFF800000> : vector<256xf32>
    %134 = vector.multi_reduction <maximumf>, %133, %cst_55 [0] : vector<2x256xf32> to vector<256xf32>
    %135 = vector.shape_cast %134 : vector<256xf32> to vector<1x256xf32>
    %136 = vector.extract_strided_slice %126 {offsets = [6, 0], sizes = [2, 256], strides = [1, 1]} : vector<32x256xf32> to vector<2x256xf32>
    %cst_56 = arith.constant dense<0xFF800000> : vector<256xf32>
    %137 = vector.multi_reduction <maximumf>, %136, %cst_56 [0] : vector<2x256xf32> to vector<256xf32>
    %138 = vector.shape_cast %137 : vector<256xf32> to vector<1x256xf32>
    %139 = vector.extract_strided_slice %126 {offsets = [8, 0], sizes = [2, 256], strides = [1, 1]} : vector<32x256xf32> to vector<2x256xf32>
    %cst_57 = arith.constant dense<0xFF800000> : vector<256xf32>
    %140 = vector.multi_reduction <maximumf>, %139, %cst_57 [0] : vector<2x256xf32> to vector<256xf32>
    %141 = vector.shape_cast %140 : vector<256xf32> to vector<1x256xf32>
    %142 = vector.extract_strided_slice %126 {offsets = [10, 0], sizes = [2, 256], strides = [1, 1]} : vector<32x256xf32> to vector<2x256xf32>
    %cst_58 = arith.constant dense<0xFF800000> : vector<256xf32>
    %143 = vector.multi_reduction <maximumf>, %142, %cst_58 [0] : vector<2x256xf32> to vector<256xf32>
    %144 = vector.shape_cast %143 : vector<256xf32> to vector<1x256xf32>
    %145 = vector.extract_strided_slice %126 {offsets = [12, 0], sizes = [2, 256], strides = [1, 1]} : vector<32x256xf32> to vector<2x256xf32>
    %cst_59 = arith.constant dense<0xFF800000> : vector<256xf32>
    %146 = vector.multi_reduction <maximumf>, %145, %cst_59 [0] : vector<2x256xf32> to vector<256xf32>
    %147 = vector.shape_cast %146 : vector<256xf32> to vector<1x256xf32>
    %148 = vector.extract_strided_slice %126 {offsets = [14, 0], sizes = [2, 256], strides = [1, 1]} : vector<32x256xf32> to vector<2x256xf32>
    %cst_60 = arith.constant dense<0xFF800000> : vector<256xf32>
    %149 = vector.multi_reduction <maximumf>, %148, %cst_60 [0] : vector<2x256xf32> to vector<256xf32>
    %150 = vector.shape_cast %149 : vector<256xf32> to vector<1x256xf32>
    %151 = vector.extract_strided_slice %126 {offsets = [16, 0], sizes = [2, 256], strides = [1, 1]} : vector<32x256xf32> to vector<2x256xf32>
    %cst_61 = arith.constant dense<0xFF800000> : vector<256xf32>
    %152 = vector.multi_reduction <maximumf>, %151, %cst_61 [0] : vector<2x256xf32> to vector<256xf32>
    %153 = vector.shape_cast %152 : vector<256xf32> to vector<1x256xf32>
    %154 = vector.extract_strided_slice %126 {offsets = [18, 0], sizes = [2, 256], strides = [1, 1]} : vector<32x256xf32> to vector<2x256xf32>
    %cst_62 = arith.constant dense<0xFF800000> : vector<256xf32>
    %155 = vector.multi_reduction <maximumf>, %154, %cst_62 [0] : vector<2x256xf32> to vector<256xf32>
    %156 = vector.shape_cast %155 : vector<256xf32> to vector<1x256xf32>
    %157 = vector.extract_strided_slice %126 {offsets = [20, 0], sizes = [2, 256], strides = [1, 1]} : vector<32x256xf32> to vector<2x256xf32>
    %cst_63 = arith.constant dense<0xFF800000> : vector<256xf32>
    %158 = vector.multi_reduction <maximumf>, %157, %cst_63 [0] : vector<2x256xf32> to vector<256xf32>
    %159 = vector.shape_cast %158 : vector<256xf32> to vector<1x256xf32>
    %160 = vector.extract_strided_slice %126 {offsets = [22, 0], sizes = [2, 256], strides = [1, 1]} : vector<32x256xf32> to vector<2x256xf32>
    %cst_64 = arith.constant dense<0xFF800000> : vector<256xf32>
    %161 = vector.multi_reduction <maximumf>, %160, %cst_64 [0] : vector<2x256xf32> to vector<256xf32>
    %162 = vector.shape_cast %161 : vector<256xf32> to vector<1x256xf32>
    %163 = vector.extract_strided_slice %126 {offsets = [24, 0], sizes = [2, 256], strides = [1, 1]} : vector<32x256xf32> to vector<2x256xf32>
    %cst_65 = arith.constant dense<0xFF800000> : vector<256xf32>
    %164 = vector.multi_reduction <maximumf>, %163, %cst_65 [0] : vector<2x256xf32> to vector<256xf32>
    %165 = vector.shape_cast %164 : vector<256xf32> to vector<1x256xf32>
    %166 = vector.extract_strided_slice %126 {offsets = [26, 0], sizes = [2, 256], strides = [1, 1]} : vector<32x256xf32> to vector<2x256xf32>
    %cst_66 = arith.constant dense<0xFF800000> : vector<256xf32>
    %167 = vector.multi_reduction <maximumf>, %166, %cst_66 [0] : vector<2x256xf32> to vector<256xf32>
    %168 = vector.shape_cast %167 : vector<256xf32> to vector<1x256xf32>
    %169 = vector.extract_strided_slice %126 {offsets = [28, 0], sizes = [2, 256], strides = [1, 1]} : vector<32x256xf32> to vector<2x256xf32>
    %cst_67 = arith.constant dense<0xFF800000> : vector<256xf32>
    %170 = vector.multi_reduction <maximumf>, %169, %cst_67 [0] : vector<2x256xf32> to vector<256xf32>
    %171 = vector.shape_cast %170 : vector<256xf32> to vector<1x256xf32>
    %172 = vector.extract_strided_slice %126 {offsets = [30, 0], sizes = [2, 256], strides = [1, 1]} : vector<32x256xf32> to vector<2x256xf32>
    %cst_68 = arith.constant dense<0xFF800000> : vector<256xf32>
    %173 = vector.multi_reduction <maximumf>, %172, %cst_68 [0] : vector<2x256xf32> to vector<256xf32>
    %174 = vector.shape_cast %173 : vector<256xf32> to vector<1x256xf32>
    %175 = tpu.concatenate %129, %132, %135, %138, %141, %144, %147, %150, %153, %156, %159, %162, %165, %168, %171, %174 in 0 : vector<1x256xf32>, vector<1x256xf32>, vector<1x256xf32>, vector<1x256xf32>, vector<1x256xf32>, vector<1x256xf32>, vector<1x256xf32>, vector<1x256xf32>, vector<1x256xf32>, vector<1x256xf32>, vector<1x256xf32>, vector<1x256xf32>, vector<1x256xf32>, vector<1x256xf32>, vector<1x256xf32>, vector<1x256xf32> -> vector<16x256xf32>
    %c0_69 = arith.constant 0 : index
    %c0_70 = arith.constant 0 : index
    %176 = vector.load %arg10[%c0_69, %c0_70] : memref<16x256xf32, #tpu.memory_space<vmem>>, vector<16x256xf32>
    tpu.vector_store %arg10[%c0_69, %c0_70], %175 {strides = array<i32>} : memref<16x256xf32, #tpu.memory_space<vmem>>, vector<16x256xf32>,
    return
  }
}

module attributes {stable_mosaic.version = 11 : i64} {
  func.func @_head_kernel(%arg0: memref<2x2048xf32, #tpu.memory_space<vmem>>, %arg1: memref<32x128xf32, #tpu.memory_space<vmem>>, %arg2: memref<128x128xbf16, #tpu.memory_space<vmem>>, %arg3: memref<1x128xf32, #tpu.memory_space<vmem>>, %arg4: memref<2048x512xbf16, #tpu.memory_space<vmem>>, %arg5: memref<128x512xbf16, #tpu.memory_space<vmem>>, %arg6: memref<1x512xf32, #tpu.memory_space<vmem>>, %arg7: memref<512x256xbf16, #tpu.memory_space<vmem>>, %arg8: memref<1x256xf32, #tpu.memory_space<vmem>>, %arg9: memref<256x4xbf16, #tpu.memory_space<vmem>>, %arg10: memref<1x4xf32, #tpu.memory_space<vmem>>, %arg11: memref<2x4xf32, #tpu.memory_space<vmem>>) attributes {dimension_semantics = [], scalar_prefetch = 0 : i64, scratch_operands = 0 : i64, tpu.core_type = #tpu.core_type<tc>} {
    %c0 = arith.constant 0 : index
    %c0_0 = arith.constant 0 : index
    %0 = vector.load %arg1[%c0, %c0_0] : memref<32x128xf32, #tpu.memory_space<vmem>>, vector<32x128xf32>
    %1 = vector.extract_strided_slice %0 {offsets = [0, 0], sizes = [16, 128], strides = [1, 1]} : vector<32x128xf32> to vector<16x128xf32>
    %cst = arith.constant dense<0.000000e+00> : vector<128xf32>
    %2 = vector.multi_reduction <add>, %1, %cst [0] : vector<16x128xf32> to vector<128xf32>
    %3 = vector.shape_cast %2 : vector<128xf32> to vector<1x128xf32>
    %cst_1 = arith.constant 1.600000e+01 : f32
    %4 = vector.broadcast %cst_1 : f32 to vector<1x128xf32>
    %5 = arith.divf %3, %4 : vector<1x128xf32>
    %6 = vector.extract_strided_slice %0 {offsets = [16, 0], sizes = [16, 128], strides = [1, 1]} : vector<32x128xf32> to vector<16x128xf32>
    %cst_2 = arith.constant dense<0.000000e+00> : vector<128xf32>
    %7 = vector.multi_reduction <add>, %6, %cst_2 [0] : vector<16x128xf32> to vector<128xf32>
    %8 = vector.shape_cast %7 : vector<128xf32> to vector<1x128xf32>
    %cst_3 = arith.constant 1.600000e+01 : f32
    %9 = vector.broadcast %cst_3 : f32 to vector<1x128xf32>
    %10 = arith.divf %8, %9 : vector<1x128xf32>
    %11 = tpu.concatenate %5, %10 in 0 : vector<1x128xf32>, vector<1x128xf32> -> vector<2x128xf32>
    %12 = arith.truncf %11 : vector<2x128xf32> to vector<2x128xbf16>
    %c0_4 = arith.constant 0 : index
    %c0_5 = arith.constant 0 : index
    %13 = vector.load %arg2[%c0_4, %c0_5] : memref<128x128xbf16, #tpu.memory_space<vmem>>, vector<128x128xbf16>
    %cst_6 = arith.constant dense<0.000000e+00> : vector<2x128xf32>
    %14 = tpu.matmul %12, %13, %cst_6 {dimension_numbers = #tpu.dot_dimension_numbers<[1], [0], [0], [1], [0, 0, 1, 1], [], []>} : vector<2x128xbf16>, vector<128x128xbf16>, vector<2x128xf32> -> vector<2x128xf32>
    %c0_7 = arith.constant 0 : index
    %c0_8 = arith.constant 0 : index
    %15 = vector.load %arg3[%c0_7, %c0_8] : memref<1x128xf32, #tpu.memory_space<vmem>>, vector<1x128xf32>
    %16 = vector.broadcast %15 : vector<1x128xf32> to vector<2x128xf32>
    %17 = arith.addf %14, %16 : vector<2x128xf32>
    %cst_9 = arith.constant 0.000000e+00 : f32
    %18 = vector.broadcast %cst_9 : f32 to vector<2x128xf32>
    %19 = arith.maximumf %17, %18 : vector<2x128xf32>
    %c0_10 = arith.constant 0 : index
    %c0_11 = arith.constant 0 : index
    %20 = vector.load %arg0[%c0_10, %c0_11] : memref<2x2048xf32, #tpu.memory_space<vmem>>, vector<2x2048xf32>
    %21 = arith.truncf %20 : vector<2x2048xf32> to vector<2x2048xbf16>
    %c0_12 = arith.constant 0 : index
    %c0_13 = arith.constant 0 : index
    %22 = vector.load %arg4[%c0_12, %c0_13] : memref<2048x512xbf16, #tpu.memory_space<vmem>>, vector<2048x512xbf16>
    %cst_14 = arith.constant dense<0.000000e+00> : vector<2x512xf32>
    %23 = tpu.matmul %21, %22, %cst_14 {dimension_numbers = #tpu.dot_dimension_numbers<[1], [0], [0], [1], [0, 0, 1, 1], [], []>} : vector<2x2048xbf16>, vector<2048x512xbf16>, vector<2x512xf32> -> vector<2x512xf32>
    %24 = arith.truncf %19 : vector<2x128xf32> to vector<2x128xbf16>
    %c0_15 = arith.constant 0 : index
    %c0_16 = arith.constant 0 : index
    %25 = vector.load %arg5[%c0_15, %c0_16] : memref<128x512xbf16, #tpu.memory_space<vmem>>, vector<128x512xbf16>
    %cst_17 = arith.constant dense<0.000000e+00> : vector<2x512xf32>
    %26 = tpu.matmul %24, %25, %cst_17 {dimension_numbers = #tpu.dot_dimension_numbers<[1], [0], [0], [1], [0, 0, 1, 1], [], []>} : vector<2x128xbf16>, vector<128x512xbf16>, vector<2x512xf32> -> vector<2x512xf32>
    %27 = arith.addf %23, %26 : vector<2x512xf32>
    %c0_18 = arith.constant 0 : index
    %c0_19 = arith.constant 0 : index
    %28 = vector.load %arg6[%c0_18, %c0_19] : memref<1x512xf32, #tpu.memory_space<vmem>>, vector<1x512xf32>
    %29 = vector.broadcast %28 : vector<1x512xf32> to vector<2x512xf32>
    %30 = arith.addf %27, %29 : vector<2x512xf32>
    %cst_20 = arith.constant 0.000000e+00 : f32
    %31 = vector.broadcast %cst_20 : f32 to vector<2x512xf32>
    %32 = arith.maximumf %30, %31 : vector<2x512xf32>
    %33 = arith.truncf %32 : vector<2x512xf32> to vector<2x512xbf16>
    %c0_21 = arith.constant 0 : index
    %c0_22 = arith.constant 0 : index
    %34 = vector.load %arg7[%c0_21, %c0_22] : memref<512x256xbf16, #tpu.memory_space<vmem>>, vector<512x256xbf16>
    %cst_23 = arith.constant dense<0.000000e+00> : vector<2x256xf32>
    %35 = tpu.matmul %33, %34, %cst_23 {dimension_numbers = #tpu.dot_dimension_numbers<[1], [0], [0], [1], [0, 0, 1, 1], [], []>} : vector<2x512xbf16>, vector<512x256xbf16>, vector<2x256xf32> -> vector<2x256xf32>
    %c0_24 = arith.constant 0 : index
    %c0_25 = arith.constant 0 : index
    %36 = vector.load %arg8[%c0_24, %c0_25] : memref<1x256xf32, #tpu.memory_space<vmem>>, vector<1x256xf32>
    %37 = vector.broadcast %36 : vector<1x256xf32> to vector<2x256xf32>
    %38 = arith.addf %35, %37 : vector<2x256xf32>
    %cst_26 = arith.constant 0.000000e+00 : f32
    %39 = vector.broadcast %cst_26 : f32 to vector<2x256xf32>
    %40 = arith.maximumf %38, %39 : vector<2x256xf32>
    %41 = arith.truncf %40 : vector<2x256xf32> to vector<2x256xbf16>
    %c0_27 = arith.constant 0 : index
    %c0_28 = arith.constant 0 : index
    %42 = vector.load %arg9[%c0_27, %c0_28] : memref<256x4xbf16, #tpu.memory_space<vmem>>, vector<256x4xbf16>
    %cst_29 = arith.constant dense<0.000000e+00> : vector<2x4xf32>
    %43 = tpu.matmul %41, %42, %cst_29 {dimension_numbers = #tpu.dot_dimension_numbers<[1], [0], [0], [1], [0, 0, 1, 1], [], []>} : vector<2x256xbf16>, vector<256x4xbf16>, vector<2x4xf32> -> vector<2x4xf32>
    %c0_30 = arith.constant 0 : index
    %c0_31 = arith.constant 0 : index
    %44 = vector.load %arg10[%c0_30, %c0_31] : memref<1x4xf32, #tpu.memory_space<vmem>>, vector<1x4xf32>
    %45 = vector.broadcast %44 : vector<1x4xf32> to vector<2x4xf32>
    %46 = arith.addf %43, %45 : vector<2x4xf32>
    %c0_32 = arith.constant 0 : index
    %c0_33 = arith.constant 0 : index
    %47 = vector.load %arg11[%c0_32, %c0_33] : memref<2x4xf32, #tpu.memory_space<vmem>>, vector<2x4xf32>
    tpu.vector_store %arg11[%c0_32, %c0_33], %46 {strides = array<i32>} : memref<2x4xf32, #tpu.memory_space<vmem>>, vector<2x4xf32>,
    return
  }
}

</mosaic_0001>

<bundles_post_ra>
// kernel: _lambda_.6
= control target key start
LH: loop header
LB: loop body
LE: loop exit
PB: predicated region body
PF: predicated region fallthrough
CT: control target
= control target key end

     0   :  { %9 = vsyncpa [#allocation3], 0  ;;  %s332_s0 = inlined_call_operand.vmem [shape: f32[32,8], index: 0, kind: input, shape index: {}]   ;;  %s333_s1 = inlined_call_operand.hbm [shape: f32[8,128], index: 1, kind: input, shape index: {}]   ;;  %s334_s2 = inlined_call_operand.hbm [shape: f32[1,128], index: 2, kind: input, shape index: {}]   ;;  %s335_s3 = inlined_call_operand.hbm [shape: f32[16,128], index: 3, kind: input, shape index: {}]   ;;  %s336_s4 = inlined_call_operand.vmem [shape: f32[32,128], index: 4, kind: output, shape index: {}]  }
   0x1   :  { %10 = vsyncpa [#allocation5], 0  ;;  %s269_s15 = smov [#allocation4]   ;;  %s270_s17 = smov [#allocation2]  }
   0x2   :  { %s29_s16 = sshll.u32 %s269_s15, 4  ;;  %s19_s18 = sshll.u32 %s270_s17, 4  ;;  %s30_s16 = int_to_ptr.vmem [resolvable:$true] %s29_s16  ;;  %s20_s18 = int_to_ptr.vmem [resolvable:$true] %s19_s18 }
   0x3   :  { %s213_s19 = scalar_lea.vmem %s30_s16, 16  ;;  %s217_s20 = scalar_lea.vmem %s30_s16, 32 }
   0x4   :  { %p214_p0 = scmp.ne.s32.totalorder %s30_s16, %s213_s19  ;;  %p218_p1 = scmp.lt.s32.totalorder %s30_s16, %s30_s16 }
   0x5   :  { %p219_p2 = scmp.lt.s32.totalorder %s217_s20, %s213_s19 }
   0x7   :  { %p220_p3 = por %p219_p2, %p218_p1 }
   0x9   :  { %p221_p4 = pnand %p220_p3, %p214_p0 }
   0xb   :  { %224 = shalt.err (!%p221_p4)
}
   0xc   :  { %32 = dma.hbm_to_vmem [thread:$0]  %s334_s2, 16, %s30_s16, [#allocation5]  }
   0xd   :  { %s233_s23 = scalar_lea.vmem %s20_s18, 128  ;;  %p238_p6 = scmp.lt.s32.totalorder %s20_s18, %s20_s18 }
   0xe   :  { %p234_p5 = scmp.ne.s32.totalorder %s20_s18, %s233_s23  ;;  %p239_p7 = scmp.lt.s32.totalorder %s233_s23, %s233_s23 }
  0x10   :  { %p240_p8 = por %p239_p7, %p238_p6 }
  0x12   :  { %p241_p9 = pnand %p240_p8, %p234_p5 }
  0x14   :  { %244 = shalt.err (!%p241_p9)
}
  0x15   :  { %22 = dma.hbm_to_vmem [thread:$0]  %s333_s1, 128, %s20_s18, [#allocation3]  }
  0x16   :  { %s271_s26 = smov [#allocation6]  }
  0x17   :  { %s38_s27 = sshll.u32 %s271_s26, 4  ;;  %s39_s27 = int_to_ptr.vmem [resolvable:$true] %s38_s27 }
  0x18   :  { %s253_s28 = scalar_lea.vmem %s39_s27, 256  ;;  %p258_p11 = scmp.lt.s32.totalorder %s39_s27, %s39_s27 }
  0x19   :  { %p254_p10 = scmp.ne.s32.totalorder %s39_s27, %s253_s28  ;;  %p259_p12 = scmp.lt.s32.totalorder %s253_s28, %s253_s28 }
  0x1b   :  { %p260_p13 = por %p259_p12, %p258_p11 }
  0x1d   :  { %p261_p0 = pnand %p260_p13, %p254_p10 }
  0x1f   :  { %264 = shalt.err (!%p261_p0)
}
  0x20   :  { %s272_s2 = smov 128   ;;  %s273_s29 = smov 8  }
  0x21   :  { %44 = dma.hbm_to_vmem [thread:$0]  %s335_s3, 256, %s39_s27, [#allocation5], %s272_s2, %s272_s2, %s273_s29  }
  0x22   :  { %265 = dma.done.wait [#allocation3], 128  }
  0x23   :  { %266 = vsyncadd [#allocation3], 4294967168 }
  0x24   :  { %267 = dma.done.wait [#allocation5], 272  }
  0x25   :  { %268 = vsyncadd [#allocation5], 4294967024  ;;  %v60_v0 = vld [vmem:[#allocation2] sm:$0xff]  ;;  %vm68_vm0 = vcmask 64512   ;;  %v58_v2 = vld [vmem:[%s332_s0 + $0x10] sm:$0xff] }
  0x26   :  { %v56_v1 = vld [vmem:[%s332_s0] sm:$0xff]  ;;  %190 = vmatprep.subr.mxu0 %v60_v0  ;;  %198 = vmatprep.subr.mxu1 %v60_v0  ;;  %v57_v3 = vld [vmem:[%s332_s0 + $0x8] sm:$0xff]  ;;  %v59_v4 = vld [vmem:[%s332_s0 + $0x18] sm:$0xff] }
  0x27   :  { %191 = vmatpush3.msra.mxu0 %v60_v0  ;;  %199 = vmatpush3.msra.mxu1 %v60_v0  ;;  %v180_v5 = vld [vmem:[#allocation4] ss:$0 sm:$0xff]  ;;  %v55_v6 = vld [vmem:[#allocation6 + $0x8] sm:$0xff]  ;;  %v54_v11 = vld [vmem:[#allocation6] sm:$0xff] }
  0x28   :  { %192 = vmatprep.mubr.msk.f32.mxu0 %vm68_vm0, %v56_v1  ;;  %195 = vmatprep.mubr.msk.f32.mxu1 %vm68_vm0, %v58_v2 }
  0x29   :  { %193 = vmatmul.mubr.msk.f32.vlgmr.msra.gmra.mxu0 %vm68_vm0, %v57_v3  ;;  %196 = vmatmul.mubr.msk.f32.vlgmr.msra.gmra.mxu1 %vm68_vm0, %v59_v4 }
  0xe9   :  { %v194_v7 = vpop.f32.mrf.mxu0  ;;  %v197_v8 = vpop.f32.mrf.mxu1 }
  0xea   :  { %v153_v9 = vadd.f32 %v194_v7, %v180_v5  ;;  %v163_v10 = vadd.f32 %v197_v8, %v180_v5 }
  0xeb   :  { %v147_v12 = vpop.f32.mrf.mxu0  ;;  %v157_v13 = vpop.f32.mrf.mxu1 }
  0xec   :  { %v167_v14 = vadd.f32 %v153_v9, %v55_v6  ;;  %v169_v15 = vadd.f32 %v163_v10, %v55_v6  ;;  %v148_v16 = vadd.f32 %v180_v5, %v147_v12  ;;  %v158_v17 = vadd.f32 %v180_v5, %v157_v13 }
  0xee   :  { %171 = vst [vmem:[%s336_s4 + $0x8] sm:$0xff] %v167_v14  ;;  %173 = vst [vmem:[%s336_s4 + $0x18] sm:$0xff] %v169_v15  ;;  %v166_v18 = vadd.f32 %v148_v16, %v54_v11  ;;  %v168_v19 = vadd.f32 %v158_v17, %v54_v11 }
  0xf0   :  { %170 = vst [vmem:[%s336_s4] sm:$0xff] %v166_v18  ;;  %172 = vst [vmem:[%s336_s4 + $0x10] sm:$0xff] %v168_v19 }
  0xf1   :  { %178 = vsyncpa [#allocation3], 1 }
  0xf2   :  { %179 = vsyncpa [#allocation5], 1 }

// kernel: _lambda_.5
= control target key start
LH: loop header
LB: loop body
LE: loop exit
PB: predicated region body
PF: predicated region fallthrough
CT: control target
= control target key end

     0   :  { %v40_v0 = vlaneseq  ;;  %vm118_vm0 = vcmask 1046528   ;;  %s1466_s21 = smov 1   ;;  %vm97_vm1 = vcmask 1040384   ;;  %vm187_vm2 = vcmask 1041408   ;;  %s1963_s0 = inlined_call_operand.vmem [shape: f32[32,1], index: 0, kind: input, shape index: {}]   ;;  %s1964_s1 = inlined_call_operand.vmem [shape: bf16[3,64], index: 1, kind: input, shape index: {}]   ;;  %s1965_s4 = inlined_call_operand.vmem [shape: bf16[192,128], index: 4, kind: input, shape index: {}]   ;;  %s1966_s2 = inlined_call_operand.vmem [shape: f32[1,64], index: 2, kind: input, shape index: {}]   ;;  %s1967_s3 = inlined_call_operand.vmem [shape: f32[1,64], index: 3, kind: input, shape index: {}]   ;;  %s1968_s7 = inlined_call_operand.vmem [shape: bf16[384,256], index: 7, kind: input, shape index: {}]   ;;  %s1969_s5 = inlined_call_operand.vmem [shape: f32[1,128], index: 5, kind: input, shape index: {}]   ;;  %s1970_s6 = inlined_call_operand.vmem [shape: f32[1,128], index: 6, kind: input, shape index: {}]   ;;  %s1971_s8 = inlined_call_operand.vmem [shape: f32[1,256], index: 8, kind: input, shape index: {}]   ;;  %s1972_s9 = inlined_call_operand.vmem [shape: f32[1,256], index: 9, kind: input, shape index: {}]   ;;  %s1973_s10 = inlined_call_operand.vmem [shape: f32[16,256], index: 10, kind: output, shape index: {}]  }
   0x1   :  { %v36_v1 = vld [vmem:[%s1963_s0] sm:$0xff]  ;;  %v37_v2 = vld [vmem:[%s1963_s0 + $0x8] sm:$0xff]  ;;  %v38_v3 = vld [vmem:[%s1963_s0 + $0x10] sm:$0xff]  ;;  %v1467_v25 = vmov 65535   ;;  %vm167_vm6 = vcmask 7168   ;;  %vm172_vm8 = vcmask 15360  }
   0x2   :  { %v99_v4 = vrot.slane %v37_v2, 7  ;;  %v120_v5 = vrot.slane %v37_v2, 1  ;;  %v1352_v6 = vpack.i.bf16 %v37_v2, %v36_v1  ;;  %v98_v7 = vrot.slane %v36_v1, 7  ;;  %v39_v8 = vld [vmem:[%s1963_s0 + $0x18] sm:$0xff]  ;;  %v179_v21 = vld [vmem:[%s1964_s1] sm:$0x3] }
   0x3   :  { %v119_v9 = vrot.slane %v36_v1, 1  ;;  %v1539_v10 = vshrl.u32 %v40_v0, 7  ;;  %v101_v11 = vrot.slane %v38_v3, 7  ;;  %v122_v12 = vrot.slane %v38_v3, 1  ;;  %s1468_s1 = smov 2  }
   0x4   :  { %1353 = vrot.lane.b32.xlu0 %v1352_v6, %s1466_s21  ;;  %v103_v13 = vrot.slane %v39_v8, 7  ;;  %v1357_v14 = vpack.i.bf16 %v39_v8, %v38_v3  ;;  %v124_v15 = vrot.slane %v39_v8, 1  ;;  %v188_v26 = vsel %vm97_vm1, 4294967295, %v1467_v25  ;;  %v1383_v6 = vld [vmem:[%s1965_s4 + $0x30] sm:$0xff]   ;;  %v1385_v8 = vld [vmem:[%s1965_s4 + $0x20] sm:$0xff]  }
   0x5   :  { %v42_v16 = vadd.s32 8, %v1539_v10  ;;  %v44_v17 = vadd.s32 24, %v1539_v10  ;;  %v123_v18 = vsel %vm118_vm0, %v120_v5, %v122_v12  ;;  %v102_v20 = vsel %vm97_vm1, %v99_v4, %v101_v11 }
   0x6   :  { %v130_v19 = vsel %vm118_vm0, %v124_v15, 0.0  ;;  %v104_v24 = vsel %vm97_vm1, %v101_v11, %v103_v13  ;;  %v121_v27 = vsel %vm118_vm0, %v119_v9, %v120_v5  ;;  %v189_v28 = vsel %vm187_vm2, %v188_v26, 0  ;;  %v1382_v5 = vld [vmem:[%s1965_s4 + $0x38] sm:$0xff]   ;;  %v1387_v11 = vld [vmem:[%s1965_s4 + $0x10] sm:$0xff]   ;;  %v1389_v13 = vld [vmem:[%s1965_s4] sm:$0xff]  }
   0x7   :  { %v56_v22 = vand.u32 15, %v42_v16  ;;  %v70_v23 = vand.u32 15, %v44_v17  ;;  %v100_v29 = vsel %vm97_vm1, %v98_v7, %v99_v4  ;;  %v191_v32 = vand.u32 %v189_v28, %v179_v21  ;;  %v1386_v9 = vld [vmem:[%s1965_s4 + $0x18] sm:$0xff]   ;;  %v1255_v16 = vld [vmem:[%s1966_s2] ss:$0 sm:$0xff]  ;;  %v1392_v17 = vld [vmem:[%s1965_s4 + $0x48] sm:$0xff]  }
   0x8   :  { %1358 = vrot.lane.b32.xlu0 %v1357_v14, %s1466_s21  ;;  %v125_v34 = vsel %vm118_vm0, %v122_v12, %v124_v15  ;;  %v43_v38 = vadd.s32 16, %v1539_v10  ;;  %v49_v39 = vand.u32 15, %v1539_v10  ;;  %v109_v42 = vsel %vm97_vm1, 0.0, %v98_v7  ;;  %v1384_v7 = vld [vmem:[%s1965_s4 + $0x28] sm:$0xff]   ;;  %v1390_v14 = vld [vmem:[%s1965_s4 + $0x58] sm:$0xff]   ;;  %v1391_v15 = vld [vmem:[%s1965_s4 + $0x50] sm:$0xff]  }
   0x9   :  { %vm1554_vm3 = vcmp.eq.s32.totalorder %v56_v22, 15  ;;  %vm1558_vm4 = vcmp.eq.s32.totalorder %v70_v23, 15  ;;  %1340 = vmatprep.subr.bf16.mxu0 %v191_v32  ;;  %vm180_vm9 = vcmask 23552   ;;  %v1469_v4 = vmov 0   ;;  %v1388_v12 = vld [vmem:[%s1965_s4 + $0x8] sm:$0xff]   ;;  %s1470_s2 = smov 64  }
   0xa   :  { %v136_v33 = vsel %vm1554_vm3, 0.0, %v123_v18  ;;  %v138_v35 = vsel %vm1558_vm4, 0.0, %v130_v19  ;;  %1341 = vmatpush3.bf16.msra.mxu0 %v191_v32  ;;  %v63_v41 = vand.u32 15, %v43_v38  ;;  %vm1570_vm5 = vcmp.eq.s32.totalorder %v49_v39, 0  ;;  %427 = vmatprep.subr.bf16.mxu1 %v1469_v4  ;;  %v1256_v19 = vld [vmem:[%s1967_s3] ss:$0 sm:$0xff]  ;;  %vm1329_vm14 = vmneg %vm1554_vm3 }
   0xb   :  { %v1362_v36 = vpack.i.bf16 %v136_v33, %v121_v27  ;;  %v1367_v37 = vpack.i.bf16 %v138_v35, %v125_v34  ;;  %v114_v47 = vsel %vm1570_vm5, 0.0, %v109_v42  ;;  %428 = vmatpush1.bf16.msra.mxu1 %v1382_v5  ;;  %vm316_vm10 = vcmask 523264   ;;  %v1403_v5 = vld [vmem:[%s1968_s7 + $0x40] ss:$8 sps:$4 sm:$0xff]   ;;  %vm1321_vm11 = vmneg %vm1570_vm5 }
   0xc   :  { %vm1576_vm7 = vcmp.eq.s32.totalorder %v63_v41, 0  ;;  %429 = vmatprep.subr.bf16.mxu1 %v1469_v4  ;;  %vm1471_vm12 = vmmov 1  }
   0xd   :  { %1363 = vrot.lane.b32.xlu1 %v1362_v36, %s1468_s1  ;;  %v116_v56 = vsel %vm1576_vm7, 0.0, %v102_v20  ;;  %vm1322_vm13 = vmpackc.low %vm1471_vm12, %vm1321_vm11  ;;  %vm1220_vm11 = vcmask 1043456  }
   0xe   :  { %vm1330_vm15 = vmpackc.low %vm1329_vm14, %vm1471_vm12 }
   0xf   :  { %430 = vmatpush1.bf16.msra.mxu1 %v1383_v6  ;;  %v1408_v6 = vld [vmem:[%s1968_s7 + $0x34] ss:$8 sps:$4 sm:$0xff]  }
  0x10   :  { %431 = vmatprep.subr.bf16.mxu1 %v1469_v4 }
  0x11   :  { %1368 = vrot.lane.b32.xlu1 %v1367_v37, %s1468_s1 }
  0x13   :  { %432 = vmatpush1.bf16.msra.mxu1 %v1384_v7  ;;  %v1426_v7 = vld [vmem:[%s1968_s7 + $0x174] ss:$8 sps:$4 sm:$0xff]  }
  0x14   :  { %433 = vmatprep.subr.bf16.mxu1 %v1469_v4 }
  0x17   :  { %434 = vmatpush1.bf16.msra.mxu1 %v1385_v8  ;;  %v1406_v8 = vld [vmem:[%s1968_s7 + $0x30] ss:$8 sps:$4 sm:$0xff]  }
  0x18   :  { %435 = vmatprep.subr.bf16.mxu1 %v1469_v4 }
  0x1b   :  { %436 = vmatpush1.bf16.msra.mxu1 %v1386_v9  ;;  %v1411_v9 = vld [vmem:[%s1968_s7 + $0x24] ss:$8 sps:$4 sm:$0xff]  }
  0x1c   :  { %437 = vmatprep.subr.bf16.mxu1 %v1469_v4 }
  0x1f   :  { %438 = vmatpush1.bf16.msra.mxu1 %v1387_v11  ;;  %v1409_v11 = vld [vmem:[%s1968_s7 + $0x20] ss:$8 sps:$4 sm:$0xff]  }
  0x20   :  { %439 = vmatprep.subr.bf16.mxu1 %v1469_v4 }
  0x23   :  { %440 = vmatpush1.bf16.msra.mxu1 %v1388_v12  ;;  %v1414_v12 = vld [vmem:[%s1968_s7 + $0x14] ss:$8 sps:$4 sm:$0xff]  }
  0x24   :  { %441 = vmatprep.subr.bf16.mxu1 %v1469_v4 }
  0x27   :  { %442 = vmatpush1.bf16.msra.mxu1 %v1389_v13  ;;  %v1412_v13 = vld [vmem:[%s1968_s7 + $0x10] ss:$8 sps:$4 sm:$0xff]  }
  0x28   :  { %451 = vmatprep.subr.bf16.mxu1 %v1469_v4 }
  0x2b   :  { %452 = vmatpush2.bf16.msra.mxu1 %v1390_v14  ;;  %v1417_v14 = vld [vmem:[%s1968_s7 + $0x4] ss:$8 sps:$4 sm:$0xff]  }
  0x2c   :  { %453 = vmatprep.subr.bf16.mxu1 %v1469_v4 }
  0x2f   :  { %454 = vmatpush2.bf16.msra.mxu1 %v1391_v15  ;;  %v1415_v15 = vld [vmem:[%s1968_s7] ss:$8 sps:$4 sm:$0xff]  }
  0x30   :  { %455 = vmatprep.subr.bf16.mxu1 %v1469_v4 }
  0x33   :  { %456 = vmatpush2.bf16.msra.mxu1 %v1392_v17  ;;  %v1418_v17 = vld [vmem:[%s1968_s7 + $0xf0] ss:$8 sps:$4 sm:$0xff]  }
  0x34   :  { %457 = vmatprep.subr.bf16.mxu1 %v1469_v4 }
  0x76   :  { %v1354_v40 = vpop.permute.xlu0 %1353 }
  0x77   :  { %v1356_v44 = vunpack.i.h.bf16 %v1354_v40  ;;  %v1355_v45 = vunpack.i.l.bf16 %v1354_v40 }
  0x79   :  { %v168_v52 = vsel %vm167_vm6, %v114_v47, %v1355_v45  ;;  %v169_v53 = vsel %vm167_vm6, %v100_v29, %v1356_v44 }
  0x7a   :  { %v1359_v46 = vpop.permute.xlu0 %1358 }
  0x7b   :  { %v1361_v50 = vunpack.i.h.bf16 %v1359_v46  ;;  %v1360_v51 = vunpack.i.l.bf16 %v1359_v46 }
  0x7d   :  { %v171_v59 = vsel %vm167_vm6, %v104_v24, %v1361_v50  ;;  %v170_v60 = vsel %vm167_vm6, %v116_v56, %v1360_v51  ;;  %v1393_v24 = vld [vmem:[%s1965_s4 + $0x40] sm:$0xff]   ;;  %vm1333_vm6 = vmneg %vm1558_vm4 }
  0x7e   :  { %458 = vmatpush2.bf16.msra.mxu1 %v1393_v24 }
  0x7f   :  { %v1364_v49 = vpop.permute.xlu1 %1363  ;;  %885 = vmatprep.subr.bf16.mxu1 %v1426_v7 }
  0x80   :  { %v1366_v54 = vunpack.i.h.bf16 %v1364_v49  ;;  %v1365_v55 = vunpack.i.l.bf16 %v1364_v49 }
  0x82   :  { %v173_v57 = vsel %vm172_vm8, %v168_v52, %v1365_v55  ;;  %v174_v58 = vsel %vm172_vm8, %v169_v53, %v1366_v54 }
  0x83   :  { %v1369_v61 = vpop.permute.xlu1 %1368  ;;  %v177_v62 = vpack.c.bf16 %v174_v58, %v173_v57 }
  0x84   :  { %v1371_v63 = vunpack.i.h.bf16 %v1369_v61  ;;  %v1370_v0 = vunpack.i.l.bf16 %v1369_v61 }
  0x85   :  { %1342 = vmatprep.mubr.msk.bf16.mxu0 %vm180_vm9, %v177_v62  ;;  %v1396_v62 = vld [vmem:[%s1968_s7 + $0x74] ss:$8 sps:$4 sm:$0xff]  }
  0x86   :  { %v176_v1 = vsel %vm172_vm8, %v171_v59, %v1371_v63  ;;  %v175_v2 = vsel %vm172_vm8, %v170_v60, %v1370_v0  ;;  %v1394_v60 = vld [vmem:[%s1968_s7 + $0x70] ss:$8 sps:$4 sm:$0xff]   ;;  %v1399_v63 = vld [vmem:[%s1968_s7 + $0x64] ss:$8 sps:$4 sm:$0xff]   ;;  %832 = vmatprep.subr.bf16.mxu0 %v1396_v62  ;;  %v1397_v0 = vld [vmem:[%s1968_s7 + $0x60] ss:$8 sps:$4 sm:$0xff]  }
  0x87   :  { %v178_v3 = vpack.c.bf16 %v176_v1, %v175_v2  ;;  %v1402_v1 = vld [vmem:[%s1968_s7 + $0x54] ss:$8 sps:$4 sm:$0xff]   ;;  %v1400_v2 = vld [vmem:[%s1968_s7 + $0x50] ss:$8 sps:$4 sm:$0xff]   ;;  %v1457_v62 = vld [vmem:[%s1968_s7 + $0x80] ss:$8 sps:$4 sm:$0xff]  }
  0x88   :  { %vm1015_vm8 = vcmask 1045508  }
  0x89   :  { %1343 = vmatmul.mubr.msk.bf16.vlgmr.msra.gmra.mxu0 %vm180_vm9, %v178_v3  ;;  %v1405_v3 = vld [vmem:[%s1968_s7 + $0x44] ss:$8 sps:$4 sm:$0xff]   ;;  %vm1030_vm9 = vcmask 1047558  }
  0x8a   :  { %833 = vmatpush1.bf16.msra.mxu0 %v1394_v60  ;;  %v1459_v60 = vld [vmem:[%s1968_s7 + $0x84] ss:$8 sps:$4 sm:$0xff]  }
  0x8b   :  { %834 = vmatprep.subr.bf16.mxu0 %v1399_v63  ;;  %v1460_v63 = vld [vmem:[%s1968_s7 + $0x110] ss:$8 sps:$4 sm:$0xff]  }
  0x8e   :  { %835 = vmatpush1.bf16.msra.mxu0 %v1397_v0  ;;  %v1465_v0 = vld [vmem:[%s1968_s7 + $0x104] ss:$8 sps:$4 sm:$0xff]  }
  0x8f   :  { %836 = vmatprep.subr.bf16.mxu0 %v1402_v1  ;;  %v1463_v1 = vld [vmem:[%s1968_s7 + $0x100] ss:$8 sps:$4 sm:$0xff]  }
  0x92   :  { %837 = vmatpush1.bf16.msra.mxu0 %v1400_v2  ;;  %v1271_v2 = vld [vmem:[%s1969_s5] ss:$0 sm:$0xff] }
  0x93   :  { %838 = vmatprep.subr.bf16.mxu0 %v1405_v3 }
  0x96   :  { %839 = vmatpush1.bf16.msra.mxu0 %v1403_v5  ;;  %v1272_v5 = vld [vmem:[%s1970_s6] ss:$0 sm:$0xff] }
  0x97   :  { %840 = vmatprep.subr.bf16.mxu0 %v1408_v6 }
  0x9a   :  { %841 = vmatpush1.bf16.msra.mxu0 %v1406_v8 }
  0x9b   :  { %842 = vmatprep.subr.bf16.mxu0 %v1411_v9 }
  0x9e   :  { %843 = vmatpush1.bf16.msra.mxu0 %v1409_v11 }
  0x9f   :  { %844 = vmatprep.subr.bf16.mxu0 %v1414_v12 }
  0xa2   :  { %845 = vmatpush1.bf16.msra.mxu0 %v1412_v13 }
  0xa3   :  { %846 = vmatprep.subr.bf16.mxu0 %v1417_v14 }
  0xa6   :  { %847 = vmatpush1.bf16.msra.mxu0 %v1415_v15 }
 0x149   :  { %v1344_v18 = vpop.f32.mrf.mxu0 }
 0x14a   :  { %v251_v20 = vmul.f32 %v1344_v18, %v1255_v16  ;;  %v1423_v18 = vld [vmem:[%s1968_s7 + $0xe4] ss:$8 sps:$4 sm:$0xff]  }
 0x14b   :  { %v227_v21 = vpop.f32.mrf.mxu0 }
 0x14c   :  { %v262_v22 = vadd.f32 %v1256_v19, %v251_v20  ;;  %v249_v23 = vmul.f32 %v1255_v16, %v227_v21  ;;  %v1429_v20 = vld [vmem:[%s1968_s7 + $0xd4] ss:$8 sps:$4 sm:$0xff]   ;;  %v1427_v21 = vld [vmem:[%s1968_s7 + $0xd0] ss:$8 sps:$4 sm:$0xff]  }
 0x14d   :  { %v1345_v25 = vpop.f32.mrf.mxu0 }
 0x14e   :  { %v260_v26 = vadd.f32 %v1256_v19, %v249_v23  ;;  %v252_v27 = vmul.f32 %v1345_v25, %v1255_v16  ;;  %v266_v28 = vmax.f32 %v262_v22, 0.0  ;;  %v1435_v22 = vld [vmem:[%s1968_s7 + $0xc4] ss:$8 sps:$4 sm:$0xff]   ;;  %v1433_v23 = vld [vmem:[%s1968_s7 + $0xc0] ss:$8 sps:$4 sm:$0xff]  }
 0x14f   :  { %v230_v29 = vpop.f32.mrf.mxu0 }
 0x150   :  { %v263_v32 = vadd.f32 %v1256_v19, %v252_v27  ;;  %v1644_v33 = vmax.f32 %v260_v26, 0.0  ;;  %v250_v34 = vmul.f32 %v1255_v16, %v230_v29  ;;  %v275_v36 = vrot.slane %v266_v28, 7  ;;  %v1420_v16 = vld [vmem:[%s1968_s7 + $0xf4] ss:$8 sps:$4 sm:$0xff]  }
 0x151   :  { %v291_v38 = vrot.slane %v266_v28, 1  ;;  %848 = vmatprep.subr.bf16.mxu0 %v1420_v16 }
 0x152   :  { %v267_v35 = vmax.f32 %v263_v32, 0.0  ;;  %v261_v37 = vadd.f32 %v1256_v19, %v250_v34  ;;  %v272_v42 = vrot.slane %v1644_v33, 7  ;;  %v288_v45 = vrot.slane %v1644_v33, 1  ;;  %849 = vmatpush2.bf16.msra.mxu0 %v1418_v17  ;;  %v1421_v19 = vld [vmem:[%s1968_s7 + $0xe0] ss:$8 sps:$4 sm:$0xff]  }
 0x153   :  { %850 = vmatprep.subr.bf16.mxu0 %v1423_v18 }
 0x154   :  { %v277_v39 = vrot.slane %v267_v35, 7  ;;  %v293_v40 = vrot.slane %v267_v35, 1  ;;  %v1377_v41 = vpack.i.bf16 %v267_v35, %v266_v28  ;;  %v265_v44 = vmax.f32 %v261_v37, 0.0 }
 0x155   :  { %v283_v27 = vsel %vm97_vm1, 0.0, %v272_v42 }
 0x156   :  { %1378 = vrot.lane.b32.xlu1 %v1377_v41, %s1470_s2  ;;  %v294_v46 = vsel %vm118_vm0, %v291_v38, %v293_v40  ;;  %v299_v47 = vsel %vm118_vm0, %v293_v40, 0.0  ;;  %v1651_v49 = vsel %vm97_vm1, %v275_v36, %v277_v39  ;;  %v273_v50 = vrot.slane %v265_v44, 7  ;;  %851 = vmatpush2.bf16.msra.mxu0 %v1421_v19  ;;  %v1424_v40 = vld [vmem:[%s1968_s7 + $0x170] ss:$8 sps:$4 sm:$0xff]  }
 0x157   :  { %v1372_v51 = vpack.i.bf16 %v265_v44, %v1644_v33  ;;  %v289_v52 = vrot.slane %v265_v44, 1  ;;  %v303_v53 = vsel %vm1558_vm4, 0.0, %v299_v47  ;;  %852 = vmatprep.subr.bf16.mxu0 %v1429_v20  ;;  %v1430_v44 = vld [vmem:[%s1968_s7 + $0x160] ss:$8 sps:$4 sm:$0xff]   ;;  %v1441_v47 = vld [vmem:[%s1968_s7 + $0xb4] ss:$8 sps:$4 sm:$0xff]  }
 0x158   :  { %v1656_v54 = vpack.c.bf16 %v303_v53, %v294_v46  ;;  %v1663_v57 = vsel %vm97_vm1, %v272_v42, %v273_v50  ;;  %v1666_v58 = vsel %vm97_vm1, %v273_v50, %v275_v36  ;;  %v1432_v42 = vld [vmem:[%s1968_s7 + $0x164] ss:$8 sps:$4 sm:$0xff]   ;;  %v1436_v46 = vld [vmem:[%s1968_s7 + $0x150] ss:$8 sps:$4 sm:$0xff]   ;;  %v1450_v53 = vld [vmem:[%s1968_s7 + $0x134] ss:$8 sps:$4 sm:$0xff]  }
 0x159   :  { %1373 = vrot.lane.b32.xlu0 %v1372_v51, %s1470_s2  ;;  %v290_v55 = vsel %vm118_vm0, %v288_v45, %v289_v52  ;;  %v292_v56 = vsel %vm118_vm0, %v289_v52, %v291_v38  ;;  %v286_v28 = vsel %vm1576_vm7, 0.0, %v1666_v58  ;;  %v284_v38 = vsel %vm1570_vm5, 0.0, %v283_v27  ;;  %v1438_v45 = vld [vmem:[%s1968_s7 + $0x154] ss:$8 sps:$4 sm:$0xff]   ;;  %v1439_v50 = vld [vmem:[%s1968_s7 + $0xb0] ss:$8 sps:$4 sm:$0xff]   ;;  %vm1325_vm5 = vmneg %vm1576_vm7 }
 0x15a   :  { %v301_v59 = vsel %vm1554_vm3, 0.0, %v292_v56  ;;  %853 = vmatpush2.bf16.msra.mxu0 %v1427_v21  ;;  %v1442_v51 = vld [vmem:[%s1968_s7 + $0x140] ss:$8 sps:$4 sm:$0xff]   ;;  %v1447_v52 = vld [vmem:[%s1968_s7 + $0xa4] ss:$8 sps:$4 sm:$0xff]   ;;  %vm1326_vm3 = vmpackc.low %vm1471_vm12, %vm1325_vm5  ;;  %vm1000_vm4 = vcmask 1043458  }
 0x15b   :  { %v322_v61 = vpack.c.bf16 %v301_v59, %v290_v55  ;;  %854 = vmatprep.subr.bf16.mxu0 %v1435_v22  ;;  %v1448_v55 = vld [vmem:[%s1968_s7 + $0x130] ss:$8 sps:$4 sm:$0xff]   ;;  %v1453_v56 = vld [vmem:[%s1968_s7 + $0x94] ss:$8 sps:$4 sm:$0xff]   ;;  %v1454_v59 = vld [vmem:[%s1968_s7 + $0x120] ss:$8 sps:$4 sm:$0xff]  }
 0x15c   :  { %v1451_v58 = vld [vmem:[%s1968_s7 + $0x90] ss:$8 sps:$4 sm:$0xff]   ;;  %vm1334_vm7 = vmpackc.low %vm1333_vm6, %vm1471_vm12  ;;  %vm1223_vm12 = vcmask 1044480  }
 0x15d   :  { %1269 = vmatprep.mubr.msk.bf16.mxu1 %vm316_vm10, %v322_v61  ;;  %v1462_v61 = vld [vmem:[%s1968_s7 + $0x114] ss:$8 sps:$4 sm:$0xff]  }
 0x15e   :  { %855 = vmatpush2.bf16.msra.mxu0 %v1433_v23 }
 0x15f   :  { %856 = vmatprep.subr.bf16.mxu0 %v1441_v47 }
 0x162   :  { %857 = vmatpush2.bf16.msra.mxu0 %v1439_v50 }
 0x163   :  { %858 = vmatprep.subr.bf16.mxu0 %v1447_v52  ;;  %v958_v52 = vld [vmem:[%s1972_s9] sm:$0x3] }
 0x1c8   :  { %v1379_v24 = vpop.permute.xlu1 %1378 }
 0x1c9   :  { %v1381_v25 = vunpack.i.h.bf16 %v1379_v24  ;;  %v1380_v26 = vunpack.i.l.bf16 %v1379_v24 }
 0x1cb   :  { %v1374_v29 = vpop.permute.xlu0 %1373  ;;  %v319_v32 = vsel %vm316_vm10, %v286_v28, %v1380_v26  ;;  %v320_v34 = vsel %vm316_vm10, %v1651_v49, %v1381_v25  ;;  %v1444_v49 = vld [vmem:[%s1968_s7 + $0x144] ss:$8 sps:$4 sm:$0xff]  }
 0x1cc   :  { %v1376_v35 = vunpack.i.h.bf16 %v1374_v29  ;;  %v1375_v36 = vunpack.i.l.bf16 %v1374_v29  ;;  %v323_v37 = vpack.c.bf16 %v320_v34, %v319_v32 }
 0x1ce   :  { %v317_v33 = vsel %vm316_vm10, %v284_v38, %v1375_v36  ;;  %v318_v39 = vsel %vm316_vm10, %v1663_v57, %v1376_v35  ;;  %v1456_v57 = vld [vmem:[%s1968_s7 + $0x124] ss:$8 sps:$4 sm:$0xff]  }
 0x1cf   :  { %v321_v41 = vpack.c.bf16 %v318_v39, %v317_v33 }
 0x1d1   :  { %460 = vmatmul.mubr.bf16.vlgmr.msra.gmra.mxu1 %v321_v41 }
 0x1d2   :  { %1270 = vmatprep.mubr.msk.bf16.mxu1 %vm316_vm10, %v1656_v54  ;;  %886 = vmatpush1.bf16.msra.mxu1 %v1424_v40  ;;  %v1445_v54 = vld [vmem:[%s1968_s7 + $0xa0] ss:$8 sps:$4 sm:$0xff]   ;;  %vm1217_vm10 = vcmask 1042432  }
 0x1d3   :  { %887 = vmatprep.subr.bf16.mxu1 %v1432_v42  ;;  %859 = vmatpush2.bf16.msra.mxu0 %v1445_v54 }
 0x1d4   :  { %860 = vmatprep.subr.bf16.mxu0 %v1453_v56 }
 0x1d6   :  { %888 = vmatpush1.bf16.msra.mxu1 %v1430_v44 }
 0x1d7   :  { %889 = vmatprep.subr.bf16.mxu1 %v1438_v45  ;;  %861 = vmatpush2.bf16.msra.mxu0 %v1451_v58 }
 0x1d8   :  { %862 = vmatprep.subr.bf16.mxu0 %v1459_v60 }
 0x1d9   :  { %468 = vmatmul.mubr.bf16.gmra.mxu1 %v323_v37 }
 0x1da   :  { %890 = vmatpush1.bf16.msra.mxu1 %v1436_v46  ;;  %917 = vmatprep.mubr.bf16.mxu1 %v1469_v4 }
 0x1db   :  { %891 = vmatprep.subr.bf16.mxu1 %v1444_v49  ;;  %863 = vmatpush2.bf16.msra.mxu0 %v1457_v62  ;;  %v942_v49 = vsub.s32 0, %v1539_v10 }
 0x1dd   :  { %v1869_v56 = vrot.slane %v958_v52, %v942_v49 }
 0x1de   :  { %892 = vmatpush1.bf16.msra.mxu1 %v1442_v51  ;;  %v946_v51 = vsub.s32 1, %v1539_v10 }
 0x1df   :  { %893 = vmatprep.subr.bf16.mxu1 %v1450_v53 }
 0x1e0   :  { %v1874_v62 = vrot.slane %v958_v52, %v946_v51 }
 0x1e2   :  { %894 = vmatpush1.bf16.msra.mxu1 %v1448_v55 }
 0x1e3   :  { %895 = vmatprep.subr.bf16.mxu1 %v1456_v57 }
 0x1e6   :  { %896 = vmatpush1.bf16.msra.mxu1 %v1454_v59 }
 0x1e7   :  { %897 = vmatprep.subr.bf16.mxu1 %v1462_v61 }
 0x1ea   :  { %898 = vmatpush1.bf16.msra.mxu1 %v1460_v63 }
 0x1eb   :  { %899 = vmatprep.subr.bf16.mxu1 %v1465_v0 }
 0x1ee   :  { %900 = vmatpush1.bf16.msra.mxu1 %v1463_v1 }
 0x291   :  { %v461_v3 = vpop.f32.mrf.mxu1 }
 0x292   :  { %v483_v6 = vmul.f32 %v1271_v2, %v461_v3 }
 0x293   :  { %v463_v7 = vpop.f32.mrf.mxu1 }
 0x294   :  { %v494_v8 = vadd.f32 %v1272_v5, %v483_v6 }
 0x295   :  { %v464_v9 = vpop.f32.mrf.mxu1 }
 0x296   :  { %v498_v11 = vmax.f32 %v494_v8, 0.0  ;;  %v484_v12 = vmul.f32 %v1271_v2, %v464_v9 }
 0x297   :  { %v466_v13 = vpop.f32.mrf.mxu1 }
 0x298   :  { %v495_v14 = vadd.f32 %v1272_v5, %v484_v12  ;;  %v506_v15 = vrot.slane %v498_v11, 7  ;;  %v522_v32 = vrot.slane %v498_v11, 1 }
 0x299   :  { %v469_v16 = vpop.f32.mrf.mxu1 }
 0x29a   :  { %v499_v17 = vmax.f32 %v495_v14, 0.0  ;;  %v485_v18 = vmul.f32 %v1271_v2, %v469_v16  ;;  %v517_v23 = vsel %vm97_vm1, 0.0, %v506_v15 }
 0x29b   :  { %v471_v19 = vpop.f32.mrf.mxu1 }
 0x29c   :  { %v507_v20 = vrot.slane %v499_v17, 7  ;;  %v496_v21 = vadd.f32 %v1272_v5, %v485_v18  ;;  %v539_v22 = vpack.c.bf16 %v499_v17, %v498_v11  ;;  %v523_v26 = vrot.slane %v499_v17, 1 }
 0x29d   :  { %v472_v24 = vpop.f32.mrf.mxu1 }
 0x29e   :  { %v508_v25 = vsel %vm97_vm1, %v506_v15, %v507_v20  ;;  %v500_v27 = vmax.f32 %v496_v21, 0.0  ;;  %v486_v28 = vmul.f32 %v1271_v2, %v472_v24  ;;  %864 = vmatprep.mubr.bf16.mxu0 %v539_v22  ;;  %v524_v36 = vsel %vm118_vm0, %v522_v32, %v523_v26 }
 0x29f   :  { %v474_v43 = vpop.f32.mrf.mxu1  ;;  %v1323_v29 = vpack.c.bf16 %v508_v25, %v517_v23 }
 0x2a0   :  { %v525_v34 = vrot.slane %v500_v27, 1  ;;  %v497_v35 = vadd.f32 %v1272_v5, %v486_v28  ;;  %v509_v37 = vrot.slane %v500_v27, 7 }
 0x2a1   :  { %1324 = vmatmul.mubr.msk.bf16.vlgmr.msra.gmra.mxu0 %vm1322_vm13, %v1323_v29  ;;  %vm1226_vm13 = vcmask 1045504  }
 0x2a2   :  { %v526_v38 = vsel %vm118_vm0, %v523_v26, %v525_v34  ;;  %v501_v33 = vmax.f32 %v497_v35, 0.0  ;;  %v510_v42 = vsel %vm97_vm1, %v507_v20, %v509_v37 }
 0x2a3   :  { %v1331_v39 = vpack.c.bf16 %v526_v38, %v524_v36 }
 0x2a4   :  { %v511_v30 = vrot.slane %v501_v33, 7  ;;  %v527_v40 = vrot.slane %v501_v33, 1  ;;  %v542_v41 = vpack.c.bf16 %v501_v33, %v500_v27 }
 0x2a5   :  { %1332 = vmatmul.mubr.msk.bf16.vlgmr.msra.gmra.mxu1 %vm1330_vm15, %v1331_v39 }
 0x2a6   :  { %874 = vmatprep.mubr.bf16.mxu0 %v542_v41  ;;  %v512_v44 = vsel %vm97_vm1, %v509_v37, %v511_v30  ;;  %927 = vmatprep.mubr.bf16.mxu1 %v1469_v4  ;;  %v528_v48 = vsel %vm118_vm0, %v525_v34, %v527_v40  ;;  %v533_v46 = vsel %vm118_vm0, %v527_v40, 0.0  ;;  %v938_v4 = vld [vmem:[%s1971_s8] sm:$0x3] }
 0x2a7   :  { %v1327_v45 = vpack.c.bf16 %v512_v44, %v510_v42  ;;  %v1335_v47 = vpack.c.bf16 %v533_v46, %v528_v48  ;;  %v1867_v53 = vrot.slane %v938_v4, %v942_v49  ;;  %v1871_v57 = vrot.slane %v938_v4, %v946_v51 }
 0x2a9   :  { %1328 = vmatmul.mubr.msk.bf16.gmra.mxu0 %vm1326_vm3, %v1327_v45 }
 0x2ad   :  { %1336 = vmatmul.mubr.msk.bf16.gmra.mxu1 %vm1334_vm7, %v1335_v47 }
 0x361   :  { %v866_v50 = vpop.f32.mrf.mxu0 }
 0x363   :  { %v868_v31 = vpop.f32.mrf.mxu0 }
 0x365   :  { %v919_v54 = vpop.f32.mrf.mxu1  ;;  %v870_v58 = vpop.f32.mrf.mxu0 }
 0x366   :  { %v920_v55 = vadd.f32 %v919_v54, %v866_v50 }
 0x367   :  { %v921_v59 = vpop.f32.mrf.mxu1  ;;  %v872_v2 = vpop.f32.mrf.mxu0 }
 0x368   :  { %v950_v60 = vmul.f32 %v1867_v53, %v920_v55  ;;  %v922_v61 = vadd.f32 %v921_v59, %v868_v31 }
 0x369   :  { %v923_v10 = vpop.f32.mrf.mxu1  ;;  %v876_v19 = vpop.f32.mrf.mxu0 }
 0x36a   :  { %v970_v63 = vadd.f32 %v1869_v56, %v950_v60  ;;  %v951_v0 = vmul.f32 %v1871_v57, %v922_v61  ;;  %v924_v1 = vadd.f32 %v923_v10, %v870_v58 }
 0x36b   :  { %v925_v3 = vpop.f32.mrf.mxu1 }
 0x36c   :  { %v978_v5 = vmax.f32 %v970_v63, 0.0  ;;  %v971_v6 = vadd.f32 %v1874_v62, %v951_v0  ;;  %v952_v7 = vmul.f32 %v1867_v53, %v924_v1  ;;  %v926_v8 = vadd.f32 %v925_v3, %v872_v2 }
 0x36d   :  { %v929_v9 = vpop.f32.mrf.mxu1 }
 0x36e   :  { %v986_v11 = vsel %vm187_vm2, %v978_v5, -inf  ;;  %v1001_v12 = vsel %vm1000_vm4, %v978_v5, -inf  ;;  %v1016_v13 = vsel %vm1015_vm8, %v978_v5, -inf  ;;  %v1031_v14 = vsel %vm1030_vm9, %v978_v5, -inf }
 0x36f   :  { %v987_v15 = vrot.slane %v986_v11, 4  ;;  %v1002_v16 = vrot.slane %v1001_v12, 4  ;;  %v1017_v17 = vrot.slane %v1016_v13, 4  ;;  %v1032_v18 = vrot.slane %v1031_v14, 4 }
 0x370   :  { %v979_v20 = vmax.f32 %v971_v6, 0.0  ;;  %v972_v21 = vadd.f32 %v1869_v56, %v952_v7  ;;  %v953_v22 = vmul.f32 %v1871_v57, %v926_v8  ;;  %v930_v23 = vadd.f32 %v929_v9, %v876_v19 }
 0x371   :  { %v988_v24 = vmax.f32 %v986_v11, %v987_v15  ;;  %v1003_v25 = vmax.f32 %v1001_v12, %v1002_v16  ;;  %v1018_v26 = vmax.f32 %v1016_v13, %v1017_v17  ;;  %v1033_v27 = vmax.f32 %v1031_v14, %v1032_v18 }
 0x372   :  { %v993_v28 = vsel %vm187_vm2, %v979_v20, -inf  ;;  %v1008_v43 = vsel %vm1000_vm4, %v979_v20, -inf  ;;  %v1023_v29 = vsel %vm1015_vm8, %v979_v20, -inf  ;;  %v1038_v32 = vsel %vm1030_vm9, %v979_v20, -inf }
 0x373   :  { %v989_v34 = vrot.slane %v988_v24, 2  ;;  %v1004_v35 = vrot.slane %v1003_v25, 2  ;;  %v1019_v36 = vrot.slane %v1018_v26, 2  ;;  %v1034_v37 = vrot.slane %v1033_v27, 2 }
 0x374   :  { %v994_v38 = vrot.slane %v993_v28, 4  ;;  %v1009_v33 = vrot.slane %v1008_v43, 4  ;;  %v1024_v39 = vrot.slane %v1023_v29, 4  ;;  %v1039_v30 = vrot.slane %v1038_v32, 4 }
 0x375   :  { %v990_v40 = vmax.f32 %v988_v24, %v989_v34  ;;  %v1005_v41 = vmax.f32 %v1003_v25, %v1004_v35  ;;  %v1020_v42 = vmax.f32 %v1018_v26, %v1019_v36  ;;  %v1035_v44 = vmax.f32 %v1033_v27, %v1034_v37 }
 0x376   :  { %v995_v45 = vmax.f32 %v993_v28, %v994_v38  ;;  %v1010_v48 = vmax.f32 %v1008_v43, %v1009_v33  ;;  %v1025_v46 = vmax.f32 %v1023_v29, %v1024_v39  ;;  %v1040_v47 = vmax.f32 %v1038_v32, %v1039_v30 }
 0x377   :  { %v991_v49 = vrot.slane %v990_v40, 1  ;;  %v1006_v50 = vrot.slane %v1005_v41, 1  ;;  %v1021_v4 = vrot.slane %v1020_v42, 1  ;;  %v1036_v51 = vrot.slane %v1035_v44, 1 }
 0x378   :  { %v996_v31 = vrot.slane %v995_v45, 2  ;;  %v1011_v52 = vrot.slane %v1010_v48, 2  ;;  %v1026_v54 = vrot.slane %v1025_v46, 2  ;;  %v1041_v55 = vrot.slane %v1040_v47, 2 }
 0x379   :  { %v992_v58 = vmax.f32 %v990_v40, %v991_v49  ;;  %v1007_v59 = vmax.f32 %v1005_v41, %v1006_v50  ;;  %v1022_v60 = vmax.f32 %v1020_v42, %v1021_v4  ;;  %v1037_v61 = vmax.f32 %v1035_v44, %v1036_v51 }
 0x37a   :  { %v997_v10 = vmax.f32 %v995_v45, %v996_v31  ;;  %v1012_v63 = vmax.f32 %v1010_v48, %v1011_v52  ;;  %v1027_v0 = vmax.f32 %v1025_v46, %v1026_v54  ;;  %v1042_v1 = vmax.f32 %v1040_v47, %v1041_v55 }
 0x37b   :  { %v1213_v2 = vsel %vm97_vm1, %v992_v58, %v1007_v59  ;;  %v980_v3 = vmax.f32 %v972_v21, 0.0  ;;  %v973_v5 = vadd.f32 %v1874_v62, %v953_v22  ;;  %v954_v6 = vmul.f32 %v1867_v53, %v930_v23 }
 0x37c   :  { %v1215_v7 = vsel %vm187_vm2, %v1213_v2, %v1022_v60  ;;  %v998_v8 = vrot.slane %v997_v10, 1  ;;  %v1013_v9 = vrot.slane %v1012_v63, 1  ;;  %v1028_v11 = vrot.slane %v1027_v0, 1  ;;  %v931_v2 = vpop.f32.mrf.mxu1 }
 0x37d   :  { %v1218_v12 = vsel %vm1217_vm10, %v1215_v7, %v1037_v61  ;;  %v1043_v13 = vrot.slane %v1042_v1, 1  ;;  %v1045_v14 = vsel %vm187_vm2, %v980_v3, -inf  ;;  %v1059_v15 = vsel %vm1000_vm4, %v980_v3, -inf }
 0x37e   :  { %v999_v16 = vmax.f32 %v997_v10, %v998_v8  ;;  %v1014_v17 = vmax.f32 %v1012_v63, %v1013_v9  ;;  %v1029_v18 = vmax.f32 %v1027_v0, %v1028_v11  ;;  %v1046_v19 = vrot.slane %v1045_v14, 4  ;;  %v878_v9 = vpop.f32.mrf.mxu0 }
 0x37f   :  { %v1044_v20 = vmax.f32 %v1042_v1, %v1043_v13  ;;  %v1060_v21 = vrot.slane %v1059_v15, 4  ;;  %v1073_v22 = vsel %vm1015_vm8, %v980_v3, -inf  ;;  %v1087_v23 = vsel %vm1030_vm9, %v980_v3, -inf }
 0x380   :  { %v1214_v24 = vsel %vm97_vm1, %v999_v16, %v1014_v17  ;;  %v1047_v25 = vmax.f32 %v1045_v14, %v1046_v19  ;;  %v1074_v26 = vrot.slane %v1073_v22, 4  ;;  %v1088_v27 = vrot.slane %v1087_v23, 4 }
 0x381   :  { %v1216_v28 = vsel %vm187_vm2, %v1214_v24, %v1029_v18  ;;  %v1061_v43 = vmax.f32 %v1059_v15, %v1060_v21  ;;  %v981_v29 = vmax.f32 %v973_v5, 0.0  ;;  %v974_v32 = vadd.f32 %v1869_v56, %v954_v6 }
 0x382   :  { %v1219_v34 = vsel %vm1217_vm10, %v1216_v28, %v1044_v20  ;;  %v1048_v35 = vrot.slane %v1047_v25, 2  ;;  %v1075_v36 = vmax.f32 %v1073_v22, %v1074_v26  ;;  %v1089_v37 = vmax.f32 %v1087_v23, %v1088_v27 }
 0x383   :  { %v1062_v38 = vrot.slane %v1061_v43, 2  ;;  %v1052_v33 = vsel %vm187_vm2, %v981_v29, -inf  ;;  %v1066_v39 = vsel %vm1000_vm4, %v981_v29, -inf  ;;  %v1080_v30 = vsel %vm1015_vm8, %v981_v29, -inf }
 0x384   :  { %v1049_v40 = vmax.f32 %v1047_v25, %v1048_v35  ;;  %v1076_v41 = vrot.slane %v1075_v36, 2  ;;  %v1090_v42 = vrot.slane %v1089_v37, 2  ;;  %v1053_v44 = vrot.slane %v1052_v33, 4 }
 0x385   :  { %v1063_v45 = vmax.f32 %v1061_v43, %v1062_v38  ;;  %v1067_v48 = vrot.slane %v1066_v39, 4  ;;  %v1081_v46 = vrot.slane %v1080_v30, 4  ;;  %v1094_v47 = vsel %vm1030_vm9, %v981_v29, -inf  ;;  %v933_v29 = vpop.f32.mrf.mxu1 }
 0x386   :  { %v1050_v49 = vrot.slane %v1049_v40, 1  ;;  %v1077_v50 = vmax.f32 %v1075_v36, %v1076_v41  ;;  %v1091_v4 = vmax.f32 %v1089_v37, %v1090_v42  ;;  %v1054_v51 = vmax.f32 %v1052_v33, %v1053_v44 }
 0x387   :  { %v1064_v31 = vrot.slane %v1063_v45, 1  ;;  %v1068_v52 = vmax.f32 %v1066_v39, %v1067_v48  ;;  %v1082_v54 = vmax.f32 %v1080_v30, %v1081_v46  ;;  %v1095_v55 = vrot.slane %v1094_v47, 4  ;;  %v880_v39 = vpop.f32.mrf.mxu0 }
 0x388   :  { %v1051_v58 = vmax.f32 %v1049_v40, %v1050_v49  ;;  %v1078_v59 = vrot.slane %v1077_v50, 1  ;;  %v1092_v60 = vrot.slane %v1091_v4, 1  ;;  %v1055_v61 = vrot.slane %v1054_v51, 2  ;;  %v935_v49 = vpop.f32.mrf.mxu1 }
 0x389   :  { %v1065_v10 = vmax.f32 %v1063_v45, %v1064_v31  ;;  %v1069_v63 = vrot.slane %v1068_v52, 2  ;;  %v1083_v0 = vrot.slane %v1082_v54, 2  ;;  %v1096_v1 = vmax.f32 %v1094_v47, %v1095_v55 }
 0x38a   :  { %v1079_v3 = vmax.f32 %v1077_v50, %v1078_v59  ;;  %v1093_v5 = vmax.f32 %v1091_v4, %v1092_v60  ;;  %v1221_v6 = vsel %vm1220_vm11, %v1218_v12, %v1051_v58  ;;  %v1056_v7 = vmax.f32 %v1054_v51, %v1055_v61 }
 0x38b   :  { %v1224_v8 = vsel %vm1223_vm12, %v1221_v6, %v1065_v10  ;;  %v1070_v11 = vmax.f32 %v1068_v52, %v1069_v63  ;;  %v1084_v13 = vmax.f32 %v1082_v54, %v1083_v0  ;;  %v1097_v14 = vrot.slane %v1096_v1, 2  ;;  %v882_v54 = vpop.f32.mrf.mxu0 }
 0x38c   :  { %v1227_v15 = vsel %vm1226_vm13, %v1224_v8, %v1079_v3  ;;  %v1057_v16 = vrot.slane %v1056_v7, 1  ;;  %v982_v17 = vmax.f32 %v974_v32, 0.0  ;;  %v932_v18 = vadd.f32 %v931_v2, %v878_v9 }
 0x38d   :  { %v1229_v19 = vsel %vm118_vm0, %v1227_v15, %v1093_v5  ;;  %v1071_v20 = vrot.slane %v1070_v11, 1  ;;  %v1085_v21 = vrot.slane %v1084_v13, 1  ;;  %v1098_v22 = vmax.f32 %v1096_v1, %v1097_v14 }
 0x38e   :  { %1245 = vst [vmem:[%s1973_s10] sm:$0xff] %v1229_v19  ;;  %v1058_v12 = vmax.f32 %v1056_v7, %v1057_v16  ;;  %v1101_v23 = vsel %vm187_vm2, %v982_v17, -inf  ;;  %v1115_v24 = vsel %vm1000_vm4, %v982_v17, -inf  ;;  %v1129_v25 = vsel %vm1015_vm8, %v982_v17, -inf }
 0x38f   :  { %v1072_v26 = vmax.f32 %v1070_v11, %v1071_v20  ;;  %v1086_v27 = vmax.f32 %v1084_v13, %v1085_v21  ;;  %v1099_v28 = vrot.slane %v1098_v22, 1  ;;  %v1102_v43 = vrot.slane %v1101_v23, 4 }
 0x390   :  { %v1222_v32 = vsel %vm1220_vm11, %v1219_v34, %v1058_v12  ;;  %v1116_v35 = vrot.slane %v1115_v24, 4  ;;  %v1130_v36 = vrot.slane %v1129_v25, 4  ;;  %v1143_v37 = vsel %vm1030_vm9, %v982_v17, -inf }
 0x391   :  { %v1100_v38 = vmax.f32 %v1098_v22, %v1099_v28  ;;  %v1225_v33 = vsel %vm1223_vm12, %v1222_v32, %v1072_v26  ;;  %v1103_v30 = vmax.f32 %v1101_v23, %v1102_v43  ;;  %v1144_v40 = vrot.slane %v1143_v37, 4 }
 0x392   :  { %v1228_v41 = vsel %vm1226_vm13, %v1225_v33, %v1086_v27  ;;  %v1117_v42 = vmax.f32 %v1115_v24, %v1116_v35  ;;  %v1131_v44 = vmax.f32 %v1129_v25, %v1130_v36  ;;  %v955_v45 = vmul.f32 %v1871_v57, %v932_v18 }
 0x393   :  { %v1230_v48 = vsel %vm118_vm0, %v1228_v41, %v1100_v38  ;;  %v1104_v46 = vrot.slane %v1103_v30, 2  ;;  %v1145_v34 = vmax.f32 %v1143_v37, %v1144_v40  ;;  %v934_v47 = vadd.f32 %v933_v29, %v880_v39 }
 0x394   :  { %1246 = vst [vmem:[%s1973_s10 + $0x8] sm:$0xff] %v1230_v48  ;;  %v1118_v50 = vrot.slane %v1117_v42, 2  ;;  %v1132_v4 = vrot.slane %v1131_v44, 2  ;;  %v975_v51 = vadd.f32 %v1874_v62, %v955_v45  ;;  %v936_v61 = vadd.f32 %v935_v49, %v882_v54 }
 0x395   :  { %v1105_v31 = vmax.f32 %v1103_v30, %v1104_v46  ;;  %v1146_v52 = vrot.slane %v1145_v34, 2  ;;  %v956_v55 = vmul.f32 %v1867_v53, %v934_v47 }
 0x396   :  { %v1119_v58 = vmax.f32 %v1117_v42, %v1118_v50  ;;  %v1133_v59 = vmax.f32 %v1131_v44, %v1132_v4  ;;  %v983_v60 = vmax.f32 %v975_v51, 0.0  ;;  %v957_v13 = vmul.f32 %v1871_v57, %v936_v61 }
 0x397   :  { %v1106_v10 = vrot.slane %v1105_v31, 1  ;;  %v1147_v63 = vmax.f32 %v1145_v34, %v1146_v52  ;;  %v976_v0 = vadd.f32 %v1869_v56, %v956_v55 }
 0x398   :  { %v1120_v1 = vrot.slane %v1119_v58, 1  ;;  %v1134_v2 = vrot.slane %v1133_v59, 1  ;;  %v1108_v3 = vsel %vm187_vm2, %v983_v60, -inf  ;;  %v1122_v5 = vsel %vm1000_vm4, %v983_v60, -inf }
 0x399   :  { %v1107_v6 = vmax.f32 %v1105_v31, %v1106_v10  ;;  %v1109_v7 = vrot.slane %v1108_v3, 4  ;;  %v1123_v8 = vrot.slane %v1122_v5, 4  ;;  %v1136_v53 = vsel %vm1015_vm8, %v983_v60, -inf }
 0x39a   :  { %v1121_v9 = vmax.f32 %v1119_v58, %v1120_v1  ;;  %v1150_v11 = vsel %vm1030_vm9, %v983_v60, -inf  ;;  %v1137_v16 = vrot.slane %v1136_v53, 4  ;;  %v1135_v56 = vmax.f32 %v1133_v59, %v1134_v2 }
 0x39b   :  { %v1110_v14 = vmax.f32 %v1108_v3, %v1109_v7  ;;  %v1124_v15 = vmax.f32 %v1122_v5, %v1123_v8  ;;  %v1148_v17 = vrot.slane %v1147_v63, 1  ;;  %v1151_v18 = vrot.slane %v1150_v11, 4 }
 0x39c   :  { %v984_v19 = vmax.f32 %v976_v0, 0.0  ;;  %v1231_v20 = vsel %vm97_vm1, %v1107_v6, %v1121_v9  ;;  %v1138_v12 = vmax.f32 %v1136_v53, %v1137_v16  ;;  %v977_v26 = vadd.f32 %v1874_v62, %v957_v13 }
 0x39d   :  { %v1111_v21 = vrot.slane %v1110_v14, 2  ;;  %v1125_v22 = vrot.slane %v1124_v15, 2  ;;  %v1152_v23 = vmax.f32 %v1150_v11, %v1151_v18  ;;  %v1233_v29 = vsel %vm187_vm2, %v1231_v20, %v1135_v56 }
 0x39e   :  { %v1157_v24 = vsel %vm187_vm2, %v984_v19, -inf  ;;  %v1171_v25 = vsel %vm1000_vm4, %v984_v19, -inf  ;;  %v1139_v28 = vrot.slane %v1138_v12, 2  ;;  %v1185_v35 = vsel %vm1015_vm8, %v984_v19, -inf }
 0x39f   :  { %v1112_v57 = vmax.f32 %v1110_v14, %v1111_v21  ;;  %v1126_v27 = vmax.f32 %v1124_v15, %v1125_v22  ;;  %v1158_v43 = vrot.slane %v1157_v24, 4  ;;  %v1172_v32 = vrot.slane %v1171_v25, 4 }
 0x3a0   :  { %v1199_v36 = vsel %vm1030_vm9, %v984_v19, -inf  ;;  %v1140_v33 = vmax.f32 %v1138_v12, %v1139_v28  ;;  %v1153_v30 = vrot.slane %v1152_v23, 2  ;;  %v1186_v41 = vrot.slane %v1185_v35, 4 }
 0x3a1   :  { %v1113_v37 = vrot.slane %v1112_v57, 1  ;;  %v1127_v38 = vrot.slane %v1126_v27, 1  ;;  %v1159_v39 = vmax.f32 %v1157_v24, %v1158_v43  ;;  %v1173_v40 = vmax.f32 %v1171_v25, %v1172_v32 }
 0x3a2   :  { %v1200_v42 = vrot.slane %v1199_v36, 4  ;;  %v1149_v62 = vmax.f32 %v1147_v63, %v1148_v17  ;;  %v1141_v45 = vrot.slane %v1140_v33, 1  ;;  %v1187_v47 = vmax.f32 %v1185_v35, %v1186_v41 }
 0x3a3   :  { %v1114_v44 = vmax.f32 %v1112_v57, %v1113_v37  ;;  %v1160_v48 = vrot.slane %v1159_v39, 2  ;;  %v1128_v46 = vmax.f32 %v1126_v27, %v1127_v38  ;;  %v1174_v34 = vrot.slane %v1173_v40, 2 }
 0x3a4   :  { %v1201_v49 = vmax.f32 %v1199_v36, %v1200_v42  ;;  %v1235_v50 = vsel %vm1217_vm10, %v1233_v29, %v1149_v62  ;;  %v985_v51 = vmax.f32 %v977_v26, 0.0  ;;  %v1154_v31 = vmax.f32 %v1152_v23, %v1153_v30 }
 0x3a5   :  { %v1161_v4 = vmax.f32 %v1159_v39, %v1160_v48  ;;  %v1175_v52 = vmax.f32 %v1173_v40, %v1174_v34  ;;  %v1188_v54 = vrot.slane %v1187_v47, 2  ;;  %v1142_v58 = vmax.f32 %v1140_v33, %v1141_v45 }
 0x3a6   :  { %v1202_v55 = vrot.slane %v1201_v49, 2  ;;  %v1164_v60 = vsel %vm187_vm2, %v985_v51, -inf  ;;  %v1178_v61 = vsel %vm1000_vm4, %v985_v51, -inf  ;;  %v1232_v10 = vsel %vm97_vm1, %v1114_v44, %v1128_v46 }
 0x3a7   :  { %v1162_v59 = vrot.slane %v1161_v4, 1  ;;  %v1176_v63 = vrot.slane %v1175_v52, 1  ;;  %v1189_v0 = vmax.f32 %v1187_v47, %v1188_v54  ;;  %v1165_v3 = vrot.slane %v1164_v60, 4 }
 0x3a8   :  { %v1203_v1 = vmax.f32 %v1201_v49, %v1202_v55  ;;  %v1179_v5 = vrot.slane %v1178_v61, 4  ;;  %v1192_v6 = vsel %vm1015_vm8, %v985_v51, -inf  ;;  %v1206_v15 = vsel %vm1030_vm9, %v985_v51, -inf }
 0x3a9   :  { %v1163_v2 = vmax.f32 %v1161_v4, %v1162_v59  ;;  %v1177_v7 = vmax.f32 %v1175_v52, %v1176_v63  ;;  %v1190_v8 = vrot.slane %v1189_v0, 1  ;;  %v1193_v53 = vrot.slane %v1192_v6, 4 }
 0x3aa   :  { %v1204_v9 = vrot.slane %v1203_v1, 1  ;;  %v1166_v13 = vmax.f32 %v1164_v60, %v1165_v3  ;;  %v1180_v14 = vmax.f32 %v1178_v61, %v1179_v5  ;;  %v1155_v16 = vrot.slane %v1154_v31, 1 }
 0x3ab   :  { %v1237_v11 = vsel %vm1220_vm11, %v1235_v50, %v1163_v2  ;;  %v1191_v56 = vmax.f32 %v1189_v0, %v1190_v8  ;;  %v1194_v18 = vmax.f32 %v1192_v6, %v1193_v53  ;;  %v1207_v22 = vrot.slane %v1206_v15, 4 }
 0x3ac   :  { %v1239_v17 = vsel %vm1223_vm12, %v1237_v11, %v1177_v7  ;;  %v1205_v19 = vmax.f32 %v1203_v1, %v1204_v9  ;;  %v1167_v20 = vrot.slane %v1166_v13, 2  ;;  %v1181_v21 = vrot.slane %v1180_v14, 2 }
 0x3ad   :  { %v1234_v12 = vsel %vm187_vm2, %v1232_v10, %v1142_v58  ;;  %v1241_v23 = vsel %vm1226_vm13, %v1239_v17, %v1191_v56  ;;  %v1195_v24 = vrot.slane %v1194_v18, 2  ;;  %v1208_v27 = vmax.f32 %v1206_v15, %v1207_v22 }
 0x3ae   :  { %v1243_v25 = vsel %vm118_vm0, %v1241_v23, %v1205_v19  ;;  %v1168_v26 = vmax.f32 %v1166_v13, %v1167_v20  ;;  %v1182_v57 = vmax.f32 %v1180_v14, %v1181_v21  ;;  %v1156_v28 = vmax.f32 %v1154_v31, %v1155_v16 }
 0x3af   :  { %1247 = vst [vmem:[%s1973_s10 + $0x10] sm:$0xff] %v1243_v25  ;;  %v1196_v43 = vmax.f32 %v1194_v18, %v1195_v24  ;;  %v1209_v35 = vrot.slane %v1208_v27, 2 }
 0x3b0   :  { %v1169_v29 = vrot.slane %v1168_v26, 1  ;;  %v1183_v32 = vrot.slane %v1182_v57, 1  ;;  %v1236_v36 = vsel %vm1217_vm10, %v1234_v12, %v1156_v28 }
 0x3b1   :  { %v1197_v37 = vrot.slane %v1196_v43, 1  ;;  %v1210_v39 = vmax.f32 %v1208_v27, %v1209_v35 }
 0x3b2   :  { %v1170_v38 = vmax.f32 %v1168_v26, %v1169_v29  ;;  %v1184_v33 = vmax.f32 %v1182_v57, %v1183_v32 }
 0x3b3   :  { %v1198_v30 = vmax.f32 %v1196_v43, %v1197_v37  ;;  %v1211_v40 = vrot.slane %v1210_v39, 1 }
 0x3b4   :  { %v1238_v41 = vsel %vm1220_vm11, %v1236_v36, %v1170_v38 }
 0x3b5   :  { %v1240_v42 = vsel %vm1223_vm12, %v1238_v41, %v1184_v33  ;;  %v1212_v62 = vmax.f32 %v1210_v39, %v1211_v40 }
 0x3b6   :  { %v1242_v44 = vsel %vm1226_vm13, %v1240_v42, %v1198_v30 }
 0x3b7   :  { %v1244_v45 = vsel %vm118_vm0, %v1242_v44, %v1212_v62 }
 0x3b8   :  { %1248 = vst [vmem:[%s1973_s10 + $0x18] sm:$0xff] %v1244_v45 }

// kernel: _lambda_.7
= control target key start
LH: loop header
LB: loop body
LE: loop exit
PB: predicated region body
PF: predicated region fallthrough
CT: control target
= control target key end

     0   :  { %18 = vsyncpa [#allocation3], 0  ;;  %s7099_s0 = inlined_call_operand.vmem [shape: f32[32,128], index: 0, kind: input, shape index: {}]   ;;  %s7100_s1 = inlined_call_operand.hbm [shape: bf16[128,384], index: 1, kind: input, shape index: {}]   ;;  %s7101_s2 = inlined_call_operand.hbm [shape: f32[1,384], index: 2, kind: input, shape index: {}]   ;;  %s7102_s3 = inlined_call_operand.hbm [shape: bf16[128,128], index: 3, kind: input, shape index: {}]   ;;  %s7103_s4 = inlined_call_operand.hbm [shape: f32[1,128], index: 4, kind: input, shape index: {}]   ;;  %s7104_s5 = inlined_call_operand.vmem [shape: f32[1,128], index: 5, kind: input, shape index: {}, may-alias: {5,11}]   ;;  %s7105_s6 = inlined_call_operand.vmem [shape: f32[1,128], index: 6, kind: input, shape index: {}, may-alias: {6,12}]   ;;  %s7106_s7 = inlined_call_operand.hbm [shape: bf16[128,2048], index: 7, kind: input, shape index: {}]   ;;  %s7107_s8 = inlined_call_operand.hbm [shape: f32[1,2048], index: 8, kind: input, shape index: {}]   ;;  %s7108_s9 = inlined_call_operand.hbm [shape: bf16[2048,128], index: 9, kind: input, shape index: {}]   ;;  %s7109_s10 = inlined_call_operand.hbm [shape: f32[1,128], index: 10, kind: input, shape index: {}]   ;;  %s7110_s11 = inlined_call_operand.vmem [shape: f32[1,128], index: 11, kind: input, shape index: {}, may-alias: {5,11}]   ;;  %s7111_s12 = inlined_call_operand.vmem [shape: f32[1,128], index: 12, kind: input, shape index: {}, may-alias: {6,12}]   ;;  %s7112_s13 = inlined_call_operand.vmem [shape: f32[32,128], index: 13, kind: output, shape index: {}]  }
   0x1   :  { %19 = vsyncpa [#allocation5], 0 }
   0x2   :  { %20 = vsyncpa [#allocation8], 0 }
   0x3   :  { %21 = vsyncpa [#allocation11], 0 }
   0x4   :  { %22 = vsyncpa [#allocation14], 0  ;;  %s6426_s25 = smov [#allocation4]   ;;  %s6427_s27 = smov [#allocation7]  }
   0x5   :  { %s43_s26 = sshll.u32 %s6426_s25, 4  ;;  %s65_s28 = sshll.u32 %s6427_s27, 4  ;;  %s44_s26 = int_to_ptr.vmem [resolvable:$true] %s43_s26  ;;  %s66_s28 = int_to_ptr.vmem [resolvable:$true] %s65_s28 }
   0x6   :  { %s6264_s29 = scalar_lea.vmem %s44_s26, 48  ;;  %s6268_s30 = scalar_lea.vmem %s44_s26, 64 }
   0x7   :  { %p6265_p0 = scmp.ne.s32.totalorder %s44_s26, %s6264_s29  ;;  %p6269_p1 = scmp.lt.s32.totalorder %s44_s26, %s44_s26 }
   0x8   :  { %p6270_p2 = scmp.lt.s32.totalorder %s6268_s30, %s6264_s29 }
   0xa   :  { %p6271_p3 = por %p6270_p2, %p6269_p1 }
   0xc   :  { %p6272_p4 = pnand %p6271_p3, %p6265_p0 }
   0xe   :  { %6275 = shalt.err (!%p6272_p4)
}
   0xf   :  { %46 = dma.hbm_to_vmem [thread:$0]  %s7101_s2, 48, %s44_s26, [#allocation5]  }
  0x10   :  { %s6284_s16 = scalar_lea.vmem %s66_s28, 16  ;;  %s6288_s17 = scalar_lea.vmem %s66_s28, 32 }
  0x11   :  { %p6285_p5 = scmp.ne.s32.totalorder %s66_s28, %s6284_s16  ;;  %p6289_p6 = scmp.lt.s32.totalorder %s66_s28, %s66_s28 }
  0x12   :  { %p6290_p7 = scmp.lt.s32.totalorder %s6288_s17, %s6284_s16 }
  0x14   :  { %p6291_p8 = por %p6290_p7, %p6289_p6 }
  0x16   :  { %p6292_p9 = pnand %p6291_p8, %p6285_p5 }
  0x18   :  { %6295 = shalt.err (!%p6292_p9)
}
  0x19   :  { %68 = dma.hbm_to_vmem [thread:$0]  %s7103_s4, 16, %s66_s28, [#allocation8]  }
  0x1a   :  { %s6428_s20 = smov [#allocation10]   ;;  %s6429_s22 = smov [#allocation2]  }
  0x1b   :  { %s91_s21 = sshll.u32 %s6428_s20, 4  ;;  %s30_s23 = sshll.u32 %s6429_s22, 4  ;;  %s92_s21 = int_to_ptr.vmem [resolvable:$true] %s91_s21  ;;  %s31_s23 = int_to_ptr.vmem [resolvable:$true] %s30_s23 }
  0x1c   :  { %s6304_s24 = scalar_lea.vmem %s92_s21, 256  ;;  %p6309_p11 = scmp.lt.s32.totalorder %s92_s21, %s92_s21 }
  0x1d   :  { %p6305_p10 = scmp.ne.s32.totalorder %s92_s21, %s6304_s24  ;;  %p6310_p12 = scmp.lt.s32.totalorder %s6304_s24, %s6304_s24 }
  0x1f   :  { %p6311_p13 = por %p6310_p12, %p6309_p11 }
  0x21   :  { %p6312_p0 = pnand %p6311_p13, %p6305_p10 }
  0x23   :  { %6315 = shalt.err (!%p6312_p0)
}
  0x24   :  { %94 = dma.hbm_to_vmem [thread:$0]  %s7107_s8, 256, %s92_s21, [#allocation11]  }
  0x25   :  { %s6324_s26 = scalar_lea.vmem %s31_s23, 3072  ;;  %p6329_p2 = scmp.lt.s32.totalorder %s31_s23, %s31_s23 }
  0x26   :  { %p6325_p1 = scmp.ne.s32.totalorder %s31_s23, %s6324_s26  ;;  %p6330_p3 = scmp.lt.s32.totalorder %s6324_s26, %s6324_s26 }
  0x28   :  { %p6331_p4 = por %p6330_p3, %p6329_p2 }
  0x2a   :  { %p6332_p5 = pnand %p6331_p4, %p6325_p1 }
  0x2c   :  { %6335 = shalt.err (!%p6332_p5)
}
  0x2d   :  { %s6430_s4 = smov 192   ;;  %s6431_s27 = smov 12  }
  0x2e   :  { %36 = dma.hbm_to_vmem [thread:$0]  %s7100_s1, 3072, %s31_s23, [#allocation3], %s6430_s4, %s6430_s4, %s6431_s27  }
  0x2f   :  { %s6432_s30 = smov [#allocation6]  }
  0x30   :  { %s52_s14 = sshll.u32 %s6432_s30, 4  ;;  %s53_s14 = int_to_ptr.vmem [resolvable:$true] %s52_s14 }
  0x31   :  { %s6344_s15 = scalar_lea.vmem %s53_s14, 1024  ;;  %p6349_p7 = scmp.lt.s32.totalorder %s53_s14, %s53_s14 }
  0x32   :  { %p6345_p6 = scmp.ne.s32.totalorder %s53_s14, %s6344_s15  ;;  %p6350_p8 = scmp.lt.s32.totalorder %s6344_s15, %s6344_s15 }
  0x34   :  { %p6351_p9 = por %p6350_p8, %p6349_p7 }
  0x36   :  { %p6352_p10 = pnand %p6351_p9, %p6345_p6 }
  0x38   :  { %6355 = shalt.err (!%p6352_p10)
}
  0x39   :  { %s6433_s8 = smov 64   ;;  %s6434_s16 = smov 4  }
  0x3a   :  { %58 = dma.hbm_to_vmem [thread:$0]  %s7102_s3, 1024, %s53_s14, [#allocation5], %s6433_s8, %s6433_s8, %s6434_s16  }
  0x3b   :  { %s6435_s1 = smov [#allocation9]  }
  0x3c   :  { %s78_s19 = sshll.u32 %s6435_s1, 4  ;;  %s79_s19 = int_to_ptr.vmem [resolvable:$true] %s78_s19 }
  0x3d   :  { %s6364_s20 = scalar_lea.vmem %s79_s19, 16384  ;;  %p6369_p12 = scmp.lt.s32.totalorder %s79_s19, %s79_s19 }
  0x3e   :  { %p6365_p11 = scmp.ne.s32.totalorder %s79_s19, %s6364_s20  ;;  %p6370_p13 = scmp.lt.s32.totalorder %s6364_s20, %s6364_s20 }
  0x40   :  { %p6371_p0 = por %p6370_p13, %p6369_p12 }
  0x42   :  { %p6372_p1 = pnand %p6371_p0, %p6365_p11 }
  0x44   :  { %6375 = shalt.err (!%p6372_p1)
}
  0x45   :  { %s6436_s21 = smov 1024   ;;  %s6437_s24 = smov [#allocation12]  }
  0x46   :  { %84 = dma.hbm_to_vmem [thread:$0]  %s7106_s7, 16384, %s79_s19, [#allocation8], %s6436_s21, %s6436_s21, %s6433_s8  }
  0x47   :  { %s100_s2 = sshll.u32 %s6437_s24, 4  ;;  %s6438_s3 = smov [#allocation13]   ;;  %s101_s2 = int_to_ptr.vmem [resolvable:$true] %s100_s2 }
  0x48   :  { %s113_s25 = sshll.u32 %s6438_s3, 4  ;;  %s6384_s26 = scalar_lea.vmem %s101_s2, 16384  ;;  %s114_s25 = int_to_ptr.vmem [resolvable:$true] %s113_s25 }
  0x49   :  { %p6385_p2 = scmp.ne.s32.totalorder %s101_s2, %s6384_s26  ;;  %p6389_p3 = scmp.lt.s32.totalorder %s101_s2, %s101_s2 }
  0x4a   :  { %p6390_p4 = scmp.lt.s32.totalorder %s6384_s26, %s6384_s26 }
  0x4c   :  { %p6391_p5 = por %p6390_p4, %p6389_p3 }
  0x4e   :  { %p6392_p6 = pnand %p6391_p5, %p6385_p2 }
  0x50   :  { %6395 = shalt.err (!%p6392_p6)
}
  0x51   :  { %106 = dma.hbm_to_vmem [thread:$0]  %s7108_s9, 16384, %s101_s2, [#allocation11], %s6433_s8, %s6433_s8, %s6434_s16  }
  0x52   :  { %s6404_s7 = scalar_lea.vmem %s114_s25, 16  ;;  %s6408_s28 = scalar_lea.vmem %s114_s25, 32 }
  0x53   :  { %p6405_p7 = scmp.ne.s32.totalorder %s114_s25, %s6404_s7  ;;  %p6409_p8 = scmp.lt.s32.totalorder %s114_s25, %s114_s25 }
  0x54   :  { %p6410_p9 = scmp.lt.s32.totalorder %s6408_s28, %s6404_s7 }
  0x56   :  { %p6411_p10 = por %p6410_p9, %p6409_p8 }
  0x58   :  { %p6412_p11 = pnand %p6411_p10, %p6405_p7 }
  0x5a   :  { %6415 = shalt.err (!%p6412_p11)
}
  0x5b   :  { %116 = dma.hbm_to_vmem [thread:$0]  %s7109_s10, 16, %s114_s25, [#allocation14]  }
  0x5c   :  { %6416 = dma.done.wait [#allocation3], 3072  }
  0x5d   :  { %6417 = vsyncadd [#allocation3], 4294964224 }
  0x5e   :  { %6418 = dma.done.wait [#allocation5], 1072  }
  0x5f   :  { %6419 = vsyncadd [#allocation5], 4294966224 }
  0x60   :  { %6420 = dma.done.wait [#allocation8], 16400  }
  0x61   :  { %6421 = vsyncadd [#allocation8], 4294950896 }
  0x62   :  { %6422 = dma.done.wait [#allocation11], 16640  }
  0x63   :  { %6423 = vsyncadd [#allocation11], 4294950656 }
  0x64   :  { %6424 = dma.done.wait [#allocation14], 16  }
  0x65   :  { %6425 = vsyncadd [#allocation14], 4294967280  ;;  %v6439_v0 = vmov 0   ;;  %v6004_v1 = vld [vmem:[#allocation2 + $0xac] ss:$12 sps:$4 sm:$0xff]   ;;  %v146_v10 = vld [vmem:[%s7099_s0] sm:$0xff]  ;;  %v186_v31 = vlaneseq }
  0x66   :  { %361 = vmatprep.mubr.bf16.mxu0 %v6439_v0  ;;  %v6006_v2 = vld [vmem:[#allocation2 + $0xa8] ss:$12 sps:$4 sm:$0xff]   ;;  %329 = vmatprep.subr.bf16.mxu0 %v6004_v1  ;;  %v6009_v4 = vld [vmem:[#allocation2 + $0x90] ss:$12 sps:$4 sm:$0xff]   ;;  %v6012_v6 = vld [vmem:[#allocation2 + $0x78] ss:$12 sps:$4 sm:$0xff]  }
  0x67   :  { %v6007_v3 = vld [vmem:[#allocation2 + $0x94] ss:$12 sps:$4 sm:$0xff]   ;;  %330 = vmatpush1.bf16.msra.mxu0 %v6006_v2  ;;  %v6010_v5 = vld [vmem:[#allocation2 + $0x7c] ss:$12 sps:$4 sm:$0xff]   ;;  %v6013_v7 = vld [vmem:[#allocation2 + $0x64] ss:$12 sps:$4 sm:$0xff]  }
  0x68   :  { %331 = vmatprep.subr.bf16.mxu0 %v6007_v3  ;;  %v6015_v8 = vld [vmem:[#allocation2 + $0x60] ss:$12 sps:$4 sm:$0xff]   ;;  %v6028_v13 = vld [vmem:[#allocation2 + $0xb0] ss:$12 sps:$4 sm:$0xff]   ;;  %v6029_v14 = vld [vmem:[#allocation2 + $0x98] ss:$12 sps:$4 sm:$0xff]  }
  0x69   :  { %v6016_v9 = vld [vmem:[#allocation2 + $0x4c] ss:$12 sps:$4 sm:$0xff]   ;;  %v6018_v15 = vld [vmem:[#allocation2 + $0x48] ss:$12 sps:$4 sm:$0xff]   ;;  %5806 = vmatprep.subr.bf16.mxu1 %v6028_v13  ;;  %v6021_v18 = vld [vmem:[#allocation2 + $0x30] ss:$12 sps:$4 sm:$0xff]  }
  0x6a   :  { %v147_v11 = vld [vmem:[%s7099_s0 + $0x8] sm:$0xff]  ;;  %v6019_v16 = vld [vmem:[#allocation2 + $0x34] ss:$12 sps:$4 sm:$0xff]   ;;  %5807 = vmatpush3.bf16.msra.mxu1 %v6028_v13  ;;  %v6024_v21 = vld [vmem:[#allocation2 + $0x18] ss:$12 sps:$4 sm:$0xff]   ;;  %v6557_v32 = vshrl.u32 %v186_v31, 7 }
  0x6b   :  { %332 = vmatpush1.bf16.msra.mxu0 %v6009_v4  ;;  %v150_v12 = vpack.c.bf16 %v147_v11, %v146_v10  ;;  %5808 = vmatprep.subr.bf16.mxu1 %v6029_v14  ;;  %v6030_v17 = vld [vmem:[#allocation2 + $0x80] ss:$12 sps:$4 sm:$0xff]   ;;  %v6022_v19 = vld [vmem:[#allocation2 + $0x1c] ss:$12 sps:$4 sm:$0xff]   ;;  %v6025_v22 = vld [vmem:[#allocation2 + $0x4] ss:$12 sps:$4 sm:$0xff]  }
  0x6c   :  { %333 = vmatprep.subr.bf16.mxu0 %v6010_v5  ;;  %v6031_v20 = vld [vmem:[#allocation2 + $0x68] ss:$12 sps:$4 sm:$0xff]   ;;  %v6032_v23 = vld [vmem:[#allocation2 + $0x50] ss:$12 sps:$4 sm:$0xff]   ;;  %v6027_v24 = vld [vmem:[#allocation2] ss:$12 sps:$4 sm:$0xff]  }
  0x6d   :  { %5822 = vmatprep.mubr.bf16.mxu1 %v150_v12  ;;  %v6033_v25 = vld [vmem:[#allocation2 + $0x38] ss:$12 sps:$4 sm:$0xff]   ;;  %v6034_v26 = vld [vmem:[#allocation2 + $0x20] ss:$12 sps:$4 sm:$0xff]   ;;  %v6035_v27 = vld [vmem:[#allocation2 + $0x8] ss:$12 sps:$4 sm:$0xff]  }
  0x6e   :  { %5809 = vmatpush3.bf16.msra.mxu1 %v6029_v14  ;;  %v148_v28 = vld [vmem:[%s7099_s0 + $0x10] sm:$0xff]  ;;  %v149_v29 = vld [vmem:[%s7099_s0 + $0x18] sm:$0xff]  ;;  %v6560_v33 = vsub.s32 0, %v6557_v32  ;;  %v184_v34 = vld [vmem:[#allocation4] sm:$0x7]  ;;  %v6563_v35 = vsub.s32 1, %v6557_v32 }
  0x6f   :  { %334 = vmatpush1.bf16.msra.mxu0 %v6012_v6  ;;  %5810 = vmatprep.subr.bf16.mxu1 %v6030_v17  ;;  %v151_v30 = vpack.c.bf16 %v149_v29, %v148_v28  ;;  %vm435_vm0 = vcmask 261120   ;;  %s6440_s19 = smov 96   ;;  %v6602_v48 = vsub.s32 2, %v6557_v32  ;;  %vm523_vm1 = vcmask 130048   ;;  %s6441_s20 = smov 32  }
  0x70   :  { %335 = vmatprep.subr.bf16.mxu0 %v6013_v7  ;;  %v6566_v36 = vrot.slane %v184_v34, %v6560_v33  ;;  %v6569_v37 = vrot.slane %v184_v34, %v6563_v35  ;;  %vm1255_vm2 = vcmask 523264   ;;  %vm1258_vm3 = vcmask 785408  }
  0x71   :  { %v197_v49 = vrot.slane %v184_v34, %v6602_v48 }
  0x72   :  { %5811 = vmatpush3.bf16.msra.mxu1 %v6030_v17 }
  0x73   :  { %336 = vmatpush1.bf16.msra.mxu0 %v6015_v8  ;;  %5812 = vmatprep.subr.bf16.mxu1 %v6031_v20 }
  0x74   :  { %337 = vmatprep.subr.bf16.mxu0 %v6016_v9 }
  0x76   :  { %5813 = vmatpush3.bf16.msra.mxu1 %v6031_v20 }
  0x77   :  { %338 = vmatpush1.bf16.msra.mxu0 %v6018_v15  ;;  %5814 = vmatprep.subr.bf16.mxu1 %v6032_v23 }
  0x78   :  { %339 = vmatprep.subr.bf16.mxu0 %v6019_v16 }
  0x7a   :  { %5815 = vmatpush3.bf16.msra.mxu1 %v6032_v23 }
  0x7b   :  { %340 = vmatpush1.bf16.msra.mxu0 %v6021_v18  ;;  %5816 = vmatprep.subr.bf16.mxu1 %v6033_v25 }
  0x7c   :  { %341 = vmatprep.subr.bf16.mxu0 %v6022_v19 }
  0x7e   :  { %5817 = vmatpush3.bf16.msra.mxu1 %v6033_v25 }
  0x7f   :  { %342 = vmatpush1.bf16.msra.mxu0 %v6024_v21  ;;  %5818 = vmatprep.subr.bf16.mxu1 %v6034_v26 }
  0x80   :  { %343 = vmatprep.subr.bf16.mxu0 %v6025_v22 }
  0x82   :  { %5819 = vmatpush3.bf16.msra.mxu1 %v6034_v26 }
  0x83   :  { %344 = vmatpush1.bf16.msra.mxu0 %v6027_v24  ;;  %5820 = vmatprep.subr.bf16.mxu1 %v6035_v27 }
  0x86   :  { %362 = vmatmul.mubr.bf16.vlgmr.msra.gmra.mxu0 %v150_v12  ;;  %5821 = vmatpush3.bf16.msra.mxu1 %v6035_v27 }
  0x87   :  { %371 = vmatprep.mubr.bf16.mxu0 %v6439_v0 }
  0x89   :  { %5823 = vmatmul.mubr.bf16.vlgmr.msra.gmra.mxu1 %v151_v30 }
  0x8e   :  { %372 = vmatmul.mubr.bf16.gmra.mxu0 %v151_v30 }
 0x146   :  { %v363_v38 = vpop.f32.mrf.mxu0 }
 0x147   :  { %v364_v39 = vadd.f32 %v363_v38, %v6566_v36 }
 0x148   :  { %v365_v40 = vpop.f32.mrf.mxu0 }
 0x149   :  { %v6572_v41 = vmul.f32 0.17677669, %v364_v39  ;;  %v6575_v42 = vadd.f32 %v365_v40, %v6569_v37  ;;  %v5824_v50 = vpop.f32.mrf.mxu1 }
 0x14a   :  { %v367_v43 = vpop.f32.mrf.mxu0  ;;  %v6605_v51 = vadd.f32 %v5824_v50, %v197_v49 }
 0x14b   :  { %631 = vrot.lane.b32.xlu1 %v6575_v42, %s6440_s19  ;;  %5830 = vmatprep.mubr.msk.f32.mxu1 %vm435_vm0, %v6572_v41  ;;  %v368_v46 = vadd.f32 %v367_v43, %v6566_v36  ;;  %v416_v52 = vpop.f32.mrf.mxu1 }
 0x14c   :  { %v369_v44 = vpop.f32.mrf.mxu0  ;;  %v6609_v56 = vadd.f32 %v416_v52, %v197_v49 }
 0x14d   :  { %v6582_v45 = vadd.f32 %v369_v44, %v6569_v37  ;;  %v6597_v47 = vmul.f32 0.17677669, %v368_v46  ;;  %v5825_v53 = vpop.f32.mrf.mxu1 }
 0x14e   :  { %v6607_v54 = vadd.f32 %v5825_v53, %v197_v49  ;;  %v6645_v23 = vpop.f32.mrf.mxu0 }
 0x14f   :  { %5826 = vmatprep.subr.msk.mxu1 %vm435_vm0, %v6582_v45  ;;  %835 = vrot.lane.b32.xlu1 %v6582_v45, %s6433_s8  ;;  %v419_v55 = vpop.f32.mrf.mxu1 }
 0x150   :  { %5827 = vmatpush3.xpose.msk.msra.mxu1 %vm435_vm0, %v6582_v45  ;;  %v6611_v57 = vadd.f32 %v419_v55, %v197_v49  ;;  %v6647_v24 = vpop.f32.mrf.mxu0 }
 0x151   :  { %5828 = vmatprep.subr.msk.mxu1 %vm435_vm0, %v6575_v42 }
 0x152   :  { %v6649_v25 = vpop.f32.mrf.mxu0 }
 0x153   :  { %627 = vrot.lane.b32.xlu1 %v6572_v41, %s6440_s19 }
 0x154   :  { %5829 = vmatpush3.xpose.msk.msra.mxu1 %vm435_vm0, %v6575_v42  ;;  %v6653_v27 = vpop.f32.mrf.mxu0 }
 0x155   :  { %5833 = vmatprep.subr.mxu1 %v6611_v57 }
 0x157   :  { %5831 = vmatmul.mubr.msk.f32.vlgmr.msra.gmra.mxu1 %vm435_vm0, %v6597_v47 }
 0x158   :  { %5834 = vmatpush3.msra.mxu1 %v6611_v57 }
 0x159   :  { %5835 = vmatprep.subr.mxu1 %v6609_v56 }
 0x15a   :  { %5836 = vmatpush3.msra.mxu1 %v6609_v56 }
 0x1bd   :  { %v632_v58 = vpop.permute.xlu1 %631 }
 0x1c1   :  { %v836_v59 = vpop.permute.xlu1 %835 }
 0x1c2   :  { %5854 = vmatprep.subr.msk.mxu0 %vm435_vm0, %v836_v59 }
 0x1c3   :  { %5855 = vmatpush3.xpose.msk.msra.mxu0 %vm435_vm0, %v836_v59 }
 0x1c5   :  { %v628_v14 = vpop.permute.xlu1 %627 }
 0x217   :  { %v5832_v60 = vpop.f32.mrf.mxu1 }
 0x218   :  { %v527_v63 = vsel %vm523_vm1, %v5832_v60, -inf }
 0x219   :  { %v514_v61 = vpop.f32.mrf.mxu1 }
 0x21a   :  { %v524_v62 = vsel %vm523_vm1, %v514_v61, -inf }
 0x21b   :  { %525 = vmax.xlane.f32.xlu0 %v524_v62 }
 0x21f   :  { %528 = vmax.xlane.f32.xlu0 %v527_v63 }
 0x235   :  { %633 = vrot.lane.b32.xlu0 %v6582_v45, %s6440_s19 }
 0x239   :  { %629 = vrot.lane.b32.xlu0 %v6597_v47, %s6440_s19 }
 0x23d   :  { %829 = vrot.lane.b32.xlu0 %v6572_v41, %s6433_s8 }
 0x2a4   :  { %v526_v1 = vpop.xlane.xlu0 %525 }
 0x2a5   :  { %v530_v2 = vsub.f32 %v514_v61, %v526_v1 }
 0x2a7   :  { %v532_v5 = vmul.f32 1.442695, %v530_v2 }
 0x2a8   :  { %v529_v3 = vpop.xlane.xlu0 %528 }
 0x2a9   :  { %v531_v4 = vsub.f32 %v5832_v60, %v529_v3 }
 0x2ab   :  { %v534_v6 = vmul.f32 1.442695, %v531_v4 }
 0x2ac   :  { %v634_v7 = vpop.permute.xlu0 %633 }
 0x2ad   :  { %6172 = vpow2.f32 %v534_v6  ;;  %5840 = vmatprep.subr.msk.mxu1 %vm435_vm0, %v634_v7 }
 0x2ae   :  { %6174 = vpow2.f32 %v532_v5 }
 0x2b0   :  { %v630_v8 = vpop.permute.xlu0 %629 }
 0x2b4   :  { %v830_v9 = vpop.permute.xlu0 %829 }
 0x2b5   :  { %5858 = vmatprep.mubr.msk.f32.mxu0 %vm435_vm0, %v830_v9 }
 0x2ba   :  { %v6173_v10 = vpop.eup %6172 }
 0x2bb   :  { %v539_v11 = vsel %vm523_vm1, %v6173_v10, 0.0  ;;  %v6175_v12 = vpop.eup %6174 }
 0x2bc   :  { %540 = vadd.xlane.f32.xlu1 %v539_v11  ;;  %v536_v13 = vsel %vm523_vm1, %v6175_v12, 0.0 }
 0x2c0   :  { %537 = vadd.xlane.f32.xlu1 %v536_v13 }
 0x2d1   :  { %833 = vrot.lane.b32.xlu1 %v6575_v42, %s6433_s8 }
 0x2d5   :  { %831 = vrot.lane.b32.xlu1 %v6597_v47, %s6433_s8 }
 0x345   :  { %v541_v15 = vpop.xlane.xlu1 %540 }
 0x346   :  { %6176 = vrcp.f32 %v541_v15 }
 0x349   :  { %v538_v16 = vpop.xlane.xlu1 %537 }
 0x34a   :  { %6178 = vrcp.f32 %v538_v16 }
 0x34d   :  { %v834_v17 = vpop.permute.xlu1 %833 }
 0x34e   :  { %5856 = vmatprep.subr.msk.mxu0 %vm435_vm0, %v834_v17 }
 0x34f   :  { %5857 = vmatpush3.xpose.msk.msra.mxu0 %vm435_vm0, %v834_v17 }
 0x351   :  { %v832_v18 = vpop.permute.xlu1 %831 }
 0x352   :  { %5859 = vmatmul.mubr.msk.f32.vlgmr.msra.gmra.mxu0 %vm435_vm0, %v832_v18 }
 0x353   :  { %v6177_v19 = vpop.eup %6176 }
 0x354   :  { %v545_v22 = vmul.f32 %v6177_v19, %v6173_v10 }
 0x357   :  { %v6179_v20 = vpop.eup %6178 }
 0x358   :  { %v544_v21 = vmul.f32 %v6179_v20, %v6175_v12 }
 0x35a   :  { %5837 = vmatprep.mubr.msk.f32.mxu1 %vm523_vm1, %v544_v21 }
 0x35b   :  { %5838 = vmatmul.mubr.msk.f32.vlgmr.msra.gmra.mxu1 %vm523_vm1, %v545_v22 }
 0x35c   :  { %5841 = vmatpush3.xpose.msk.msra.mxu1 %vm435_vm0, %v634_v7  ;;  %5844 = vmatprep.mubr.msk.f32.mxu1 %vm435_vm0, %v628_v14 }
 0x35d   :  { %5842 = vmatprep.subr.msk.mxu1 %vm435_vm0, %v632_v58 }
 0x360   :  { %5843 = vmatpush3.xpose.msk.msra.mxu1 %vm435_vm0, %v632_v58 }
 0x363   :  { %5845 = vmatmul.mubr.msk.f32.vlgmr.msra.gmra.mxu1 %vm435_vm0, %v630_v8 }
 0x412   :  { %v5860_v29 = vpop.f32.mrf.mxu0 }
 0x413   :  { %v923_v43 = vsel %vm523_vm1, %v5860_v29, -inf }
 0x414   :  { %v911_v39 = vpop.f32.mrf.mxu0 }
 0x415   :  { %v920_v40 = vsel %vm523_vm1, %v911_v39, -inf }
 0x41b   :  { %v6651_v26 = vpop.f32.mrf.mxu1 }
 0x41d   :  { %v6655_v28 = vpop.f32.mrf.mxu1 }
 0x423   :  { %v5846_v30 = vpop.f32.mrf.mxu1 }
 0x424   :  { %v721_v31 = vsel %vm523_vm1, %v5846_v30, -inf }
 0x425   :  { %722 = vmax.xlane.f32.xlu1 %v721_v31  ;;  %v709_v34 = vpop.f32.mrf.mxu1 }
 0x426   :  { %v718_v38 = vsel %vm523_vm1, %v709_v34, -inf }
 0x427   :  { %719 = vmax.xlane.f32.xlu0 %v718_v38  ;;  %v6702_v38 = vadd.f32 %v6647_v24, %v6569_v37 }
 0x42b   :  { %921 = vmax.xlane.f32.xlu0 %v920_v40 }
 0x42f   :  { %924 = vmax.xlane.f32.xlu0 %v923_v43 }
 0x4ae   :  { %v723_v49 = vpop.xlane.xlu1 %722 }
 0x4af   :  { %v725_v53 = vsub.f32 %v5846_v30, %v723_v49  ;;  %v6693_v30 = vadd.f32 %v6653_v27, %v6569_v37 }
 0x4b0   :  { %v720_v44 = vpop.xlane.xlu0 %719 }
 0x4b1   :  { %v724_v46 = vsub.f32 %v709_v34, %v720_v44  ;;  %v728_v61 = vmul.f32 1.442695, %v725_v53 }
 0x4b3   :  { %v726_v55 = vmul.f32 1.442695, %v724_v46 }
 0x4b4   :  { %v922_v50 = vpop.xlane.xlu0 %921 }
 0x4b5   :  { %v926_v52 = vsub.f32 %v911_v39, %v922_v50 }
 0x4b7   :  { %v928_v58 = vmul.f32 1.442695, %v926_v52 }
 0x4b8   :  { %v925_v59 = vpop.xlane.xlu0 %924 }
 0x4b9   :  { %6180 = vpow2.f32 %v928_v58  ;;  %v927_v60 = vsub.f32 %v5860_v29, %v925_v59  ;;  %v374_v29 = vadd.f32 %v6645_v23, %v6566_v36  ;;  %v378_v23 = vadd.f32 %v6649_v25, %v6566_v36 }
 0x4ba   :  { %6182 = vpow2.f32 %v726_v55 }
 0x4bb   :  { %v930_v62 = vmul.f32 1.442695, %v927_v60  ;;  %v6698_v31 = vmul.f32 0.17677669, %v374_v29  ;;  %v6715_v27 = vmul.f32 0.17677669, %v378_v23 }
 0x4bd   :  { %6184 = vpow2.f32 %v930_v62 }
 0x4be   :  { %6186 = vpow2.f32 %v728_v61 }
 0x4c6   :  { %v6181_v63 = vpop.eup %6180 }
 0x4c7   :  { %v932_v1 = vsel %vm523_vm1, %v6181_v63, 0.0  ;;  %v6183_v2 = vpop.eup %6182 }
 0x4c8   :  { %933 = vadd.xlane.f32.xlu0 %v932_v1  ;;  %v730_v4 = vsel %vm523_vm1, %v6183_v2, 0.0 }
 0x4ca   :  { %v6185_v3 = vpop.eup %6184 }
 0x4cb   :  { %v935_v5 = vsel %vm523_vm1, %v6185_v3, 0.0  ;;  %v6187_v6 = vpop.eup %6186 }
 0x4cc   :  { %731 = vadd.xlane.f32.xlu0 %v730_v4  ;;  %936 = vadd.xlane.f32.xlu1 %v935_v5  ;;  %v733_v7 = vsel %vm523_vm1, %v6187_v6, 0.0 }
 0x4d0   :  { %734 = vadd.xlane.f32.xlu1 %v733_v7 }
 0x4e1   :  { %742 = vrot.lane.b32.xlu1 %v6609_v56, %s6440_s19 }
 0x4e2   :  { %744 = vrot.lane.b32.xlu0 %v6611_v57, %s6440_s19 }
 0x4e5   :  { %944 = vrot.lane.b32.xlu1 %v6611_v57, %s6433_s8 }
 0x4e6   :  { %1035 = vrot.lane.b32.xlu0 %v6582_v45, %s6441_s20 }
 0x4e9   :  { %942 = vrot.lane.b32.xlu1 %v6609_v56, %s6433_s8 }
 0x4ea   :  { %1029 = vrot.lane.b32.xlu0 %v6572_v41, %s6441_s20 }
 0x4ed   :  { %1033 = vrot.lane.b32.xlu1 %v6575_v42, %s6441_s20 }
 0x4f1   :  { %1031 = vrot.lane.b32.xlu1 %v6597_v47, %s6441_s20 }
 0x551   :  { %v934_v8 = vpop.xlane.xlu0 %933 }
 0x555   :  { %v937_v9 = vpop.xlane.xlu1 %936  ;;  %v732_v10 = vpop.xlane.xlu0 %731 }
 0x556   :  { %6188 = vrcp.f32 %v732_v10 }
 0x557   :  { %6190 = vrcp.f32 %v934_v8 }
 0x559   :  { %v735_v11 = vpop.xlane.xlu1 %734  ;;  %v745_v12 = vpop.permute.xlu0 %744 }
 0x55a   :  { %6192 = vrcp.f32 %v735_v11  ;;  %5847 = vmatprep.subr.mxu1 %v745_v12 }
 0x55b   :  { %5848 = vmatpush3.msra.mxu1 %v745_v12  ;;  %6194 = vrcp.f32 %v937_v9 }
 0x55d   :  { %v743_v45 = vpop.permute.xlu1 %742  ;;  %v1036_v15 = vpop.permute.xlu0 %1035 }
 0x55e   :  { %5849 = vmatprep.subr.mxu1 %v743_v45 }
 0x55f   :  { %5850 = vmatpush3.msra.mxu1 %v743_v45 }
 0x561   :  { %v945_v41 = vpop.permute.xlu1 %944  ;;  %v1030_v21 = vpop.permute.xlu0 %1029 }
 0x562   :  { %5861 = vmatprep.subr.mxu1 %v945_v41 }
 0x563   :  { %v6189_v42 = vpop.eup %6188 }
 0x564   :  { %v738_v13 = vmul.f32 %v6189_v42, %v6183_v2  ;;  %v6191_v14 = vpop.eup %6190 }
 0x565   :  { %v943_v18 = vpop.permute.xlu1 %942  ;;  %v940_v19 = vmul.f32 %v6191_v14, %v6181_v63 }
 0x566   :  { %5851 = vmatprep.mubr.msk.f32.mxu1 %vm523_vm1, %v738_v13 }
 0x567   :  { %v6193_v47 = vpop.eup %6192 }
 0x568   :  { %v739_v16 = vmul.f32 %v6193_v47, %v6187_v6  ;;  %v6195_v17 = vpop.eup %6194 }
 0x569   :  { %v941_v20 = vmul.f32 %v6195_v17, %v6185_v3  ;;  %v1034_v22 = vpop.permute.xlu1 %1033 }
 0x56a   :  { %5852 = vmatmul.mubr.msk.f32.vlgmr.msra.gmra.mxu1 %vm523_vm1, %v739_v16 }
 0x56b   :  { %5862 = vmatpush3.msra.mxu1 %v945_v41  ;;  %5865 = vmatprep.mubr.msk.f32.mxu1 %vm523_vm1, %v940_v19 }
 0x56c   :  { %5863 = vmatprep.subr.mxu1 %v943_v18 }
 0x56d   :  { %5864 = vmatpush3.msra.mxu1 %v943_v18  ;;  %v1032_v34 = vpop.permute.xlu1 %1031 }
 0x56e   :  { %5868 = vmatprep.subr.msk.mxu1 %vm435_vm0, %v1036_v15  ;;  %5866 = vmatmul.mubr.msk.f32.vlgmr.msra.gmra.mxu1 %vm523_vm1, %v941_v20 }
 0x56f   :  { %5869 = vmatpush3.xpose.msk.msra.mxu1 %vm435_vm0, %v1036_v15  ;;  %5872 = vmatprep.mubr.msk.f32.mxu1 %vm435_vm0, %v1030_v21 }
 0x570   :  { %5870 = vmatprep.subr.msk.mxu1 %vm435_vm0, %v1034_v22 }
 0x573   :  { %5871 = vmatpush3.xpose.msk.msra.mxu1 %vm435_vm0, %v1034_v22 }
 0x574   :  { %5882 = vmatprep.subr.msk.mxu1 %vm435_vm0, %v6693_v30 }
 0x576   :  { %5873 = vmatmul.mubr.msk.f32.vlgmr.msra.gmra.mxu1 %vm435_vm0, %v1032_v34 }
 0x577   :  { %5883 = vmatpush3.xpose.msk.msra.mxu1 %vm435_vm0, %v6693_v30  ;;  %5886 = vmatprep.mubr.msk.f32.mxu1 %vm435_vm0, %v6698_v31 }
 0x578   :  { %5884 = vmatprep.subr.msk.mxu1 %vm435_vm0, %v6702_v38 }
 0x57b   :  { %5885 = vmatpush3.xpose.msk.msra.mxu1 %vm435_vm0, %v6702_v38 }
 0x57c   :  { %5889 = vmatprep.subr.mxu1 %v6607_v54 }
 0x57e   :  { %5887 = vmatmul.mubr.msk.f32.vlgmr.msra.gmra.mxu1 %vm435_vm0, %v6715_v27 }
 0x57f   :  { %5890 = vmatpush3.msra.mxu1 %v6607_v54 }
 0x580   :  { %5891 = vmatprep.subr.mxu1 %v6605_v51 }
 0x581   :  { %5892 = vmatpush3.msra.mxu1 %v6605_v51 }
 0x62a   :  { %v6723_v36 = vpop.f32.mrf.mxu1 }
 0x62c   :  { %v6725_v37 = vpop.f32.mrf.mxu1 }
 0x62d   :  { %v5974_v24 = vpack.i.bf16 %v6723_v36, %v6725_v37 }
 0x62e   :  { %v6729_v25 = vpop.f32.mrf.mxu1 }
 0x630   :  { %v6731_v39 = vpop.f32.mrf.mxu1 }
 0x631   :  { %v5979_v40 = vpack.i.bf16 %v6729_v25, %v6731_v39 }
 0x636   :  { %v5874_v43 = vpop.f32.mrf.mxu1 }
 0x637   :  { %v1123_v53 = vsel %vm523_vm1, %v5874_v43, -inf }
 0x638   :  { %v1111_v44 = vpop.f32.mrf.mxu1 }
 0x639   :  { %v1120_v10 = vsel %vm523_vm1, %v1111_v44, -inf }
 0x63e   :  { %v5888_v46 = vpop.f32.mrf.mxu1 }
 0x63f   :  { %v1351_v49 = vsel %vm523_vm1, %v5888_v46, -inf }
 0x640   :  { %1352 = vmax.xlane.f32.xlu1 %v1351_v49  ;;  %v1339_v50 = vpop.f32.mrf.mxu1 }
 0x641   :  { %v1348_v52 = vsel %vm523_vm1, %v1339_v50, -inf }
 0x642   :  { %1349 = vmax.xlane.f32.xlu0 %v1348_v52 }
 0x651   :  { %1455 = vrot.lane.b32.xlu1 %v6702_v38, %s6440_s19 }
 0x655   :  { %1451 = vrot.lane.b32.xlu1 %v6698_v31, %s6440_s19 }
 0x659   :  { %1453 = vrot.lane.b32.xlu1 %v6715_v27, %s6440_s19 }
 0x67d   :  { %1124 = vmax.xlane.f32.xlu1 %v1123_v53 }
 0x6c9   :  { %v1353_v55 = vpop.xlane.xlu1 %1352 }
 0x6ca   :  { %v1355_v58 = vsub.f32 %v5888_v46, %v1353_v55 }
 0x6cb   :  { %v1350_v59 = vpop.xlane.xlu0 %1349 }
 0x6cc   :  { %v1358_v60 = vmul.f32 1.442695, %v1355_v58  ;;  %v1354_v61 = vsub.f32 %v1339_v50, %v1350_v59 }
 0x6cd   :  { %v1456_v4 = vpop.permute.xlu1 %1455 }
 0x6ce   :  { %6196 = vpow2.f32 %v1358_v60  ;;  %v1356_v62 = vmul.f32 1.442695, %v1354_v61 }
 0x6d0   :  { %6198 = vpow2.f32 %v1356_v62 }
 0x6d1   :  { %v1452_v5 = vpop.permute.xlu1 %1451 }
 0x6d5   :  { %v1454_v6 = vpop.permute.xlu1 %1453 }
 0x6db   :  { %v6197_v63 = vpop.eup %6196 }
 0x6dc   :  { %v1363_v1 = vsel %vm523_vm1, %v6197_v63, 0.0 }
 0x6dd   :  { %v6199_v2 = vpop.eup %6198  ;;  %1364 = vadd.xlane.f32.xlu0 %v1363_v1 }
 0x6de   :  { %v1360_v3 = vsel %vm523_vm1, %v6199_v2, 0.0 }
 0x6e1   :  { %1361 = vadd.xlane.f32.xlu0 %v1360_v3 }
 0x6f7   :  { %1457 = vrot.lane.b32.xlu0 %v6693_v30, %s6440_s19 }
 0x706   :  { %v1125_v7 = vpop.xlane.xlu1 %1124 }
 0x707   :  { %v1127_v8 = vsub.f32 %v5874_v43, %v1125_v7 }
 0x709   :  { %v1130_v9 = vmul.f32 1.442695, %v1127_v8 }
 0x70b   :  { %6200 = vpow2.f32 %v1130_v9 }
 0x716   :  { %1121 = vmax.xlane.f32.xlu0 %v1120_v10 }
 0x718   :  { %v6749_v11 = vpop.eup %6200 }
 0x719   :  { %v1135_v12 = vsel %vm523_vm1, %v6749_v11, 0.0 }
 0x71a   :  { %1136 = vadd.xlane.f32.xlu1 %v1135_v12 }
 0x72b   :  { %1142 = vrot.lane.b32.xlu1 %v6609_v56, %s6441_s20 }
 0x72f   :  { %1568 = vrot.lane.b32.xlu1 %v6607_v54, %s6440_s19 }
 0x733   :  { %1566 = vrot.lane.b32.xlu1 %v6605_v51, %s6440_s19 }
 0x766   :  { %v1365_v45 = vpop.xlane.xlu0 %1364 }
 0x767   :  { %6202 = vrcp.f32 %v1365_v45 }
 0x76a   :  { %v1362_v41 = vpop.xlane.xlu0 %1361 }
 0x76b   :  { %6204 = vrcp.f32 %v1362_v41 }
 0x76e   :  { %v1458_v42 = vpop.permute.xlu0 %1457 }
 0x76f   :  { %5896 = vmatprep.subr.msk.mxu1 %vm435_vm0, %v1458_v42 }
 0x774   :  { %v6203_v13 = vpop.eup %6202 }
 0x775   :  { %v1369_v15 = vmul.f32 %v6203_v13, %v6197_v63 }
 0x778   :  { %v6205_v14 = vpop.eup %6204 }
 0x779   :  { %v1368_v47 = vmul.f32 %v6205_v14, %v6199_v2 }
 0x77b   :  { %5893 = vmatprep.mubr.msk.f32.mxu1 %vm523_vm1, %v1368_v47 }
 0x77c   :  { %5894 = vmatmul.mubr.msk.f32.vlgmr.msra.gmra.mxu1 %vm523_vm1, %v1369_v15 }
 0x77d   :  { %5897 = vmatpush3.xpose.msk.msra.mxu1 %vm435_vm0, %v1458_v42  ;;  %5900 = vmatprep.mubr.msk.f32.mxu1 %vm435_vm0, %v1452_v5 }
 0x77e   :  { %5898 = vmatprep.subr.msk.mxu1 %vm435_vm0, %v1456_v4 }
 0x781   :  { %5899 = vmatpush3.xpose.msk.msra.mxu1 %vm435_vm0, %v1456_v4 }
 0x784   :  { %5901 = vmatmul.mubr.msk.f32.vlgmr.msra.gmra.mxu1 %vm435_vm0, %v1454_v6 }
 0x79f   :  { %v1122_v56 = vpop.xlane.xlu0 %1121 }
 0x7a0   :  { %v1126_v16 = vsub.f32 %v1111_v44, %v1122_v56 }
 0x7a2   :  { %v1128_v17 = vmul.f32 1.442695, %v1126_v16 }
 0x7a3   :  { %v1137_v49 = vpop.xlane.xlu1 %1136 }
 0x7a4   :  { %6206 = vpow2.f32 %v1128_v17 }
 0x7a7   :  { %v1143_v58 = vpop.permute.xlu1 %1142 }
 0x7ab   :  { %v1569_v60 = vpop.permute.xlu1 %1568 }
 0x7af   :  { %v1567_v5 = vpop.permute.xlu1 %1566 }
 0x7b1   :  { %v6207_v34 = vpop.eup %6206 }
 0x7b2   :  { %v1132_v23 = vsel %vm523_vm1, %v6207_v34, 0.0 }
 0x83c   :  { %v6767_v18 = vpop.f32.mrf.mxu1 }
 0x83e   :  { %v6769_v19 = vpop.f32.mrf.mxu1 }
 0x844   :  { %v5902_v20 = vpop.f32.mrf.mxu1 }
 0x845   :  { %v1545_v29 = vsel %vm523_vm1, %v5902_v20, -inf }
 0x846   :  { %v1533_v21 = vpop.f32.mrf.mxu1 }
 0x847   :  { %v1542_v22 = vsel %vm523_vm1, %v1533_v21, -inf }
 0x848   :  { %1543 = vmax.xlane.f32.xlu0 %v1542_v22 }
 0x84c   :  { %1546 = vmax.xlane.f32.xlu0 %v1545_v29 }
 0x850   :  { %1133 = vadd.xlane.f32.xlu0 %v1132_v23 }
 0x866   :  { %1144 = vrot.lane.b32.xlu0 %v6611_v57, %s6441_s20 }
 0x8d1   :  { %v1544_v43 = vpop.xlane.xlu0 %1543 }
 0x8d2   :  { %v1548_v44 = vsub.f32 %v1533_v21, %v1544_v43 }
 0x8d4   :  { %v1550_v46 = vmul.f32 1.442695, %v1548_v44 }
 0x8d5   :  { %v1547_v50 = vpop.xlane.xlu0 %1546 }
 0x8d6   :  { %6208 = vpow2.f32 %v1550_v46  ;;  %v1549_v52 = vsub.f32 %v5902_v20, %v1547_v50 }
 0x8d7   :  { %6210 = vrcp.f32 %v1137_v49 }
 0x8d8   :  { %v1552_v53 = vmul.f32 1.442695, %v1549_v52 }
 0x8d9   :  { %v1134_v55 = vpop.xlane.xlu0 %1133 }
 0x8da   :  { %6212 = vpow2.f32 %v1552_v53 }
 0x8db   :  { %6214 = vrcp.f32 %v1134_v55 }
 0x8dd   :  { %v1145_v59 = vpop.permute.xlu0 %1144 }
 0x8de   :  { %5875 = vmatprep.subr.mxu0 %v1145_v59 }
 0x8df   :  { %5876 = vmatpush3.msra.mxu0 %v1145_v59 }
 0x8e0   :  { %5877 = vmatprep.subr.mxu0 %v1143_v58 }
 0x8e1   :  { %5878 = vmatpush3.msra.mxu0 %v1143_v58 }
 0x8e2   :  { %5903 = vmatprep.subr.mxu0 %v1569_v60 }
 0x8e3   :  { %v6209_v57 = vpop.eup %6208 }
 0x8e4   :  { %v1554_v61 = vsel %vm523_vm1, %v6209_v57, 0.0  ;;  %v6211_v62 = vpop.eup %6210 }
 0x8e5   :  { %1555 = vadd.xlane.f32.xlu0 %v1554_v61  ;;  %v1141_v4 = vmul.f32 %v6211_v62, %v6749_v11 }
 0x8e7   :  { %v6213_v63 = vpop.eup %6212 }
 0x8e8   :  { %v6215_v1 = vpop.eup %6214  ;;  %v1557_v2 = vsel %vm523_vm1, %v6213_v63, 0.0 }
 0x8e9   :  { %1558 = vadd.xlane.f32.xlu1 %v1557_v2  ;;  %v1140_v3 = vmul.f32 %v6215_v1, %v6207_v34 }
 0x8eb   :  { %5879 = vmatprep.mubr.msk.f32.mxu0 %vm523_vm1, %v1140_v3 }
 0x8ec   :  { %5880 = vmatmul.mubr.msk.f32.vlgmr.msra.gmra.mxu0 %vm523_vm1, %v1141_v4 }
 0x8ed   :  { %5904 = vmatpush3.msra.mxu0 %v1569_v60 }
 0x8ee   :  { %5905 = vmatprep.subr.mxu0 %v1567_v5 }
 0x8ef   :  { %5906 = vmatpush3.msra.mxu0 %v1567_v5 }
 0x8fa   :  { %1657 = vrot.lane.b32.xlu1 %v6702_v38, %s6433_s8 }
 0x8fb   :  { %1659 = vrot.lane.b32.xlu0 %v6693_v30, %s6433_s8 }
 0x8fe   :  { %1655 = vrot.lane.b32.xlu1 %v6715_v27, %s6433_s8 }
 0x8ff   :  { %1653 = vrot.lane.b32.xlu0 %v6698_v31, %s6433_s8 }
 0x96e   :  { %v1556_v6 = vpop.xlane.xlu0 %1555 }
 0x96f   :  { %6216 = vrcp.f32 %v1556_v6 }
 0x972   :  { %v1559_v7 = vpop.xlane.xlu1 %1558  ;;  %v1660_v8 = vpop.permute.xlu0 %1659 }
 0x973   :  { %6218 = vrcp.f32 %v1559_v7  ;;  %5910 = vmatprep.subr.msk.mxu0 %vm435_vm0, %v1660_v8 }
 0x976   :  { %v1654_v45 = vpop.permute.xlu0 %1653  ;;  %v1658_v41 = vpop.permute.xlu1 %1657 }
 0x97a   :  { %v1656_v42 = vpop.permute.xlu1 %1655 }
 0x97c   :  { %v6217_v9 = vpop.eup %6216 }
 0x97d   :  { %v1562_v10 = vmul.f32 %v6217_v9, %v6209_v57 }
 0x97f   :  { %5907 = vmatprep.mubr.msk.f32.mxu0 %vm523_vm1, %v1562_v10 }
 0x980   :  { %v6219_v11 = vpop.eup %6218 }
 0x981   :  { %v1563_v12 = vmul.f32 %v6219_v11, %v6213_v63 }
 0x983   :  { %5908 = vmatmul.mubr.msk.f32.vlgmr.msra.gmra.mxu0 %vm523_vm1, %v1563_v12 }
 0x984   :  { %5911 = vmatpush3.xpose.msk.msra.mxu0 %vm435_vm0, %v1660_v8  ;;  %5914 = vmatprep.mubr.msk.f32.mxu0 %vm435_vm0, %v1654_v45 }
 0x985   :  { %5912 = vmatprep.subr.msk.mxu0 %vm435_vm0, %v1658_v41 }
 0x988   :  { %5913 = vmatpush3.xpose.msk.msra.mxu0 %vm435_vm0, %v1658_v41 }
 0x98b   :  { %5915 = vmatmul.mubr.msk.f32.vlgmr.msra.gmra.mxu0 %vm435_vm0, %v1656_v42 }
 0x9ac   :  { %v6797_v13 = vpop.f32.mrf.mxu0 }
 0x9ae   :  { %v6799_v14 = vpop.f32.mrf.mxu0 }
 0x9af   :  { %v5989_v7 = vpack.i.bf16 %v6797_v13, %v6799_v14 }
 0xa43   :  { %v6801_v47 = vpop.f32.mrf.mxu0 }
 0xa45   :  { %v6803_v15 = vpop.f32.mrf.mxu0 }
 0xa46   :  { %v5984_v56 = vpack.i.bf16 %v6801_v47, %v6803_v15 }
 0xa4b   :  { %v5916_v16 = vpop.f32.mrf.mxu0 }
 0xa4c   :  { %v1747_v17 = vsel %vm523_vm1, %v5916_v16, -inf }
 0xa4d   :  { %1748 = vmax.xlane.f32.xlu1 %v1747_v17  ;;  %v1735_v20 = vpop.f32.mrf.mxu0 }
 0xa4e   :  { %v1744_v21 = vsel %vm523_vm1, %v1735_v20, -inf }
 0xa4f   :  { %1745 = vmax.xlane.f32.xlu0 %v1744_v21 }
 0xa5e   :  { %1766 = vrot.lane.b32.xlu1 %v6605_v51, %s6433_s8 }
 0xa62   :  { %1859 = vrot.lane.b32.xlu1 %v6693_v30, %s6441_s20 }
 0xa66   :  { %1857 = vrot.lane.b32.xlu1 %v6702_v38, %s6441_s20 }
 0xa6a   :  { %1855 = vrot.lane.b32.xlu1 %v6715_v27, %s6441_s20 }
 0xad6   :  { %v1749_v22 = vpop.xlane.xlu1 %1748 }
 0xad7   :  { %v1751_v29 = vsub.f32 %v5916_v16, %v1749_v22 }
 0xad8   :  { %v1746_v34 = vpop.xlane.xlu0 %1745 }
 0xad9   :  { %v1754_v23 = vmul.f32 1.442695, %v1751_v29  ;;  %v1750_v43 = vsub.f32 %v1735_v20, %v1746_v34 }
 0xada   :  { %v1767_v52 = vpop.permute.xlu1 %1766 }
 0xadb   :  { %6220 = vpow2.f32 %v1754_v23  ;;  %v1752_v44 = vmul.f32 1.442695, %v1750_v43 }
 0xadd   :  { %6222 = vpow2.f32 %v1752_v44 }
 0xade   :  { %v1860_v55 = vpop.permute.xlu1 %1859 }
 0xae2   :  { %v1858_v61 = vpop.permute.xlu1 %1857 }
 0xae6   :  { %v1856_v62 = vpop.permute.xlu1 %1855 }
 0xae8   :  { %v6221_v46 = vpop.eup %6220 }
 0xae9   :  { %v1759_v49 = vsel %vm523_vm1, %v6221_v46, 0.0 }
 0xaea   :  { %v6223_v50 = vpop.eup %6222  ;;  %1760 = vadd.xlane.f32.xlu0 %v1759_v49 }
 0xaeb   :  { %v1756_v30 = vsel %vm523_vm1, %v6223_v50, 0.0 }
 0xaee   :  { %1757 = vadd.xlane.f32.xlu0 %v1756_v30  ;;  %v6038_v30 = vld [vmem:[#allocation6 + $0x28] sm:$0xff]  }
 0xb04   :  { %1768 = vrot.lane.b32.xlu0 %v6607_v54, %s6433_s8 }
 0xb08   :  { %1853 = vrot.lane.b32.xlu0 %v6698_v31, %s6441_s20 }
 0xb73   :  { %v1761_v38 = vpop.xlane.xlu0 %1760 }
 0xb74   :  { %6224 = vrcp.f32 %v1761_v38  ;;  %v6039_v38 = vld [vmem:[#allocation6 + $0x20] sm:$0xff]  }
 0xb77   :  { %v1758_v27 = vpop.xlane.xlu0 %1757 }
 0xb78   :  { %6226 = vrcp.f32 %v1758_v27  ;;  %v6040_v27 = vld [vmem:[#allocation6 + $0x18] sm:$0xff]  }
 0xb7b   :  { %v1769_v53 = vpop.permute.xlu0 %1768 }
 0xb7c   :  { %5917 = vmatprep.subr.mxu1 %v1769_v53 }
 0xb7d   :  { %5918 = vmatpush3.msra.mxu1 %v1769_v53  ;;  %v6042_v53 = vld [vmem:[#allocation6 + $0x8] sm:$0xff]  }
 0xb7e   :  { %5919 = vmatprep.subr.mxu1 %v1767_v52 }
 0xb7f   :  { %5920 = vmatpush3.msra.mxu1 %v1767_v52  ;;  %v1854_v31 = vpop.permute.xlu0 %1853  ;;  %v6041_v52 = vld [vmem:[#allocation6 + $0x10] sm:$0xff]  }
 0xb80   :  { %5924 = vmatprep.subr.msk.mxu1 %vm435_vm0, %v1860_v55 }
 0xb81   :  { %v6225_v58 = vpop.eup %6224 }
 0xb82   :  { %v1765_v57 = vmul.f32 %v6225_v58, %v6221_v46 }
 0xb85   :  { %v6227_v59 = vpop.eup %6226 }
 0xb86   :  { %v1764_v60 = vmul.f32 %v6227_v59, %v6223_v50 }
 0xb88   :  { %5921 = vmatprep.mubr.msk.f32.mxu1 %vm523_vm1, %v1764_v60 }
 0xb89   :  { %5922 = vmatmul.mubr.msk.f32.vlgmr.msra.gmra.mxu1 %vm523_vm1, %v1765_v57 }
 0xb8a   :  { %5925 = vmatpush3.xpose.msk.msra.mxu1 %vm435_vm0, %v1860_v55  ;;  %5928 = vmatprep.mubr.msk.f32.mxu1 %vm435_vm0, %v1854_v31  ;;  %v6043_v55 = vld [vmem:[#allocation6] sm:$0xff]  }
 0xb8b   :  { %5926 = vmatprep.subr.msk.mxu1 %vm435_vm0, %v1858_v61 }
 0xb8e   :  { %5927 = vmatpush3.xpose.msk.msra.mxu1 %vm435_vm0, %v1858_v61 }
 0xb91   :  { %5929 = vmatmul.mubr.msk.f32.vlgmr.msra.gmra.mxu1 %vm435_vm0, %v1856_v62 }
 0xb92   :  { %3162 = vmatprep.mubr.bf16.mxu1 %v6439_v0 }
 0xc49   :  { %v5923_v63 = vpop.f32.mrf.mxu1 }
 0xc4b   :  { %v1844_v1 = vpop.f32.mrf.mxu1 }
 0xc4c   :  { %v5994_v2 = vpack.i.bf16 %v5923_v63, %v1844_v1 }
 0xc51   :  { %v5930_v3 = vpop.f32.mrf.mxu1 }
 0xc52   :  { %v1947_v4 = vsel %vm523_vm1, %v5930_v3, -inf }
 0xc53   :  { %1948 = vmax.xlane.f32.xlu1 %v1947_v4  ;;  %v1935_v5 = vpop.f32.mrf.mxu1 }
 0xc54   :  { %v1944_v6 = vsel %vm523_vm1, %v1935_v5, -inf }
 0xc55   :  { %1945 = vmax.xlane.f32.xlu0 %v1944_v6 }
 0xc64   :  { %1966 = vrot.lane.b32.xlu1 %v6605_v51, %s6441_s20 }
 0xc68   :  { %5975 = vrot.lane.b32.xlu1 %v5974_v24, %s6441_s20 }
 0xc6c   :  { %5980 = vrot.lane.b32.xlu1 %v5979_v40, %s6433_s8 }
 0xc70   :  { %5990 = vrot.lane.b32.xlu1 %v5989_v7, %s6440_s19 }
 0xcdc   :  { %v1949_v8 = vpop.xlane.xlu1 %1948 }
 0xcdd   :  { %v1951_v9 = vsub.f32 %v5930_v3, %v1949_v8 }
 0xcde   :  { %v1946_v10 = vpop.xlane.xlu0 %1945 }
 0xcdf   :  { %v1954_v11 = vmul.f32 1.442695, %v1951_v9  ;;  %v1950_v51 = vsub.f32 %v1935_v5, %v1946_v10 }
 0xce0   :  { %v1967_v39 = vpop.permute.xlu1 %1966 }
 0xce1   :  { %6228 = vpow2.f32 %v1954_v11  ;;  %v1952_v12 = vmul.f32 1.442695, %v1950_v51 }
 0xce3   :  { %6230 = vpow2.f32 %v1952_v12  ;;  %v5228_v12 = vld [vmem:[#allocation7] ss:$0 sm:$0xff] }
 0xce4   :  { %v5976_v40 = vpop.permute.xlu1 %5975 }
 0xce5   :  { %v5977_v16 = vunpack.i.l.bf16 %v5976_v40 }
 0xce7   :  { %v1253_v21 = vsel %vm435_vm0, %v6655_v28, %v5977_v16  ;;  %v6037_v28 = vld [vmem:[#allocation6 + $0x30] sm:$0xff]  }
 0xce8   :  { %v5981_v42 = vpop.permute.xlu1 %5980 }
 0xce9   :  { %v5983_v17 = vunpack.i.h.bf16 %v5981_v42  ;;  %v5982_v47 = vunpack.i.l.bf16 %v5981_v42 }
 0xceb   :  { %v1256_v29 = vsel %vm1255_vm2, %v1253_v21, %v5982_v47  ;;  %v2398_v47 = vld [vmem:[#allocation9 + $0x3c0] sm:$0xff]  ;;  %v2399_v21 = vld [vmem:[#allocation9 + $0x3c8] sm:$0xff] }
 0xcec   :  { %v5991_v14 = vpop.permute.xlu1 %5990 }
 0xced   :  { %v5993_v15 = vunpack.i.h.bf16 %v5991_v14 }
 0xcee   :  { %v6229_v36 = vpop.eup %6228 }
 0xcef   :  { %v1959_v37 = vsel %vm523_vm1, %v6229_v36, 0.0 }
 0xcf0   :  { %v6231_v24 = vpop.eup %6230  ;;  %1960 = vadd.xlane.f32.xlu0 %v1959_v37 }
 0xcf1   :  { %v1956_v25 = vsel %vm523_vm1, %v6231_v24, 0.0 }
 0xcf4   :  { %1957 = vadd.xlane.f32.xlu0 %v1956_v25 }
 0xd0a   :  { %1968 = vrot.lane.b32.xlu0 %v6607_v54, %s6441_s20  ;;  %v5978_v54 = vunpack.i.h.bf16 %v5976_v40 }
 0xd0c   :  { %v1254_v20 = vsel %vm435_vm0, %v6651_v26, %v5978_v54  ;;  %v6036_v26 = vld [vmem:[#allocation6 + $0x38] sm:$0xff]  }
 0xd0d   :  { %v1257_v34 = vsel %vm1255_vm2, %v1254_v20, %v5983_v17  ;;  %v6255_v54 = vld [vmem:[%s7099_s0 + $0x18] sm:$0xff]  ;;  %v2390_v17 = vld [vmem:[#allocation9 + $0x380] sm:$0xff] }
 0xd0e   :  { %5985 = vrot.lane.b32.xlu0 %v5984_v56, %s6441_s20  ;;  %v5992_v56 = vunpack.i.l.bf16 %v5991_v14  ;;  %v1260_v44 = vsel %vm1258_vm3, %v1257_v34, %v5993_v15  ;;  %v2391_v15 = vld [vmem:[#allocation9 + $0x388] sm:$0xff]  ;;  %v5352_v20 = vcombine.high %v2390_v17, %v2398_v47 }
 0xd10   :  { %v1259_v43 = vsel %vm1258_vm3, %v1256_v29, %v5992_v56  ;;  %v5351_v56 = vcombine.low %v2390_v17, %v2398_v47  ;;  %v5354_v29 = vcombine.high %v2391_v15, %v2399_v21  ;;  %3130 = vmatprep.subr.bf16.mxu1 %v5352_v20  ;;  %v2319_v47 = vld [vmem:[#allocation9 + $0x148] sm:$0xff] }
 0xd11   :  { %v2083_v50 = vpack.c.bf16 %v1260_v44, %v1259_v43 }
 0xd12   :  { %5995 = vrot.lane.b32.xlu0 %v5994_v2, %s6433_s8  ;;  %3131 = vmatpush1.bf16.msra.mxu1 %v5351_v56 }
 0xd79   :  { %v1961_v45 = vpop.xlane.xlu0 %1960 }
 0xd7a   :  { %6232 = vrcp.f32 %v1961_v45 }
 0xd7d   :  { %v1958_v41 = vpop.xlane.xlu0 %1957 }
 0xd7e   :  { %6234 = vrcp.f32 %v1958_v41  ;;  %v6253_v41 = vld [vmem:[%s7099_s0 + $0x8] sm:$0xff] }
 0xd81   :  { %v1969_v13 = vpop.permute.xlu0 %1968 }
 0xd82   :  { %5931 = vmatprep.subr.mxu0 %v1969_v13 }
 0xd83   :  { %5932 = vmatpush3.msra.mxu0 %v1969_v13  ;;  %v6254_v13 = vld [vmem:[%s7099_s0 + $0x10] sm:$0xff] }
 0xd84   :  { %5933 = vmatprep.subr.mxu0 %v1967_v39 }
 0xd85   :  { %5934 = vmatpush3.msra.mxu0 %v1967_v39  ;;  %v5986_v57 = vpop.permute.xlu0 %5985 }
 0xd86   :  { %5938 = vmatprep.subr.bf16.mxu0 %v6036_v26  ;;  %v5988_v61 = vunpack.i.h.bf16 %v5986_v57  ;;  %v5987_v62 = vunpack.i.l.bf16 %v5986_v57  ;;  %v2375_v57 = vld [vmem:[#allocation9 + $0x308] sm:$0xff] }
 0xd87   :  { %v6233_v22 = vpop.eup %6232 }
 0xd88   :  { %v1965_v49 = vmul.f32 %v6233_v22, %v6229_v36  ;;  %v2078_v3 = vsel %vm435_vm0, %v6767_v18, %v5988_v61  ;;  %v2077_v4 = vsel %vm435_vm0, %v6769_v19, %v5987_v62  ;;  %v5353_v22 = vcombine.low %v2391_v15, %v2399_v21  ;;  %v2383_v61 = vld [vmem:[#allocation9 + $0x348] sm:$0xff]  ;;  %v2294_v21 = vld [vmem:[#allocation9 + $0x80] sm:$0xff] }
 0xd89   :  { %v5996_v31 = vpop.permute.xlu0 %5995 }
 0xd8a   :  { %v5998_v63 = vunpack.i.h.bf16 %v5996_v31  ;;  %v5997_v1 = vunpack.i.l.bf16 %v5996_v31 }
 0xd8b   :  { %v6235_v23 = vpop.eup %6234 }
 0xd8c   :  { %v1964_v46 = vmul.f32 %v6235_v23, %v6231_v24  ;;  %v2079_v7 = vsel %vm1255_vm2, %v2077_v4, %v5997_v1  ;;  %v2080_v8 = vsel %vm1255_vm2, %v2078_v3, %v5998_v63  ;;  %v6252_v24 = vld [vmem:[%s7099_s0] sm:$0xff]  ;;  %v5337_v63 = vcombine.low %v2375_v57, %v2383_v61  ;;  %v2359_v4 = vld [vmem:[#allocation9 + $0x288] sm:$0xff] }
 0xd8d   :  { %v5338_v1 = vcombine.high %v2375_v57, %v2383_v61  ;;  %v2366_v3 = vld [vmem:[#allocation9 + $0x2c0] sm:$0xff]  ;;  %v2400_v57 = vld [vmem:[#allocation9 + $0x3d0] sm:$0xff] }
 0xd8e   :  { %5935 = vmatprep.mubr.msk.f32.mxu0 %vm523_vm1, %v1964_v46 }
 0xd8f   :  { %5936 = vmatmul.mubr.msk.f32.vlgmr.msra.gmra.mxu0 %vm523_vm1, %v1965_v49 }
 0xd90   :  { %5954 = vmatprep.mubr.bf16.mxu0 %v2083_v50  ;;  %5939 = vmatpush3.bf16.msra.mxu0 %v6036_v26 }
 0xd91   :  { %5940 = vmatprep.subr.bf16.mxu0 %v6037_v28 }
 0xd94   :  { %5941 = vmatpush3.bf16.msra.mxu0 %v6037_v28 }
 0xd95   :  { %5942 = vmatprep.subr.bf16.mxu0 %v6038_v30 }
 0xd98   :  { %5943 = vmatpush3.bf16.msra.mxu0 %v6038_v30 }
 0xd99   :  { %5944 = vmatprep.subr.bf16.mxu0 %v6039_v38 }
 0xd9c   :  { %5945 = vmatpush3.bf16.msra.mxu0 %v6039_v38 }
 0xd9d   :  { %5946 = vmatprep.subr.bf16.mxu0 %v6040_v27 }
 0xda0   :  { %5947 = vmatpush3.bf16.msra.mxu0 %v6040_v27 }
 0xda1   :  { %5948 = vmatprep.subr.bf16.mxu0 %v6041_v52 }
 0xda4   :  { %5949 = vmatpush3.bf16.msra.mxu0 %v6041_v52 }
 0xda5   :  { %5950 = vmatprep.subr.bf16.mxu0 %v6042_v53 }
 0xda8   :  { %5951 = vmatpush3.bf16.msra.mxu0 %v6042_v53 }
 0xda9   :  { %5952 = vmatprep.subr.bf16.mxu0 %v6043_v55 }
 0xdac   :  { %5953 = vmatpush3.bf16.msra.mxu0 %v6043_v55 }
 0xdad   :  { %3183 = vmatprep.subr.bf16.mxu0 %v5354_v29  ;;  %v2295_v29 = vld [vmem:[#allocation9 + $0x88] sm:$0xff] }
 0xe4f   :  { %v5937_v58 = vpop.f32.mrf.mxu0 }
 0xe51   :  { %v2044_v59 = vpop.f32.mrf.mxu0 }
 0xe52   :  { %v5999_v60 = vpack.i.bf16 %v5937_v58, %v2044_v59  ;;  %v2374_v59 = vld [vmem:[#allocation9 + $0x300] sm:$0xff] }
 0xe54   :  { %6000 = vrot.lane.b32.xlu1 %v5999_v60, %s6440_s19  ;;  %v2382_v60 = vld [vmem:[#allocation9 + $0x340] sm:$0xff] }
 0xe55   :  { %v5336_v31 = vcombine.high %v2374_v59, %v2382_v60  ;;  %v5335_v62 = vcombine.low %v2374_v59, %v2382_v60  ;;  %v2392_v60 = vld [vmem:[#allocation9 + $0x390] sm:$0xff] }
 0xe56   :  { %v5356_v61 = vcombine.high %v2392_v60, %v2400_v57 }
 0xe57   :  { %3132 = vmatprep.subr.bf16.mxu1 %v5336_v31  ;;  %v2393_v31 = vld [vmem:[#allocation9 + $0x398] sm:$0xff] }
 0xe58   :  { %3133 = vmatpush1.bf16.msra.mxu1 %v5335_v62  ;;  %v2401_v62 = vld [vmem:[#allocation9 + $0x3d8] sm:$0xff] }
 0xec6   :  { %v6001_v2 = vpop.permute.xlu1 %6000 }
 0xec7   :  { %v6003_v5 = vunpack.i.h.bf16 %v6001_v2  ;;  %v6002_v6 = vunpack.i.l.bf16 %v6001_v2  ;;  %v2358_v2 = vld [vmem:[#allocation9 + $0x280] sm:$0xff] }
 0xec9   :  { %v2081_v9 = vsel %vm1258_vm3, %v2079_v7, %v6002_v6  ;;  %v2082_v10 = vsel %vm1258_vm3, %v2080_v8, %v6003_v5  ;;  %v5320_v5 = vcombine.high %v2358_v2, %v2366_v3  ;;  %v2367_v6 = vld [vmem:[#allocation9 + $0x2c8] sm:$0xff]  ;;  %v5319_v7 = vcombine.low %v2358_v2, %v2366_v3 }
 0xeca   :  { %v2084_v11 = vpack.c.bf16 %v2082_v10, %v2081_v9  ;;  %v5321_v8 = vcombine.low %v2359_v4, %v2367_v6  ;;  %v5322_v9 = vcombine.high %v2359_v4, %v2367_v6  ;;  %v2342_v10 = vld [vmem:[#allocation9 + $0x200] sm:$0xff]  ;;  %v5358_v2 = vcombine.high %v2393_v31, %v2401_v62 }
 0xecb   :  { %3134 = vmatprep.subr.bf16.mxu1 %v5320_v5 }
 0xecc   :  { %5955 = vmatmul.mubr.bf16.vlgmr.msra.gmra.mxu0 %v2084_v11  ;;  %3135 = vmatpush1.bf16.msra.mxu1 %v5319_v7  ;;  %v2350_v11 = vld [vmem:[#allocation9 + $0x240] sm:$0xff] }
 0xecd   :  { %3215 = vmatprep.mubr.bf16.mxu0 %v6439_v0  ;;  %3184 = vmatpush1.bf16.msra.mxu0 %v5353_v22  ;;  %v2302_v22 = vld [vmem:[#allocation9 + $0xc0] sm:$0xff] }
 0xece   :  { %3185 = vmatprep.subr.bf16.mxu0 %v5338_v1  ;;  %v5357_v1 = vcombine.low %v2393_v31, %v2401_v62  ;;  %v2336_v62 = vld [vmem:[#allocation9 + $0x1d0] sm:$0xff] }
 0xed1   :  { %3186 = vmatpush1.bf16.msra.mxu0 %v5337_v63  ;;  %v5355_v63 = vcombine.low %v2392_v60, %v2400_v57 }
 0xed2   :  { %3187 = vmatprep.subr.bf16.mxu0 %v5322_v9 }
 0xed5   :  { %3188 = vmatpush1.bf16.msra.mxu0 %v5321_v8 }
 0xf8c   :  { %v5956_v51 = vpop.f32.mrf.mxu0 }
 0xf8d   :  { %v2199_v19 = vadd.f32 %v5956_v51, %v5228_v12  ;;  %v2343_v51 = vld [vmem:[#allocation9 + $0x208] sm:$0xff] }
 0xf8e   :  { %v2190_v18 = vpop.f32.mrf.mxu0 }
 0xf8f   :  { %v2191_v36 = vadd.f32 %v5228_v12, %v2190_v18  ;;  %v2207_v14 = vadd.f32 %v6254_v13, %v2199_v19  ;;  %v2351_v18 = vld [vmem:[#allocation9 + $0x248] sm:$0xff] }
 0xf90   :  { %v5957_v37 = vpop.f32.mrf.mxu0  ;;  %v5306_v19 = vcombine.high %v2343_v51, %v2351_v18 }
 0xf91   :  { %v2205_v25 = vadd.f32 %v6252_v24, %v2191_v36  ;;  %v2202_v45 = vadd.f32 %v5957_v37, %v5228_v12  ;;  %v5303_v36 = vcombine.low %v2342_v10, %v2350_v11  ;;  %v5305_v37 = vcombine.low %v2343_v51, %v2351_v18  ;;  %v2326_v24 = vld [vmem:[#allocation9 + $0x180] sm:$0xff] }
 0xf92   :  { %v2193_v39 = vpop.f32.mrf.mxu0  ;;  %3189 = vmatprep.subr.bf16.mxu0 %v5306_v19  ;;  %v5237_v19 = vld [vmem:[%s7104_s5] ss:$0 sm:$0xff] }
 0xf93   :  { %v2194_v40 = vadd.f32 %v5228_v12, %v2193_v39  ;;  %2209 = vadd.xlane.f32.xlu0 %v2205_v25  ;;  %v2208_v16 = vadd.f32 %v6255_v54, %v2202_v45  ;;  %v5304_v12 = vcombine.high %v2342_v10, %v2350_v11  ;;  %v2327_v39 = vld [vmem:[#allocation9 + $0x188] sm:$0xff]  ;;  %3190 = vmatpush1.bf16.msra.mxu0 %v5305_v37  ;;  %v2318_v54 = vld [vmem:[#allocation9 + $0x140] sm:$0xff] }
 0xf94   :  { %v2335_v45 = vld [vmem:[#allocation9 + $0x1c8] sm:$0xff] }
 0xf95   :  { %v2206_v42 = vadd.f32 %v6253_v41, %v2194_v40  ;;  %3136 = vmatprep.subr.bf16.mxu1 %v5304_v12  ;;  %v5290_v13 = vcombine.high %v2327_v39, %v2335_v45 }
 0xf96   :  { %3137 = vmatpush1.bf16.msra.mxu1 %v5303_v36 }
 0xf97   :  { %2211 = vadd.xlane.f32.xlu1 %v2206_v42  ;;  %2213 = vadd.xlane.f32.xlu0 %v2207_v14 }
 0xf98   :  { %3191 = vmatprep.subr.bf16.mxu0 %v5290_v13 }
 0xf9b   :  { %2215 = vadd.xlane.f32.xlu0 %v2208_v16 }
0x101c   :  { %v2210_v34 = vpop.xlane.xlu0 %2209 }
0x101d   :  { %v2218_v23 = vmul.f32 0.0078125, %v2210_v34  ;;  %v5256_v34 = vcombine.high %v2294_v21, %v2302_v22 }
0x101f   :  { %v6888_v43 = vsub.f32 %v2205_v25, %v2218_v23  ;;  %v2334_v25 = vld [vmem:[#allocation9 + $0x1c0] sm:$0xff]  ;;  %v2303_v23 = vld [vmem:[#allocation9 + $0xc8] sm:$0xff] }
0x1020   :  { %v2212_v44 = vpop.xlane.xlu1 %2211  ;;  %v2214_v46 = vpop.xlane.xlu0 %2213  ;;  %v5288_v40 = vcombine.high %v2326_v24, %v2334_v25  ;;  %v5287_v41 = vcombine.low %v2326_v24, %v2334_v25 }
0x1021   :  { %v2219_v49 = vmul.f32 0.0078125, %v2212_v44  ;;  %v2220_v50 = vmul.f32 0.0078125, %v2214_v46  ;;  %v2226_v26 = vmul.f32 %v6888_v43, %v6888_v43  ;;  %v5255_v44 = vcombine.low %v2294_v21, %v2302_v22  ;;  %v2360_v22 = vld [vmem:[#allocation9 + $0x290] sm:$0xff] }
0x1022   :  { %3138 = vmatprep.subr.bf16.mxu1 %v5288_v40  ;;  %v5257_v46 = vcombine.low %v2295_v29, %v2303_v23 }
0x1023   :  { %v6892_v28 = vsub.f32 %v2206_v42, %v2219_v49  ;;  %v6894_v30 = vsub.f32 %v2207_v14, %v2220_v50  ;;  %2230 = vadd.xlane.f32.xlu0 %v2226_v26  ;;  %v5289_v42 = vcombine.low %v2327_v39, %v2335_v45  ;;  %3139 = vmatpush1.bf16.msra.mxu1 %v5287_v41  ;;  %v2310_v14 = vld [vmem:[#allocation9 + $0x100] sm:$0xff]  ;;  %v5238_v45 = vld [vmem:[%s7105_s6] ss:$0 sm:$0xff] }
0x1024   :  { %v2216_v38 = vpop.xlane.xlu0 %2215  ;;  %v5272_v17 = vcombine.high %v2310_v14, %v2318_v54  ;;  %v5271_v15 = vcombine.low %v2310_v14, %v2318_v54  ;;  %v5258_v49 = vcombine.high %v2295_v29, %v2303_v23  ;;  %v2278_v50 = vld [vmem:[#allocation9] sm:$0xff]  ;;  %v2384_v14 = vld [vmem:[#allocation9 + $0x350] sm:$0xff]  ;;  %v2377_v54 = vld [vmem:[#allocation9 + $0x318] sm:$0xff] }
0x1025   :  { %v2221_v27 = vmul.f32 0.0078125, %v2216_v38  ;;  %v2227_v52 = vmul.f32 %v6892_v28, %v6892_v28  ;;  %v2228_v53 = vmul.f32 %v6894_v30, %v6894_v30  ;;  %3192 = vmatpush1.bf16.msra.mxu0 %v5289_v42  ;;  %v2286_v26 = vld [vmem:[#allocation9 + $0x40] sm:$0xff]  ;;  %v2279_v38 = vld [vmem:[#allocation9 + $0x8] sm:$0xff]  ;;  %v2376_v42 = vld [vmem:[#allocation9 + $0x310] sm:$0xff] }
0x1026   :  { %3140 = vmatprep.subr.bf16.mxu1 %v5272_v17  ;;  %v2368_v29 = vld [vmem:[#allocation9 + $0x2d0] sm:$0xff]  ;;  %v2369_v23 = vld [vmem:[#allocation9 + $0x2d8] sm:$0xff] }
0x1027   :  { %v6900_v55 = vsub.f32 %v2208_v16, %v2221_v27  ;;  %2232 = vadd.xlane.f32.xlu1 %v2227_v52  ;;  %2234 = vadd.xlane.f32.xlu0 %v2228_v53  ;;  %v2311_v16 = vld [vmem:[#allocation9 + $0x108] sm:$0xff]  ;;  %v5240_v27 = vcombine.high %v2278_v50, %v2286_v26  ;;  %v5239_v53 = vcombine.low %v2278_v50, %v2286_v26  ;;  %v2344_v26 = vld [vmem:[#allocation9 + $0x210] sm:$0xff] }
0x1028   :  { %v5273_v56 = vcombine.low %v2311_v16, %v2319_v47  ;;  %v5274_v20 = vcombine.high %v2311_v16, %v2319_v47  ;;  %3141 = vmatpush1.bf16.msra.mxu1 %v5271_v15  ;;  %v2287_v52 = vld [vmem:[#allocation9 + $0x48] sm:$0xff]  ;;  %v2385_v16 = vld [vmem:[#allocation9 + $0x358] sm:$0xff] }
0x1029   :  { %v2229_v58 = vmul.f32 %v6900_v55, %v6900_v55  ;;  %3142 = vmatprep.subr.bf16.mxu1 %v5256_v34  ;;  %v5242_v59 = vcombine.high %v2279_v38, %v2287_v52  ;;  %v5342_v21 = vcombine.high %v2377_v54, %v2385_v16  ;;  %v2361_v34 = vld [vmem:[#allocation9 + $0x298] sm:$0xff] }
0x102a   :  { %3193 = vmatprep.subr.bf16.mxu0 %v5274_v20  ;;  %v5340_v20 = vcombine.high %v2376_v42, %v2384_v14  ;;  %v5326_v50 = vcombine.high %v2361_v34, %v2369_v23 }
0x102b   :  { %2236 = vadd.xlane.f32.xlu1 %v2229_v58  ;;  %3194 = vmatpush1.bf16.msra.mxu0 %v5273_v56  ;;  %v5241_v58 = vcombine.low %v2279_v38, %v2287_v52  ;;  %v2352_v38 = vld [vmem:[#allocation9 + $0x250] sm:$0xff]  ;;  %v2353_v52 = vld [vmem:[#allocation9 + $0x258] sm:$0xff] }
0x102c   :  { %3195 = vmatprep.subr.bf16.mxu0 %v5258_v49  ;;  %3143 = vmatpush1.bf16.msra.mxu1 %v5255_v44  ;;  %v5324_v49 = vcombine.high %v2360_v22, %v2368_v29  ;;  %v5308_v57 = vcombine.high %v2344_v26, %v2352_v38 }
0x102d   :  { %3144 = vmatprep.subr.bf16.mxu1 %v5240_v27  ;;  %v2345_v27 = vld [vmem:[#allocation9 + $0x218] sm:$0xff] }
0x102e   :  { %v5310_v31 = vcombine.high %v2345_v27, %v2353_v52 }
0x102f   :  { %3196 = vmatpush1.bf16.msra.mxu0 %v5257_v46 }
0x1030   :  { %3197 = vmatprep.subr.bf16.mxu0 %v5242_v59  ;;  %3145 = vmatpush1.bf16.msra.mxu1 %v5239_v53  ;;  %v5325_v59 = vcombine.low %v2361_v34, %v2369_v23 }
0x1031   :  { %3236 = vmatprep.subr.bf16.mxu1 %v5356_v61  ;;  %v2328_v61 = vld [vmem:[#allocation9 + $0x190] sm:$0xff] }
0x1033   :  { %3198 = vmatpush1.bf16.msra.mxu0 %v5241_v58  ;;  %v5323_v58 = vcombine.low %v2360_v22, %v2368_v29 }
0x1034   :  { %3289 = vmatprep.subr.bf16.mxu0 %v5358_v2  ;;  %v5307_v2 = vcombine.low %v2344_v26, %v2352_v38 }
0x10ac   :  { %v2231_v3 = vpop.xlane.xlu0 %2230 }
0x10ad   :  { %v2238_v4 = vmul.f32 0.0078125, %v2231_v3  ;;  %v5309_v3 = vcombine.low %v2345_v27, %v2353_v52  ;;  %v2362_v52 = vld [vmem:[#allocation9 + $0x2a0] sm:$0xff] }
0x10af   :  { %v2242_v5 = vadd.f32 1e-05, %v2238_v4  ;;  %v5292_v4 = vcombine.high %v2328_v61, %v2336_v62 }
0x10b0   :  { %v2233_v6 = vpop.xlane.xlu1 %2232  ;;  %v2235_v7 = vpop.xlane.xlu0 %2234 }
0x10b1   :  { %6236 = vrsqrt.f32 %v2242_v5  ;;  %v2239_v8 = vmul.f32 0.0078125, %v2233_v6  ;;  %v2240_v9 = vmul.f32 0.0078125, %v2235_v7  ;;  %v2312_v6 = vld [vmem:[#allocation9 + $0x110] sm:$0xff] }
0x10b2   :  { %v2320_v7 = vld [vmem:[#allocation9 + $0x150] sm:$0xff] }
0x10b3   :  { %v2243_v10 = vadd.f32 1e-05, %v2239_v8  ;;  %v2244_v11 = vadd.f32 1e-05, %v2240_v9  ;;  %v2313_v8 = vld [vmem:[#allocation9 + $0x118] sm:$0xff] }
0x10b4   :  { %v2237_v51 = vpop.xlane.xlu1 %2236  ;;  %v2321_v9 = vld [vmem:[#allocation9 + $0x158] sm:$0xff] }
0x10b5   :  { %6238 = vrsqrt.f32 %v2243_v10  ;;  %v2241_v12 = vmul.f32 0.0078125, %v2237_v51  ;;  %v5291_v10 = vcombine.low %v2328_v61, %v2336_v62  ;;  %v5276_v51 = vcombine.high %v2312_v6, %v2320_v7 }
0x10b6   :  { %6240 = vrsqrt.f32 %v2244_v11 }
0x10b7   :  { %v2245_v18 = vadd.f32 1e-05, %v2241_v12  ;;  %v5278_v12 = vcombine.high %v2313_v8, %v2321_v9 }
0x10b9   :  { %6242 = vrsqrt.f32 %v2245_v18  ;;  %v2296_v18 = vld [vmem:[#allocation9 + $0x90] sm:$0xff] }
0x10be   :  { %v6237_v36 = vpop.eup %6236 }
0x10bf   :  { %v2250_v37 = vmul.f32 %v6237_v36, %v6888_v43  ;;  %v2304_v36 = vld [vmem:[#allocation9 + $0xd0] sm:$0xff] }
0x10c1   :  { %v2261_v25 = vmul.f32 %v5237_v19, %v2250_v37  ;;  %v2297_v37 = vld [vmem:[#allocation9 + $0x98] sm:$0xff] }
0x10c2   :  { %v6239_v24 = vpop.eup %6238 }
0x10c3   :  { %v2251_v39 = vmul.f32 %v6239_v24, %v6892_v28  ;;  %v6241_v40 = vpop.eup %6240  ;;  %v6912_v43 = vadd.f32 %v5238_v45, %v2261_v25  ;;  %v5275_v24 = vcombine.low %v2312_v6, %v2320_v7  ;;  %v5277_v25 = vcombine.low %v2313_v8, %v2321_v9  ;;  %v2330_v9 = vld [vmem:[#allocation9 + $0x1a0] sm:$0xff] }
0x10c4   :  { %v2252_v47 = vmul.f32 %v6241_v40, %v6894_v30  ;;  %v5339_v30 = vcombine.low %v2376_v42, %v2384_v14  ;;  %v2281_v42 = vld [vmem:[#allocation9 + $0x18] sm:$0xff]  ;;  %v5259_v14 = vcombine.low %v2296_v18, %v2304_v36 }
0x10c5   :  { %v2262_v41 = vmul.f32 %v5237_v19, %v2251_v39  ;;  %v5260_v39 = vcombine.high %v2296_v18, %v2304_v36 }
0x10c6   :  { %v6243_v13 = vpop.eup %6242  ;;  %v2263_v44 = vmul.f32 %v5237_v19, %v2252_v47 }
0x10c7   :  { %v6914_v17 = vadd.f32 %v5238_v45, %v2262_v41  ;;  %v2253_v15 = vmul.f32 %v6243_v13, %v6900_v55  ;;  %v5341_v55 = vcombine.low %v2377_v54, %v2385_v16  ;;  %v2288_v41 = vld [vmem:[#allocation9 + $0x50] sm:$0xff]  ;;  %v2289_v13 = vld [vmem:[#allocation9 + $0x58] sm:$0xff] }
0x10c8   :  { %v6928_v53 = vadd.f32 %v5238_v45, %v2263_v44  ;;  %v5246_v47 = vcombine.high %v2281_v42, %v2289_v13  ;;  %v5245_v29 = vcombine.low %v2281_v42, %v2289_v13  ;;  %v2378_v44 = vld [vmem:[#allocation9 + $0x320] sm:$0xff] }
0x10c9   :  { %v6920_v28 = vpack.c.bf16 %v6914_v17, %v6912_v43  ;;  %v2264_v56 = vmul.f32 %v5237_v19, %v2253_v15  ;;  %v2305_v19 = vld [vmem:[#allocation9 + $0xd8] sm:$0xff]  ;;  %v2394_v15 = vld [vmem:[#allocation9 + $0x3a0] sm:$0xff] }
0x10ca   :  { %v5262_v40 = vcombine.high %v2297_v37, %v2305_v19  ;;  %v5261_v54 = vcombine.low %v2297_v37, %v2305_v19  ;;  %v2314_v19 = vld [vmem:[#allocation9 + $0x120] sm:$0xff] }
0x10cb   :  { %3163 = vmatmul.mubr.bf16.vlgmr.msra.gmra.mxu1 %v6920_v28  ;;  %3216 = vmatmul.mubr.bf16.vlgmr.msra.gmra.mxu0 %v6920_v28  ;;  %v6924_v46 = vadd.f32 %v5238_v45, %v2264_v56  ;;  %v2280_v45 = vld [vmem:[#allocation9 + $0x10] sm:$0xff]  ;;  %v2402_v56 = vld [vmem:[#allocation9 + $0x3e0] sm:$0xff] }
0x10cc   :  { %3237 = vmatpush1.bf16.msra.mxu1 %v5355_v63  ;;  %3290 = vmatpush1.bf16.msra.mxu0 %v5357_v1  ;;  %v2329_v63 = vld [vmem:[#allocation9 + $0x198] sm:$0xff]  ;;  %v5244_v16 = vcombine.high %v2280_v45, %v2288_v41  ;;  %v5243_v22 = vcombine.low %v2280_v45, %v2288_v41  ;;  %v5360_v34 = vcombine.high %v2394_v15, %v2402_v56  ;;  %v2298_v13 = vld [vmem:[#allocation9 + $0xa0] sm:$0xff] }
0x10cd   :  { %7114 = vst [vmem:[#allocation20_spill] sm:$0xff] %v6924_v46  ;;  %3238 = vmatprep.subr.bf16.mxu1 %v5340_v20  ;;  %3291 = vmatprep.subr.bf16.mxu0 %v5342_v21  ;;  %v6932_v60 = vpack.c.bf16 %v6924_v46, %v6928_v53  ;;  %v2337_v1 = vld [vmem:[#allocation9 + $0x1d8] sm:$0xff]  ;;  %v2395_v20 = vld [vmem:[#allocation9 + $0x3a8] sm:$0xff] }
0x10ce   :  { %3172 = vmatprep.mubr.bf16.mxu1 %v6439_v0  ;;  %3225 = vmatprep.mubr.bf16.mxu0 %v6439_v0  ;;  %v5294_v5 = vcombine.high %v2329_v63, %v2337_v1  ;;  %v5293_v11 = vcombine.low %v2329_v63, %v2337_v1  ;;  %v2403_v21 = vld [vmem:[#allocation9 + $0x3e8] sm:$0xff]  ;;  %v2346_v1 = vld [vmem:[#allocation9 + $0x220] sm:$0xff] }
0x10cf   :  { %v5362_v23 = vcombine.high %v2395_v20, %v2403_v21  ;;  %v5361_v26 = vcombine.low %v2395_v20, %v2403_v21  ;;  %v2282_v21 = vld [vmem:[#allocation9 + $0x20] sm:$0xff] }
0x10d0   :  { %3239 = vmatpush1.bf16.msra.mxu1 %v5339_v30  ;;  %3292 = vmatpush1.bf16.msra.mxu0 %v5341_v55  ;;  %v2386_v30 = vld [vmem:[#allocation9 + $0x360] sm:$0xff]  ;;  %v2379_v55 = vld [vmem:[#allocation9 + $0x328] sm:$0xff] }
0x10d1   :  { %3240 = vmatprep.subr.bf16.mxu1 %v5324_v49  ;;  %3293 = vmatprep.subr.bf16.mxu0 %v5326_v50  ;;  %v2387_v49 = vld [vmem:[#allocation9 + $0x368] sm:$0xff]  ;;  %v5359_v50 = vcombine.low %v2394_v15, %v2402_v56  ;;  %v5344_v38 = vcombine.high %v2378_v44, %v2386_v30 }
0x10d2   :  { %v5346_v27 = vcombine.high %v2379_v55, %v2387_v49  ;;  %v5345_v61 = vcombine.low %v2379_v55, %v2387_v49  ;;  %v2396_v49 = vld [vmem:[#allocation9 + $0x3b0] sm:$0xff] }
0x10d3   :  { %3173 = vmatmul.mubr.bf16.gmra.mxu1 %v6932_v60  ;;  %3226 = vmatmul.mubr.bf16.gmra.mxu0 %v6932_v60 }
0x10d4   :  { %3241 = vmatpush1.bf16.msra.mxu1 %v5323_v58  ;;  %3294 = vmatpush1.bf16.msra.mxu0 %v5325_v59  ;;  %v2370_v58 = vld [vmem:[#allocation9 + $0x2e0] sm:$0xff]  ;;  %v2363_v59 = vld [vmem:[#allocation9 + $0x2a8] sm:$0xff] }
0x10d5   :  { %3242 = vmatprep.subr.bf16.mxu1 %v5308_v57  ;;  %3295 = vmatprep.subr.bf16.mxu0 %v5310_v31  ;;  %v2371_v57 = vld [vmem:[#allocation9 + $0x2e8] sm:$0xff]  ;;  %v5343_v31 = vcombine.low %v2378_v44, %v2386_v30  ;;  %v5328_v62 = vcombine.high %v2362_v52, %v2370_v58 }
0x10d6   :  { %3268 = vmatprep.mubr.bf16.mxu1 %v6439_v0  ;;  %3321 = vmatprep.mubr.bf16.mxu0 %v6439_v0  ;;  %v5330_v63 = vcombine.high %v2363_v59, %v2371_v57  ;;  %v5329_v6 = vcombine.low %v2363_v59, %v2371_v57  ;;  %v2380_v57 = vld [vmem:[#allocation9 + $0x330] sm:$0xff] }
0x10d8   :  { %3243 = vmatpush1.bf16.msra.mxu1 %v5307_v2  ;;  %3296 = vmatpush1.bf16.msra.mxu0 %v5309_v3  ;;  %v2354_v2 = vld [vmem:[#allocation9 + $0x260] sm:$0xff]  ;;  %v2347_v3 = vld [vmem:[#allocation9 + $0x228] sm:$0xff] }
0x10d9   :  { %3244 = vmatprep.subr.bf16.mxu1 %v5292_v4  ;;  %3297 = vmatprep.subr.bf16.mxu0 %v5294_v5  ;;  %v2355_v4 = vld [vmem:[#allocation9 + $0x268] sm:$0xff]  ;;  %v5327_v5 = vcombine.low %v2362_v52, %v2370_v58  ;;  %v5312_v7 = vcombine.high %v2346_v1, %v2354_v2 }
0x10da   :  { %v5314_v8 = vcombine.high %v2347_v3, %v2355_v4  ;;  %v5313_v18 = vcombine.low %v2347_v3, %v2355_v4  ;;  %v2364_v4 = vld [vmem:[#allocation9 + $0x2b0] sm:$0xff] }
0x10dc   :  { %3245 = vmatpush1.bf16.msra.mxu1 %v5291_v10  ;;  %3298 = vmatpush1.bf16.msra.mxu0 %v5293_v11  ;;  %v2338_v10 = vld [vmem:[#allocation9 + $0x1e0] sm:$0xff]  ;;  %v2331_v11 = vld [vmem:[#allocation9 + $0x1a8] sm:$0xff] }
0x10dd   :  { %3246 = vmatprep.subr.bf16.mxu1 %v5276_v51  ;;  %3299 = vmatprep.subr.bf16.mxu0 %v5278_v12  ;;  %v2339_v51 = vld [vmem:[#allocation9 + $0x1e8] sm:$0xff]  ;;  %v5311_v12 = vcombine.low %v2346_v1, %v2354_v2  ;;  %v5296_v36 = vcombine.high %v2330_v9, %v2338_v10 }
0x10de   :  { %v5298_v37 = vcombine.high %v2331_v11, %v2339_v51  ;;  %v5297_v45 = vcombine.low %v2331_v11, %v2339_v51  ;;  %v2348_v51 = vld [vmem:[#allocation9 + $0x230] sm:$0xff] }
0x10e0   :  { %3247 = vmatpush1.bf16.msra.mxu1 %v5275_v24  ;;  %3300 = vmatpush1.bf16.msra.mxu0 %v5277_v25  ;;  %v2322_v24 = vld [vmem:[#allocation9 + $0x160] sm:$0xff]  ;;  %v2315_v25 = vld [vmem:[#allocation9 + $0x128] sm:$0xff] }
0x10e1   :  { %3248 = vmatprep.subr.bf16.mxu1 %v5260_v39  ;;  %3301 = vmatprep.subr.bf16.mxu0 %v5262_v40  ;;  %v2323_v39 = vld [vmem:[#allocation9 + $0x168] sm:$0xff]  ;;  %v5295_v40 = vcombine.low %v2330_v9, %v2338_v10  ;;  %v5280_v41 = vcombine.high %v2314_v19, %v2322_v24 }
0x10e2   :  { %v5282_v42 = vcombine.high %v2315_v25, %v2323_v39  ;;  %v5281_v15 = vcombine.low %v2315_v25, %v2323_v39  ;;  %v2332_v39 = vld [vmem:[#allocation9 + $0x1b0] sm:$0xff] }
0x10e4   :  { %3249 = vmatpush1.bf16.msra.mxu1 %v5259_v14  ;;  %3302 = vmatpush1.bf16.msra.mxu0 %v5261_v54  ;;  %v2306_v14 = vld [vmem:[#allocation9 + $0xe0] sm:$0xff]  ;;  %v2299_v54 = vld [vmem:[#allocation9 + $0xa8] sm:$0xff] }
0x10e5   :  { %3250 = vmatprep.subr.bf16.mxu1 %v5244_v16  ;;  %3303 = vmatprep.subr.bf16.mxu0 %v5246_v47  ;;  %v2307_v16 = vld [vmem:[#allocation9 + $0xe8] sm:$0xff]  ;;  %v5279_v47 = vcombine.low %v2314_v19, %v2322_v24  ;;  %v5264_v56 = vcombine.high %v2298_v13, %v2306_v14 }
0x10e6   :  { %v5266_v20 = vcombine.high %v2299_v54, %v2307_v16  ;;  %v5265_v44 = vcombine.low %v2299_v54, %v2307_v16  ;;  %v2316_v16 = vld [vmem:[#allocation9 + $0x130] sm:$0xff] }
0x10e8   :  { %3251 = vmatpush1.bf16.msra.mxu1 %v5243_v22  ;;  %3304 = vmatpush1.bf16.msra.mxu0 %v5245_v29  ;;  %v2290_v22 = vld [vmem:[#allocation9 + $0x60] sm:$0xff]  ;;  %v2283_v29 = vld [vmem:[#allocation9 + $0x28] sm:$0xff] }
0x10e9   :  { %3342 = vmatprep.subr.bf16.mxu1 %v5360_v34  ;;  %3395 = vmatprep.subr.bf16.mxu0 %v5362_v23  ;;  %v2291_v34 = vld [vmem:[#allocation9 + $0x68] sm:$0xff]  ;;  %v5263_v23 = vcombine.low %v2298_v13, %v2306_v14  ;;  %v5248_v30 = vcombine.high %v2282_v21, %v2290_v22 }
0x10ea   :  { %v5250_v55 = vcombine.high %v2283_v29, %v2291_v34  ;;  %v5249_v52 = vcombine.low %v2283_v29, %v2291_v34  ;;  %v2300_v34 = vld [vmem:[#allocation9 + $0xb0] sm:$0xff] }
0x10eb   :  { %3269 = vmatmul.mubr.bf16.vlgmr.msra.gmra.mxu1 %v6920_v28  ;;  %3322 = vmatmul.mubr.bf16.vlgmr.msra.gmra.mxu0 %v6920_v28 }
0x10ec   :  { %3343 = vmatpush1.bf16.msra.mxu1 %v5359_v50  ;;  %3396 = vmatpush1.bf16.msra.mxu0 %v5361_v26  ;;  %v2404_v50 = vld [vmem:[#allocation9 + $0x3f0] sm:$0xff]  ;;  %v2397_v26 = vld [vmem:[#allocation9 + $0x3b8] sm:$0xff] }
0x10ed   :  { %3344 = vmatprep.subr.bf16.mxu1 %v5344_v38  ;;  %3397 = vmatprep.subr.bf16.mxu0 %v5346_v27  ;;  %v2405_v38 = vld [vmem:[#allocation9 + $0x3f8] sm:$0xff]  ;;  %v5247_v27 = vcombine.low %v2282_v21, %v2290_v22  ;;  %v5364_v58 = vcombine.high %v2396_v49, %v2404_v50 }
0x10ee   :  { %3278 = vmatprep.mubr.bf16.mxu1 %v6439_v0  ;;  %3331 = vmatprep.mubr.bf16.mxu0 %v6439_v0  ;;  %v5366_v59 = vcombine.high %v2397_v26, %v2405_v38  ;;  %v5365_v1 = vcombine.low %v2397_v26, %v2405_v38  ;;  %v2284_v38 = vld [vmem:[#allocation9 + $0x30] sm:$0xff] }
0x10f0   :  { %3345 = vmatpush1.bf16.msra.mxu1 %v5343_v31  ;;  %3398 = vmatpush1.bf16.msra.mxu0 %v5345_v61  ;;  %v2388_v31 = vld [vmem:[#allocation9 + $0x370] sm:$0xff]  ;;  %v2381_v61 = vld [vmem:[#allocation9 + $0x338] sm:$0xff] }
0x10f1   :  { %3346 = vmatprep.subr.bf16.mxu1 %v5328_v62  ;;  %3399 = vmatprep.subr.bf16.mxu0 %v5330_v63  ;;  %v2389_v62 = vld [vmem:[#allocation9 + $0x378] sm:$0xff]  ;;  %v5363_v63 = vcombine.low %v2396_v49, %v2404_v50  ;;  %v5348_v2 = vcombine.high %v2380_v57, %v2388_v31 }
0x10f2   :  { %v5350_v3 = vcombine.high %v2381_v61, %v2389_v62  ;;  %v5349_v9 = vcombine.low %v2381_v61, %v2389_v62 }
0x10f3   :  { %3279 = vmatmul.mubr.bf16.gmra.mxu1 %v6932_v60  ;;  %3332 = vmatmul.mubr.bf16.gmra.mxu0 %v6932_v60 }
0x10f4   :  { %3347 = vmatpush1.bf16.msra.mxu1 %v5327_v5  ;;  %3400 = vmatpush1.bf16.msra.mxu0 %v5329_v6  ;;  %v2372_v5 = vld [vmem:[#allocation9 + $0x2f0] sm:$0xff]  ;;  %v2365_v6 = vld [vmem:[#allocation9 + $0x2b8] sm:$0xff] }
0x10f5   :  { %3348 = vmatprep.subr.bf16.mxu1 %v5312_v7  ;;  %3401 = vmatprep.subr.bf16.mxu0 %v5314_v8  ;;  %v2373_v7 = vld [vmem:[#allocation9 + $0x2f8] sm:$0xff]  ;;  %v5347_v8 = vcombine.low %v2380_v57, %v2388_v31  ;;  %v5332_v10 = vcombine.high %v2364_v4, %v2372_v5 }
0x10f6   :  { %3374 = vmatprep.mubr.bf16.mxu1 %v6439_v0  ;;  %3427 = vmatprep.mubr.bf16.mxu0 %v6439_v0  ;;  %v5334_v11 = vcombine.high %v2365_v6, %v2373_v7  ;;  %v5333_v19 = vcombine.low %v2365_v6, %v2373_v7  ;;  %v6049_v6 = vld [vmem:[#allocation12 + $0xf0] sm:$0xff]  }
0x10f7   :  { %v6050_v7 = vld [vmem:[#allocation12 + $0x30] sm:$0xff]  }
0x10f8   :  { %3349 = vmatpush1.bf16.msra.mxu1 %v5311_v12  ;;  %3402 = vmatpush1.bf16.msra.mxu0 %v5313_v18  ;;  %v2356_v12 = vld [vmem:[#allocation9 + $0x270] sm:$0xff]  ;;  %v2349_v18 = vld [vmem:[#allocation9 + $0x238] sm:$0xff] }
0x10f9   :  { %3350 = vmatprep.subr.bf16.mxu1 %v5296_v36  ;;  %3403 = vmatprep.subr.bf16.mxu0 %v5298_v37  ;;  %v2357_v36 = vld [vmem:[#allocation9 + $0x278] sm:$0xff]  ;;  %v5331_v37 = vcombine.low %v2364_v4, %v2372_v5  ;;  %v5316_v24 = vcombine.high %v2348_v51, %v2356_v12  ;;  %v6047_v4 = vld [vmem:[#allocation12 + $0xb8] sm:$0xff]   ;;  %v6048_v5 = vld [vmem:[#allocation12 + $0x70] sm:$0xff]  }
0x10fa   :  { %v5318_v25 = vcombine.high %v2349_v18, %v2357_v36  ;;  %v5317_v13 = vcombine.low %v2349_v18, %v2357_v36  ;;  %v6059_v18 = vld [vmem:[#allocation12 + $0xa0] sm:$0xff]   ;;  %v6060_v36 = vld [vmem:[#allocation12 + $0x58] sm:$0xff]  }
0x10fc   :  { %3351 = vmatpush1.bf16.msra.mxu1 %v5295_v40  ;;  %3404 = vmatpush1.bf16.msra.mxu0 %v5297_v45  ;;  %v2340_v40 = vld [vmem:[#allocation9 + $0x1f0] sm:$0xff]  ;;  %v2333_v45 = vld [vmem:[#allocation9 + $0x1b8] sm:$0xff] }
0x10fd   :  { %3352 = vmatprep.subr.bf16.mxu1 %v5280_v41  ;;  %3405 = vmatprep.subr.bf16.mxu0 %v5282_v42  ;;  %v2341_v41 = vld [vmem:[#allocation9 + $0x1f8] sm:$0xff]  ;;  %v5315_v42 = vcombine.low %v2348_v51, %v2356_v12  ;;  %v5300_v14 = vcombine.high %v2332_v39, %v2340_v40  ;;  %v6056_v12 = vld [vmem:[#allocation12 + $0x60] sm:$0xff]  }
0x10fe   :  { %v5302_v54 = vcombine.high %v2333_v45, %v2341_v41  ;;  %v5301_v21 = vcombine.low %v2333_v45, %v2341_v41  ;;  %v6055_v51 = vld [vmem:[#allocation12 + $0xa8] sm:$0xff]  }
0x10ff   :  { %v6068_v45 = vld [vmem:[#allocation12 + $0x48] sm:$0xff]  }
0x1100   :  { %3353 = vmatpush1.bf16.msra.mxu1 %v5279_v47  ;;  %3406 = vmatpush1.bf16.msra.mxu0 %v5281_v15  ;;  %v2324_v47 = vld [vmem:[#allocation9 + $0x170] sm:$0xff]  ;;  %v2317_v15 = vld [vmem:[#allocation9 + $0x138] sm:$0xff] }
0x1101   :  { %3354 = vmatprep.subr.bf16.mxu1 %v5264_v56  ;;  %3407 = vmatprep.subr.bf16.mxu0 %v5266_v20  ;;  %v2325_v56 = vld [vmem:[#allocation9 + $0x178] sm:$0xff]  ;;  %v5299_v20 = vcombine.low %v2332_v39, %v2340_v40  ;;  %v5284_v22 = vcombine.high %v2316_v16, %v2324_v47  ;;  %v6065_v39 = vld [vmem:[#allocation12 + $0xd0] sm:$0xff]  }
0x1102   :  { %v5286_v29 = vcombine.high %v2317_v15, %v2325_v56  ;;  %v5285_v49 = vcombine.low %v2317_v15, %v2325_v56  ;;  %v6066_v40 = vld [vmem:[#allocation12 + $0x10] sm:$0xff]   ;;  %v6069_v41 = vld [vmem:[#allocation12 + $0xc8] sm:$0xff]   ;;  %v6076_v15 = vld [vmem:[#allocation12 + $0x178] sm:$0xff]  }
0x1103   :  { %v6077_v56 = vld [vmem:[#allocation12 + $0x1f8] sm:$0xff]  }
0x1104   :  { %3355 = vmatpush1.bf16.msra.mxu1 %v5263_v23  ;;  %3408 = vmatpush1.bf16.msra.mxu0 %v5265_v44  ;;  %v2308_v23 = vld [vmem:[#allocation9 + $0xf0] sm:$0xff]  ;;  %v2301_v44 = vld [vmem:[#allocation9 + $0xb8] sm:$0xff] }
0x1105   :  { %3356 = vmatprep.subr.bf16.mxu1 %v5248_v30  ;;  %3409 = vmatprep.subr.bf16.mxu0 %v5250_v55  ;;  %v2309_v30 = vld [vmem:[#allocation9 + $0xf8] sm:$0xff]  ;;  %v5283_v55 = vcombine.low %v2316_v16, %v2324_v47  ;;  %v5268_v50 = vcombine.high %v2300_v34, %v2308_v23  ;;  %v6074_v16 = vld [vmem:[#allocation12] sm:$0xff]  }
0x1106   :  { %v5270_v26 = vcombine.high %v2301_v44, %v2309_v30  ;;  %v5269_v57 = vcombine.low %v2301_v44, %v2309_v30  ;;  %v6075_v47 = vld [vmem:[#allocation12 + $0x80] sm:$0xff]  }
0x1108   :  { %3357 = vmatpush1.bf16.msra.mxu1 %v5247_v27  ;;  %3410 = vmatpush1.bf16.msra.mxu0 %v5249_v52  ;;  %v2292_v27 = vld [vmem:[#allocation9 + $0x70] sm:$0xff]  ;;  %v2285_v52 = vld [vmem:[#allocation9 + $0x38] sm:$0xff] }
0x1109   :  { %3448 = vmatprep.subr.bf16.mxu1 %v5364_v58  ;;  %3501 = vmatprep.subr.bf16.mxu0 %v5366_v59  ;;  %v2293_v58 = vld [vmem:[#allocation9 + $0x78] sm:$0xff]  ;;  %v5267_v59 = vcombine.low %v2300_v34, %v2308_v23  ;;  %v5252_v31 = vcombine.high %v2284_v38, %v2292_v27  ;;  %v5251_v62 = vcombine.low %v2284_v38, %v2292_v27 }
0x110a   :  { %v5254_v61 = vcombine.high %v2285_v52, %v2293_v58 }
0x110b   :  { %3375 = vmatmul.mubr.bf16.vlgmr.msra.gmra.mxu1 %v6920_v28  ;;  %3428 = vmatmul.mubr.bf16.vlgmr.msra.gmra.mxu0 %v6920_v28 }
0x110c   :  { %3449 = vmatpush1.bf16.msra.mxu1 %v5363_v63  ;;  %3502 = vmatpush1.bf16.msra.mxu0 %v5365_v1  ;;  %v5253_v63 = vcombine.low %v2285_v52, %v2293_v58  ;;  %v6044_v1 = vld [vmem:[#allocation12 + $0x78] sm:$0xff]  }
0x110d   :  { %3450 = vmatprep.subr.bf16.mxu1 %v5348_v2  ;;  %3503 = vmatprep.subr.bf16.mxu0 %v5350_v3  ;;  %v6045_v2 = vld [vmem:[#allocation12 + $0xf8] sm:$0xff]  }
0x110e   :  { %3384 = vmatprep.mubr.bf16.mxu1 %v6439_v0  ;;  %3437 = vmatprep.mubr.bf16.mxu0 %v6439_v0  ;;  %v6046_v3 = vld [vmem:[#allocation12 + $0x38] sm:$0xff]  }
0x1110   :  { %3451 = vmatpush1.bf16.msra.mxu1 %v5347_v8  ;;  %3504 = vmatpush1.bf16.msra.mxu0 %v5349_v9  ;;  %v6051_v8 = vld [vmem:[#allocation12 + $0xb0] sm:$0xff]   ;;  %v6052_v9 = vld [vmem:[#allocation12 + $0x68] sm:$0xff]  }
0x1111   :  { %3452 = vmatprep.subr.bf16.mxu1 %v5332_v10  ;;  %3505 = vmatprep.subr.bf16.mxu0 %v5334_v11  ;;  %v6053_v10 = vld [vmem:[#allocation12 + $0xe8] sm:$0xff]  }
0x1112   :  { %v6054_v11 = vld [vmem:[#allocation12 + $0x28] sm:$0xff]  }
0x1113   :  { %3385 = vmatmul.mubr.bf16.gmra.mxu1 %v6932_v60  ;;  %3438 = vmatmul.mubr.bf16.gmra.mxu0 %v6932_v60 }
0x1114   :  { %3453 = vmatpush1.bf16.msra.mxu1 %v5331_v37  ;;  %3506 = vmatpush1.bf16.msra.mxu0 %v5333_v19  ;;  %v6061_v37 = vld [vmem:[#allocation12 + $0xd8] sm:$0xff]  }
0x1115   :  { %3454 = vmatprep.subr.bf16.mxu1 %v5316_v24  ;;  %3507 = vmatprep.subr.bf16.mxu0 %v5318_v25  ;;  %v6062_v19 = vld [vmem:[#allocation12 + $0x18] sm:$0xff]   ;;  %v6064_v25 = vld [vmem:[#allocation12 + $0x50] sm:$0xff]  }
0x1116   :  { %3480 = vmatprep.mubr.bf16.mxu1 %v6439_v0  ;;  %3533 = vmatprep.mubr.bf16.mxu0 %v6439_v0  ;;  %v6063_v24 = vld [vmem:[#allocation12 + $0x98] sm:$0xff]  }
0x1118   :  { %3455 = vmatpush1.bf16.msra.mxu1 %v5315_v42  ;;  %3508 = vmatpush1.bf16.msra.mxu0 %v5317_v13  ;;  %v6070_v42 = vld [vmem:[#allocation12 + $0x8] sm:$0xff]  }
0x1119   :  { %3456 = vmatprep.subr.bf16.mxu1 %v5300_v14  ;;  %3509 = vmatprep.subr.bf16.mxu0 %v5302_v54  ;;  %v6071_v13 = vld [vmem:[#allocation12 + $0x88] sm:$0xff]   ;;  %v6072_v14 = vld [vmem:[#allocation12 + $0x40] sm:$0xff]  }
0x111a   :  { %v6073_v54 = vld [vmem:[#allocation12 + $0xc0] sm:$0xff]  }
0x111c   :  { %3457 = vmatpush1.bf16.msra.mxu1 %v5299_v20  ;;  %3510 = vmatpush1.bf16.msra.mxu0 %v5301_v21  ;;  %v2424_v20 = vsub.s32 3, %v6557_v32  ;;  %v6961_v21 = vld [vmem:[#allocation10] sm:$0xff] }
0x111d   :  { %3458 = vmatprep.subr.bf16.mxu1 %v5284_v22  ;;  %3511 = vmatprep.subr.bf16.mxu0 %v5286_v29  ;;  %v2417_v34 = vrot.slane %v6961_v21, %v6563_v35  ;;  %v2413_v44 = vrot.slane %v6961_v21, %v6560_v33  ;;  %v2421_v30 = vrot.slane %v6961_v21, %v6602_v48 }
0x111e   :  { %v2425_v23 = vrot.slane %v6961_v21, %v2424_v20 }
0x1120   :  { %3459 = vmatpush1.bf16.msra.mxu1 %v5283_v55  ;;  %3512 = vmatpush1.bf16.msra.mxu0 %v5285_v49 }
0x1121   :  { %3460 = vmatprep.subr.bf16.mxu1 %v5268_v50  ;;  %3513 = vmatprep.subr.bf16.mxu0 %v5270_v26 }
0x1124   :  { %3461 = vmatpush1.bf16.msra.mxu1 %v5267_v59  ;;  %3514 = vmatpush1.bf16.msra.mxu0 %v5269_v57 }
0x1125   :  { %3462 = vmatprep.subr.bf16.mxu1 %v5252_v31  ;;  %3515 = vmatprep.subr.bf16.mxu0 %v5254_v61 }
0x1128   :  { %3463 = vmatpush1.bf16.msra.mxu1 %v5251_v62  ;;  %3516 = vmatpush1.bf16.msra.mxu0 %v5253_v63 }
0x1129   :  { %5582 = vmatprep.subr.bf16.mxu1 %v6044_v1  ;;  %5610 = vmatprep.subr.bf16.mxu0 %v6045_v2 }
0x112b   :  { %3481 = vmatmul.mubr.bf16.vlgmr.msra.gmra.mxu1 %v6920_v28  ;;  %3534 = vmatmul.mubr.bf16.vlgmr.msra.gmra.mxu0 %v6920_v28  ;;  %v6057_v28 = vld [vmem:[#allocation12 + $0xe0] sm:$0xff]  }
0x112c   :  { %3490 = vmatprep.mubr.bf16.mxu1 %v6439_v0  ;;  %3543 = vmatprep.mubr.bf16.mxu0 %v6439_v0  ;;  %v6058_v0 = vld [vmem:[#allocation12 + $0x20] sm:$0xff]  }
0x112d   :  { %5583 = vmatpush3.bf16.msra.mxu1 %v6046_v3  ;;  %5611 = vmatpush3.bf16.msra.mxu0 %v6047_v4 }
0x112e   :  { %5584 = vmatprep.subr.bf16.mxu1 %v6048_v5  ;;  %5612 = vmatprep.subr.bf16.mxu0 %v6049_v6 }
0x1131   :  { %5585 = vmatpush3.bf16.msra.mxu1 %v6050_v7  ;;  %5613 = vmatpush3.bf16.msra.mxu0 %v6051_v8 }
0x1132   :  { %5586 = vmatprep.subr.bf16.mxu1 %v6052_v9  ;;  %5614 = vmatprep.subr.bf16.mxu0 %v6053_v10 }
0x1133   :  { %3491 = vmatmul.mubr.bf16.gmra.mxu1 %v6932_v60  ;;  %3544 = vmatmul.mubr.bf16.gmra.mxu0 %v6932_v60  ;;  %v6067_v60 = vld [vmem:[#allocation12 + $0x90] sm:$0xff]  }
0x1135   :  { %5587 = vmatpush3.bf16.msra.mxu1 %v6054_v11  ;;  %5615 = vmatpush3.bf16.msra.mxu0 %v6055_v51 }
0x1136   :  { %5588 = vmatprep.subr.bf16.mxu1 %v6056_v12  ;;  %5616 = vmatprep.subr.bf16.mxu0 %v6057_v28 }
0x1139   :  { %5589 = vmatpush3.bf16.msra.mxu1 %v6058_v0  ;;  %5617 = vmatpush3.bf16.msra.mxu0 %v6059_v18  ;;  %v6078_v0 = vld [vmem:[#allocation12 + $0x138] sm:$0xff]  }
0x113a   :  { %5590 = vmatprep.subr.bf16.mxu1 %v6060_v36  ;;  %5618 = vmatprep.subr.bf16.mxu0 %v6061_v37  ;;  %v6079_v18 = vld [vmem:[#allocation12 + $0x1b8] sm:$0xff]  }
0x113d   :  { %5591 = vmatpush3.bf16.msra.mxu1 %v6062_v19  ;;  %5619 = vmatpush3.bf16.msra.mxu0 %v6063_v24 }
0x113e   :  { %5592 = vmatprep.subr.bf16.mxu1 %v6064_v25  ;;  %5620 = vmatprep.subr.bf16.mxu0 %v6065_v39  ;;  %v6080_v39 = vld [vmem:[#allocation12 + $0x170] sm:$0xff]  }
0x1141   :  { %5593 = vmatpush3.bf16.msra.mxu1 %v6066_v40  ;;  %5621 = vmatpush3.bf16.msra.mxu0 %v6067_v60  ;;  %v6081_v40 = vld [vmem:[#allocation12 + $0x1f0] sm:$0xff]  }
0x1142   :  { %5594 = vmatprep.subr.bf16.mxu1 %v6068_v45  ;;  %5622 = vmatprep.subr.bf16.mxu0 %v6069_v41 }
0x1145   :  { %5595 = vmatpush3.bf16.msra.mxu1 %v6070_v42  ;;  %5623 = vmatpush3.bf16.msra.mxu0 %v6071_v13 }
0x1146   :  { %5596 = vmatprep.subr.bf16.mxu1 %v6072_v14  ;;  %5624 = vmatprep.subr.bf16.mxu0 %v6073_v54 }
0x1149   :  { %5597 = vmatpush3.bf16.msra.mxu1 %v6074_v16  ;;  %5625 = vmatpush3.bf16.msra.mxu0 %v6075_v47 }
0x114a   :  { %5638 = vmatprep.subr.bf16.mxu1 %v6076_v15  ;;  %5666 = vmatprep.subr.bf16.mxu0 %v6077_v56  ;;  %v6082_v15 = vld [vmem:[#allocation12 + $0x130] sm:$0xff]  }
0x114b   :  { %v6083_v56 = vld [vmem:[#allocation12 + $0x1b0] sm:$0xff]  }
0x118b   :  { %v3164_v22 = vpop.f32.mrf.mxu1  ;;  %v3217_v29 = vpop.f32.mrf.mxu0 }
0x118c   :  { %v3165_v59 = vadd.f32 %v3164_v22, %v2413_v44  ;;  %v3218_v57 = vadd.f32 %v3217_v29, %v2421_v30 }
0x118d   :  { %v3166_v55 = vpop.f32.mrf.mxu1  ;;  %v3219_v49 = vpop.f32.mrf.mxu0 }
0x118e   :  { %v3167_v38 = vadd.f32 %v3166_v55, %v2417_v34  ;;  %v3220_v27 = vadd.f32 %v3219_v49, %v2425_v23  ;;  %v3554_v9 = vmax.f32 %v3165_v59, 0.0  ;;  %v3556_v10 = vmax.f32 %v3218_v57, 0.0  ;;  %v6084_v55 = vld [vmem:[#allocation12 + $0x168] sm:$0xff]  }
0x118f   :  { %v3168_v50 = vpop.f32.mrf.mxu1  ;;  %v3221_v26 = vpop.f32.mrf.mxu0  ;;  %v6085_v49 = vld [vmem:[#allocation12 + $0x1e8] sm:$0xff]  }
0x1190   :  { %v3169_v52 = vadd.f32 %v3168_v50, %v2413_v44  ;;  %v3222_v58 = vadd.f32 %v3221_v26, %v2421_v30  ;;  %v3555_v5 = vmax.f32 %v3167_v38, 0.0  ;;  %v3557_v6 = vmax.f32 %v3220_v27, 0.0 }
0x1191   :  { %v3170_v31 = vpop.f32.mrf.mxu1  ;;  %v3223_v61 = vpop.f32.mrf.mxu0 }
0x1192   :  { %v3171_v62 = vadd.f32 %v3170_v31, %v2417_v34  ;;  %v3224_v63 = vadd.f32 %v3223_v61, %v2425_v23  ;;  %v3570_v1 = vmax.f32 %v3169_v52, 0.0  ;;  %v3572_v2 = vmax.f32 %v3222_v58, 0.0  ;;  %v6088_v31 = vld [vmem:[#allocation12 + $0x160] sm:$0xff]  }
0x1193   :  { %v3174_v3 = vpop.f32.mrf.mxu1  ;;  %v3227_v4 = vpop.f32.mrf.mxu0  ;;  %v6089_v61 = vld [vmem:[#allocation12 + $0x1e0] sm:$0xff]  }
0x1194   :  { %v3571_v7 = vmax.f32 %v3171_v62, 0.0  ;;  %v3573_v8 = vmax.f32 %v3224_v63, 0.0  ;;  %v3618_v36 = vpack.c.bf16 %v3570_v1, %v3554_v9  ;;  %v3620_v37 = vpack.c.bf16 %v3572_v2, %v3556_v10  ;;  %v6090_v62 = vld [vmem:[#allocation12 + $0x120] sm:$0xff]   ;;  %v6092_v1 = vld [vmem:[#allocation12 + $0x158] sm:$0xff]  }
0x1195   :  { %v3176_v11 = vpop.f32.mrf.mxu1  ;;  %v3229_v51 = vpop.f32.mrf.mxu0  ;;  %v3175_v42 = vadd.f32 %v3174_v3, %v2413_v44  ;;  %v3228_v13 = vadd.f32 %v3227_v4, %v2421_v30  ;;  %v6091_v63 = vld [vmem:[#allocation12 + $0x1a0] sm:$0xff]   ;;  %v6093_v2 = vld [vmem:[#allocation12 + $0x1d8] sm:$0xff]   ;;  %v2428_v9 = vsub.s32 4, %v6557_v32  ;;  %v2436_v10 = vsub.s32 6, %v6557_v32 }
0x1196   :  { %v3619_v12 = vpack.c.bf16 %v3571_v7, %v3555_v5  ;;  %v3621_v28 = vpack.c.bf16 %v3573_v8, %v3557_v6  ;;  %v3177_v19 = vadd.f32 %v3176_v11, %v2417_v34  ;;  %v3230_v60 = vadd.f32 %v3229_v51, %v2425_v23  ;;  %v6094_v3 = vld [vmem:[#allocation12 + $0x118] sm:$0xff]   ;;  %v6096_v5 = vld [vmem:[#allocation12 + $0x150] sm:$0xff]  }
0x1197   :  { %v3178_v24 = vpop.f32.mrf.mxu1  ;;  %v3231_v25 = vpop.f32.mrf.mxu0  ;;  %v3586_v38 = vmax.f32 %v3175_v42, 0.0  ;;  %v3588_v27 = vmax.f32 %v3228_v13, 0.0  ;;  %v6095_v4 = vld [vmem:[#allocation12 + $0x198] sm:$0xff]   ;;  %v6097_v6 = vld [vmem:[#allocation12 + $0x1d0] sm:$0xff]   ;;  %v2432_v7 = vsub.s32 5, %v6557_v32  ;;  %v2440_v8 = vsub.s32 7, %v6557_v32 }
0x1198   :  { %v3179_v45 = vadd.f32 %v3178_v24, %v2413_v44  ;;  %v3232_v41 = vadd.f32 %v3231_v25, %v2421_v30  ;;  %4713 = vmatprep.mubr.bf16.mxu1 %v3619_v12  ;;  %4762 = vmatprep.mubr.bf16.mxu0 %v3621_v28  ;;  %v3587_v50 = vmax.f32 %v3177_v19, 0.0  ;;  %v3589_v26 = vmax.f32 %v3230_v60, 0.0  ;;  %v6098_v11 = vld [vmem:[#allocation12 + $0x110] sm:$0xff]   ;;  %v6103_v60 = vld [vmem:[#allocation12 + $0x188] sm:$0xff]   ;;  %v6104_v42 = vld [vmem:[#allocation12 + $0x140] sm:$0xff]  }
0x1199   :  { %v3180_v14 = vpop.f32.mrf.mxu1  ;;  %v3233_v54 = vpop.f32.mrf.mxu0  ;;  %4714 = vmatmul.mubr.bf16.vlgmr.msra.gmra.mxu1 %v3618_v36  ;;  %4763 = vmatmul.mubr.bf16.vlgmr.msra.gmra.mxu0 %v3620_v37  ;;  %v6099_v51 = vld [vmem:[#allocation12 + $0x190] sm:$0xff]   ;;  %v6979_v36 = vrot.slane %v6961_v21, %v2432_v7  ;;  %v6984_v37 = vrot.slane %v6961_v21, %v2440_v8  ;;  %v6989_v19 = vrot.slane %v6961_v21, %v2428_v9  ;;  %v6105_v13 = vld [vmem:[#allocation12 + $0x1c0] sm:$0xff]  }
0x119a   :  { %v3181_v16 = vadd.f32 %v3180_v14, %v2417_v34  ;;  %v3234_v47 = vadd.f32 %v3233_v54, %v2425_v23  ;;  %5639 = vmatpush3.bf16.msra.mxu1 %v6078_v0  ;;  %5667 = vmatpush3.bf16.msra.mxu0 %v6079_v18  ;;  %v3602_v22 = vmax.f32 %v3179_v45, 0.0  ;;  %v3604_v29 = vmax.f32 %v3232_v41, 0.0  ;;  %v6086_v34 = vld [vmem:[#allocation12 + $0x128] sm:$0xff]   ;;  %v6169_v32 = vld [vmem:[#allocation12 + $0x3c0] sm:$0xff]  }
0x119b   :  { %5640 = vmatprep.subr.bf16.mxu1 %v6080_v39  ;;  %5668 = vmatprep.subr.bf16.mxu0 %v6081_v40  ;;  %v6087_v23 = vld [vmem:[#allocation12 + $0x1a8] sm:$0xff]   ;;  %v6994_v24 = vrot.slane %v6961_v21, %v2436_v10 }
0x119c   :  { %v3603_v44 = vmax.f32 %v3181_v16, 0.0  ;;  %v3605_v30 = vmax.f32 %v3234_v47, 0.0  ;;  %v3634_v59 = vpack.c.bf16 %v3602_v22, %v3586_v38  ;;  %v3636_v57 = vpack.c.bf16 %v3604_v29, %v3588_v27  ;;  %v6100_v0 = vld [vmem:[#allocation12 + $0x148] sm:$0xff]   ;;  %v6107_v38 = vld [vmem:[#allocation12 + $0x180] sm:$0xff]   ;;  %v6108_v27 = vld [vmem:[#allocation12 + $0x278] sm:$0xff]  }
0x119d   :  { %v6101_v18 = vld [vmem:[#allocation12 + $0x1c8] sm:$0xff]  }
0x119e   :  { %v3635_v52 = vpack.c.bf16 %v3603_v44, %v3587_v50  ;;  %v3637_v58 = vpack.c.bf16 %v3605_v30, %v3589_v26  ;;  %5641 = vmatpush3.bf16.msra.mxu1 %v6082_v15  ;;  %5669 = vmatpush3.bf16.msra.mxu0 %v6083_v56  ;;  %v6102_v40 = vld [vmem:[#allocation12 + $0x108] sm:$0xff]  }
0x119f   :  { %5642 = vmatprep.subr.bf16.mxu1 %v6084_v55  ;;  %5670 = vmatprep.subr.bf16.mxu0 %v6085_v49  ;;  %v6106_v49 = vld [vmem:[#allocation12 + $0x100] sm:$0xff]  }
0x11a0   :  { %4721 = vmatprep.mubr.bf16.mxu1 %v3635_v52  ;;  %4770 = vmatprep.mubr.bf16.mxu0 %v3637_v58 }
0x11a1   :  { %4722 = vmatmul.mubr.bf16.gmra.mxu1 %v3634_v59  ;;  %4771 = vmatmul.mubr.bf16.gmra.mxu0 %v3636_v57 }
0x11a2   :  { %5643 = vmatpush3.bf16.msra.mxu1 %v6086_v34  ;;  %5671 = vmatpush3.bf16.msra.mxu0 %v6087_v23 }
0x11a3   :  { %5644 = vmatprep.subr.bf16.mxu1 %v6088_v31  ;;  %5672 = vmatprep.subr.bf16.mxu0 %v6089_v61 }
0x11a6   :  { %5645 = vmatpush3.bf16.msra.mxu1 %v6090_v62  ;;  %5673 = vmatpush3.bf16.msra.mxu0 %v6091_v63  ;;  %v6109_v62 = vld [vmem:[#allocation12 + $0x2f8] sm:$0xff]  }
0x11a7   :  { %5646 = vmatprep.subr.bf16.mxu1 %v6092_v1  ;;  %5674 = vmatprep.subr.bf16.mxu0 %v6093_v2  ;;  %v6110_v2 = vld [vmem:[#allocation12 + $0x238] sm:$0xff]  }
0x11aa   :  { %5647 = vmatpush3.bf16.msra.mxu1 %v6094_v3  ;;  %5675 = vmatpush3.bf16.msra.mxu0 %v6095_v4 }
0x11ab   :  { %v3270_v12 = vpop.f32.mrf.mxu1  ;;  %v3323_v28 = vpop.f32.mrf.mxu0  ;;  %5648 = vmatprep.subr.bf16.mxu1 %v6096_v5  ;;  %5676 = vmatprep.subr.bf16.mxu0 %v6097_v6 }
0x11ac   :  { %v3271_v47 = vadd.f32 %v3270_v12, %v6989_v19  ;;  %v3324_v15 = vadd.f32 %v3323_v28, %v6994_v24  ;;  %v6112_v12 = vld [vmem:[#allocation12 + $0x270] sm:$0xff]  }
0x11ad   :  { %v3272_v25 = vpop.f32.mrf.mxu1  ;;  %v3325_v39 = vpop.f32.mrf.mxu0 }
0x11ae   :  { %5649 = vmatpush3.bf16.msra.mxu1 %v6098_v11  ;;  %5677 = vmatpush3.bf16.msra.mxu0 %v6099_v51  ;;  %v3273_v14 = vadd.f32 %v3272_v25, %v6979_v36  ;;  %v3326_v54 = vadd.f32 %v3325_v39, %v6984_v37  ;;  %v3558_v59 = vmax.f32 %v3271_v47, 0.0  ;;  %v3560_v57 = vmax.f32 %v3324_v15, 0.0  ;;  %v6111_v51 = vld [vmem:[#allocation12 + $0x2b8] sm:$0xff]   ;;  %v6113_v25 = vld [vmem:[#allocation12 + $0x2f0] sm:$0xff]  }
0x11af   :  { %v3274_v45 = vpop.f32.mrf.mxu1  ;;  %v3327_v41 = vpop.f32.mrf.mxu0  ;;  %5650 = vmatprep.subr.bf16.mxu1 %v6100_v0  ;;  %5678 = vmatprep.subr.bf16.mxu0 %v6101_v18 }
0x11b0   :  { %v3275_v16 = vadd.f32 %v3274_v45, %v6989_v19  ;;  %v3328_v21 = vadd.f32 %v3327_v41, %v6994_v24  ;;  %v3559_v52 = vmax.f32 %v3273_v14, 0.0  ;;  %v3561_v58 = vmax.f32 %v3326_v54, 0.0 }
0x11b1   :  { %v3276_v56 = vpop.f32.mrf.mxu1  ;;  %v3329_v22 = vpop.f32.mrf.mxu0 }
0x11b2   :  { %v3277_v29 = vadd.f32 %v3276_v56, %v6979_v36  ;;  %v3330_v55 = vadd.f32 %v3329_v22, %v6984_v37  ;;  %5651 = vmatpush3.bf16.msra.mxu1 %v6102_v40  ;;  %5679 = vmatpush3.bf16.msra.mxu0 %v6103_v60  ;;  %v3574_v50 = vmax.f32 %v3275_v16, 0.0  ;;  %v3576_v26 = vmax.f32 %v3328_v21, 0.0  ;;  %v6115_v16 = vld [vmem:[#allocation12 + $0x2b0] sm:$0xff]   ;;  %v6116_v21 = vld [vmem:[#allocation12 + $0x268] sm:$0xff]  }
0x11b3   :  { %v3280_v44 = vpop.f32.mrf.mxu1  ;;  %v3333_v30 = vpop.f32.mrf.mxu0  ;;  %5652 = vmatprep.subr.bf16.mxu1 %v6104_v42  ;;  %5680 = vmatprep.subr.bf16.mxu0 %v6105_v13  ;;  %v6114_v13 = vld [vmem:[#allocation12 + $0x230] sm:$0xff]  }
0x11b4   :  { %v3575_v34 = vmax.f32 %v3277_v29, 0.0  ;;  %v3577_v23 = vmax.f32 %v3330_v55, 0.0  ;;  %v3622_v3 = vpack.c.bf16 %v3574_v50, %v3558_v59  ;;  %v3624_v4 = vpack.c.bf16 %v3576_v26, %v3560_v57  ;;  %v6119_v50 = vld [vmem:[#allocation12 + $0x2a8] sm:$0xff]   ;;  %v6120_v26 = vld [vmem:[#allocation12 + $0x260] sm:$0xff]   ;;  %v6128_v59 = vld [vmem:[#allocation12 + $0x250] sm:$0xff]  }
0x11b5   :  { %v3282_v31 = vpop.f32.mrf.mxu1  ;;  %v3335_v61 = vpop.f32.mrf.mxu0  ;;  %v3281_v39 = vadd.f32 %v3280_v44, %v6989_v19  ;;  %v3334_v45 = vadd.f32 %v3333_v30, %v6994_v24  ;;  %v6121_v30 = vld [vmem:[#allocation12 + $0x2e0] sm:$0xff]   ;;  %v6129_v57 = vld [vmem:[#allocation12 + $0x2d0] sm:$0xff]  }
0x11b6   :  { %v3623_v63 = vpack.c.bf16 %v3575_v34, %v3559_v52  ;;  %v3625_v1 = vpack.c.bf16 %v3577_v23, %v3561_v58  ;;  %5653 = vmatpush3.bf16.msra.mxu1 %v6106_v49  ;;  %v3283_v5 = vadd.f32 %v3282_v31, %v6979_v36  ;;  %5681 = vmatpush3.bf16.msra.mxu0 %v6107_v38  ;;  %v6122_v38 = vld [vmem:[#allocation12 + $0x220] sm:$0xff]   ;;  %v6124_v52 = vld [vmem:[#allocation12 + $0x258] sm:$0xff]  }
0x11b7   :  { %v3284_v6 = vpop.f32.mrf.mxu1  ;;  %v3337_v11 = vpop.f32.mrf.mxu0  ;;  %5694 = vmatprep.subr.bf16.mxu1 %v6108_v27  ;;  %v3336_v28 = vadd.f32 %v3335_v61, %v6984_v37  ;;  %5722 = vmatprep.subr.bf16.mxu0 %v6109_v62  ;;  %v3590_v22 = vmax.f32 %v3281_v39, 0.0  ;;  %v3592_v29 = vmax.f32 %v3334_v45, 0.0  ;;  %v6123_v27 = vld [vmem:[#allocation12 + $0x2a0] sm:$0xff]   ;;  %v6125_v58 = vld [vmem:[#allocation12 + $0x2d8] sm:$0xff]   ;;  %v6130_v61 = vld [vmem:[#allocation12 + $0x210] sm:$0xff]  }
0x11b8   :  { %v3285_v0 = vadd.f32 %v3284_v6, %v6989_v19  ;;  %v3338_v18 = vadd.f32 %v3337_v11, %v6994_v24  ;;  %4811 = vmatprep.mubr.bf16.mxu1 %v3623_v63  ;;  %4860 = vmatprep.mubr.bf16.mxu0 %v3625_v1  ;;  %v3591_v14 = vmax.f32 %v3283_v5, 0.0  ;;  %v6117_v24 = vld [vmem:[#allocation12 + $0x2e8] sm:$0xff]   ;;  %v6126_v34 = vld [vmem:[#allocation12 + $0x218] sm:$0xff]   ;;  %v6131_v1 = vld [vmem:[#allocation12 + $0x290] sm:$0xff]  }
0x11b9   :  { %v3286_v40 = vpop.f32.mrf.mxu1  ;;  %v3339_v60 = vpop.f32.mrf.mxu0  ;;  %4812 = vmatmul.mubr.bf16.vlgmr.msra.gmra.mxu1 %v3622_v3  ;;  %4861 = vmatmul.mubr.bf16.vlgmr.msra.gmra.mxu0 %v3624_v4  ;;  %v3593_v19 = vmax.f32 %v3336_v28, 0.0  ;;  %v6127_v23 = vld [vmem:[#allocation12 + $0x298] sm:$0xff]   ;;  %v6133_v5 = vld [vmem:[#allocation12 + $0x2c8] sm:$0xff]  }
0x11ba   :  { %v3287_v41 = vadd.f32 %v3286_v40, %v6979_v36  ;;  %v3340_v42 = vadd.f32 %v3339_v60, %v6984_v37  ;;  %5695 = vmatpush3.bf16.msra.mxu1 %v6110_v2  ;;  %v3606_v54 = vmax.f32 %v3285_v0, 0.0  ;;  %5723 = vmatpush3.bf16.msra.mxu0 %v6111_v51  ;;  %v3608_v47 = vmax.f32 %v3338_v18, 0.0  ;;  %v6118_v37 = vld [vmem:[#allocation12 + $0x228] sm:$0xff]   ;;  %v7012_v31 = vld [vmem:[#allocation10 + $0x8] sm:$0xff]  ;;  %v6136_v18 = vld [vmem:[#allocation12 + $0x240] sm:$0xff]  }
0x11bb   :  { %5696 = vmatprep.subr.bf16.mxu1 %v6112_v12  ;;  %5724 = vmatprep.subr.bf16.mxu0 %v6113_v25  ;;  %v6132_v2 = vld [vmem:[#allocation12 + $0x248] sm:$0xff]   ;;  %v7016_v3 = vrot.slane %v7012_v31, %v6563_v35  ;;  %v7021_v4 = vrot.slane %v7012_v31, %v2424_v20  ;;  %v7025_v6 = vrot.slane %v7012_v31, %v6560_v33 }
0x11bc   :  { %v3607_v15 = vmax.f32 %v3287_v41, 0.0  ;;  %v3609_v56 = vmax.f32 %v3340_v42, 0.0  ;;  %v3638_v49 = vpack.c.bf16 %v3606_v54, %v3590_v22  ;;  %v3640_v44 = vpack.c.bf16 %v3608_v47, %v3592_v29  ;;  %v6134_v35 = vld [vmem:[#allocation12 + $0x208] sm:$0xff]   ;;  %v6138_v54 = vld [vmem:[#allocation12 + $0x200] sm:$0xff]  }
0x11bd   :  { %v7029_v11 = vrot.slane %v7012_v31, %v6602_v48  ;;  %v6135_v20 = vld [vmem:[#allocation12 + $0x288] sm:$0xff]   ;;  %v6137_v48 = vld [vmem:[#allocation12 + $0x2c0] sm:$0xff]  }
0x11be   :  { %v3639_v36 = vpack.c.bf16 %v3607_v15, %v3591_v14  ;;  %v3641_v55 = vpack.c.bf16 %v3609_v56, %v3593_v19  ;;  %5697 = vmatpush3.bf16.msra.mxu1 %v6114_v13  ;;  %5725 = vmatpush3.bf16.msra.mxu0 %v6115_v16  ;;  %v6139_v15 = vld [vmem:[#allocation12 + $0x280] sm:$0xff]   ;;  %v6140_v56 = vld [vmem:[#allocation12 + $0x378] sm:$0xff]  }
0x11bf   :  { %5698 = vmatprep.subr.bf16.mxu1 %v6116_v21  ;;  %5726 = vmatprep.subr.bf16.mxu0 %v6117_v24 }
0x11c0   :  { %4819 = vmatprep.mubr.bf16.mxu1 %v3639_v36  ;;  %4868 = vmatprep.mubr.bf16.mxu0 %v3641_v55 }
0x11c1   :  { %4820 = vmatmul.mubr.bf16.gmra.mxu1 %v3638_v49  ;;  %4869 = vmatmul.mubr.bf16.gmra.mxu0 %v3640_v44 }
0x11c2   :  { %5699 = vmatpush3.bf16.msra.mxu1 %v6118_v37  ;;  %5727 = vmatpush3.bf16.msra.mxu0 %v6119_v50 }
0x11c3   :  { %5700 = vmatprep.subr.bf16.mxu1 %v6120_v26  ;;  %5728 = vmatprep.subr.bf16.mxu0 %v6121_v30  ;;  %v6141_v26 = vld [vmem:[#allocation12 + $0x3f8] sm:$0xff]  }
0x11c6   :  { %5701 = vmatpush3.bf16.msra.mxu1 %v6122_v38  ;;  %5729 = vmatpush3.bf16.msra.mxu0 %v6123_v27  ;;  %v6142_v38 = vld [vmem:[#allocation12 + $0x338] sm:$0xff]  }
0x11c7   :  { %5702 = vmatprep.subr.bf16.mxu1 %v6124_v52  ;;  %5730 = vmatprep.subr.bf16.mxu0 %v6125_v58 }
0x11ca   :  { %5703 = vmatpush3.bf16.msra.mxu1 %v6126_v34  ;;  %5731 = vmatpush3.bf16.msra.mxu0 %v6127_v23 }
0x11cb   :  { %v3376_v62 = vpop.f32.mrf.mxu1  ;;  %v3429_v63 = vpop.f32.mrf.mxu0  ;;  %5704 = vmatprep.subr.bf16.mxu1 %v6128_v59  ;;  %5732 = vmatprep.subr.bf16.mxu0 %v6129_v57  ;;  %v6143_v59 = vld [vmem:[#allocation12 + $0x3b8] sm:$0xff]   ;;  %v6144_v57 = vld [vmem:[#allocation12 + $0x370] sm:$0xff]  }
0x11cc   :  { %v3377_v60 = vadd.f32 %v3376_v62, %v7025_v6  ;;  %v3430_v45 = vadd.f32 %v3429_v63, %v7029_v11 }
0x11cd   :  { %v3378_v51 = vpop.f32.mrf.mxu1  ;;  %v3431_v12 = vpop.f32.mrf.mxu0 }
0x11ce   :  { %5705 = vmatpush3.bf16.msra.mxu1 %v6130_v61  ;;  %5733 = vmatpush3.bf16.msra.mxu0 %v6131_v1  ;;  %v3379_v25 = vadd.f32 %v3378_v51, %v7016_v3  ;;  %v3432_v39 = vadd.f32 %v3431_v12, %v7021_v4  ;;  %v3562_v55 = vmax.f32 %v3377_v60, 0.0  ;;  %v3564_v37 = vmax.f32 %v3430_v45, 0.0  ;;  %v6145_v1 = vld [vmem:[#allocation12 + $0x3f0] sm:$0xff]  }
0x11cf   :  { %v3380_v28 = vpop.f32.mrf.mxu1  ;;  %v3433_v0 = vpop.f32.mrf.mxu0  ;;  %5706 = vmatprep.subr.bf16.mxu1 %v6132_v2  ;;  %5734 = vmatprep.subr.bf16.mxu0 %v6133_v5 }
0x11d0   :  { %v3381_v33 = vadd.f32 %v3380_v28, %v7025_v6  ;;  %v3434_v40 = vadd.f32 %v3433_v0, %v7029_v11  ;;  %v3563_v22 = vmax.f32 %v3379_v25, 0.0  ;;  %v3565_v24 = vmax.f32 %v3432_v39, 0.0  ;;  %v6146_v0 = vld [vmem:[#allocation12 + $0x330] sm:$0xff]   ;;  %v6148_v39 = vld [vmem:[#allocation12 + $0x368] sm:$0xff]  }
0x11d1   :  { %v3382_v41 = vpop.f32.mrf.mxu1  ;;  %v3435_v42 = vpop.f32.mrf.mxu0  ;;  %v6147_v25 = vld [vmem:[#allocation12 + $0x3b0] sm:$0xff]  }
0x11d2   :  { %v3383_v13 = vadd.f32 %v3382_v41, %v7016_v3  ;;  %v3436_v14 = vadd.f32 %v3435_v42, %v7021_v4  ;;  %5707 = vmatpush3.bf16.msra.mxu1 %v6134_v35  ;;  %v3578_v16 = vmax.f32 %v3381_v33, 0.0  ;;  %v3580_v21 = vmax.f32 %v3434_v40, 0.0  ;;  %5735 = vmatpush3.bf16.msra.mxu0 %v6135_v20 }
0x11d3   :  { %v3386_v19 = vpop.f32.mrf.mxu1  ;;  %v3439_v47 = vpop.f32.mrf.mxu0  ;;  %5708 = vmatprep.subr.bf16.mxu1 %v6136_v18  ;;  %5736 = vmatprep.subr.bf16.mxu0 %v6137_v48 }
0x11d4   :  { %v3579_v29 = vmax.f32 %v3383_v13, 0.0  ;;  %v3581_v36 = vmax.f32 %v3436_v14, 0.0  ;;  %v3626_v27 = vpack.c.bf16 %v3578_v16, %v3562_v55  ;;  %v3628_v52 = vpack.c.bf16 %v3580_v21, %v3564_v37  ;;  %v6151_v13 = vld [vmem:[#allocation12 + $0x3a8] sm:$0xff]   ;;  %v6152_v14 = vld [vmem:[#allocation12 + $0x360] sm:$0xff]  }
0x11d5   :  { %v3388_v49 = vpop.f32.mrf.mxu1  ;;  %v3441_v50 = vpop.f32.mrf.mxu0  ;;  %v3387_v2 = vadd.f32 %v3386_v19, %v7025_v6  ;;  %v3440_v12 = vadd.f32 %v3439_v47, %v7029_v11  ;;  %v6153_v16 = vld [vmem:[#allocation12 + $0x3e0] sm:$0xff]   ;;  %v6156_v47 = vld [vmem:[#allocation12 + $0x358] sm:$0xff]  }
0x11d6   :  { %v3627_v44 = vpack.c.bf16 %v3579_v29, %v3563_v22  ;;  %v3629_v30 = vpack.c.bf16 %v3581_v36, %v3565_v24  ;;  %5709 = vmatpush3.bf16.msra.mxu1 %v6138_v54  ;;  %v3389_v58 = vadd.f32 %v3388_v49, %v7016_v3  ;;  %5737 = vmatpush3.bf16.msra.mxu0 %v6139_v15  ;;  %v6154_v21 = vld [vmem:[#allocation12 + $0x320] sm:$0xff]   ;;  %v6157_v15 = vld [vmem:[#allocation12 + $0x3d8] sm:$0xff]   ;;  %v6160_v24 = vld [vmem:[#allocation12 + $0x350] sm:$0xff]  }
0x11d7   :  { %v3390_v34 = vpop.f32.mrf.mxu1  ;;  %v3443_v23 = vpop.f32.mrf.mxu0  ;;  %5750 = vmatprep.subr.bf16.mxu1 %v6140_v56  ;;  %v3442_v61 = vadd.f32 %v3441_v50, %v7021_v4  ;;  %5778 = vmatprep.subr.bf16.mxu0 %v6141_v26  ;;  %v3594_v60 = vmax.f32 %v3387_v2, 0.0  ;;  %v3596_v45 = vmax.f32 %v3440_v12, 0.0  ;;  %v6155_v19 = vld [vmem:[#allocation12 + $0x3a0] sm:$0xff]   ;;  %v6158_v56 = vld [vmem:[#allocation12 + $0x318] sm:$0xff]   ;;  %v6161_v29 = vld [vmem:[#allocation12 + $0x3d0] sm:$0xff]   ;;  %v7050_v26 = vrot.slane %v7012_v31, %v2432_v7 }
0x11d8   :  { %v3391_v62 = vadd.f32 %v3390_v34, %v7025_v6  ;;  %v3444_v63 = vadd.f32 %v3443_v23, %v7029_v11  ;;  %4909 = vmatprep.mubr.bf16.mxu1 %v3627_v44  ;;  %4958 = vmatprep.mubr.bf16.mxu0 %v3629_v30  ;;  %v3595_v20 = vmax.f32 %v3389_v58, 0.0  ;;  %v6149_v11 = vld [vmem:[#allocation12 + $0x3e8] sm:$0xff]   ;;  %v6159_v22 = vld [vmem:[#allocation12 + $0x398] sm:$0xff]   ;;  %v6162_v36 = vld [vmem:[#allocation12 + $0x310] sm:$0xff]   ;;  %v7055_v44 = vrot.slane %v7012_v31, %v2440_v8 }
0x11d9   :  { %v3392_v5 = vpop.f32.mrf.mxu1  ;;  %v3445_v51 = vpop.f32.mrf.mxu0  ;;  %4910 = vmatmul.mubr.bf16.vlgmr.msra.gmra.mxu1 %v3626_v27  ;;  %4959 = vmatmul.mubr.bf16.vlgmr.msra.gmra.mxu0 %v3628_v52  ;;  %v3597_v6 = vmax.f32 %v3442_v61, 0.0  ;;  %v6163_v49 = vld [vmem:[#allocation12 + $0x390] sm:$0xff]   ;;  %v6164_v50 = vld [vmem:[#allocation12 + $0x348] sm:$0xff]   ;;  %v2469_v27 = vrot.slane %v7012_v31, %v2436_v10 }
0x11da   :  { %v3393_v35 = vadd.f32 %v3392_v5, %v7016_v3  ;;  %v3446_v28 = vadd.f32 %v3445_v51, %v7021_v4  ;;  %5751 = vmatpush3.bf16.msra.mxu1 %v6142_v38  ;;  %v3610_v18 = vmax.f32 %v3391_v62, 0.0  ;;  %5779 = vmatpush3.bf16.msra.mxu0 %v6143_v59  ;;  %v3612_v33 = vmax.f32 %v3444_v63, 0.0  ;;  %v6150_v4 = vld [vmem:[#allocation12 + $0x328] sm:$0xff]   ;;  %v6168_v59 = vld [vmem:[#allocation12 + $0x340] sm:$0xff]  }
0x11db   :  { %5752 = vmatprep.subr.bf16.mxu1 %v6144_v57  ;;  %5780 = vmatprep.subr.bf16.mxu0 %v6145_v1  ;;  %v6165_v30 = vld [vmem:[#allocation12 + $0x3c8] sm:$0xff]   ;;  %v2461_v38 = vrot.slane %v7012_v31, %v2428_v9  ;;  %v6170_v51 = vld [vmem:[#allocation12 + $0x300] sm:$0xff]  }
0x11dc   :  { %v3611_v40 = vmax.f32 %v3393_v35, 0.0  ;;  %v3613_v48 = vmax.f32 %v3446_v28, 0.0  ;;  %v3642_v42 = vpack.c.bf16 %v3610_v18, %v3594_v60  ;;  %v3644_v54 = vpack.c.bf16 %v3612_v33, %v3596_v45  ;;  %v6166_v7 = vld [vmem:[#allocation12 + $0x308] sm:$0xff]  }
0x11dd   :  { %v6167_v8 = vld [vmem:[#allocation12 + $0x388] sm:$0xff]  }
0x11de   :  { %v3643_v3 = vpack.c.bf16 %v3611_v40, %v3595_v20  ;;  %v3645_v41 = vpack.c.bf16 %v3613_v48, %v3597_v6  ;;  %5753 = vmatpush3.bf16.msra.mxu1 %v6146_v0  ;;  %5781 = vmatpush3.bf16.msra.mxu0 %v6147_v25  ;;  %v6171_v20 = vld [vmem:[#allocation12 + $0x380] sm:$0xff]  }
0x11df   :  { %5754 = vmatprep.subr.bf16.mxu1 %v6148_v39  ;;  %5782 = vmatprep.subr.bf16.mxu0 %v6149_v11 }
0x11e0   :  { %4917 = vmatprep.mubr.bf16.mxu1 %v3643_v3  ;;  %4966 = vmatprep.mubr.bf16.mxu0 %v3645_v41 }
0x11e1   :  { %4918 = vmatmul.mubr.bf16.gmra.mxu1 %v3642_v42  ;;  %4967 = vmatmul.mubr.bf16.gmra.mxu0 %v3644_v54 }
0x11e2   :  { %5755 = vmatpush3.bf16.msra.mxu1 %v6150_v4  ;;  %5783 = vmatpush3.bf16.msra.mxu0 %v6151_v13 }
0x11e3   :  { %5756 = vmatprep.subr.bf16.mxu1 %v6152_v14  ;;  %5784 = vmatprep.subr.bf16.mxu0 %v6153_v16 }
0x11e6   :  { %5757 = vmatpush3.bf16.msra.mxu1 %v6154_v21  ;;  %5785 = vmatpush3.bf16.msra.mxu0 %v6155_v19 }
0x11e7   :  { %5758 = vmatprep.subr.bf16.mxu1 %v6156_v47  ;;  %5786 = vmatprep.subr.bf16.mxu0 %v6157_v15 }
0x11ea   :  { %5759 = vmatpush3.bf16.msra.mxu1 %v6158_v56  ;;  %5787 = vmatpush3.bf16.msra.mxu0 %v6159_v22 }
0x11eb   :  { %v3482_v55 = vpop.f32.mrf.mxu1  ;;  %v3535_v37 = vpop.f32.mrf.mxu0  ;;  %5760 = vmatprep.subr.bf16.mxu1 %v6160_v24  ;;  %5788 = vmatprep.subr.bf16.mxu0 %v6161_v29 }
0x11ec   :  { %v3483_v63 = vadd.f32 %v3482_v55, %v2461_v38  ;;  %v3536_v10 = vadd.f32 %v3535_v37, %v2469_v27 }
0x11ed   :  { %v3484_v52 = vpop.f32.mrf.mxu1  ;;  %v3537_v58 = vpop.f32.mrf.mxu0 }
0x11ee   :  { %5761 = vmatpush3.bf16.msra.mxu1 %v6162_v36  ;;  %5789 = vmatpush3.bf16.msra.mxu0 %v6163_v49  ;;  %v3485_v57 = vadd.f32 %v3484_v52, %v7050_v26  ;;  %v3538_v61 = vadd.f32 %v3537_v58, %v7055_v44  ;;  %v3566_v33 = vmax.f32 %v3483_v63, 0.0  ;;  %v3568_v40 = vmax.f32 %v3536_v10, 0.0 }
0x11ef   :  { %v3486_v34 = vpop.f32.mrf.mxu1  ;;  %v3539_v23 = vpop.f32.mrf.mxu0  ;;  %5762 = vmatprep.subr.bf16.mxu1 %v6164_v50  ;;  %5790 = vmatprep.subr.bf16.mxu0 %v6165_v30 }
0x11f0   :  { %v3487_v62 = vadd.f32 %v3486_v34, %v2461_v38  ;;  %v3540_v9 = vadd.f32 %v3539_v23, %v2469_v27  ;;  %v3567_v18 = vmax.f32 %v3485_v57, 0.0  ;;  %v3569_v25 = vmax.f32 %v3538_v61, 0.0 }
0x11f1   :  { %v3488_v31 = vpop.f32.mrf.mxu1  ;;  %v3541_v1 = vpop.f32.mrf.mxu0 }
0x11f2   :  { %v3489_v2 = vadd.f32 %v3488_v31, %v7050_v26  ;;  %v3542_v5 = vadd.f32 %v3541_v1, %v7055_v44  ;;  %5763 = vmatpush3.bf16.msra.mxu1 %v6166_v7  ;;  %v3582_v12 = vmax.f32 %v3487_v62, 0.0  ;;  %v3584_v35 = vmax.f32 %v3540_v9, 0.0  ;;  %5791 = vmatpush3.bf16.msra.mxu0 %v6167_v8 }
0x11f3   :  { %v3492_v28 = vpop.f32.mrf.mxu1  ;;  %v3545_v0 = vpop.f32.mrf.mxu0  ;;  %5764 = vmatprep.subr.bf16.mxu1 %v6168_v59  ;;  %5792 = vmatprep.subr.bf16.mxu0 %v6169_v32 }
0x11f4   :  { %v3583_v39 = vmax.f32 %v3489_v2, 0.0  ;;  %v3585_v6 = vmax.f32 %v3542_v5, 0.0  ;;  %v3630_v3 = vpack.c.bf16 %v3582_v12, %v3566_v33  ;;  %v3632_v41 = vpack.c.bf16 %v3584_v35, %v3568_v40 }
0x11f5   :  { %v3494_v48 = vpop.f32.mrf.mxu1  ;;  %v3547_v60 = vpop.f32.mrf.mxu0  ;;  %v3493_v21 = vadd.f32 %v3492_v28, %v2461_v38  ;;  %v3546_v15 = vadd.f32 %v3545_v0, %v2469_v27 }
0x11f6   :  { %v3631_v11 = vpack.c.bf16 %v3583_v39, %v3567_v18  ;;  %v3633_v45 = vpack.c.bf16 %v3585_v6, %v3569_v25  ;;  %5765 = vmatpush3.bf16.msra.mxu1 %v6170_v51  ;;  %v3495_v4 = vadd.f32 %v3494_v48, %v7050_v26  ;;  %5793 = vmatpush3.bf16.msra.mxu0 %v6171_v20 }
0x11f7   :  { %v3496_v42 = vpop.f32.mrf.mxu1  ;;  %v3549_v13 = vpop.f32.mrf.mxu0  ;;  %v3548_v14 = vadd.f32 %v3547_v60, %v7055_v44  ;;  %v3598_v50 = vmax.f32 %v3493_v21, 0.0  ;;  %v3600_v30 = vmax.f32 %v3546_v15, 0.0 }
0x11f8   :  { %v3497_v54 = vadd.f32 %v3496_v42, %v2461_v38  ;;  %v3550_v16 = vadd.f32 %v3549_v13, %v2469_v27  ;;  %5007 = vmatprep.mubr.bf16.mxu1 %v3631_v11  ;;  %5056 = vmatprep.mubr.bf16.mxu0 %v3633_v45  ;;  %v3599_v24 = vmax.f32 %v3495_v4, 0.0 }
0x11f9   :  { %v3498_v19 = vpop.f32.mrf.mxu1  ;;  %v3551_v47 = vpop.f32.mrf.mxu0  ;;  %5008 = vmatmul.mubr.bf16.vlgmr.msra.gmra.mxu1 %v3630_v3  ;;  %5057 = vmatmul.mubr.bf16.vlgmr.msra.gmra.mxu0 %v3632_v41  ;;  %v3601_v36 = vmax.f32 %v3548_v14, 0.0 }
0x11fa   :  { %v3499_v56 = vadd.f32 %v3498_v19, %v7050_v26  ;;  %v3552_v22 = vadd.f32 %v3551_v47, %v7055_v44  ;;  %v3614_v29 = vmax.f32 %v3497_v54, 0.0  ;;  %v3616_v55 = vmax.f32 %v3550_v16, 0.0  ;;  %v5367_v16 = vld [vmem:[#allocation13] ss:$0 sm:$0xff] }
0x11fc   :  { %v3615_v37 = vmax.f32 %v3499_v56, 0.0  ;;  %v3617_v49 = vmax.f32 %v3552_v22, 0.0  ;;  %v3646_v38 = vpack.c.bf16 %v3614_v29, %v3598_v50  ;;  %v3648_v7 = vpack.c.bf16 %v3616_v55, %v3600_v30 }
0x11fe   :  { %v3647_v52 = vpack.c.bf16 %v3615_v37, %v3599_v24  ;;  %v3649_v58 = vpack.c.bf16 %v3617_v49, %v3601_v36 }
0x1200   :  { %5015 = vmatprep.mubr.bf16.mxu1 %v3647_v52  ;;  %5064 = vmatprep.mubr.bf16.mxu0 %v3649_v58 }
0x1201   :  { %5016 = vmatmul.mubr.bf16.gmra.mxu1 %v3646_v38  ;;  %5065 = vmatmul.mubr.bf16.gmra.mxu0 %v3648_v7 }
0x1259   :  { %v5598_v26 = vpop.f32.mrf.mxu1  ;;  %v5626_v27 = vpop.f32.mrf.mxu0 }
0x125b   :  { %v5599_v44 = vpop.f32.mrf.mxu1  ;;  %v5627_v34 = vpop.f32.mrf.mxu0 }
0x125c   :  { %v5600_v14 = vadd.f32 %v5599_v44, %v5598_v26  ;;  %v5628_v56 = vadd.f32 %v5627_v34, %v5626_v27 }
0x125d   :  { %v5601_v23 = vpop.f32.mrf.mxu1  ;;  %v5629_v8 = vpop.f32.mrf.mxu0 }
0x125e   :  { %v4716_v47 = vadd.f32 %v5600_v14, %v5367_v16 }
0x125f   :  { %v5602_v59 = vpop.f32.mrf.mxu1  ;;  %v5630_v57 = vpop.f32.mrf.mxu0 }
0x1260   :  { %v5603_v21 = vadd.f32 %v5602_v59, %v5601_v23  ;;  %v4765_v36 = vadd.f32 %v5628_v56, %v4716_v47  ;;  %v5631_v49 = vadd.f32 %v5630_v57, %v5629_v8 }
0x1261   :  { %v5604_v61 = vpop.f32.mrf.mxu1  ;;  %v5632_v62 = vpop.f32.mrf.mxu0 }
0x1262   :  { %v4719_v24 = vadd.f32 %v5603_v21, %v5367_v16 }
0x1263   :  { %v5605_v9 = vpop.f32.mrf.mxu1  ;;  %v5633_v32 = vpop.f32.mrf.mxu0 }
0x1264   :  { %v5606_v55 = vadd.f32 %v5605_v9, %v5604_v61  ;;  %v4768_v52 = vadd.f32 %v5631_v49, %v4719_v24  ;;  %v5634_v14 = vadd.f32 %v5633_v32, %v5632_v62 }
0x1265   :  { %v5607_v63 = vpop.f32.mrf.mxu1  ;;  %v5635_v10 = vpop.f32.mrf.mxu0 }
0x1266   :  { %v4724_v7 = vadd.f32 %v5606_v55, %v5367_v16 }
0x1267   :  { %v5608_v31 = vpop.f32.mrf.mxu1  ;;  %v5636_v1 = vpop.f32.mrf.mxu0 }
0x1268   :  { %v5609_v58 = vadd.f32 %v5608_v31, %v5607_v63  ;;  %v4773_v61 = vadd.f32 %v5634_v14, %v4724_v7  ;;  %v5637_v57 = vadd.f32 %v5636_v1, %v5635_v10 }
0x126a   :  { %v4727_v34 = vadd.f32 %v5609_v58, %v5367_v16 }
0x1279   :  { %v5654_v2 = vpop.f32.mrf.mxu1  ;;  %v5682_v5 = vpop.f32.mrf.mxu0 }
0x127b   :  { %v5655_v51 = vpop.f32.mrf.mxu1  ;;  %v5683_v12 = vpop.f32.mrf.mxu0 }
0x127c   :  { %v5656_v22 = vadd.f32 %v5655_v51, %v5654_v2  ;;  %v5684_v26 = vadd.f32 %v5683_v12, %v5682_v5  ;;  %v4776_v12 = vadd.f32 %v5637_v57, %v4727_v34 }
0x127d   :  { %v5657_v35 = vpop.f32.mrf.mxu1  ;;  %v5685_v28 = vpop.f32.mrf.mxu0 }
0x127e   :  { %v4814_v30 = vadd.f32 %v5656_v22, %v4765_v36 }
0x127f   :  { %v5658_v0 = vpop.f32.mrf.mxu1  ;;  %v5686_v20 = vpop.f32.mrf.mxu0 }
0x1280   :  { %v5659_v50 = vadd.f32 %v5658_v0, %v5657_v35  ;;  %v4863_v46 = vadd.f32 %v5684_v26, %v4814_v30  ;;  %v5687_v2 = vadd.f32 %v5686_v20, %v5685_v28 }
0x1281   :  { %v5660_v18 = vpop.f32.mrf.mxu1  ;;  %v5688_v25 = vpop.f32.mrf.mxu0 }
0x1282   :  { %v4817_v59 = vadd.f32 %v5659_v50, %v4768_v52 }
0x1283   :  { %v5661_v39 = vpop.f32.mrf.mxu1  ;;  %v5689_v6 = vpop.f32.mrf.mxu0 }
0x1284   :  { %v5662_v27 = vadd.f32 %v5661_v39, %v5660_v18  ;;  %v4866_v35 = vadd.f32 %v5687_v2, %v4817_v59  ;;  %v5690_v62 = vadd.f32 %v5689_v6, %v5688_v25 }
0x1285   :  { %v5663_v33 = vpop.f32.mrf.mxu1  ;;  %v7071_v40 = vpop.f32.mrf.mxu0 }
0x1286   :  { %v4822_v31 = vadd.f32 %v5662_v27, %v4773_v61  ;;  %v7115_v61 = vld [vmem:[#allocation20_spill] sm:$0xff] }
0x1287   :  { %v5664_v48 = vpop.f32.mrf.mxu1  ;;  %v7073_v60 = vpop.f32.mrf.mxu0 }
0x1288   :  { %v5665_v0 = vadd.f32 %v5664_v48, %v5663_v33  ;;  %v5693_v33 = vadd.f32 %v7073_v60, %v7071_v40 }
0x128a   :  { %v4825_v20 = vadd.f32 %v5665_v0, %v4776_v12 }
0x1299   :  { %v5710_v11 = vpop.f32.mrf.mxu1  ;;  %v5738_v45 = vpop.f32.mrf.mxu0 }
0x129b   :  { %v5711_v3 = vpop.f32.mrf.mxu1  ;;  %v5739_v41 = vpop.f32.mrf.mxu0 }
0x129c   :  { %v5712_v44 = vadd.f32 %v5711_v3, %v5710_v11  ;;  %v5740_v47 = vadd.f32 %v5739_v41, %v5738_v45 }
0x129d   :  { %v5713_v4 = vpop.f32.mrf.mxu1  ;;  %v5741_v42 = vpop.f32.mrf.mxu0 }
0x129e   :  { %v4912_v9 = vadd.f32 %v5712_v44, %v4863_v46  ;;  %v4871_v46 = vadd.f32 %v5690_v62, %v4822_v31 }
0x129f   :  { %v5714_v13 = vpop.f32.mrf.mxu1  ;;  %v5742_v54 = vpop.f32.mrf.mxu0 }
0x12a0   :  { %v5715_v51 = vadd.f32 %v5714_v13, %v5713_v4  ;;  %v4961_v32 = vadd.f32 %v5740_v47, %v4912_v9  ;;  %v5743_v4 = vadd.f32 %v5742_v54, %v5741_v42 }
0x12a1   :  { %v5716_v19 = vpop.f32.mrf.mxu1  ;;  %v5744_v15 = vpop.f32.mrf.mxu0 }
0x12a2   :  { %v4915_v11 = vadd.f32 %v5715_v51, %v4866_v35 }
0x12a3   :  { %v5717_v29 = vpop.f32.mrf.mxu1  ;;  %v5745_v37 = vpop.f32.mrf.mxu0 }
0x12a4   :  { %v5718_v18 = vadd.f32 %v5717_v29, %v5716_v19  ;;  %v4964_v48 = vadd.f32 %v5743_v4, %v4915_v11  ;;  %v4874_v19 = vadd.f32 %v5693_v33, %v4825_v20  ;;  %v5746_v29 = vadd.f32 %v5745_v37, %v5744_v15 }
0x12a5   :  { %v5719_v38 = vpop.f32.mrf.mxu1  ;;  %v5747_v23 = vpop.f32.mrf.mxu0 }
0x12a6   :  { %v4920_v41 = vadd.f32 %v5718_v18, %v4871_v46 }
0x12a7   :  { %v5720_v21 = vpop.f32.mrf.mxu1  ;;  %v5748_v8 = vpop.f32.mrf.mxu0 }
0x12a8   :  { %v5721_v56 = vadd.f32 %v5720_v21, %v5719_v38  ;;  %v4969_v50 = vadd.f32 %v5746_v29, %v4920_v41  ;;  %v5749_v38 = vadd.f32 %v5748_v8, %v5747_v23  ;;  %v5496_v41 = vld [vmem:[%s7110_s11] ss:$0 sm:$0xff] }
0x12aa   :  { %v4923_v30 = vadd.f32 %v5721_v56, %v4874_v19 }
0x12ac   :  { %v4972_v37 = vadd.f32 %v5749_v38, %v4923_v30 }
0x12b9   :  { %v5766_v63 = vpop.f32.mrf.mxu1  ;;  %v5794_v5 = vpop.f32.mrf.mxu0 }
0x12bb   :  { %v5767_v3 = vpop.f32.mrf.mxu1  ;;  %v5795_v28 = vpop.f32.mrf.mxu0 }
0x12bc   :  { %v5768_v39 = vadd.f32 %v5767_v3, %v5766_v63  ;;  %v5796_v10 = vadd.f32 %v5795_v28, %v5794_v5 }
0x12bd   :  { %v5769_v13 = vpop.f32.mrf.mxu1  ;;  %v5797_v1 = vpop.f32.mrf.mxu0 }
0x12be   :  { %v5010_v16 = vadd.f32 %v5768_v39, %v4961_v32 }
0x12bf   :  { %v5770_v45 = vpop.f32.mrf.mxu1  ;;  %v5798_v6 = vpop.f32.mrf.mxu0 }
0x12c0   :  { %v5059_v22 = vadd.f32 %v5796_v10, %v5010_v16  ;;  %v5771_v25 = vadd.f32 %v5770_v45, %v5769_v13  ;;  %v5799_v42 = vadd.f32 %v5798_v6, %v5797_v1 }
0x12c1   :  { %v5772_v24 = vpop.f32.mrf.mxu1  ;;  %v5800_v54 = vpop.f32.mrf.mxu0 }
0x12c2   :  { %v5013_v36 = vadd.f32 %v5771_v25, %v4964_v48  ;;  %v5073_v55 = vadd.f32 %v5059_v22, %v6912_v43  ;;  %v5497_v22 = vld [vmem:[%s7111_s12] ss:$0 sm:$0xff] }
0x12c3   :  { %v5773_v49 = vpop.f32.mrf.mxu1  ;;  %v5801_v60 = vpop.f32.mrf.mxu0 }
0x12c4   :  { %v5062_v52 = vadd.f32 %v5799_v42, %v5013_v36  ;;  %v5774_v40 = vadd.f32 %v5773_v49, %v5772_v24  ;;  %5077 = vadd.xlane.f32.xlu0 %v5073_v55  ;;  %v5802_v26 = vadd.f32 %v5801_v60, %v5800_v54 }
0x12c5   :  { %v5775_v58 = vpop.f32.mrf.mxu1  ;;  %v5803_v44 = vpop.f32.mrf.mxu0 }
0x12c6   :  { %v5018_v7 = vadd.f32 %v5774_v40, %v4969_v50  ;;  %v5074_v59 = vadd.f32 %v5062_v52, %v6914_v17 }
0x12c7   :  { %v5776_v15 = vpop.f32.mrf.mxu1  ;;  %v5804_v34 = vpop.f32.mrf.mxu0 }
0x12c8   :  { %v5067_v14 = vadd.f32 %v5802_v26, %v5018_v7  ;;  %v5777_v27 = vadd.f32 %v5776_v15, %v5775_v58  ;;  %5079 = vadd.xlane.f32.xlu1 %v5074_v59  ;;  %v5805_v2 = vadd.f32 %v5804_v34, %v5803_v44 }
0x12ca   :  { %v5021_v43 = vadd.f32 %v5777_v27, %v4972_v37  ;;  %v5075_v51 = vadd.f32 %v5067_v14, %v6928_v53 }
0x12cc   :  { %v5070_v21 = vadd.f32 %v5805_v2, %v5021_v43  ;;  %5081 = vadd.xlane.f32.xlu0 %v5075_v51 }
0x12ce   :  { %v5076_v9 = vadd.f32 %v5070_v21, %v7115_v61 }
0x12d0   :  { %5083 = vadd.xlane.f32.xlu1 %v5076_v9 }
0x134d   :  { %v5078_v23 = vpop.xlane.xlu0 %5077 }
0x134e   :  { %v5085_v8 = vmul.f32 0.0078125, %v5078_v23 }
0x1350   :  { %v5089_v57 = vsub.f32 %v5073_v55, %v5085_v8 }
0x1351   :  { %v5080_v35 = vpop.xlane.xlu1 %5079 }
0x1352   :  { %v5086_v17 = vmul.f32 0.0078125, %v5080_v35  ;;  %v5093_v0 = vmul.f32 %v5089_v57, %v5089_v57 }
0x1354   :  { %v5090_v63 = vsub.f32 %v5074_v59, %v5086_v17  ;;  %5097 = vadd.xlane.f32.xlu0 %v5093_v0 }
0x1355   :  { %v5082_v31 = vpop.xlane.xlu0 %5081 }
0x1356   :  { %v5087_v47 = vmul.f32 0.0078125, %v5082_v31  ;;  %v5094_v5 = vmul.f32 %v5090_v63, %v5090_v63 }
0x1358   :  { %v5091_v12 = vsub.f32 %v5075_v51, %v5087_v47  ;;  %5099 = vadd.xlane.f32.xlu1 %v5094_v5 }
0x1359   :  { %v5084_v11 = vpop.xlane.xlu1 %5083 }
0x135a   :  { %v5088_v53 = vmul.f32 0.0078125, %v5084_v11  ;;  %v5095_v3 = vmul.f32 %v5091_v12, %v5091_v12 }
0x135c   :  { %v5092_v62 = vsub.f32 %v5076_v9, %v5088_v53  ;;  %5101 = vadd.xlane.f32.xlu0 %v5095_v3 }
0x135e   :  { %v5096_v32 = vmul.f32 %v5092_v62, %v5092_v62 }
0x1360   :  { %5103 = vadd.xlane.f32.xlu1 %v5096_v32 }
0x13dd   :  { %v5098_v18 = vpop.xlane.xlu0 %5097 }
0x13de   :  { %v5105_v39 = vmul.f32 0.0078125, %v5098_v18 }
0x13e0   :  { %v5109_v28 = vadd.f32 1e-05, %v5105_v39 }
0x13e1   :  { %v5100_v20 = vpop.xlane.xlu1 %5099 }
0x13e2   :  { %6244 = vrsqrt.f32 %v5109_v28  ;;  %v5106_v4 = vmul.f32 0.0078125, %v5100_v20 }
0x13e4   :  { %v5110_v13 = vadd.f32 1e-05, %v5106_v4 }
0x13e5   :  { %v5102_v46 = vpop.xlane.xlu0 %5101 }
0x13e6   :  { %6246 = vrsqrt.f32 %v5110_v13  ;;  %v5107_v16 = vmul.f32 0.0078125, %v5102_v46 }
0x13e8   :  { %v5111_v10 = vadd.f32 1e-05, %v5107_v16 }
0x13e9   :  { %v5104_v1 = vpop.xlane.xlu1 %5103 }
0x13ea   :  { %6248 = vrsqrt.f32 %v5111_v10  ;;  %v5108_v33 = vmul.f32 0.0078125, %v5104_v1 }
0x13ec   :  { %v5112_v48 = vadd.f32 1e-05, %v5108_v33 }
0x13ee   :  { %6250 = vrsqrt.f32 %v5112_v48 }
0x13ef   :  { %v6245_v45 = vpop.eup %6244 }
0x13f0   :  { %v5117_v56 = vmul.f32 %v6245_v45, %v5089_v57 }
0x13f2   :  { %v5128_v25 = vmul.f32 %v5496_v41, %v5117_v56 }
0x13f3   :  { %v6247_v6 = vpop.eup %6246 }
0x13f4   :  { %v5139_v19 = vadd.f32 %v5497_v22, %v5128_v25  ;;  %v5118_v24 = vmul.f32 %v6247_v6, %v5090_v63 }
0x13f6   :  { %5143 = vst [vmem:[%s7112_s13] sm:$0xff] %v5139_v19  ;;  %v5129_v29 = vmul.f32 %v5496_v41, %v5118_v24 }
0x13f7   :  { %v6249_v36 = vpop.eup %6248 }
0x13f8   :  { %v5140_v42 = vadd.f32 %v5497_v22, %v5129_v29  ;;  %v5119_v54 = vmul.f32 %v6249_v36, %v5091_v12 }
0x13fa   :  { %5144 = vst [vmem:[%s7112_s13 + $0x8] sm:$0xff] %v5140_v42  ;;  %v5130_v55 = vmul.f32 %v5496_v41, %v5119_v54 }
0x13fb   :  { %v6251_v49 = vpop.eup %6250 }
0x13fc   :  { %v5141_v50 = vadd.f32 %v5497_v22, %v5130_v55  ;;  %v5120_v30 = vmul.f32 %v6251_v49, %v5092_v62 }
0x13fe   :  { %5145 = vst [vmem:[%s7112_s13 + $0x10] sm:$0xff] %v5141_v50  ;;  %v5131_v52 = vmul.f32 %v5496_v41, %v5120_v30 }
0x1400   :  { %v5142_v40 = vadd.f32 %v5497_v22, %v5131_v52 }
0x1402   :  { %5146 = vst [vmem:[%s7112_s13 + $0x18] sm:$0xff] %v5142_v40 }
0x1403   :  { %5151 = vsyncpa [#allocation3], 1 }
0x1404   :  { %5152 = vsyncpa [#allocation5], 1 }
0x1405   :  { %5153 = vsyncpa [#allocation8], 1 }
0x1406   :  { %5154 = vsyncpa [#allocation11], 1 }
0x1407   :  { %5155 = vsyncpa [#allocation14], 1 }

// kernel: _lambda_.9
= control target key start
LH: loop header
LB: loop body
LE: loop exit
PB: predicated region body
PF: predicated region fallthrough
CT: control target
= control target key end

     0   :  { %v6646_v1 = vmov 0.0   ;;  %vm6647_vm0 = vmmov 0   ;;  %vm61_vm1 = vcmask 1040384   ;;  %s8843_s0 = inlined_call_operand.vmem [shape: f32[2,2048], index: 0, kind: input, shape index: {}]   ;;  %s8844_s1 = inlined_call_operand.vmem [shape: f32[32,128], index: 1, kind: input, shape index: {}]   ;;  %s8845_s2 = inlined_call_operand.vmem [shape: bf16[128,128], index: 2, kind: input, shape index: {}]   ;;  %s8846_s3 = inlined_call_operand.vmem [shape: f32[1,128], index: 3, kind: input, shape index: {}]   ;;  %s8847_s4 = inlined_call_operand.vmem [shape: bf16[2048,512], index: 4, kind: input, shape index: {}]   ;;  %s8848_s5 = inlined_call_operand.vmem [shape: bf16[128,512], index: 5, kind: input, shape index: {}]   ;;  %s8849_s6 = inlined_call_operand.vmem [shape: f32[1,512], index: 6, kind: input, shape index: {}]   ;;  %s8850_s7 = inlined_call_operand.vmem [shape: bf16[512,256], index: 7, kind: input, shape index: {}]   ;;  %s8851_s8 = inlined_call_operand.vmem [shape: f32[1,256], index: 8, kind: input, shape index: {}]   ;;  %s8852_s9 = inlined_call_operand.vmem [shape: bf16[256,4], index: 9, kind: input, shape index: {}]   ;;  %s8853_s10 = inlined_call_operand.vmem [shape: f32[1,4], index: 10, kind: input, shape index: {}]   ;;  %s8854_s11 = inlined_call_operand.hbm [shape: f32[2,4], index: 11, kind: output, shape index: {}]  }
   0x1   :  { %v5684_v0 = vld [vmem:[%s8845_s2 + $0x38] sm:$0xff]   ;;  %5659 = vmatprep.subr.bf16.mxu0 %v6646_v1  ;;  %v5685_v2 = vld [vmem:[%s8845_s2 + $0x30] sm:$0xff]   ;;  %5675 = vmatprep.mubr.msk.bf16.mxu0 %vm6647_vm0, %v6646_v1  ;;  %v5686_v3 = vld [vmem:[%s8845_s2 + $0x28] sm:$0xff]  }
   0x2   :  { %5660 = vmatpush3.bf16.msra.mxu0 %v5684_v0  ;;  %v5687_v4 = vld [vmem:[%s8845_s2 + $0x20] sm:$0xff]   ;;  %v41_v6 = vld [vmem:[%s8844_s1 + $0x8] sm:$0xff]  ;;  %v42_v7 = vld [vmem:[%s8844_s1 + $0x10] sm:$0xff] }
   0x3   :  { %5661 = vmatprep.subr.bf16.mxu0 %v6646_v1  ;;  %v40_v5 = vld [vmem:[%s8844_s1] sm:$0xff]  ;;  %v43_v8 = vld [vmem:[%s8844_s1 + $0x18] sm:$0xff]  ;;  %v5689_v23 = vld [vmem:[%s8845_s2 + $0x10] sm:$0xff]  }
   0x4   :  { %v44_v9 = vadd.f32 %v41_v6, %v40_v5  ;;  %v53_v10 = vadd.f32 %v43_v8, %v42_v7  ;;  %v5692_v11 = vld [vmem:[%s8848_s5 + $0xe4] ss:$16 sps:$4 sm:$0xff]   ;;  %v5697_v14 = vld [vmem:[%s8848_s5 + $0xe0] ss:$16 sps:$4 sm:$0xff]   ;;  %v5688_v17 = vld [vmem:[%s8845_s2 + $0x18] sm:$0xff]  }
   0x5   :  { %989 = vmatprep.subr.bf16.mxu1 %v5692_v11  ;;  %v5698_v15 = vld [vmem:[%s8848_s5 + $0xc4] ss:$16 sps:$4 sm:$0xff]   ;;  %v5703_v19 = vld [vmem:[%s8848_s5 + $0xc0] ss:$16 sps:$4 sm:$0xff]   ;;  %v5690_v31 = vld [vmem:[%s8845_s2 + $0x8] sm:$0xff]  }
   0x6   :  { %5662 = vmatpush3.bf16.msra.mxu0 %v5685_v2  ;;  %v45_v12 = vrot.slane %v44_v9, 4  ;;  %v54_v13 = vrot.slane %v53_v10, 4  ;;  %990 = vmatpush1.bf16.msra.mxu1 %v5697_v14  ;;  %v5704_v21 = vld [vmem:[%s8848_s5 + $0xa4] ss:$16 sps:$4 sm:$0xff]   ;;  %v5709_v26 = vld [vmem:[%s8848_s5 + $0xa0] ss:$16 sps:$4 sm:$0xff]  }
   0x7   :  { %5663 = vmatprep.subr.bf16.mxu0 %v6646_v1  ;;  %991 = vmatprep.subr.bf16.mxu1 %v5698_v15  ;;  %v5710_v28 = vld [vmem:[%s8848_s5 + $0x84] ss:$16 sps:$4 sm:$0xff]   ;;  %v5715_v33 = vld [vmem:[%s8848_s5 + $0x80] ss:$16 sps:$4 sm:$0xff]   ;;  %v5696_v40 = vld [vmem:[%s8848_s5 + $0xec] ss:$16 sps:$4 sm:$0xff]  }
   0x8   :  { %v46_v16 = vadd.f32 %v45_v12, %v44_v9  ;;  %v55_v18 = vadd.f32 %v54_v13, %v53_v10  ;;  %v5716_v35 = vld [vmem:[%s8848_s5 + $0x64] ss:$16 sps:$4 sm:$0xff]   ;;  %v5721_v39 = vld [vmem:[%s8848_s5 + $0x60] ss:$16 sps:$4 sm:$0xff]   ;;  %v5694_v42 = vld [vmem:[%s8848_s5 + $0xe8] ss:$16 sps:$4 sm:$0xff]  }
   0x9   :  { %v5691_v37 = vld [vmem:[%s8845_s2] sm:$0xff]   ;;  %v5702_v45 = vld [vmem:[%s8848_s5 + $0xcc] ss:$16 sps:$4 sm:$0xff]   ;;  %v5700_v47 = vld [vmem:[%s8848_s5 + $0xc8] ss:$16 sps:$4 sm:$0xff]  }
   0xa   :  { %5664 = vmatpush3.bf16.msra.mxu0 %v5686_v3  ;;  %v47_v20 = vrot.slane %v46_v16, 2  ;;  %v56_v22 = vrot.slane %v55_v18, 2  ;;  %992 = vmatpush1.bf16.msra.mxu1 %v5703_v19  ;;  %v5722_v41 = vld [vmem:[%s8848_s5 + $0x44] ss:$16 sps:$4 sm:$0xff]   ;;  %v5727_v43 = vld [vmem:[%s8848_s5 + $0x40] ss:$16 sps:$4 sm:$0xff]  }
   0xb   :  { %5665 = vmatprep.subr.bf16.mxu0 %v6646_v1  ;;  %993 = vmatprep.subr.bf16.mxu1 %v5704_v21  ;;  %v5728_v46 = vld [vmem:[%s8848_s5 + $0x24] ss:$16 sps:$4 sm:$0xff]   ;;  %v5733_v48 = vld [vmem:[%s8848_s5 + $0x20] ss:$16 sps:$4 sm:$0xff]   ;;  %v5708_v49 = vld [vmem:[%s8848_s5 + $0xac] ss:$16 sps:$4 sm:$0xff]  }
   0xc   :  { %v48_v24 = vadd.f32 %v47_v20, %v46_v16  ;;  %v57_v25 = vadd.f32 %v56_v22, %v55_v18  ;;  %v5706_v50 = vld [vmem:[%s8848_s5 + $0xa8] ss:$16 sps:$4 sm:$0xff]   ;;  %v5714_v51 = vld [vmem:[%s8848_s5 + $0x8c] ss:$16 sps:$4 sm:$0xff]   ;;  %v5734_v59 = vld [vmem:[%s8848_s5 + $0x4] ss:$16 sps:$4 sm:$0xff]  }
   0xd   :  { %v5712_v52 = vld [vmem:[%s8848_s5 + $0x88] ss:$16 sps:$4 sm:$0xff]   ;;  %v5720_v53 = vld [vmem:[%s8848_s5 + $0x6c] ss:$16 sps:$4 sm:$0xff]   ;;  %v5739_v62 = vld [vmem:[%s8848_s5] ss:$16 sps:$4 sm:$0xff]  }
   0xe   :  { %5666 = vmatpush3.bf16.msra.mxu0 %v5687_v4  ;;  %v49_v27 = vrot.slane %v48_v24, 1  ;;  %v58_v29 = vrot.slane %v57_v25, 1  ;;  %994 = vmatpush1.bf16.msra.mxu1 %v5709_v26  ;;  %v5718_v54 = vld [vmem:[%s8848_s5 + $0x68] ss:$16 sps:$4 sm:$0xff]   ;;  %v5726_v55 = vld [vmem:[%s8848_s5 + $0x4c] ss:$16 sps:$4 sm:$0xff]   ;;  %v188_v4 = vlaneseq }
   0xf   :  { %5667 = vmatprep.subr.bf16.mxu0 %v6646_v1  ;;  %995 = vmatprep.subr.bf16.mxu1 %v5710_v28  ;;  %v5724_v56 = vld [vmem:[%s8848_s5 + $0x48] ss:$16 sps:$4 sm:$0xff]   ;;  %v5732_v57 = vld [vmem:[%s8848_s5 + $0x2c] ss:$16 sps:$4 sm:$0xff]   ;;  %v5742_v63 = vld [vmem:[%s8847_s4 + $0xe4] ss:$16 sps:$4 sm:$0xff]  }
  0x10   :  { %v50_v30 = vadd.f32 %v49_v27, %v48_v24  ;;  %v59_v32 = vadd.f32 %v58_v29, %v57_v25  ;;  %v5730_v58 = vld [vmem:[%s8848_s5 + $0x28] ss:$16 sps:$4 sm:$0xff]   ;;  %v5738_v60 = vld [vmem:[%s8848_s5 + $0xc] ss:$16 sps:$4 sm:$0xff]   ;;  %v5745_v0 = vld [vmem:[%s8847_s4 + $0x2e4] ss:$16 sps:$4 sm:$0xff]  }
  0x11   :  { %v5736_v61 = vld [vmem:[%s8848_s5 + $0x8] ss:$16 sps:$4 sm:$0xff]   ;;  %v6649_v2 = vmov 1983009808   ;;  %v176_v5 = vld [vmem:[%s8843_s0] sm:$0xff]  ;;  %v6861_v7 = vshrl.u32 %v188_v4, 7 }
  0x12   :  { %5668 = vmatpush3.bf16.msra.mxu0 %v5688_v17  ;;  %v52_v34 = vmul.f32 0.0625, %v50_v30  ;;  %v60_v36 = vmul.f32 0.0625, %v59_v32  ;;  %996 = vmatpush1.bf16.msra.mxu1 %v5715_v33  ;;  %v186_v3 = vunpack.c.l.s4 %v6649_v2  ;;  %v184_v9 = vcombine.high %v176_v5, %v176_v5  ;;  %v4994_v10 = vld [vmem:[%s8846_s3] ss:$0 sm:$0xff]  ;;  %v5751_v24 = vld [vmem:[%s8847_s4 + $0x2c4] ss:$16 sps:$4 sm:$0xff]  }
  0x13   :  { %5669 = vmatprep.subr.bf16.mxu0 %v6646_v1  ;;  %997 = vmatprep.subr.bf16.mxu1 %v5716_v35  ;;  %v5740_v16 = vld [vmem:[%s8847_s4 + $0xe0] ss:$16 sps:$4 sm:$0xff]   ;;  %v5754_v30 = vld [vmem:[%s8847_s4 + $0xa4] ss:$16 sps:$4 sm:$0xff]  }
  0x14   :  { %v62_v38 = vsel %vm61_vm1, %v52_v34, %v60_v36  ;;  %v187_v6 = vunpack.c.0.s8 %v186_v3  ;;  %v5743_v17 = vld [vmem:[%s8847_s4 + $0x2e0] ss:$16 sps:$4 sm:$0xff]   ;;  %v5760_v34 = vld [vmem:[%s8847_s4 + $0x84] ss:$16 sps:$4 sm:$0xff]  }
  0x15   :  { %v63_v44 = vpack.c.bf16 %v62_v38, %v62_v38  ;;  %v5746_v28 = vld [vmem:[%s8847_s4 + $0xc0] ss:$16 sps:$4 sm:$0xff]   ;;  %v5763_v35 = vld [vmem:[%s8847_s4 + $0x284] ss:$16 sps:$4 sm:$0xff]  }
  0x16   :  { %5670 = vmatpush3.bf16.msra.mxu0 %v5689_v23  ;;  %998 = vmatpush1.bf16.msra.mxu1 %v5721_v39  ;;  %v6864_v8 = vsub.s32 %v187_v6, %v6861_v7  ;;  %v5748_v23 = vld [vmem:[%s8847_s4 + $0xc4] ss:$16 sps:$4 sm:$0xff]   ;;  %v5749_v29 = vld [vmem:[%s8847_s4 + $0x2c0] ss:$16 sps:$4 sm:$0xff]  }
  0x17   :  { %5671 = vmatprep.subr.bf16.mxu0 %v6646_v1  ;;  %999 = vmatprep.subr.bf16.mxu1 %v5722_v41  ;;  %v5752_v32 = vld [vmem:[%s8847_s4 + $0xa0] ss:$16 sps:$4 sm:$0xff]   ;;  %v5766_v38 = vld [vmem:[%s8847_s4 + $0x64] ss:$16 sps:$4 sm:$0xff]  }
  0x18   :  { %v6870_v11 = vrot.slane %v176_v5, %v6864_v8  ;;  %v6873_v12 = vrot.slane %v184_v9, %v6864_v8  ;;  %v5755_v33 = vld [vmem:[%s8847_s4 + $0x2a0] ss:$16 sps:$4 sm:$0xff]   ;;  %v5769_v39 = vld [vmem:[%s8847_s4 + $0x264] ss:$16 sps:$4 sm:$0xff]  }
  0x19   :  { %v5758_v36 = vld [vmem:[%s8847_s4 + $0x80] ss:$16 sps:$4 sm:$0xff]   ;;  %v5808_v2 = vld [vmem:[%s8847_s4 + $0x184] ss:$16 sps:$4 sm:$0xff]  }
  0x1a   :  { %5672 = vmatpush3.bf16.msra.mxu0 %v5690_v31  ;;  %1000 = vmatpush1.bf16.msra.mxu1 %v5727_v43  ;;  %v199_v18 = vcombine.high %v6870_v11, %v6870_v11  ;;  %v200_v19 = vcombine.high %v6873_v12, %v6873_v12  ;;  %v5757_v31 = vld [vmem:[%s8847_s4 + $0x2a4] ss:$16 sps:$4 sm:$0xff]   ;;  %v5767_v41 = vld [vmem:[%s8847_s4 + $0x260] ss:$16 sps:$4 sm:$0xff]  }
  0x1b   :  { %5673 = vmatprep.subr.bf16.mxu0 %v6646_v1  ;;  %1001 = vmatprep.subr.bf16.mxu1 %v5728_v46  ;;  %v6648_v1 = vmov 0   ;;  %v5775_v43 = vld [vmem:[%s8847_s4 + $0x244] ss:$16 sps:$4 sm:$0xff]   ;;  %v5806_v4 = vld [vmem:[%s8847_s4 + $0x180] ss:$16 sps:$4 sm:$0xff]  }
  0x1c   :  { %1021 = vmatprep.mubr.bf16.mxu1 %v6648_v1  ;;  %v6891_v26 = vpack.c.bf16 %v199_v18, %v199_v18  ;;  %v6893_v27 = vpack.c.bf16 %v200_v19, %v200_v19  ;;  %v5778_v46 = vld [vmem:[%s8847_s4 + $0x24] ss:$16 sps:$4 sm:$0xff]   ;;  %v5809_v5 = vld [vmem:[%s8847_s4 + $0x380] ss:$16 sps:$4 sm:$0xff]  }
  0x1d   :  { %v5811_v3 = vld [vmem:[%s8847_s4 + $0x384] ss:$16 sps:$4 sm:$0xff]   ;;  %v5821_v18 = vld [vmem:[%s8847_s4 + $0x340] ss:$16 sps:$4 sm:$0xff]  }
  0x1e   :  { %5674 = vmatpush3.bf16.msra.mxu0 %v5691_v37  ;;  %1002 = vmatpush1.bf16.msra.mxu1 %v5733_v48  ;;  %v5761_v37 = vld [vmem:[%s8847_s4 + $0x280] ss:$16 sps:$4 sm:$0xff]   ;;  %v5814_v6 = vld [vmem:[%s8847_s4 + $0x164] ss:$16 sps:$4 sm:$0xff]  }
  0x1f   :  { %1030 = vmatprep.subr.bf16.mxu0 %v5696_v40  ;;  %1003 = vmatprep.subr.bf16.mxu1 %v5734_v59  ;;  %v5764_v40 = vld [vmem:[%s8847_s4 + $0x60] ss:$16 sps:$4 sm:$0xff]   ;;  %v5799_v59 = vld [vmem:[%s8847_s4 + $0x3c4] ss:$16 sps:$4 sm:$0xff]  }
  0x20   :  { %v5776_v48 = vld [vmem:[%s8847_s4 + $0x20] ss:$16 sps:$4 sm:$0xff]   ;;  %v5817_v9 = vld [vmem:[%s8847_s4 + $0x364] ss:$16 sps:$4 sm:$0xff]  }
  0x21   :  { %5676 = vmatmul.mubr.bf16.vlgmr.msra.gmra.mxu0 %v63_v44  ;;  %v5770_v44 = vld [vmem:[%s8847_s4 + $0x40] ss:$16 sps:$4 sm:$0xff]   ;;  %v5826_v19 = vld [vmem:[%s8847_s4 + $0x124] ss:$16 sps:$4 sm:$0xff]  }
  0x22   :  { %1031 = vmatpush1.bf16.msra.mxu0 %v5694_v42  ;;  %1004 = vmatpush1.bf16.msra.mxu1 %v5739_v62  ;;  %v5772_v42 = vld [vmem:[%s8847_s4 + $0x44] ss:$16 sps:$4 sm:$0xff]  }
  0x23   :  { %1032 = vmatprep.subr.bf16.mxu0 %v5702_v45  ;;  %1062 = vmatprep.mubr.bf16.mxu0 %v6648_v1  ;;  %v5773_v45 = vld [vmem:[%s8847_s4 + $0x240] ss:$16 sps:$4 sm:$0xff]   ;;  %v5802_v62 = vld [vmem:[%s8847_s4 + $0x1a4] ss:$16 sps:$4 sm:$0xff]  }
  0x24   :  { %3631 = vmatprep.subr.bf16.mxu1 %v5742_v63  ;;  %v5805_v63 = vld [vmem:[%s8847_s4 + $0x3a4] ss:$16 sps:$4 sm:$0xff]   ;;  %v5803_v1 = vld [vmem:[%s8847_s4 + $0x3a0] ss:$16 sps:$4 sm:$0xff]  }
  0x26   :  { %1033 = vmatpush1.bf16.msra.mxu0 %v5700_v47  ;;  %v5781_v47 = vld [vmem:[%s8847_s4 + $0x224] ss:$16 sps:$4 sm:$0xff]  }
  0x27   :  { %1034 = vmatprep.subr.bf16.mxu0 %v5708_v49  ;;  %v5779_v49 = vld [vmem:[%s8847_s4 + $0x220] ss:$16 sps:$4 sm:$0xff]  }
  0x2a   :  { %1035 = vmatpush1.bf16.msra.mxu0 %v5706_v50  ;;  %v5784_v50 = vld [vmem:[%s8847_s4 + $0x4] ss:$16 sps:$4 sm:$0xff]  }
  0x2b   :  { %1036 = vmatprep.subr.bf16.mxu0 %v5714_v51  ;;  %v5787_v51 = vld [vmem:[%s8847_s4 + $0x204] ss:$16 sps:$4 sm:$0xff]  }
  0x2e   :  { %1037 = vmatpush1.bf16.msra.mxu0 %v5712_v52  ;;  %v5782_v52 = vld [vmem:[%s8847_s4] ss:$16 sps:$4 sm:$0xff]  }
  0x2f   :  { %1038 = vmatprep.subr.bf16.mxu0 %v5720_v53  ;;  %v5785_v53 = vld [vmem:[%s8847_s4 + $0x200] ss:$16 sps:$4 sm:$0xff]  }
  0x32   :  { %1039 = vmatpush1.bf16.msra.mxu0 %v5718_v54  ;;  %v5790_v54 = vld [vmem:[%s8847_s4 + $0x1e4] ss:$16 sps:$4 sm:$0xff]  }
  0x33   :  { %1040 = vmatprep.subr.bf16.mxu0 %v5726_v55  ;;  %v5793_v55 = vld [vmem:[%s8847_s4 + $0x3e4] ss:$16 sps:$4 sm:$0xff]  }
  0x36   :  { %1041 = vmatpush1.bf16.msra.mxu0 %v5724_v56  ;;  %v5788_v56 = vld [vmem:[%s8847_s4 + $0x1e0] ss:$16 sps:$4 sm:$0xff]  }
  0x37   :  { %1042 = vmatprep.subr.bf16.mxu0 %v5732_v57  ;;  %v5791_v57 = vld [vmem:[%s8847_s4 + $0x3e0] ss:$16 sps:$4 sm:$0xff]  }
  0x3a   :  { %1043 = vmatpush1.bf16.msra.mxu0 %v5730_v58  ;;  %v5796_v58 = vld [vmem:[%s8847_s4 + $0x1c4] ss:$16 sps:$4 sm:$0xff]  }
  0x3b   :  { %1044 = vmatprep.subr.bf16.mxu0 %v5738_v60  ;;  %v5794_v60 = vld [vmem:[%s8847_s4 + $0x1c0] ss:$16 sps:$4 sm:$0xff]  }
  0x3e   :  { %1045 = vmatpush1.bf16.msra.mxu0 %v5736_v61  ;;  %v5797_v61 = vld [vmem:[%s8847_s4 + $0x3c0] ss:$16 sps:$4 sm:$0xff]  }
  0x3f   :  { %3672 = vmatprep.subr.bf16.mxu0 %v5745_v0  ;;  %v5800_v0 = vld [vmem:[%s8847_s4 + $0x1a0] ss:$16 sps:$4 sm:$0xff]  }
  0xe1   :  { %v169_v13 = vpop.f32.mrf.mxu0 }
  0xe2   :  { %v170_v14 = vadd.f32 %v4994_v10, %v169_v13  ;;  %v5812_v10 = vld [vmem:[%s8847_s4 + $0x160] ss:$16 sps:$4 sm:$0xff]  }
  0xe3   :  { %v5677_v15 = vpop.f32.mrf.mxu0  ;;  %v5815_v13 = vld [vmem:[%s8847_s4 + $0x360] ss:$16 sps:$4 sm:$0xff]  }
  0xe4   :  { %v175_v20 = vmax.f32 %v170_v14, 0.0  ;;  %v5820_v14 = vld [vmem:[%s8847_s4 + $0x144] ss:$16 sps:$4 sm:$0xff]  }
  0xe5   :  { %v172_v21 = vpop.f32.mrf.mxu0  ;;  %v5823_v15 = vld [vmem:[%s8847_s4 + $0x344] ss:$16 sps:$4 sm:$0xff]  }
  0xe6   :  { %v796_v22 = vpack.c.bf16 %v175_v20, %v175_v20  ;;  %v5829_v20 = vld [vmem:[%s8847_s4 + $0x324] ss:$16 sps:$4 sm:$0xff]  }
  0xe7   :  { %v5678_v25 = vpop.f32.mrf.mxu0 }
  0xe8   :  { %1022 = vmatmul.mubr.bf16.vlgmr.msra.gmra.mxu1 %v796_v22  ;;  %1063 = vmatmul.mubr.bf16.vlgmr.msra.gmra.mxu0 %v796_v22  ;;  %v5824_v22 = vld [vmem:[%s8847_s4 + $0x120] ss:$16 sps:$4 sm:$0xff]   ;;  %v5835_v25 = vld [vmem:[%s8847_s4 + $0x304] ss:$16 sps:$4 sm:$0xff]  }
  0xe9   :  { %3632 = vmatpush1.bf16.msra.mxu1 %v5740_v16  ;;  %3673 = vmatpush1.bf16.msra.mxu0 %v5743_v17  ;;  %v177_v16 = vld [vmem:[%s8843_s0 + $0x8] sm:$0xff]  ;;  %v5818_v17 = vld [vmem:[%s8847_s4 + $0x140] ss:$16 sps:$4 sm:$0xff]  }
  0xea   :  { %3633 = vmatprep.subr.bf16.mxu1 %v5748_v23  ;;  %3674 = vmatprep.subr.bf16.mxu0 %v5751_v24  ;;  %v201_v21 = vcombine.high %v177_v16, %v177_v16  ;;  %v5827_v23 = vld [vmem:[%s8847_s4 + $0x320] ss:$16 sps:$4 sm:$0xff]   ;;  %v5832_v24 = vld [vmem:[%s8847_s4 + $0x104] ss:$16 sps:$4 sm:$0xff]  }
  0xeb   :  { %3663 = vmatprep.mubr.bf16.mxu1 %v6891_v26  ;;  %3704 = vmatprep.mubr.bf16.mxu0 %v6893_v27 }
  0xed   :  { %3634 = vmatpush1.bf16.msra.mxu1 %v5746_v28  ;;  %3675 = vmatpush1.bf16.msra.mxu0 %v5749_v29  ;;  %v7069_v28 = vrot.slane %v177_v16, %v6864_v8  ;;  %v7072_v29 = vrot.slane %v201_v21, %v6864_v8 }
  0xee   :  { %3635 = vmatprep.subr.bf16.mxu1 %v5754_v30  ;;  %3676 = vmatprep.subr.bf16.mxu0 %v5757_v31  ;;  %v5830_v30 = vld [vmem:[%s8847_s4 + $0x100] ss:$16 sps:$4 sm:$0xff]  }
  0xef   :  { %v5833_v31 = vld [vmem:[%s8847_s4 + $0x300] ss:$16 sps:$4 sm:$0xff]  }
  0xf1   :  { %3636 = vmatpush1.bf16.msra.mxu1 %v5752_v32  ;;  %3677 = vmatpush1.bf16.msra.mxu0 %v5755_v33  ;;  %v5839_v32 = vld [vmem:[%s8847_s4 + $0x4e4] ss:$16 sps:$4 sm:$0xff]  }
  0xf2   :  { %3637 = vmatprep.subr.bf16.mxu1 %v5760_v34  ;;  %3678 = vmatprep.subr.bf16.mxu0 %v5763_v35  ;;  %v5842_v33 = vld [vmem:[%s8847_s4 + $0x6e4] ss:$16 sps:$4 sm:$0xff]   ;;  %v5837_v34 = vld [vmem:[%s8847_s4 + $0x4e0] ss:$16 sps:$4 sm:$0xff]  }
  0xf3   :  { %v5840_v35 = vld [vmem:[%s8847_s4 + $0x6e0] ss:$16 sps:$4 sm:$0xff]  }
  0xf5   :  { %3638 = vmatpush1.bf16.msra.mxu1 %v5758_v36  ;;  %3679 = vmatpush1.bf16.msra.mxu0 %v5761_v37  ;;  %v216_v36 = vcombine.high %v7069_v28, %v7069_v28  ;;  %v217_v37 = vcombine.high %v7072_v29, %v7072_v29 }
  0xf6   :  { %3639 = vmatprep.subr.bf16.mxu1 %v5766_v38  ;;  %3680 = vmatprep.subr.bf16.mxu0 %v5769_v39  ;;  %v7098_v38 = vpack.c.bf16 %v6870_v11, %v6870_v11  ;;  %v7102_v39 = vpack.c.bf16 %v6873_v12, %v6873_v12  ;;  %v5843_v11 = vld [vmem:[%s8847_s4 + $0x4c0] ss:$16 sps:$4 sm:$0xff]  }
  0xf7   :  { %v5846_v12 = vld [vmem:[%s8847_s4 + $0x6c0] ss:$16 sps:$4 sm:$0xff]  }
  0xf9   :  { %3640 = vmatpush1.bf16.msra.mxu1 %v5764_v40  ;;  %3681 = vmatpush1.bf16.msra.mxu0 %v5767_v41  ;;  %v5845_v40 = vld [vmem:[%s8847_s4 + $0x4c4] ss:$16 sps:$4 sm:$0xff]  }
  0xfa   :  { %3641 = vmatprep.subr.bf16.mxu1 %v5772_v42  ;;  %3682 = vmatprep.subr.bf16.mxu0 %v5775_v43  ;;  %v5848_v41 = vld [vmem:[%s8847_s4 + $0x6c4] ss:$16 sps:$4 sm:$0xff]   ;;  %v7116_v42 = vpack.c.bf16 %v216_v36, %v216_v36  ;;  %v7118_v43 = vpack.c.bf16 %v217_v37, %v217_v37 }
  0xfd   :  { %3642 = vmatpush1.bf16.msra.mxu1 %v5770_v44  ;;  %3683 = vmatpush1.bf16.msra.mxu0 %v5773_v45  ;;  %v5851_v44 = vld [vmem:[%s8847_s4 + $0x4a4] ss:$16 sps:$4 sm:$0xff]  }
  0xfe   :  { %3643 = vmatprep.subr.bf16.mxu1 %v5778_v46  ;;  %3684 = vmatprep.subr.bf16.mxu0 %v5781_v47  ;;  %v5854_v45 = vld [vmem:[%s8847_s4 + $0x6a4] ss:$16 sps:$4 sm:$0xff]   ;;  %v5849_v46 = vld [vmem:[%s8847_s4 + $0x4a0] ss:$16 sps:$4 sm:$0xff]  }
  0xff   :  { %v5852_v47 = vld [vmem:[%s8847_s4 + $0x6a0] ss:$16 sps:$4 sm:$0xff]  }
 0x101   :  { %3644 = vmatpush1.bf16.msra.mxu1 %v5776_v48  ;;  %3685 = vmatpush1.bf16.msra.mxu0 %v5779_v49 }
 0x102   :  { %3645 = vmatprep.subr.bf16.mxu1 %v5784_v50  ;;  %3686 = vmatprep.subr.bf16.mxu0 %v5787_v51 }
 0x105   :  { %3646 = vmatpush1.bf16.msra.mxu1 %v5782_v52  ;;  %3687 = vmatpush1.bf16.msra.mxu0 %v5785_v53 }
 0x106   :  { %3647 = vmatprep.subr.bf16.mxu1 %v5790_v54  ;;  %3688 = vmatprep.subr.bf16.mxu0 %v5793_v55 }
 0x109   :  { %3648 = vmatpush2.bf16.msra.mxu1 %v5788_v56  ;;  %3689 = vmatpush2.bf16.msra.mxu0 %v5791_v57 }
 0x10a   :  { %3649 = vmatprep.subr.bf16.mxu1 %v5796_v58  ;;  %3690 = vmatprep.subr.bf16.mxu0 %v5799_v59 }
 0x10d   :  { %3650 = vmatpush2.bf16.msra.mxu1 %v5794_v60  ;;  %3691 = vmatpush2.bf16.msra.mxu0 %v5797_v61 }
 0x10e   :  { %3651 = vmatprep.subr.bf16.mxu1 %v5802_v62  ;;  %3692 = vmatprep.subr.bf16.mxu0 %v5805_v63 }
 0x111   :  { %3652 = vmatpush2.bf16.msra.mxu1 %v5800_v0  ;;  %3693 = vmatpush2.bf16.msra.mxu0 %v5803_v1 }
 0x112   :  { %3653 = vmatprep.subr.bf16.mxu1 %v5808_v2  ;;  %3694 = vmatprep.subr.bf16.mxu0 %v5811_v3 }
 0x115   :  { %3654 = vmatpush2.bf16.msra.mxu1 %v5806_v4  ;;  %3695 = vmatpush2.bf16.msra.mxu0 %v5809_v5 }
 0x116   :  { %3655 = vmatprep.subr.bf16.mxu1 %v5814_v6  ;;  %3696 = vmatprep.subr.bf16.mxu0 %v5817_v9 }
 0x119   :  { %3656 = vmatpush2.bf16.msra.mxu1 %v5812_v10  ;;  %3697 = vmatpush2.bf16.msra.mxu0 %v5815_v13 }
 0x11a   :  { %3657 = vmatprep.subr.bf16.mxu1 %v5820_v14  ;;  %3698 = vmatprep.subr.bf16.mxu0 %v5823_v15 }
 0x11d   :  { %3658 = vmatpush2.bf16.msra.mxu1 %v5818_v17  ;;  %3699 = vmatpush2.bf16.msra.mxu0 %v5821_v18 }
 0x11e   :  { %3659 = vmatprep.subr.bf16.mxu1 %v5826_v19  ;;  %3700 = vmatprep.subr.bf16.mxu0 %v5829_v20 }
 0x121   :  { %3660 = vmatpush2.bf16.msra.mxu1 %v5824_v22  ;;  %3701 = vmatpush2.bf16.msra.mxu0 %v5827_v23 }
 0x122   :  { %3661 = vmatprep.subr.bf16.mxu1 %v5832_v24  ;;  %3702 = vmatprep.subr.bf16.mxu0 %v5835_v25 }
 0x125   :  { %3662 = vmatpush2.bf16.msra.mxu1 %v5830_v30  ;;  %3703 = vmatpush2.bf16.msra.mxu0 %v5833_v31 }
 0x126   :  { %3713 = vmatprep.subr.bf16.mxu1 %v5839_v32  ;;  %3754 = vmatprep.subr.bf16.mxu0 %v5842_v33 }
 0x128   :  { %3664 = vmatmul.mubr.bf16.vlgmr.msra.gmra.mxu1 %v7098_v38  ;;  %3705 = vmatmul.mubr.bf16.vlgmr.msra.gmra.mxu0 %v7102_v39 }
 0x129   :  { %3714 = vmatpush1.bf16.msra.mxu1 %v5837_v34  ;;  %3755 = vmatpush1.bf16.msra.mxu0 %v5840_v35 }
 0x12a   :  { %3715 = vmatprep.subr.bf16.mxu1 %v5845_v40  ;;  %3756 = vmatprep.subr.bf16.mxu0 %v5848_v41 }
 0x12b   :  { %3745 = vmatprep.mubr.bf16.mxu1 %v7116_v42  ;;  %3786 = vmatprep.mubr.bf16.mxu0 %v7118_v43 }
 0x12d   :  { %3716 = vmatpush1.bf16.msra.mxu1 %v5843_v11  ;;  %3757 = vmatpush1.bf16.msra.mxu0 %v5846_v12 }
 0x12e   :  { %16 = vsyncpa [#allocation3], 0  ;;  %3717 = vmatprep.subr.bf16.mxu1 %v5851_v44  ;;  %3758 = vmatprep.subr.bf16.mxu0 %v5854_v45  ;;  %v5857_v48 = vld [vmem:[%s8847_s4 + $0x484] ss:$16 sps:$4 sm:$0xff]   ;;  %v5855_v50 = vld [vmem:[%s8847_s4 + $0x480] ss:$16 sps:$4 sm:$0xff]  }
 0x12f   :  { %v5860_v49 = vld [vmem:[%s8847_s4 + $0x684] ss:$16 sps:$4 sm:$0xff]   ;;  %v5858_v51 = vld [vmem:[%s8847_s4 + $0x680] ss:$16 sps:$4 sm:$0xff]   ;;  %s6650_s22 = smov [#allocation2]   ;;  %vm4978_vm2 = vcmask 25600  }
 0x130   :  { %v5863_v52 = vld [vmem:[%s8847_s4 + $0x464] ss:$16 sps:$4 sm:$0xff]   ;;  %v5861_v54 = vld [vmem:[%s8847_s4 + $0x460] ss:$16 sps:$4 sm:$0xff]   ;;  %s4986_s23 = sshll.u32 %s6650_s22, 4  ;;  %s4987_s23 = int_to_ptr.vmem [resolvable:$true] %s4986_s23 }
 0x131   :  { %3718 = vmatpush1.bf16.msra.mxu1 %v5849_v46  ;;  %3759 = vmatpush1.bf16.msra.mxu0 %v5852_v47  ;;  %v5866_v53 = vld [vmem:[%s8847_s4 + $0x664] ss:$16 sps:$4 sm:$0xff]   ;;  %v5864_v55 = vld [vmem:[%s8847_s4 + $0x660] ss:$16 sps:$4 sm:$0xff]   ;;  %p6629_p1 = scmp.lt.s32.totalorder %s4987_s23, %s4987_s23 }
 0x132   :  { %3719 = vmatprep.subr.bf16.mxu1 %v5857_v48  ;;  %3760 = vmatprep.subr.bf16.mxu0 %v5860_v49  ;;  %v5869_v56 = vld [vmem:[%s8847_s4 + $0x444] ss:$16 sps:$4 sm:$0xff]   ;;  %v5867_v58 = vld [vmem:[%s8847_s4 + $0x440] ss:$16 sps:$4 sm:$0xff]  }
 0x133   :  { %v5872_v57 = vld [vmem:[%s8847_s4 + $0x644] ss:$16 sps:$4 sm:$0xff]   ;;  %v5870_v59 = vld [vmem:[%s8847_s4 + $0x640] ss:$16 sps:$4 sm:$0xff]  }
 0x134   :  { %v5875_v60 = vld [vmem:[%s8847_s4 + $0x424] ss:$16 sps:$4 sm:$0xff]   ;;  %v5873_v62 = vld [vmem:[%s8847_s4 + $0x420] ss:$16 sps:$4 sm:$0xff]  }
 0x135   :  { %3720 = vmatpush1.bf16.msra.mxu1 %v5855_v50  ;;  %3761 = vmatpush1.bf16.msra.mxu0 %v5858_v51  ;;  %v5878_v61 = vld [vmem:[%s8847_s4 + $0x624] ss:$16 sps:$4 sm:$0xff]   ;;  %v5876_v63 = vld [vmem:[%s8847_s4 + $0x620] ss:$16 sps:$4 sm:$0xff]  }
 0x136   :  { %3721 = vmatprep.subr.bf16.mxu1 %v5863_v52  ;;  %3762 = vmatprep.subr.bf16.mxu0 %v5866_v53  ;;  %v5881_v0 = vld [vmem:[%s8847_s4 + $0x404] ss:$16 sps:$4 sm:$0xff]   ;;  %v5879_v2 = vld [vmem:[%s8847_s4 + $0x400] ss:$16 sps:$4 sm:$0xff]  }
 0x137   :  { %v5884_v1 = vld [vmem:[%s8847_s4 + $0x604] ss:$16 sps:$4 sm:$0xff]   ;;  %v5882_v3 = vld [vmem:[%s8847_s4 + $0x600] ss:$16 sps:$4 sm:$0xff]  }
 0x138   :  { %v5887_v4 = vld [vmem:[%s8847_s4 + $0x5e4] ss:$16 sps:$4 sm:$0xff]   ;;  %v5885_v6 = vld [vmem:[%s8847_s4 + $0x5e0] ss:$16 sps:$4 sm:$0xff]  }
 0x139   :  { %3722 = vmatpush1.bf16.msra.mxu1 %v5861_v54  ;;  %3763 = vmatpush1.bf16.msra.mxu0 %v5864_v55  ;;  %v5890_v5 = vld [vmem:[%s8847_s4 + $0x7e4] ss:$16 sps:$4 sm:$0xff]   ;;  %v5888_v9 = vld [vmem:[%s8847_s4 + $0x7e0] ss:$16 sps:$4 sm:$0xff]   ;;  %v7313_v54 = vpack.c.bf16 %v7069_v28, %v7069_v28  ;;  %v7317_v55 = vpack.c.bf16 %v7072_v29, %v7072_v29 }
 0x13a   :  { %3723 = vmatprep.subr.bf16.mxu1 %v5869_v56  ;;  %3764 = vmatprep.subr.bf16.mxu0 %v5872_v57  ;;  %v5893_v10 = vld [vmem:[%s8847_s4 + $0x5c4] ss:$16 sps:$4 sm:$0xff]   ;;  %v5891_v14 = vld [vmem:[%s8847_s4 + $0x5c0] ss:$16 sps:$4 sm:$0xff]  }
 0x13b   :  { %v5896_v13 = vld [vmem:[%s8847_s4 + $0x7c4] ss:$16 sps:$4 sm:$0xff]   ;;  %v5894_v15 = vld [vmem:[%s8847_s4 + $0x7c0] ss:$16 sps:$4 sm:$0xff]  }
 0x13c   :  { %v5899_v16 = vld [vmem:[%s8847_s4 + $0x5a4] ss:$16 sps:$4 sm:$0xff]   ;;  %v5897_v18 = vld [vmem:[%s8847_s4 + $0x5a0] ss:$16 sps:$4 sm:$0xff]  }
 0x13d   :  { %3724 = vmatpush1.bf16.msra.mxu1 %v5867_v58  ;;  %3765 = vmatpush1.bf16.msra.mxu0 %v5870_v59  ;;  %v5902_v17 = vld [vmem:[%s8847_s4 + $0x7a4] ss:$16 sps:$4 sm:$0xff]   ;;  %v5900_v19 = vld [vmem:[%s8847_s4 + $0x7a0] ss:$16 sps:$4 sm:$0xff]  }
 0x13e   :  { %3725 = vmatprep.subr.bf16.mxu1 %v5875_v60  ;;  %3766 = vmatprep.subr.bf16.mxu0 %v5878_v61  ;;  %v5905_v20 = vld [vmem:[%s8847_s4 + $0x584] ss:$16 sps:$4 sm:$0xff]   ;;  %v5903_v22 = vld [vmem:[%s8847_s4 + $0x580] ss:$16 sps:$4 sm:$0xff]  }
 0x13f   :  { %v5908_v21 = vld [vmem:[%s8847_s4 + $0x784] ss:$16 sps:$4 sm:$0xff]   ;;  %v5906_v23 = vld [vmem:[%s8847_s4 + $0x780] ss:$16 sps:$4 sm:$0xff]  }
 0x140   :  { %v5911_v24 = vld [vmem:[%s8847_s4 + $0x564] ss:$16 sps:$4 sm:$0xff]   ;;  %v5909_v30 = vld [vmem:[%s8847_s4 + $0x560] ss:$16 sps:$4 sm:$0xff]  }
 0x141   :  { %3726 = vmatpush1.bf16.msra.mxu1 %v5873_v62  ;;  %3767 = vmatpush1.bf16.msra.mxu0 %v5876_v63  ;;  %v5914_v25 = vld [vmem:[%s8847_s4 + $0x764] ss:$16 sps:$4 sm:$0xff]   ;;  %v5912_v31 = vld [vmem:[%s8847_s4 + $0x760] ss:$16 sps:$4 sm:$0xff]  }
 0x142   :  { %3727 = vmatprep.subr.bf16.mxu1 %v5881_v0  ;;  %3768 = vmatprep.subr.bf16.mxu0 %v5884_v1  ;;  %v5917_v32 = vld [vmem:[%s8847_s4 + $0x544] ss:$16 sps:$4 sm:$0xff]   ;;  %v5915_v35 = vld [vmem:[%s8847_s4 + $0x540] ss:$16 sps:$4 sm:$0xff]  }
 0x143   :  { %v5920_v33 = vld [vmem:[%s8847_s4 + $0x744] ss:$16 sps:$4 sm:$0xff]   ;;  %v5918_v36 = vld [vmem:[%s8847_s4 + $0x740] ss:$16 sps:$4 sm:$0xff]  }
 0x144   :  { %v178_v34 = vld [vmem:[%s8843_s0 + $0x10] sm:$0xff] }
 0x145   :  { %3728 = vmatpush1.bf16.msra.mxu1 %v5879_v2  ;;  %3769 = vmatpush1.bf16.msra.mxu0 %v5882_v3  ;;  %v5923_v37 = vld [vmem:[%s8847_s4 + $0x524] ss:$16 sps:$4 sm:$0xff]   ;;  %v218_v41 = vcombine.high %v178_v34, %v178_v34  ;;  %v5921_v11 = vld [vmem:[%s8847_s4 + $0x520] ss:$16 sps:$4 sm:$0xff]   ;;  %v7290_v46 = vrot.slane %v178_v34, %v6864_v8 }
 0x146   :  { %3729 = vmatprep.subr.bf16.mxu1 %v5887_v4  ;;  %3770 = vmatprep.subr.bf16.mxu0 %v5890_v5  ;;  %v5926_v40 = vld [vmem:[%s8847_s4 + $0x724] ss:$16 sps:$4 sm:$0xff]   ;;  %v5924_v12 = vld [vmem:[%s8847_s4 + $0x720] ss:$16 sps:$4 sm:$0xff]  }
 0x147   :  { %v5929_v44 = vld [vmem:[%s8847_s4 + $0x504] ss:$16 sps:$4 sm:$0xff]   ;;  %v7293_v47 = vrot.slane %v218_v41, %v6864_v8  ;;  %v5927_v48 = vld [vmem:[%s8847_s4 + $0x500] ss:$16 sps:$4 sm:$0xff]   ;;  %v233_v52 = vcombine.high %v7290_v46, %v7290_v46 }
 0x148   :  { %v5932_v45 = vld [vmem:[%s8847_s4 + $0x704] ss:$16 sps:$4 sm:$0xff]   ;;  %v5930_v49 = vld [vmem:[%s8847_s4 + $0x700] ss:$16 sps:$4 sm:$0xff]  }
 0x149   :  { %3730 = vmatpush2.bf16.msra.mxu1 %v5885_v6  ;;  %3771 = vmatpush2.bf16.msra.mxu0 %v5888_v9  ;;  %v5936_v50 = vld [vmem:[%s8847_s4 + $0x8e4] ss:$16 sps:$4 sm:$0xff]   ;;  %v234_v53 = vcombine.high %v7293_v47, %v7293_v47  ;;  %v5934_v56 = vld [vmem:[%s8847_s4 + $0x8e0] ss:$16 sps:$4 sm:$0xff]   ;;  %v7331_v58 = vpack.c.bf16 %v233_v52, %v233_v52 }
 0x14a   :  { %3731 = vmatprep.subr.bf16.mxu1 %v5893_v10  ;;  %3772 = vmatprep.subr.bf16.mxu0 %v5896_v13  ;;  %v5939_v51 = vld [vmem:[%s8847_s4 + $0xae4] ss:$16 sps:$4 sm:$0xff]   ;;  %v5937_v57 = vld [vmem:[%s8847_s4 + $0xae0] ss:$16 sps:$4 sm:$0xff]  }
 0x14b   :  { %v5942_v28 = vld [vmem:[%s8847_s4 + $0x8c4] ss:$16 sps:$4 sm:$0xff]   ;;  %v7333_v59 = vpack.c.bf16 %v234_v53, %v234_v53  ;;  %v5940_v60 = vld [vmem:[%s8847_s4 + $0x8c0] ss:$16 sps:$4 sm:$0xff]  }
 0x14c   :  { %v5945_v29 = vld [vmem:[%s8847_s4 + $0xac4] ss:$16 sps:$4 sm:$0xff]   ;;  %v5943_v61 = vld [vmem:[%s8847_s4 + $0xac0] ss:$16 sps:$4 sm:$0xff]  }
 0x14d   :  { %3732 = vmatpush2.bf16.msra.mxu1 %v5891_v14  ;;  %3773 = vmatpush2.bf16.msra.mxu0 %v5894_v15  ;;  %v5948_v62 = vld [vmem:[%s8847_s4 + $0x8a4] ss:$16 sps:$4 sm:$0xff]   ;;  %v5946_v0 = vld [vmem:[%s8847_s4 + $0x8a0] ss:$16 sps:$4 sm:$0xff]  }
 0x14e   :  { %3733 = vmatprep.subr.bf16.mxu1 %v5899_v16  ;;  %3774 = vmatprep.subr.bf16.mxu0 %v5902_v17  ;;  %v5951_v63 = vld [vmem:[%s8847_s4 + $0xaa4] ss:$16 sps:$4 sm:$0xff]   ;;  %v5949_v1 = vld [vmem:[%s8847_s4 + $0xaa0] ss:$16 sps:$4 sm:$0xff]  }
 0x14f   :  { %v5954_v2 = vld [vmem:[%s8847_s4 + $0x884] ss:$16 sps:$4 sm:$0xff]   ;;  %v5952_v4 = vld [vmem:[%s8847_s4 + $0x880] ss:$16 sps:$4 sm:$0xff]  }
 0x150   :  { %v5957_v3 = vld [vmem:[%s8847_s4 + $0xa84] ss:$16 sps:$4 sm:$0xff]   ;;  %v5955_v5 = vld [vmem:[%s8847_s4 + $0xa80] ss:$16 sps:$4 sm:$0xff]  }
 0x151   :  { %3734 = vmatpush2.bf16.msra.mxu1 %v5897_v18  ;;  %3775 = vmatpush2.bf16.msra.mxu0 %v5900_v19  ;;  %v5960_v6 = vld [vmem:[%s8847_s4 + $0x864] ss:$16 sps:$4 sm:$0xff]   ;;  %v5958_v10 = vld [vmem:[%s8847_s4 + $0x860] ss:$16 sps:$4 sm:$0xff]  }
 0x152   :  { %3735 = vmatprep.subr.bf16.mxu1 %v5905_v20  ;;  %3776 = vmatprep.subr.bf16.mxu0 %v5908_v21  ;;  %v5963_v9 = vld [vmem:[%s8847_s4 + $0xa64] ss:$16 sps:$4 sm:$0xff]   ;;  %v5961_v13 = vld [vmem:[%s8847_s4 + $0xa60] ss:$16 sps:$4 sm:$0xff]  }
 0x153   :  { %v5966_v14 = vld [vmem:[%s8847_s4 + $0x844] ss:$16 sps:$4 sm:$0xff]   ;;  %v5964_v16 = vld [vmem:[%s8847_s4 + $0x840] ss:$16 sps:$4 sm:$0xff]  }
 0x154   :  { %v5969_v15 = vld [vmem:[%s8847_s4 + $0xa44] ss:$16 sps:$4 sm:$0xff]   ;;  %v5967_v17 = vld [vmem:[%s8847_s4 + $0xa40] ss:$16 sps:$4 sm:$0xff]  }
 0x155   :  { %3736 = vmatpush2.bf16.msra.mxu1 %v5903_v22  ;;  %3777 = vmatpush2.bf16.msra.mxu0 %v5906_v23  ;;  %v5972_v18 = vld [vmem:[%s8847_s4 + $0x824] ss:$16 sps:$4 sm:$0xff]   ;;  %v5970_v20 = vld [vmem:[%s8847_s4 + $0x820] ss:$16 sps:$4 sm:$0xff]  }
 0x156   :  { %3737 = vmatprep.subr.bf16.mxu1 %v5911_v24  ;;  %3778 = vmatprep.subr.bf16.mxu0 %v5914_v25  ;;  %v5975_v19 = vld [vmem:[%s8847_s4 + $0xa24] ss:$16 sps:$4 sm:$0xff]   ;;  %v5973_v21 = vld [vmem:[%s8847_s4 + $0xa20] ss:$16 sps:$4 sm:$0xff]  }
 0x157   :  { %v5978_v22 = vld [vmem:[%s8847_s4 + $0x804] ss:$16 sps:$4 sm:$0xff]   ;;  %v5976_v24 = vld [vmem:[%s8847_s4 + $0x800] ss:$16 sps:$4 sm:$0xff]  }
 0x158   :  { %v5981_v23 = vld [vmem:[%s8847_s4 + $0xa04] ss:$16 sps:$4 sm:$0xff]   ;;  %v5979_v25 = vld [vmem:[%s8847_s4 + $0xa00] ss:$16 sps:$4 sm:$0xff]  }
 0x159   :  { %3738 = vmatpush2.bf16.msra.mxu1 %v5909_v30  ;;  %3779 = vmatpush2.bf16.msra.mxu0 %v5912_v31  ;;  %v5984_v30 = vld [vmem:[%s8847_s4 + $0x9e4] ss:$16 sps:$4 sm:$0xff]   ;;  %v6006_v52 = vld [vmem:[%s8847_s4 + $0x960] ss:$16 sps:$4 sm:$0xff]  }
 0x15a   :  { %3739 = vmatprep.subr.bf16.mxu1 %v5917_v32  ;;  %3780 = vmatprep.subr.bf16.mxu0 %v5920_v33  ;;  %v5987_v31 = vld [vmem:[%s8847_s4 + $0xbe4] ss:$16 sps:$4 sm:$0xff]   ;;  %v5982_v32 = vld [vmem:[%s8847_s4 + $0x9e0] ss:$16 sps:$4 sm:$0xff]  }
 0x15b   :  { %v5985_v33 = vld [vmem:[%s8847_s4 + $0xbe0] ss:$16 sps:$4 sm:$0xff]   ;;  %v5990_v34 = vld [vmem:[%s8847_s4 + $0x9c4] ss:$16 sps:$4 sm:$0xff]  }
 0x15c   :  { %v5999_v41 = vld [vmem:[%s8847_s4 + $0xba4] ss:$16 sps:$4 sm:$0xff]   ;;  %v6009_v53 = vld [vmem:[%s8847_s4 + $0xb60] ss:$16 sps:$4 sm:$0xff]  }
 0x15d   :  { %3740 = vmatpush2.bf16.msra.mxu1 %v5915_v35  ;;  %3781 = vmatpush2.bf16.msra.mxu0 %v5918_v36  ;;  %v5993_v35 = vld [vmem:[%s8847_s4 + $0xbc4] ss:$16 sps:$4 sm:$0xff]   ;;  %v5988_v36 = vld [vmem:[%s8847_s4 + $0x9c0] ss:$16 sps:$4 sm:$0xff]  }
 0x15e   :  { %3741 = vmatprep.subr.bf16.mxu1 %v5923_v37  ;;  %3782 = vmatprep.subr.bf16.mxu0 %v5926_v40  ;;  %v5991_v37 = vld [vmem:[%s8847_s4 + $0xbc0] ss:$16 sps:$4 sm:$0xff]   ;;  %v5996_v40 = vld [vmem:[%s8847_s4 + $0x9a4] ss:$16 sps:$4 sm:$0xff]  }
 0x161   :  { %3742 = vmatpush2.bf16.msra.mxu1 %v5921_v11  ;;  %3783 = vmatpush2.bf16.msra.mxu0 %v5924_v12  ;;  %v5994_v11 = vld [vmem:[%s8847_s4 + $0x9a0] ss:$16 sps:$4 sm:$0xff]  }
 0x162   :  { %3743 = vmatprep.subr.bf16.mxu1 %v5929_v44  ;;  %3784 = vmatprep.subr.bf16.mxu0 %v5932_v45  ;;  %v5997_v12 = vld [vmem:[%s8847_s4 + $0xba0] ss:$16 sps:$4 sm:$0xff]   ;;  %v6002_v44 = vld [vmem:[%s8847_s4 + $0x984] ss:$16 sps:$4 sm:$0xff]  }
 0x163   :  { %v6005_v45 = vld [vmem:[%s8847_s4 + $0xb84] ss:$16 sps:$4 sm:$0xff]  }
 0x165   :  { %3744 = vmatpush2.bf16.msra.mxu1 %v5927_v48  ;;  %3785 = vmatpush2.bf16.msra.mxu0 %v5930_v49  ;;  %v6000_v48 = vld [vmem:[%s8847_s4 + $0x980] ss:$16 sps:$4 sm:$0xff]  }
 0x166   :  { %3795 = vmatprep.subr.bf16.mxu1 %v5936_v50  ;;  %3836 = vmatprep.subr.bf16.mxu0 %v5939_v51  ;;  %v6003_v49 = vld [vmem:[%s8847_s4 + $0xb80] ss:$16 sps:$4 sm:$0xff]   ;;  %v6008_v50 = vld [vmem:[%s8847_s4 + $0x964] ss:$16 sps:$4 sm:$0xff]  }
 0x167   :  { %v6011_v51 = vld [vmem:[%s8847_s4 + $0xb64] ss:$16 sps:$4 sm:$0xff]  }
 0x168   :  { %3746 = vmatmul.mubr.bf16.vlgmr.msra.gmra.mxu1 %v7313_v54  ;;  %3787 = vmatmul.mubr.bf16.vlgmr.msra.gmra.mxu0 %v7317_v55 }
 0x169   :  { %3796 = vmatpush1.bf16.msra.mxu1 %v5934_v56  ;;  %3837 = vmatpush1.bf16.msra.mxu0 %v5937_v57  ;;  %v6014_v56 = vld [vmem:[%s8847_s4 + $0x944] ss:$16 sps:$4 sm:$0xff]  }
 0x16a   :  { %3797 = vmatprep.subr.bf16.mxu1 %v5942_v28  ;;  %3838 = vmatprep.subr.bf16.mxu0 %v5945_v29  ;;  %v6017_v57 = vld [vmem:[%s8847_s4 + $0xb44] ss:$16 sps:$4 sm:$0xff]   ;;  %v179_v28 = vld [vmem:[%s8843_s0 + $0x18] sm:$0xff]  ;;  %v6012_v29 = vld [vmem:[%s8847_s4 + $0x940] ss:$16 sps:$4 sm:$0xff]  }
 0x16b   :  { %3827 = vmatprep.mubr.bf16.mxu1 %v7331_v58  ;;  %3868 = vmatprep.mubr.bf16.mxu0 %v7333_v59 }
 0x16d   :  { %3798 = vmatpush1.bf16.msra.mxu1 %v5940_v60  ;;  %3839 = vmatpush1.bf16.msra.mxu0 %v5943_v61  ;;  %v6015_v60 = vld [vmem:[%s8847_s4 + $0xb40] ss:$16 sps:$4 sm:$0xff]   ;;  %v6020_v61 = vld [vmem:[%s8847_s4 + $0x924] ss:$16 sps:$4 sm:$0xff]  }
 0x16e   :  { %3799 = vmatprep.subr.bf16.mxu1 %v5948_v62  ;;  %3840 = vmatprep.subr.bf16.mxu0 %v5951_v63  ;;  %v6023_v62 = vld [vmem:[%s8847_s4 + $0xb24] ss:$16 sps:$4 sm:$0xff]   ;;  %v235_v63 = vcombine.high %v179_v28, %v179_v28 }
 0x171   :  { %3800 = vmatpush1.bf16.msra.mxu1 %v5946_v0  ;;  %3841 = vmatpush1.bf16.msra.mxu0 %v5949_v1  ;;  %v6018_v0 = vld [vmem:[%s8847_s4 + $0x920] ss:$16 sps:$4 sm:$0xff]  }
 0x172   :  { %3801 = vmatprep.subr.bf16.mxu1 %v5954_v2  ;;  %3842 = vmatprep.subr.bf16.mxu0 %v5957_v3  ;;  %v6021_v1 = vld [vmem:[%s8847_s4 + $0xb20] ss:$16 sps:$4 sm:$0xff]   ;;  %v6026_v2 = vld [vmem:[%s8847_s4 + $0x904] ss:$16 sps:$4 sm:$0xff]  }
 0x173   :  { %v6029_v3 = vld [vmem:[%s8847_s4 + $0xb04] ss:$16 sps:$4 sm:$0xff]  }
 0x175   :  { %3802 = vmatpush1.bf16.msra.mxu1 %v5952_v4  ;;  %3843 = vmatpush1.bf16.msra.mxu0 %v5955_v5  ;;  %v7511_v4 = vrot.slane %v179_v28, %v6864_v8  ;;  %v7514_v5 = vrot.slane %v235_v63, %v6864_v8  ;;  %v6036_v8 = vld [vmem:[%s8847_s4 + $0xee4] ss:$16 sps:$4 sm:$0xff]   ;;  %v6073_v63 = vld [vmem:[%s8847_s4 + $0xc00] ss:$16 sps:$4 sm:$0xff]  }
 0x176   :  { %3803 = vmatprep.subr.bf16.mxu1 %v5960_v6  ;;  %3844 = vmatprep.subr.bf16.mxu0 %v5963_v9  ;;  %v6024_v6 = vld [vmem:[%s8847_s4 + $0x900] ss:$16 sps:$4 sm:$0xff]   ;;  %v6072_v28 = vld [vmem:[%s8847_s4 + $0xe24] ss:$16 sps:$4 sm:$0xff]  }
 0x177   :  { %v6027_v9 = vld [vmem:[%s8847_s4 + $0xb00] ss:$16 sps:$4 sm:$0xff]  }
 0x179   :  { %3804 = vmatpush1.bf16.msra.mxu1 %v5958_v10  ;;  %3845 = vmatpush1.bf16.msra.mxu0 %v5961_v13  ;;  %v6033_v10 = vld [vmem:[%s8847_s4 + $0xce4] ss:$16 sps:$4 sm:$0xff]   ;;  %v250_v13 = vcombine.high %v7511_v4, %v7511_v4 }
 0x17a   :  { %3805 = vmatprep.subr.bf16.mxu1 %v5966_v14  ;;  %3846 = vmatprep.subr.bf16.mxu0 %v5969_v15  ;;  %v251_v14 = vcombine.high %v7514_v5, %v7514_v5  ;;  %v7534_v15 = vpack.c.bf16 %v7290_v46, %v7290_v46  ;;  %v6039_v46 = vld [vmem:[%s8847_s4 + $0xcc4] ss:$16 sps:$4 sm:$0xff]  }
 0x17d   :  { %3806 = vmatpush1.bf16.msra.mxu1 %v5964_v16  ;;  %3847 = vmatpush1.bf16.msra.mxu0 %v5967_v17  ;;  %v7538_v16 = vpack.c.bf16 %v7293_v47, %v7293_v47  ;;  %v6031_v17 = vld [vmem:[%s8847_s4 + $0xce0] ss:$16 sps:$4 sm:$0xff]   ;;  %v6042_v47 = vld [vmem:[%s8847_s4 + $0xec4] ss:$16 sps:$4 sm:$0xff]  }
 0x17e   :  { %3807 = vmatprep.subr.bf16.mxu1 %v5972_v18  ;;  %3848 = vmatprep.subr.bf16.mxu0 %v5975_v19  ;;  %v6034_v18 = vld [vmem:[%s8847_s4 + $0xee0] ss:$16 sps:$4 sm:$0xff]   ;;  %v7552_v19 = vpack.c.bf16 %v250_v13, %v250_v13 }
 0x17f   :  { %v6088_v13 = vld [vmem:[%s8847_s4 + $0xfc0] ss:$16 sps:$4 sm:$0xff]  }
 0x181   :  { %3808 = vmatpush1.bf16.msra.mxu1 %v5970_v20  ;;  %3849 = vmatpush1.bf16.msra.mxu0 %v5973_v21  ;;  %v7554_v20 = vpack.c.bf16 %v251_v14, %v251_v14  ;;  %v6093_v14 = vld [vmem:[%s8847_s4 + $0xda4] ss:$16 sps:$4 sm:$0xff]  }
 0x182   :  { %3809 = vmatprep.subr.bf16.mxu1 %v5978_v22  ;;  %3850 = vmatprep.subr.bf16.mxu0 %v5981_v23  ;;  %v6037_v23 = vld [vmem:[%s8847_s4 + $0xcc0] ss:$16 sps:$4 sm:$0xff]  }
 0x185   :  { %3810 = vmatpush1.bf16.msra.mxu1 %v5976_v24  ;;  %3851 = vmatpush1.bf16.msra.mxu0 %v5979_v25  ;;  %v6040_v24 = vld [vmem:[%s8847_s4 + $0xec0] ss:$16 sps:$4 sm:$0xff]  }
 0x186   :  { %3811 = vmatprep.subr.bf16.mxu1 %v5984_v30  ;;  %3852 = vmatprep.subr.bf16.mxu0 %v5987_v31  ;;  %v6045_v31 = vld [vmem:[%s8847_s4 + $0xca4] ss:$16 sps:$4 sm:$0xff]  }
 0x189   :  { %3812 = vmatpush2.bf16.msra.mxu1 %v5982_v32  ;;  %3853 = vmatpush2.bf16.msra.mxu0 %v5985_v33  ;;  %v6048_v32 = vld [vmem:[%s8847_s4 + $0xea4] ss:$16 sps:$4 sm:$0xff]  }
 0x18a   :  { %3813 = vmatprep.subr.bf16.mxu1 %v5990_v34  ;;  %3854 = vmatprep.subr.bf16.mxu0 %v5993_v35  ;;  %v6043_v35 = vld [vmem:[%s8847_s4 + $0xca0] ss:$16 sps:$4 sm:$0xff]  }
 0x18d   :  { %3814 = vmatpush2.bf16.msra.mxu1 %v5988_v36  ;;  %3855 = vmatpush2.bf16.msra.mxu0 %v5991_v37  ;;  %v6046_v36 = vld [vmem:[%s8847_s4 + $0xea0] ss:$16 sps:$4 sm:$0xff]  }
 0x18e   :  { %3815 = vmatprep.subr.bf16.mxu1 %v5996_v40  ;;  %3856 = vmatprep.subr.bf16.mxu0 %v5999_v41  ;;  %v6051_v41 = vld [vmem:[%s8847_s4 + $0xc84] ss:$16 sps:$4 sm:$0xff]  }
 0x191   :  { %3816 = vmatpush2.bf16.msra.mxu1 %v5994_v11  ;;  %3857 = vmatpush2.bf16.msra.mxu0 %v5997_v12  ;;  %v6054_v11 = vld [vmem:[%s8847_s4 + $0xe84] ss:$16 sps:$4 sm:$0xff]   ;;  %v6049_v12 = vld [vmem:[%s8847_s4 + $0xc80] ss:$16 sps:$4 sm:$0xff]  }
 0x192   :  { %3817 = vmatprep.subr.bf16.mxu1 %v6002_v44  ;;  %3858 = vmatprep.subr.bf16.mxu0 %v6005_v45  ;;  %v6052_v44 = vld [vmem:[%s8847_s4 + $0xe80] ss:$16 sps:$4 sm:$0xff]   ;;  %v6057_v45 = vld [vmem:[%s8847_s4 + $0xc64] ss:$16 sps:$4 sm:$0xff]  }
 0x195   :  { %3818 = vmatpush2.bf16.msra.mxu1 %v6000_v48  ;;  %3859 = vmatpush2.bf16.msra.mxu0 %v6003_v49  ;;  %v6060_v48 = vld [vmem:[%s8847_s4 + $0xe64] ss:$16 sps:$4 sm:$0xff]   ;;  %v6055_v49 = vld [vmem:[%s8847_s4 + $0xc60] ss:$16 sps:$4 sm:$0xff]  }
 0x196   :  { %3819 = vmatprep.subr.bf16.mxu1 %v6008_v50  ;;  %3860 = vmatprep.subr.bf16.mxu0 %v6011_v51  ;;  %v6058_v50 = vld [vmem:[%s8847_s4 + $0xe60] ss:$16 sps:$4 sm:$0xff]   ;;  %v6063_v51 = vld [vmem:[%s8847_s4 + $0xc44] ss:$16 sps:$4 sm:$0xff]  }
 0x199   :  { %3820 = vmatpush2.bf16.msra.mxu1 %v6006_v52  ;;  %3861 = vmatpush2.bf16.msra.mxu0 %v6009_v53  ;;  %v6066_v52 = vld [vmem:[%s8847_s4 + $0xe44] ss:$16 sps:$4 sm:$0xff]   ;;  %v6061_v53 = vld [vmem:[%s8847_s4 + $0xc40] ss:$16 sps:$4 sm:$0xff]  }
 0x19a   :  { %3821 = vmatprep.subr.bf16.mxu1 %v6014_v56  ;;  %3862 = vmatprep.subr.bf16.mxu0 %v6017_v57  ;;  %v6064_v56 = vld [vmem:[%s8847_s4 + $0xe40] ss:$16 sps:$4 sm:$0xff]   ;;  %v6069_v57 = vld [vmem:[%s8847_s4 + $0xc24] ss:$16 sps:$4 sm:$0xff]  }
 0x19d   :  { %3822 = vmatpush2.bf16.msra.mxu1 %v6012_v29  ;;  %3863 = vmatpush2.bf16.msra.mxu0 %v6015_v60  ;;  %v6067_v29 = vld [vmem:[%s8847_s4 + $0xc20] ss:$16 sps:$4 sm:$0xff]  }
 0x19e   :  { %3823 = vmatprep.subr.bf16.mxu1 %v6020_v61  ;;  %3864 = vmatprep.subr.bf16.mxu0 %v6023_v62  ;;  %v6070_v60 = vld [vmem:[%s8847_s4 + $0xe20] ss:$16 sps:$4 sm:$0xff]   ;;  %v6075_v61 = vld [vmem:[%s8847_s4 + $0xc04] ss:$16 sps:$4 sm:$0xff]  }
 0x19f   :  { %v6078_v62 = vld [vmem:[%s8847_s4 + $0xe04] ss:$16 sps:$4 sm:$0xff]  }
 0x1a1   :  { %3824 = vmatpush2.bf16.msra.mxu1 %v6018_v0  ;;  %3865 = vmatpush2.bf16.msra.mxu0 %v6021_v1  ;;  %v6076_v0 = vld [vmem:[%s8847_s4 + $0xe00] ss:$16 sps:$4 sm:$0xff]   ;;  %v6081_v1 = vld [vmem:[%s8847_s4 + $0xde4] ss:$16 sps:$4 sm:$0xff]  }
 0x1a2   :  { %3825 = vmatprep.subr.bf16.mxu1 %v6026_v2  ;;  %3866 = vmatprep.subr.bf16.mxu0 %v6029_v3  ;;  %v6084_v2 = vld [vmem:[%s8847_s4 + $0xfe4] ss:$16 sps:$4 sm:$0xff]   ;;  %v6079_v3 = vld [vmem:[%s8847_s4 + $0xde0] ss:$16 sps:$4 sm:$0xff]  }
 0x1a5   :  { %3826 = vmatpush2.bf16.msra.mxu1 %v6024_v6  ;;  %3867 = vmatpush2.bf16.msra.mxu0 %v6027_v9  ;;  %v6082_v6 = vld [vmem:[%s8847_s4 + $0xfe0] ss:$16 sps:$4 sm:$0xff]   ;;  %v6087_v9 = vld [vmem:[%s8847_s4 + $0xdc4] ss:$16 sps:$4 sm:$0xff]  }
 0x1a6   :  { %3877 = vmatprep.subr.bf16.mxu1 %v6033_v10  ;;  %3918 = vmatprep.subr.bf16.mxu0 %v6036_v8  ;;  %v6090_v10 = vld [vmem:[%s8847_s4 + $0xfc4] ss:$16 sps:$4 sm:$0xff]   ;;  %v6085_v8 = vld [vmem:[%s8847_s4 + $0xdc0] ss:$16 sps:$4 sm:$0xff]  }
 0x1a8   :  { %3828 = vmatmul.mubr.bf16.vlgmr.msra.gmra.mxu1 %v7534_v15  ;;  %3869 = vmatmul.mubr.bf16.vlgmr.msra.gmra.mxu0 %v7538_v16  ;;  %v7558_v21 = vpop.f32.mrf.mxu1  ;;  %v7560_v22 = vpop.f32.mrf.mxu0 }
 0x1a9   :  { %3878 = vmatpush1.bf16.msra.mxu1 %v6031_v17  ;;  %3919 = vmatpush1.bf16.msra.mxu0 %v6034_v18  ;;  %v6096_v17 = vld [vmem:[%s8847_s4 + $0xfa4] ss:$16 sps:$4 sm:$0xff]   ;;  %v6091_v18 = vld [vmem:[%s8847_s4 + $0xda0] ss:$16 sps:$4 sm:$0xff]  }
 0x1aa   :  { %v7568_v25 = vpop.f32.mrf.mxu1  ;;  %v7570_v30 = vpop.f32.mrf.mxu0  ;;  %3879 = vmatprep.subr.bf16.mxu1 %v6039_v46  ;;  %3920 = vmatprep.subr.bf16.mxu0 %v6042_v47  ;;  %v6094_v46 = vld [vmem:[%s8847_s4 + $0xfa0] ss:$16 sps:$4 sm:$0xff]   ;;  %v6099_v47 = vld [vmem:[%s8847_s4 + $0xd84] ss:$16 sps:$4 sm:$0xff]  }
 0x1ab   :  { %3909 = vmatprep.mubr.bf16.mxu1 %v7552_v19  ;;  %3950 = vmatprep.mubr.bf16.mxu0 %v7554_v20 }
 0x1ac   :  { %v1027_v33 = vpop.f32.mrf.mxu1  ;;  %v1068_v34 = vpop.f32.mrf.mxu0 }
 0x1ad   :  { %3880 = vmatpush1.bf16.msra.mxu1 %v6037_v23  ;;  %3921 = vmatpush1.bf16.msra.mxu0 %v6040_v24  ;;  %v6102_v23 = vld [vmem:[%s8847_s4 + $0xf84] ss:$16 sps:$4 sm:$0xff]   ;;  %v6097_v24 = vld [vmem:[%s8847_s4 + $0xd80] ss:$16 sps:$4 sm:$0xff]  }
 0x1ae   :  { %v1028_v37 = vpop.f32.mrf.mxu1  ;;  %v1069_v40 = vpop.f32.mrf.mxu0  ;;  %3881 = vmatprep.subr.bf16.mxu1 %v6045_v31  ;;  %3922 = vmatprep.subr.bf16.mxu0 %v6048_v32  ;;  %v6100_v31 = vld [vmem:[%s8847_s4 + $0xf80] ss:$16 sps:$4 sm:$0xff]   ;;  %v6105_v32 = vld [vmem:[%s8847_s4 + $0xd64] ss:$16 sps:$4 sm:$0xff]  }
 0x1af   :  { %v6108_v33 = vld [vmem:[%s8847_s4 + $0xf64] ss:$16 sps:$4 sm:$0xff]   ;;  %v6103_v34 = vld [vmem:[%s8847_s4 + $0xd60] ss:$16 sps:$4 sm:$0xff]  }
 0x1b0   :  { %v6114_v37 = vld [vmem:[%s8847_s4 + $0xf44] ss:$16 sps:$4 sm:$0xff]   ;;  %v6109_v40 = vld [vmem:[%s8847_s4 + $0xd40] ss:$16 sps:$4 sm:$0xff]  }
 0x1b1   :  { %3882 = vmatpush1.bf16.msra.mxu1 %v6043_v35  ;;  %3923 = vmatpush1.bf16.msra.mxu0 %v6046_v36  ;;  %v6106_v35 = vld [vmem:[%s8847_s4 + $0xf60] ss:$16 sps:$4 sm:$0xff]   ;;  %v6111_v36 = vld [vmem:[%s8847_s4 + $0xd44] ss:$16 sps:$4 sm:$0xff]  }
 0x1b2   :  { %3883 = vmatprep.subr.bf16.mxu1 %v6051_v41  ;;  %3924 = vmatprep.subr.bf16.mxu0 %v6054_v11  ;;  %v6112_v41 = vld [vmem:[%s8847_s4 + $0xf40] ss:$16 sps:$4 sm:$0xff]   ;;  %v6117_v11 = vld [vmem:[%s8847_s4 + $0xd24] ss:$16 sps:$4 sm:$0xff]  }
 0x1b5   :  { %3884 = vmatpush1.bf16.msra.mxu1 %v6049_v12  ;;  %3925 = vmatpush1.bf16.msra.mxu0 %v6052_v44  ;;  %v6120_v12 = vld [vmem:[%s8847_s4 + $0xf24] ss:$16 sps:$4 sm:$0xff]   ;;  %v6115_v44 = vld [vmem:[%s8847_s4 + $0xd20] ss:$16 sps:$4 sm:$0xff]  }
 0x1b6   :  { %3885 = vmatprep.subr.bf16.mxu1 %v6057_v45  ;;  %3926 = vmatprep.subr.bf16.mxu0 %v6060_v48  ;;  %v6118_v45 = vld [vmem:[%s8847_s4 + $0xf20] ss:$16 sps:$4 sm:$0xff]   ;;  %v6123_v48 = vld [vmem:[%s8847_s4 + $0xd04] ss:$16 sps:$4 sm:$0xff]  }
 0x1b9   :  { %3886 = vmatpush1.bf16.msra.mxu1 %v6055_v49  ;;  %3927 = vmatpush1.bf16.msra.mxu0 %v6058_v50  ;;  %v6126_v49 = vld [vmem:[%s8847_s4 + $0xf04] ss:$16 sps:$4 sm:$0xff]   ;;  %v6121_v50 = vld [vmem:[%s8847_s4 + $0xd00] ss:$16 sps:$4 sm:$0xff]  }
 0x1ba   :  { %3887 = vmatprep.subr.bf16.mxu1 %v6063_v51  ;;  %3928 = vmatprep.subr.bf16.mxu0 %v6066_v52  ;;  %v6124_v51 = vld [vmem:[%s8847_s4 + $0xf00] ss:$16 sps:$4 sm:$0xff]   ;;  %v6130_v52 = vld [vmem:[%s8847_s4 + $0xec] ss:$16 sps:$4 sm:$0xff]  }
 0x1bd   :  { %3888 = vmatpush1.bf16.msra.mxu1 %v6061_v53  ;;  %3929 = vmatpush1.bf16.msra.mxu0 %v6064_v56  ;;  %v6133_v53 = vld [vmem:[%s8847_s4 + $0x2ec] ss:$16 sps:$4 sm:$0xff]   ;;  %v7750_v56 = vpack.c.bf16 %v7511_v4, %v7511_v4 }
 0x1be   :  { %3889 = vmatprep.subr.bf16.mxu1 %v6069_v57  ;;  %3930 = vmatprep.subr.bf16.mxu0 %v6072_v28  ;;  %v7754_v57 = vpack.c.bf16 %v7514_v5, %v7514_v5  ;;  %v6128_v28 = vld [vmem:[%s8847_s4 + $0xe8] ss:$16 sps:$4 sm:$0xff]   ;;  %v6136_v4 = vld [vmem:[%s8847_s4 + $0xcc] ss:$16 sps:$4 sm:$0xff]  }
 0x1bf   :  { %v6139_v5 = vld [vmem:[%s8847_s4 + $0x2cc] ss:$16 sps:$4 sm:$0xff]  }
 0x1c1   :  { %3890 = vmatpush1.bf16.msra.mxu1 %v6067_v29  ;;  %3931 = vmatpush1.bf16.msra.mxu0 %v6070_v60  ;;  %v6131_v29 = vld [vmem:[%s8847_s4 + $0x2e8] ss:$16 sps:$4 sm:$0xff]  }
 0x1c2   :  { %3891 = vmatprep.subr.bf16.mxu1 %v6075_v61  ;;  %3932 = vmatprep.subr.bf16.mxu0 %v6078_v62 }
 0x1c5   :  { %3892 = vmatpush1.bf16.msra.mxu1 %v6073_v63  ;;  %3933 = vmatpush1.bf16.msra.mxu0 %v6076_v0  ;;  %v6134_v63 = vld [vmem:[%s8847_s4 + $0xc8] ss:$16 sps:$4 sm:$0xff]  }
 0x1c6   :  { %3893 = vmatprep.subr.bf16.mxu1 %v6081_v1  ;;  %3934 = vmatprep.subr.bf16.mxu0 %v6084_v2  ;;  %v6137_v0 = vld [vmem:[%s8847_s4 + $0x2c8] ss:$16 sps:$4 sm:$0xff]  }
 0x1c9   :  { %3894 = vmatpush2.bf16.msra.mxu1 %v6079_v3  ;;  %3935 = vmatpush2.bf16.msra.mxu0 %v6082_v6  ;;  %v6142_v3 = vld [vmem:[%s8847_s4 + $0xac] ss:$16 sps:$4 sm:$0xff]  }
 0x1ca   :  { %3895 = vmatprep.subr.bf16.mxu1 %v6087_v9  ;;  %3936 = vmatprep.subr.bf16.mxu0 %v6090_v10 }
 0x1cd   :  { %3896 = vmatpush2.bf16.msra.mxu1 %v6085_v8  ;;  %3937 = vmatpush2.bf16.msra.mxu0 %v6088_v13 }
 0x1ce   :  { %3897 = vmatprep.subr.bf16.mxu1 %v6093_v14  ;;  %3938 = vmatprep.subr.bf16.mxu0 %v6096_v17  ;;  %v6140_v14 = vld [vmem:[%s8847_s4 + $0xa8] ss:$16 sps:$4 sm:$0xff]  }
 0x1cf   :  { %v6143_v17 = vld [vmem:[%s8847_s4 + $0x2a8] ss:$16 sps:$4 sm:$0xff]  }
 0x1d1   :  { %3898 = vmatpush2.bf16.msra.mxu1 %v6091_v18  ;;  %3939 = vmatpush2.bf16.msra.mxu0 %v6094_v46  ;;  %v6146_v46 = vld [vmem:[%s8847_s4 + $0x88] ss:$16 sps:$4 sm:$0xff]  }
 0x1d2   :  { %3899 = vmatprep.subr.bf16.mxu1 %v6099_v47  ;;  %3940 = vmatprep.subr.bf16.mxu0 %v6102_v23  ;;  %v6149_v47 = vld [vmem:[%s8847_s4 + $0x288] ss:$16 sps:$4 sm:$0xff]   ;;  %v6154_v23 = vld [vmem:[%s8847_s4 + $0x6c] ss:$16 sps:$4 sm:$0xff]  }
 0x1d5   :  { %3900 = vmatpush2.bf16.msra.mxu1 %v6097_v24  ;;  %3941 = vmatpush2.bf16.msra.mxu0 %v6100_v31  ;;  %v6157_v24 = vld [vmem:[%s8847_s4 + $0x26c] ss:$16 sps:$4 sm:$0xff]   ;;  %v6152_v31 = vld [vmem:[%s8847_s4 + $0x68] ss:$16 sps:$4 sm:$0xff]  }
 0x1d6   :  { %3901 = vmatprep.subr.bf16.mxu1 %v6105_v32  ;;  %3942 = vmatprep.subr.bf16.mxu0 %v6108_v33  ;;  %v6155_v32 = vld [vmem:[%s8847_s4 + $0x268] ss:$16 sps:$4 sm:$0xff]   ;;  %v6160_v33 = vld [vmem:[%s8847_s4 + $0x4c] ss:$16 sps:$4 sm:$0xff]  }
 0x1d9   :  { %3902 = vmatpush2.bf16.msra.mxu1 %v6103_v34  ;;  %3943 = vmatpush2.bf16.msra.mxu0 %v6106_v35  ;;  %v6163_v34 = vld [vmem:[%s8847_s4 + $0x24c] ss:$16 sps:$4 sm:$0xff]   ;;  %v6158_v35 = vld [vmem:[%s8847_s4 + $0x48] ss:$16 sps:$4 sm:$0xff]  }
 0x1da   :  { %3903 = vmatprep.subr.bf16.mxu1 %v6111_v36  ;;  %3944 = vmatprep.subr.bf16.mxu0 %v6114_v37  ;;  %v6161_v36 = vld [vmem:[%s8847_s4 + $0x248] ss:$16 sps:$4 sm:$0xff]   ;;  %v6166_v37 = vld [vmem:[%s8847_s4 + $0x2c] ss:$16 sps:$4 sm:$0xff]  }
 0x1dd   :  { %3904 = vmatpush2.bf16.msra.mxu1 %v6109_v40  ;;  %3945 = vmatpush2.bf16.msra.mxu0 %v6112_v41  ;;  %v6169_v40 = vld [vmem:[%s8847_s4 + $0x22c] ss:$16 sps:$4 sm:$0xff]   ;;  %v6164_v41 = vld [vmem:[%s8847_s4 + $0x28] ss:$16 sps:$4 sm:$0xff]  }
 0x1de   :  { %3905 = vmatprep.subr.bf16.mxu1 %v6117_v11  ;;  %3946 = vmatprep.subr.bf16.mxu0 %v6120_v12  ;;  %v6167_v11 = vld [vmem:[%s8847_s4 + $0x228] ss:$16 sps:$4 sm:$0xff]   ;;  %v6172_v12 = vld [vmem:[%s8847_s4 + $0xc] ss:$16 sps:$4 sm:$0xff]  }
 0x1e1   :  { %3906 = vmatpush2.bf16.msra.mxu1 %v6115_v44  ;;  %3947 = vmatpush2.bf16.msra.mxu0 %v6118_v45  ;;  %v6175_v44 = vld [vmem:[%s8847_s4 + $0x20c] ss:$16 sps:$4 sm:$0xff]   ;;  %v6170_v45 = vld [vmem:[%s8847_s4 + $0x8] ss:$16 sps:$4 sm:$0xff]  }
 0x1e2   :  { %3907 = vmatprep.subr.bf16.mxu1 %v6123_v48  ;;  %3948 = vmatprep.subr.bf16.mxu0 %v6126_v49  ;;  %v6173_v48 = vld [vmem:[%s8847_s4 + $0x208] ss:$16 sps:$4 sm:$0xff]   ;;  %v6178_v49 = vld [vmem:[%s8847_s4 + $0x1ec] ss:$16 sps:$4 sm:$0xff]  }
 0x1e5   :  { %3908 = vmatpush2.bf16.msra.mxu1 %v6121_v50  ;;  %3949 = vmatpush2.bf16.msra.mxu0 %v6124_v51  ;;  %v6181_v50 = vld [vmem:[%s8847_s4 + $0x3ec] ss:$16 sps:$4 sm:$0xff]   ;;  %v6176_v51 = vld [vmem:[%s8847_s4 + $0x1e8] ss:$16 sps:$4 sm:$0xff]  }
 0x1e6   :  { %3959 = vmatprep.subr.bf16.mxu1 %v6130_v52  ;;  %4000 = vmatprep.subr.bf16.mxu0 %v6133_v53  ;;  %v6179_v52 = vld [vmem:[%s8847_s4 + $0x3e8] ss:$16 sps:$4 sm:$0xff]   ;;  %v6184_v53 = vld [vmem:[%s8847_s4 + $0x1cc] ss:$16 sps:$4 sm:$0xff]  }
 0x1e8   :  { %v3665_v60 = vpop.f32.mrf.mxu1  ;;  %v3706_v61 = vpop.f32.mrf.mxu0  ;;  %3910 = vmatmul.mubr.bf16.vlgmr.msra.gmra.mxu1 %v7750_v56  ;;  %3951 = vmatmul.mubr.bf16.vlgmr.msra.gmra.mxu0 %v7754_v57 }
 0x1e9   :  { %v3666_v62 = vadd.f32 %v3665_v60, %v7558_v21  ;;  %3960 = vmatpush1.bf16.msra.mxu1 %v6128_v28  ;;  %4001 = vmatpush1.bf16.msra.mxu0 %v6131_v29  ;;  %v6145_v21 = vld [vmem:[%s8847_s4 + $0x2ac] ss:$16 sps:$4 sm:$0xff]   ;;  %v6182_v29 = vld [vmem:[%s8847_s4 + $0x1c8] ss:$16 sps:$4 sm:$0xff]  }
 0x1ea   :  { %v3667_v1 = vpop.f32.mrf.mxu1  ;;  %v3708_v2 = vpop.f32.mrf.mxu0  ;;  %3961 = vmatprep.subr.bf16.mxu1 %v6136_v4  ;;  %4002 = vmatprep.subr.bf16.mxu0 %v6139_v5  ;;  %v6187_v28 = vld [vmem:[%s8847_s4 + $0x3cc] ss:$16 sps:$4 sm:$0xff]   ;;  %v6185_v4 = vld [vmem:[%s8847_s4 + $0x3c8] ss:$16 sps:$4 sm:$0xff]  }
 0x1eb   :  { %v7783_v6 = vadd.f32 %v3706_v61, %v3666_v62  ;;  %v3668_v9 = vadd.f32 %v3667_v1, %v7568_v25  ;;  %3991 = vmatprep.mubr.bf16.mxu1 %v6891_v26  ;;  %4032 = vmatprep.mubr.bf16.mxu0 %v6893_v27  ;;  %v6148_v26 = vld [vmem:[%s8847_s4 + $0x8c] ss:$16 sps:$4 sm:$0xff]   ;;  %v6188_v61 = vld [vmem:[%s8847_s4 + $0x1a8] ss:$16 sps:$4 sm:$0xff]  }
 0x1ec   :  { %v3669_v10 = vpop.f32.mrf.mxu1  ;;  %v3710_v8 = vpop.f32.mrf.mxu0  ;;  %v6151_v27 = vld [vmem:[%s8847_s4 + $0x28c] ss:$16 sps:$4 sm:$0xff]   ;;  %v6191_v62 = vld [vmem:[%s8847_s4 + $0x3a8] ss:$16 sps:$4 sm:$0xff]  }
 0x1ed   :  { %v7788_v13 = vadd.f32 %v3708_v2, %v3668_v9  ;;  %3962 = vmatpush1.bf16.msra.mxu1 %v6134_v63  ;;  %4003 = vmatpush1.bf16.msra.mxu0 %v6137_v0  ;;  %v6190_v5 = vld [vmem:[%s8847_s4 + $0x1ac] ss:$16 sps:$4 sm:$0xff]   ;;  %v6194_v1 = vld [vmem:[%s8847_s4 + $0x188] ss:$16 sps:$4 sm:$0xff]  }
 0x1ee   :  { %v3670_v18 = vpop.f32.mrf.mxu1  ;;  %v3711_v25 = vpop.f32.mrf.mxu0  ;;  %3963 = vmatprep.subr.bf16.mxu1 %v6142_v3  ;;  %4004 = vmatprep.subr.bf16.mxu0 %v6145_v21  ;;  %v6193_v60 = vld [vmem:[%s8847_s4 + $0x3ac] ss:$16 sps:$4 sm:$0xff]   ;;  %v6197_v2 = vld [vmem:[%s8847_s4 + $0x388] ss:$16 sps:$4 sm:$0xff]  }
 0x1ef   :  { %v6196_v63 = vld [vmem:[%s8847_s4 + $0x18c] ss:$16 sps:$4 sm:$0xff]   ;;  %v6200_v9 = vld [vmem:[%s8847_s4 + $0x168] ss:$16 sps:$4 sm:$0xff]  }
 0x1f0   :  { %v6199_v0 = vld [vmem:[%s8847_s4 + $0x38c] ss:$16 sps:$4 sm:$0xff]   ;;  %v6203_v10 = vld [vmem:[%s8847_s4 + $0x368] ss:$16 sps:$4 sm:$0xff]  }
 0x1f1   :  { %3964 = vmatpush1.bf16.msra.mxu1 %v6140_v14  ;;  %4005 = vmatpush1.bf16.msra.mxu0 %v6143_v17  ;;  %v6202_v3 = vld [vmem:[%s8847_s4 + $0x16c] ss:$16 sps:$4 sm:$0xff]   ;;  %v6206_v17 = vld [vmem:[%s8847_s4 + $0x148] ss:$16 sps:$4 sm:$0xff]  }
 0x1f2   :  { %3965 = vmatprep.subr.bf16.mxu1 %v6148_v26  ;;  %4006 = vmatprep.subr.bf16.mxu0 %v6151_v27  ;;  %v6205_v21 = vld [vmem:[%s8847_s4 + $0x36c] ss:$16 sps:$4 sm:$0xff]   ;;  %v6209_v18 = vld [vmem:[%s8847_s4 + $0x348] ss:$16 sps:$4 sm:$0xff]  }
 0x1f3   :  { %v6208_v8 = vld [vmem:[%s8847_s4 + $0x14c] ss:$16 sps:$4 sm:$0xff]   ;;  %v6212_v27 = vld [vmem:[%s8847_s4 + $0x128] ss:$16 sps:$4 sm:$0xff]  }
 0x1f4   :  { %v6211_v14 = vld [vmem:[%s8847_s4 + $0x34c] ss:$16 sps:$4 sm:$0xff]  }
 0x1f5   :  { %3966 = vmatpush1.bf16.msra.mxu1 %v6146_v46  ;;  %4007 = vmatpush1.bf16.msra.mxu0 %v6149_v47  ;;  %v6214_v25 = vld [vmem:[%s8847_s4 + $0x12c] ss:$16 sps:$4 sm:$0xff]   ;;  %v6215_v46 = vld [vmem:[%s8847_s4 + $0x328] ss:$16 sps:$4 sm:$0xff]  }
 0x1f6   :  { %3967 = vmatprep.subr.bf16.mxu1 %v6154_v23  ;;  %4008 = vmatprep.subr.bf16.mxu0 %v6157_v24  ;;  %v6217_v26 = vld [vmem:[%s8847_s4 + $0x32c] ss:$16 sps:$4 sm:$0xff]   ;;  %v6218_v24 = vld [vmem:[%s8847_s4 + $0x108] ss:$16 sps:$4 sm:$0xff]  }
 0x1f7   :  { %v6220_v47 = vld [vmem:[%s8847_s4 + $0x10c] ss:$16 sps:$4 sm:$0xff]  }
 0x1f8   :  { %v6223_v23 = vld [vmem:[%s8847_s4 + $0x30c] ss:$16 sps:$4 sm:$0xff]  }
 0x1f9   :  { %3968 = vmatpush1.bf16.msra.mxu1 %v6152_v31  ;;  %4009 = vmatpush1.bf16.msra.mxu0 %v6155_v32  ;;  %v6221_v31 = vld [vmem:[%s8847_s4 + $0x308] ss:$16 sps:$4 sm:$0xff]   ;;  %v6226_v32 = vld [vmem:[%s8847_s4 + $0x4ec] ss:$16 sps:$4 sm:$0xff]  }
 0x1fa   :  { %3969 = vmatprep.subr.bf16.mxu1 %v6160_v33  ;;  %4010 = vmatprep.subr.bf16.mxu0 %v6163_v34  ;;  %v6229_v33 = vld [vmem:[%s8847_s4 + $0x6ec] ss:$16 sps:$4 sm:$0xff]   ;;  %v6224_v34 = vld [vmem:[%s8847_s4 + $0x4e8] ss:$16 sps:$4 sm:$0xff]  }
 0x1fd   :  { %3970 = vmatpush1.bf16.msra.mxu1 %v6158_v35  ;;  %4011 = vmatpush1.bf16.msra.mxu0 %v6161_v36  ;;  %v6227_v35 = vld [vmem:[%s8847_s4 + $0x6e8] ss:$16 sps:$4 sm:$0xff]   ;;  %v6232_v36 = vld [vmem:[%s8847_s4 + $0x4cc] ss:$16 sps:$4 sm:$0xff]  }
 0x1fe   :  { %3971 = vmatprep.subr.bf16.mxu1 %v6166_v37  ;;  %4012 = vmatprep.subr.bf16.mxu0 %v6169_v40  ;;  %v6235_v37 = vld [vmem:[%s8847_s4 + $0x6cc] ss:$16 sps:$4 sm:$0xff]  }
 0x201   :  { %3972 = vmatpush1.bf16.msra.mxu1 %v6164_v41  ;;  %4013 = vmatpush1.bf16.msra.mxu0 %v6167_v11 }
 0x202   :  { %3973 = vmatprep.subr.bf16.mxu1 %v6172_v12  ;;  %4014 = vmatprep.subr.bf16.mxu0 %v6175_v44  ;;  %v6230_v12 = vld [vmem:[%s8847_s4 + $0x4c8] ss:$16 sps:$4 sm:$0xff]  }
 0x203   :  { %v6233_v44 = vld [vmem:[%s8847_s4 + $0x6c8] ss:$16 sps:$4 sm:$0xff]  }
 0x205   :  { %3974 = vmatpush1.bf16.msra.mxu1 %v6170_v45  ;;  %4015 = vmatpush1.bf16.msra.mxu0 %v6173_v48 }
 0x206   :  { %3975 = vmatprep.subr.bf16.mxu1 %v6178_v49  ;;  %4016 = vmatprep.subr.bf16.mxu0 %v6181_v50 }
 0x209   :  { %3976 = vmatpush2.bf16.msra.mxu1 %v6176_v51  ;;  %4017 = vmatpush2.bf16.msra.mxu0 %v6179_v52 }
 0x20a   :  { %3977 = vmatprep.subr.bf16.mxu1 %v6184_v53  ;;  %4018 = vmatprep.subr.bf16.mxu0 %v6187_v28  ;;  %v6236_v53 = vld [vmem:[%s8847_s4 + $0x4a8] ss:$16 sps:$4 sm:$0xff]  }
 0x20b   :  { %v6239_v28 = vld [vmem:[%s8847_s4 + $0x6a8] ss:$16 sps:$4 sm:$0xff]  }
 0x20d   :  { %3978 = vmatpush2.bf16.msra.mxu1 %v6182_v29  ;;  %4019 = vmatpush2.bf16.msra.mxu0 %v6185_v4  ;;  %v6242_v4 = vld [vmem:[%s8847_s4 + $0x488] ss:$16 sps:$4 sm:$0xff]  }
 0x20e   :  { %3979 = vmatprep.subr.bf16.mxu1 %v6190_v5  ;;  %4020 = vmatprep.subr.bf16.mxu0 %v6193_v60  ;;  %v6245_v5 = vld [vmem:[%s8847_s4 + $0x688] ss:$16 sps:$4 sm:$0xff]   ;;  %v6250_v60 = vld [vmem:[%s8847_s4 + $0x46c] ss:$16 sps:$4 sm:$0xff]  }
 0x211   :  { %3980 = vmatpush2.bf16.msra.mxu1 %v6188_v61  ;;  %4021 = vmatpush2.bf16.msra.mxu0 %v6191_v62  ;;  %v6253_v61 = vld [vmem:[%s8847_s4 + $0x66c] ss:$16 sps:$4 sm:$0xff]   ;;  %v6248_v62 = vld [vmem:[%s8847_s4 + $0x468] ss:$16 sps:$4 sm:$0xff]  }
 0x212   :  { %3981 = vmatprep.subr.bf16.mxu1 %v6196_v63  ;;  %4022 = vmatprep.subr.bf16.mxu0 %v6199_v0  ;;  %v6251_v63 = vld [vmem:[%s8847_s4 + $0x668] ss:$16 sps:$4 sm:$0xff]   ;;  %v6256_v0 = vld [vmem:[%s8847_s4 + $0x44c] ss:$16 sps:$4 sm:$0xff]  }
 0x215   :  { %3982 = vmatpush2.bf16.msra.mxu1 %v6194_v1  ;;  %4023 = vmatpush2.bf16.msra.mxu0 %v6197_v2  ;;  %v6259_v1 = vld [vmem:[%s8847_s4 + $0x64c] ss:$16 sps:$4 sm:$0xff]   ;;  %v6254_v2 = vld [vmem:[%s8847_s4 + $0x448] ss:$16 sps:$4 sm:$0xff]  }
 0x216   :  { %3983 = vmatprep.subr.bf16.mxu1 %v6202_v3  ;;  %4024 = vmatprep.subr.bf16.mxu0 %v6205_v21  ;;  %v6257_v3 = vld [vmem:[%s8847_s4 + $0x648] ss:$16 sps:$4 sm:$0xff]   ;;  %v6262_v21 = vld [vmem:[%s8847_s4 + $0x42c] ss:$16 sps:$4 sm:$0xff]  }
 0x219   :  { %3984 = vmatpush2.bf16.msra.mxu1 %v6200_v9  ;;  %4025 = vmatpush2.bf16.msra.mxu0 %v6203_v10  ;;  %v6265_v9 = vld [vmem:[%s8847_s4 + $0x62c] ss:$16 sps:$4 sm:$0xff]   ;;  %v6260_v10 = vld [vmem:[%s8847_s4 + $0x428] ss:$16 sps:$4 sm:$0xff]  }
 0x21a   :  { %3985 = vmatprep.subr.bf16.mxu1 %v6208_v8  ;;  %4026 = vmatprep.subr.bf16.mxu0 %v6211_v14  ;;  %v6263_v8 = vld [vmem:[%s8847_s4 + $0x628] ss:$16 sps:$4 sm:$0xff]   ;;  %v6268_v14 = vld [vmem:[%s8847_s4 + $0x40c] ss:$16 sps:$4 sm:$0xff]  }
 0x21d   :  { %3986 = vmatpush2.bf16.msra.mxu1 %v6206_v17  ;;  %4027 = vmatpush2.bf16.msra.mxu0 %v6209_v18  ;;  %v6271_v17 = vld [vmem:[%s8847_s4 + $0x60c] ss:$16 sps:$4 sm:$0xff]   ;;  %v6266_v18 = vld [vmem:[%s8847_s4 + $0x408] ss:$16 sps:$4 sm:$0xff]  }
 0x21e   :  { %3987 = vmatprep.subr.bf16.mxu1 %v6214_v25  ;;  %4028 = vmatprep.subr.bf16.mxu0 %v6217_v26  ;;  %v6269_v25 = vld [vmem:[%s8847_s4 + $0x608] ss:$16 sps:$4 sm:$0xff]   ;;  %v6274_v26 = vld [vmem:[%s8847_s4 + $0x5ec] ss:$16 sps:$4 sm:$0xff]  }
 0x221   :  { %3988 = vmatpush2.bf16.msra.mxu1 %v6212_v27  ;;  %4029 = vmatpush2.bf16.msra.mxu0 %v6215_v46  ;;  %v6277_v27 = vld [vmem:[%s8847_s4 + $0x7ec] ss:$16 sps:$4 sm:$0xff]   ;;  %v6272_v46 = vld [vmem:[%s8847_s4 + $0x5e8] ss:$16 sps:$4 sm:$0xff]  }
 0x222   :  { %3989 = vmatprep.subr.bf16.mxu1 %v6220_v47  ;;  %4030 = vmatprep.subr.bf16.mxu0 %v6223_v23  ;;  %v6275_v47 = vld [vmem:[%s8847_s4 + $0x7e8] ss:$16 sps:$4 sm:$0xff]   ;;  %v6280_v23 = vld [vmem:[%s8847_s4 + $0x5cc] ss:$16 sps:$4 sm:$0xff]  }
 0x225   :  { %3990 = vmatpush2.bf16.msra.mxu1 %v6218_v24  ;;  %4031 = vmatpush2.bf16.msra.mxu0 %v6221_v31  ;;  %v6283_v24 = vld [vmem:[%s8847_s4 + $0x7cc] ss:$16 sps:$4 sm:$0xff]   ;;  %v6278_v31 = vld [vmem:[%s8847_s4 + $0x5c8] ss:$16 sps:$4 sm:$0xff]  }
 0x226   :  { %4041 = vmatprep.subr.bf16.mxu1 %v6226_v32  ;;  %4082 = vmatprep.subr.bf16.mxu0 %v6229_v33  ;;  %v6281_v32 = vld [vmem:[%s8847_s4 + $0x7c8] ss:$16 sps:$4 sm:$0xff]   ;;  %v6286_v33 = vld [vmem:[%s8847_s4 + $0x5ac] ss:$16 sps:$4 sm:$0xff]  }
 0x228   :  { %v3747_v40 = vpop.f32.mrf.mxu1  ;;  %v3788_v41 = vpop.f32.mrf.mxu0  ;;  %3992 = vmatmul.mubr.bf16.vlgmr.msra.gmra.mxu1 %v7098_v38  ;;  %4033 = vmatmul.mubr.bf16.vlgmr.msra.gmra.mxu0 %v7102_v39  ;;  %v6238_v38 = vld [vmem:[%s8847_s4 + $0x4ac] ss:$16 sps:$4 sm:$0xff]  }
 0x229   :  { %v3748_v11 = vadd.f32 %v3747_v40, %v7783_v6  ;;  %4042 = vmatpush1.bf16.msra.mxu1 %v6224_v34  ;;  %4083 = vmatpush1.bf16.msra.mxu0 %v6227_v35  ;;  %v6241_v39 = vld [vmem:[%s8847_s4 + $0x6ac] ss:$16 sps:$4 sm:$0xff]   ;;  %v6284_v35 = vld [vmem:[%s8847_s4 + $0x5a8] ss:$16 sps:$4 sm:$0xff]  }
 0x22a   :  { %v3749_v45 = vpop.f32.mrf.mxu1  ;;  %v3790_v48 = vpop.f32.mrf.mxu0  ;;  %4043 = vmatprep.subr.bf16.mxu1 %v6232_v36  ;;  %4084 = vmatprep.subr.bf16.mxu0 %v6235_v37  ;;  %v6289_v34 = vld [vmem:[%s8847_s4 + $0x7ac] ss:$16 sps:$4 sm:$0xff]   ;;  %v6287_v36 = vld [vmem:[%s8847_s4 + $0x7a8] ss:$16 sps:$4 sm:$0xff]  }
 0x22b   :  { %v7985_v6 = vadd.f32 %v3788_v41, %v3748_v11  ;;  %v3750_v49 = vadd.f32 %v3749_v45, %v7788_v13  ;;  %4073 = vmatprep.mubr.bf16.mxu1 %v7116_v42  ;;  %4114 = vmatprep.mubr.bf16.mxu0 %v7118_v43  ;;  %v6244_v42 = vld [vmem:[%s8847_s4 + $0x48c] ss:$16 sps:$4 sm:$0xff]   ;;  %v6290_v41 = vld [vmem:[%s8847_s4 + $0x588] ss:$16 sps:$4 sm:$0xff]  }
 0x22c   :  { %v3751_v50 = vpop.f32.mrf.mxu1  ;;  %v3792_v51 = vpop.f32.mrf.mxu0  ;;  %v6247_v43 = vld [vmem:[%s8847_s4 + $0x68c] ss:$16 sps:$4 sm:$0xff]   ;;  %v6293_v11 = vld [vmem:[%s8847_s4 + $0x788] ss:$16 sps:$4 sm:$0xff]  }
 0x22d   :  { %v7990_v52 = vadd.f32 %v3790_v48, %v3750_v49  ;;  %4044 = vmatpush1.bf16.msra.mxu1 %v6230_v12  ;;  %4085 = vmatpush1.bf16.msra.mxu0 %v6233_v44  ;;  %v6292_v37 = vld [vmem:[%s8847_s4 + $0x58c] ss:$16 sps:$4 sm:$0xff]   ;;  %v6296_v45 = vld [vmem:[%s8847_s4 + $0x568] ss:$16 sps:$4 sm:$0xff]  }
 0x22e   :  { %v3752_v29 = vpop.f32.mrf.mxu1  ;;  %v3793_v13 = vpop.f32.mrf.mxu0  ;;  %4045 = vmatprep.subr.bf16.mxu1 %v6238_v38  ;;  %4086 = vmatprep.subr.bf16.mxu0 %v6241_v39  ;;  %v6295_v40 = vld [vmem:[%s8847_s4 + $0x78c] ss:$16 sps:$4 sm:$0xff]   ;;  %v6299_v48 = vld [vmem:[%s8847_s4 + $0x768] ss:$16 sps:$4 sm:$0xff]  }
 0x22f   :  { %v6298_v12 = vld [vmem:[%s8847_s4 + $0x56c] ss:$16 sps:$4 sm:$0xff]   ;;  %v6302_v49 = vld [vmem:[%s8847_s4 + $0x548] ss:$16 sps:$4 sm:$0xff]  }
 0x230   :  { %v6301_v44 = vld [vmem:[%s8847_s4 + $0x76c] ss:$16 sps:$4 sm:$0xff]   ;;  %v6305_v50 = vld [vmem:[%s8847_s4 + $0x748] ss:$16 sps:$4 sm:$0xff]  }
 0x231   :  { %4046 = vmatpush1.bf16.msra.mxu1 %v6236_v53  ;;  %4087 = vmatpush1.bf16.msra.mxu0 %v6239_v28  ;;  %v6304_v38 = vld [vmem:[%s8847_s4 + $0x54c] ss:$16 sps:$4 sm:$0xff]   ;;  %v6308_v28 = vld [vmem:[%s8847_s4 + $0x528] ss:$16 sps:$4 sm:$0xff]  }
 0x232   :  { %4047 = vmatprep.subr.bf16.mxu1 %v6244_v42  ;;  %4088 = vmatprep.subr.bf16.mxu0 %v6247_v43  ;;  %v6307_v39 = vld [vmem:[%s8847_s4 + $0x74c] ss:$16 sps:$4 sm:$0xff]   ;;  %v6311_v29 = vld [vmem:[%s8847_s4 + $0x728] ss:$16 sps:$4 sm:$0xff]  }
 0x233   :  { %v6310_v51 = vld [vmem:[%s8847_s4 + $0x52c] ss:$16 sps:$4 sm:$0xff]   ;;  %v6314_v43 = vld [vmem:[%s8847_s4 + $0x508] ss:$16 sps:$4 sm:$0xff]  }
 0x234   :  { %v6313_v53 = vld [vmem:[%s8847_s4 + $0x72c] ss:$16 sps:$4 sm:$0xff]  }
 0x235   :  { %4048 = vmatpush1.bf16.msra.mxu1 %v6242_v4  ;;  %4089 = vmatpush1.bf16.msra.mxu0 %v6245_v5  ;;  %v6316_v13 = vld [vmem:[%s8847_s4 + $0x50c] ss:$16 sps:$4 sm:$0xff]   ;;  %v6317_v4 = vld [vmem:[%s8847_s4 + $0x708] ss:$16 sps:$4 sm:$0xff]  }
 0x236   :  { %4049 = vmatprep.subr.bf16.mxu1 %v6250_v60  ;;  %4090 = vmatprep.subr.bf16.mxu0 %v6253_v61  ;;  %v6319_v42 = vld [vmem:[%s8847_s4 + $0x70c] ss:$16 sps:$4 sm:$0xff]   ;;  %v6320_v61 = vld [vmem:[%s8847_s4 + $0x8e8] ss:$16 sps:$4 sm:$0xff]  }
 0x237   :  { %v6322_v5 = vld [vmem:[%s8847_s4 + $0x8ec] ss:$16 sps:$4 sm:$0xff]  }
 0x238   :  { %v6325_v60 = vld [vmem:[%s8847_s4 + $0xaec] ss:$16 sps:$4 sm:$0xff]  }
 0x239   :  { %4050 = vmatpush1.bf16.msra.mxu1 %v6248_v62  ;;  %4091 = vmatpush1.bf16.msra.mxu0 %v6251_v63  ;;  %v6323_v62 = vld [vmem:[%s8847_s4 + $0xae8] ss:$16 sps:$4 sm:$0xff]   ;;  %v6328_v63 = vld [vmem:[%s8847_s4 + $0x8cc] ss:$16 sps:$4 sm:$0xff]  }
 0x23a   :  { %4051 = vmatprep.subr.bf16.mxu1 %v6256_v0  ;;  %4092 = vmatprep.subr.bf16.mxu0 %v6259_v1  ;;  %v6331_v0 = vld [vmem:[%s8847_s4 + $0xacc] ss:$16 sps:$4 sm:$0xff]  }
 0x23d   :  { %4052 = vmatpush1.bf16.msra.mxu1 %v6254_v2  ;;  %4093 = vmatpush1.bf16.msra.mxu0 %v6257_v3 }
 0x23e   :  { %4053 = vmatprep.subr.bf16.mxu1 %v6262_v21  ;;  %4094 = vmatprep.subr.bf16.mxu0 %v6265_v9  ;;  %v6326_v21 = vld [vmem:[%s8847_s4 + $0x8c8] ss:$16 sps:$4 sm:$0xff]  }
 0x23f   :  { %v6329_v9 = vld [vmem:[%s8847_s4 + $0xac8] ss:$16 sps:$4 sm:$0xff]  }
 0x241   :  { %4054 = vmatpush1.bf16.msra.mxu1 %v6260_v10  ;;  %4095 = vmatpush1.bf16.msra.mxu0 %v6263_v8 }
 0x242   :  { %4055 = vmatprep.subr.bf16.mxu1 %v6268_v14  ;;  %4096 = vmatprep.subr.bf16.mxu0 %v6271_v17 }
 0x245   :  { %4056 = vmatpush1.bf16.msra.mxu1 %v6266_v18  ;;  %4097 = vmatpush1.bf16.msra.mxu0 %v6269_v25 }
 0x246   :  { %4057 = vmatprep.subr.bf16.mxu1 %v6274_v26  ;;  %4098 = vmatprep.subr.bf16.mxu0 %v6277_v27  ;;  %v6332_v26 = vld [vmem:[%s8847_s4 + $0x8a8] ss:$16 sps:$4 sm:$0xff]  }
 0x247   :  { %v6335_v27 = vld [vmem:[%s8847_s4 + $0xaa8] ss:$16 sps:$4 sm:$0xff]  }
 0x249   :  { %4058 = vmatpush2.bf16.msra.mxu1 %v6272_v46  ;;  %4099 = vmatpush2.bf16.msra.mxu0 %v6275_v47  ;;  %v6338_v47 = vld [vmem:[%s8847_s4 + $0x888] ss:$16 sps:$4 sm:$0xff]  }
 0x24a   :  { %4059 = vmatprep.subr.bf16.mxu1 %v6280_v23  ;;  %4100 = vmatprep.subr.bf16.mxu0 %v6283_v24  ;;  %v6341_v23 = vld [vmem:[%s8847_s4 + $0xa88] ss:$16 sps:$4 sm:$0xff]   ;;  %v6346_v24 = vld [vmem:[%s8847_s4 + $0x86c] ss:$16 sps:$4 sm:$0xff]  }
 0x24d   :  { %4060 = vmatpush2.bf16.msra.mxu1 %v6278_v31  ;;  %4101 = vmatpush2.bf16.msra.mxu0 %v6281_v32  ;;  %v6349_v31 = vld [vmem:[%s8847_s4 + $0xa6c] ss:$16 sps:$4 sm:$0xff]   ;;  %v6344_v32 = vld [vmem:[%s8847_s4 + $0x868] ss:$16 sps:$4 sm:$0xff]  }
 0x24e   :  { %4061 = vmatprep.subr.bf16.mxu1 %v6286_v33  ;;  %4102 = vmatprep.subr.bf16.mxu0 %v6289_v34  ;;  %v6347_v33 = vld [vmem:[%s8847_s4 + $0xa68] ss:$16 sps:$4 sm:$0xff]   ;;  %v6352_v34 = vld [vmem:[%s8847_s4 + $0x84c] ss:$16 sps:$4 sm:$0xff]  }
 0x251   :  { %4062 = vmatpush2.bf16.msra.mxu1 %v6284_v35  ;;  %4103 = vmatpush2.bf16.msra.mxu0 %v6287_v36  ;;  %v6355_v35 = vld [vmem:[%s8847_s4 + $0xa4c] ss:$16 sps:$4 sm:$0xff]   ;;  %v6350_v36 = vld [vmem:[%s8847_s4 + $0x848] ss:$16 sps:$4 sm:$0xff]  }
 0x252   :  { %4063 = vmatprep.subr.bf16.mxu1 %v6292_v37  ;;  %4104 = vmatprep.subr.bf16.mxu0 %v6295_v40  ;;  %v6353_v37 = vld [vmem:[%s8847_s4 + $0xa48] ss:$16 sps:$4 sm:$0xff]   ;;  %v6358_v40 = vld [vmem:[%s8847_s4 + $0x82c] ss:$16 sps:$4 sm:$0xff]  }
 0x255   :  { %4064 = vmatpush2.bf16.msra.mxu1 %v6290_v41  ;;  %4105 = vmatpush2.bf16.msra.mxu0 %v6293_v11  ;;  %v6361_v41 = vld [vmem:[%s8847_s4 + $0xa2c] ss:$16 sps:$4 sm:$0xff]   ;;  %v6356_v11 = vld [vmem:[%s8847_s4 + $0x828] ss:$16 sps:$4 sm:$0xff]  }
 0x256   :  { %4065 = vmatprep.subr.bf16.mxu1 %v6298_v12  ;;  %4106 = vmatprep.subr.bf16.mxu0 %v6301_v44  ;;  %v6359_v12 = vld [vmem:[%s8847_s4 + $0xa28] ss:$16 sps:$4 sm:$0xff]   ;;  %v6364_v44 = vld [vmem:[%s8847_s4 + $0x80c] ss:$16 sps:$4 sm:$0xff]  }
 0x259   :  { %4066 = vmatpush2.bf16.msra.mxu1 %v6296_v45  ;;  %4107 = vmatpush2.bf16.msra.mxu0 %v6299_v48  ;;  %v6367_v45 = vld [vmem:[%s8847_s4 + $0xa0c] ss:$16 sps:$4 sm:$0xff]   ;;  %v6362_v48 = vld [vmem:[%s8847_s4 + $0x808] ss:$16 sps:$4 sm:$0xff]  }
 0x25a   :  { %4067 = vmatprep.subr.bf16.mxu1 %v6304_v38  ;;  %4108 = vmatprep.subr.bf16.mxu0 %v6307_v39  ;;  %v6365_v38 = vld [vmem:[%s8847_s4 + $0xa08] ss:$16 sps:$4 sm:$0xff]   ;;  %v6370_v39 = vld [vmem:[%s8847_s4 + $0x9ec] ss:$16 sps:$4 sm:$0xff]  }
 0x25d   :  { %4068 = vmatpush2.bf16.msra.mxu1 %v6302_v49  ;;  %4109 = vmatpush2.bf16.msra.mxu0 %v6305_v50  ;;  %v6373_v49 = vld [vmem:[%s8847_s4 + $0xbec] ss:$16 sps:$4 sm:$0xff]   ;;  %v6368_v50 = vld [vmem:[%s8847_s4 + $0x9e8] ss:$16 sps:$4 sm:$0xff]  }
 0x25e   :  { %4069 = vmatprep.subr.bf16.mxu1 %v6310_v51  ;;  %4110 = vmatprep.subr.bf16.mxu0 %v6313_v53  ;;  %v6371_v51 = vld [vmem:[%s8847_s4 + $0xbe8] ss:$16 sps:$4 sm:$0xff]   ;;  %v6376_v53 = vld [vmem:[%s8847_s4 + $0x9cc] ss:$16 sps:$4 sm:$0xff]  }
 0x261   :  { %4070 = vmatpush2.bf16.msra.mxu1 %v6308_v28  ;;  %4111 = vmatpush2.bf16.msra.mxu0 %v6311_v29  ;;  %v6379_v28 = vld [vmem:[%s8847_s4 + $0xbcc] ss:$16 sps:$4 sm:$0xff]   ;;  %v6374_v29 = vld [vmem:[%s8847_s4 + $0x9c8] ss:$16 sps:$4 sm:$0xff]  }
 0x262   :  { %4071 = vmatprep.subr.bf16.mxu1 %v6316_v13  ;;  %4112 = vmatprep.subr.bf16.mxu0 %v6319_v42  ;;  %v6377_v13 = vld [vmem:[%s8847_s4 + $0xbc8] ss:$16 sps:$4 sm:$0xff]   ;;  %v6382_v42 = vld [vmem:[%s8847_s4 + $0x9ac] ss:$16 sps:$4 sm:$0xff]  }
 0x265   :  { %4072 = vmatpush2.bf16.msra.mxu1 %v6314_v43  ;;  %4113 = vmatpush2.bf16.msra.mxu0 %v6317_v4  ;;  %v6385_v43 = vld [vmem:[%s8847_s4 + $0xbac] ss:$16 sps:$4 sm:$0xff]   ;;  %v6380_v4 = vld [vmem:[%s8847_s4 + $0x9a8] ss:$16 sps:$4 sm:$0xff]  }
 0x266   :  { %4123 = vmatprep.subr.bf16.mxu1 %v6322_v5  ;;  %4164 = vmatprep.subr.bf16.mxu0 %v6325_v60  ;;  %v6383_v5 = vld [vmem:[%s8847_s4 + $0xba8] ss:$16 sps:$4 sm:$0xff]   ;;  %v6388_v60 = vld [vmem:[%s8847_s4 + $0x98c] ss:$16 sps:$4 sm:$0xff]  }
 0x268   :  { %v3829_v1 = vpop.f32.mrf.mxu1  ;;  %v3870_v2 = vpop.f32.mrf.mxu0  ;;  %4074 = vmatmul.mubr.bf16.vlgmr.msra.gmra.mxu1 %v7313_v54  ;;  %4115 = vmatmul.mubr.bf16.vlgmr.msra.gmra.mxu0 %v7317_v55  ;;  %v6334_v54 = vld [vmem:[%s8847_s4 + $0x8ac] ss:$16 sps:$4 sm:$0xff]  }
 0x269   :  { %v3830_v3 = vadd.f32 %v3829_v1, %v7985_v6  ;;  %4124 = vmatpush1.bf16.msra.mxu1 %v6320_v61  ;;  %4165 = vmatpush1.bf16.msra.mxu0 %v6323_v62  ;;  %v6337_v55 = vld [vmem:[%s8847_s4 + $0xaac] ss:$16 sps:$4 sm:$0xff]   ;;  %v6386_v62 = vld [vmem:[%s8847_s4 + $0x988] ss:$16 sps:$4 sm:$0xff]  }
 0x26a   :  { %v3831_v10 = vpop.f32.mrf.mxu1  ;;  %v3872_v8 = vpop.f32.mrf.mxu0  ;;  %4125 = vmatprep.subr.bf16.mxu1 %v6328_v63  ;;  %4166 = vmatprep.subr.bf16.mxu0 %v6331_v0  ;;  %v6391_v61 = vld [vmem:[%s8847_s4 + $0xb8c] ss:$16 sps:$4 sm:$0xff]   ;;  %v6389_v63 = vld [vmem:[%s8847_s4 + $0xb88] ss:$16 sps:$4 sm:$0xff]  }
 0x26b   :  { %v8187_v6 = vadd.f32 %v3870_v2, %v3830_v3  ;;  %v3832_v14 = vadd.f32 %v3831_v10, %v7990_v52  ;;  %4155 = vmatprep.mubr.bf16.mxu1 %v7331_v58  ;;  %4196 = vmatprep.mubr.bf16.mxu0 %v7333_v59  ;;  %v6340_v58 = vld [vmem:[%s8847_s4 + $0x88c] ss:$16 sps:$4 sm:$0xff]   ;;  %v6392_v2 = vld [vmem:[%s8847_s4 + $0x968] ss:$16 sps:$4 sm:$0xff]  }
 0x26c   :  { %v3833_v17 = vpop.f32.mrf.mxu1  ;;  %v3874_v18 = vpop.f32.mrf.mxu0  ;;  %v6343_v59 = vld [vmem:[%s8847_s4 + $0xa8c] ss:$16 sps:$4 sm:$0xff]   ;;  %v6395_v3 = vld [vmem:[%s8847_s4 + $0xb68] ss:$16 sps:$4 sm:$0xff]  }
 0x26d   :  { %v8192_v25 = vadd.f32 %v3872_v8, %v3832_v14  ;;  %4126 = vmatpush1.bf16.msra.mxu1 %v6326_v21  ;;  %4167 = vmatpush1.bf16.msra.mxu0 %v6329_v9  ;;  %v6394_v0 = vld [vmem:[%s8847_s4 + $0x96c] ss:$16 sps:$4 sm:$0xff]   ;;  %v6398_v10 = vld [vmem:[%s8847_s4 + $0x948] ss:$16 sps:$4 sm:$0xff]  }
 0x26e   :  { %v3834_v46 = vpop.f32.mrf.mxu1  ;;  %v3875_v52 = vpop.f32.mrf.mxu0  ;;  %4127 = vmatprep.subr.bf16.mxu1 %v6334_v54  ;;  %4168 = vmatprep.subr.bf16.mxu0 %v6337_v55  ;;  %v6397_v1 = vld [vmem:[%s8847_s4 + $0xb6c] ss:$16 sps:$4 sm:$0xff]   ;;  %v6401_v8 = vld [vmem:[%s8847_s4 + $0xb48] ss:$16 sps:$4 sm:$0xff]  }
 0x26f   :  { %v6400_v21 = vld [vmem:[%s8847_s4 + $0x94c] ss:$16 sps:$4 sm:$0xff]   ;;  %v6404_v14 = vld [vmem:[%s8847_s4 + $0x928] ss:$16 sps:$4 sm:$0xff]  }
 0x270   :  { %v6403_v9 = vld [vmem:[%s8847_s4 + $0xb4c] ss:$16 sps:$4 sm:$0xff]   ;;  %v6407_v17 = vld [vmem:[%s8847_s4 + $0xb28] ss:$16 sps:$4 sm:$0xff]  }
 0x271   :  { %4128 = vmatpush1.bf16.msra.mxu1 %v6332_v26  ;;  %4169 = vmatpush1.bf16.msra.mxu0 %v6335_v27  ;;  %v6406_v54 = vld [vmem:[%s8847_s4 + $0x92c] ss:$16 sps:$4 sm:$0xff]   ;;  %v6410_v27 = vld [vmem:[%s8847_s4 + $0x908] ss:$16 sps:$4 sm:$0xff]  }
 0x272   :  { %4129 = vmatprep.subr.bf16.mxu1 %v6340_v58  ;;  %4170 = vmatprep.subr.bf16.mxu0 %v6343_v59  ;;  %v6409_v55 = vld [vmem:[%s8847_s4 + $0xb2c] ss:$16 sps:$4 sm:$0xff]   ;;  %v6413_v46 = vld [vmem:[%s8847_s4 + $0xb08] ss:$16 sps:$4 sm:$0xff]  }
 0x273   :  { %v6412_v18 = vld [vmem:[%s8847_s4 + $0x90c] ss:$16 sps:$4 sm:$0xff]   ;;  %v6416_v59 = vld [vmem:[%s8847_s4 + $0xce8] ss:$16 sps:$4 sm:$0xff]  }
 0x274   :  { %v6415_v26 = vld [vmem:[%s8847_s4 + $0xb0c] ss:$16 sps:$4 sm:$0xff]  }
 0x275   :  { %4130 = vmatpush1.bf16.msra.mxu1 %v6338_v47  ;;  %4171 = vmatpush1.bf16.msra.mxu0 %v6341_v23  ;;  %v6418_v52 = vld [vmem:[%s8847_s4 + $0xcec] ss:$16 sps:$4 sm:$0xff]   ;;  %v6419_v47 = vld [vmem:[%s8847_s4 + $0xee8] ss:$16 sps:$4 sm:$0xff]  }
 0x276   :  { %4131 = vmatprep.subr.bf16.mxu1 %v6346_v24  ;;  %4172 = vmatprep.subr.bf16.mxu0 %v6349_v31  ;;  %v6421_v58 = vld [vmem:[%s8847_s4 + $0xeec] ss:$16 sps:$4 sm:$0xff]  }
 0x277   :  { %v6424_v23 = vld [vmem:[%s8847_s4 + $0xccc] ss:$16 sps:$4 sm:$0xff]  }
 0x278   :  { %v6427_v24 = vld [vmem:[%s8847_s4 + $0xecc] ss:$16 sps:$4 sm:$0xff]  }
 0x279   :  { %4132 = vmatpush1.bf16.msra.mxu1 %v6344_v32  ;;  %4173 = vmatpush1.bf16.msra.mxu0 %v6347_v33 }
 0x27a   :  { %4133 = vmatprep.subr.bf16.mxu1 %v6352_v34  ;;  %4174 = vmatprep.subr.bf16.mxu0 %v6355_v35  ;;  %v6422_v34 = vld [vmem:[%s8847_s4 + $0xcc8] ss:$16 sps:$4 sm:$0xff]  }
 0x27b   :  { %v6425_v35 = vld [vmem:[%s8847_s4 + $0xec8] ss:$16 sps:$4 sm:$0xff]  }
 0x27d   :  { %4134 = vmatpush1.bf16.msra.mxu1 %v6350_v36  ;;  %4175 = vmatpush1.bf16.msra.mxu0 %v6353_v37 }
 0x27e   :  { %4135 = vmatprep.subr.bf16.mxu1 %v6358_v40  ;;  %4176 = vmatprep.subr.bf16.mxu0 %v6361_v41 }
 0x281   :  { %4136 = vmatpush1.bf16.msra.mxu1 %v6356_v11  ;;  %4177 = vmatpush1.bf16.msra.mxu0 %v6359_v12  ;;  %v6428_v11 = vld [vmem:[%s8847_s4 + $0xca8] ss:$16 sps:$4 sm:$0xff]  }
 0x282   :  { %4137 = vmatprep.subr.bf16.mxu1 %v6364_v44  ;;  %4178 = vmatprep.subr.bf16.mxu0 %v6367_v45  ;;  %v6431_v12 = vld [vmem:[%s8847_s4 + $0xea8] ss:$16 sps:$4 sm:$0xff]  }
 0x285   :  { %4138 = vmatpush1.bf16.msra.mxu1 %v6362_v48  ;;  %4179 = vmatpush1.bf16.msra.mxu0 %v6365_v38  ;;  %v6434_v48 = vld [vmem:[%s8847_s4 + $0xc88] ss:$16 sps:$4 sm:$0xff]  }
 0x286   :  { %4139 = vmatprep.subr.bf16.mxu1 %v6370_v39  ;;  %4180 = vmatprep.subr.bf16.mxu0 %v6373_v49  ;;  %v6437_v38 = vld [vmem:[%s8847_s4 + $0xe88] ss:$16 sps:$4 sm:$0xff]   ;;  %v6442_v39 = vld [vmem:[%s8847_s4 + $0xc6c] ss:$16 sps:$4 sm:$0xff]  }
 0x287   :  { %v6445_v49 = vld [vmem:[%s8847_s4 + $0xe6c] ss:$16 sps:$4 sm:$0xff]  }
 0x289   :  { %4140 = vmatpush2.bf16.msra.mxu1 %v6368_v50  ;;  %4181 = vmatpush2.bf16.msra.mxu0 %v6371_v51  ;;  %v6440_v50 = vld [vmem:[%s8847_s4 + $0xc68] ss:$16 sps:$4 sm:$0xff]  }
 0x28a   :  { %4141 = vmatprep.subr.bf16.mxu1 %v6376_v53  ;;  %4182 = vmatprep.subr.bf16.mxu0 %v6379_v28  ;;  %v6443_v51 = vld [vmem:[%s8847_s4 + $0xe68] ss:$16 sps:$4 sm:$0xff]   ;;  %v6448_v53 = vld [vmem:[%s8847_s4 + $0xc4c] ss:$16 sps:$4 sm:$0xff]  }
 0x28b   :  { %v6451_v28 = vld [vmem:[%s8847_s4 + $0xe4c] ss:$16 sps:$4 sm:$0xff]  }
 0x28d   :  { %4142 = vmatpush2.bf16.msra.mxu1 %v6374_v29  ;;  %4183 = vmatpush2.bf16.msra.mxu0 %v6377_v13  ;;  %v6446_v29 = vld [vmem:[%s8847_s4 + $0xc48] ss:$16 sps:$4 sm:$0xff]  }
 0x28e   :  { %4143 = vmatprep.subr.bf16.mxu1 %v6382_v42  ;;  %4184 = vmatprep.subr.bf16.mxu0 %v6385_v43  ;;  %v6449_v13 = vld [vmem:[%s8847_s4 + $0xe48] ss:$16 sps:$4 sm:$0xff]   ;;  %v6454_v42 = vld [vmem:[%s8847_s4 + $0xc2c] ss:$16 sps:$4 sm:$0xff]  }
 0x28f   :  { %v6457_v43 = vld [vmem:[%s8847_s4 + $0xe2c] ss:$16 sps:$4 sm:$0xff]  }
 0x291   :  { %4144 = vmatpush2.bf16.msra.mxu1 %v6380_v4  ;;  %4185 = vmatpush2.bf16.msra.mxu0 %v6383_v5  ;;  %v6452_v4 = vld [vmem:[%s8847_s4 + $0xc28] ss:$16 sps:$4 sm:$0xff]  }
 0x292   :  { %4145 = vmatprep.subr.bf16.mxu1 %v6388_v60  ;;  %4186 = vmatprep.subr.bf16.mxu0 %v6391_v61  ;;  %v6455_v5 = vld [vmem:[%s8847_s4 + $0xe28] ss:$16 sps:$4 sm:$0xff]   ;;  %v6460_v60 = vld [vmem:[%s8847_s4 + $0xc0c] ss:$16 sps:$4 sm:$0xff]  }
 0x293   :  { %v6463_v61 = vld [vmem:[%s8847_s4 + $0xe0c] ss:$16 sps:$4 sm:$0xff]  }
 0x295   :  { %4146 = vmatpush2.bf16.msra.mxu1 %v6386_v62  ;;  %4187 = vmatpush2.bf16.msra.mxu0 %v6389_v63  ;;  %v6458_v62 = vld [vmem:[%s8847_s4 + $0xc08] ss:$16 sps:$4 sm:$0xff]  }
 0x296   :  { %4147 = vmatprep.subr.bf16.mxu1 %v6394_v0  ;;  %4188 = vmatprep.subr.bf16.mxu0 %v6397_v1  ;;  %v6461_v63 = vld [vmem:[%s8847_s4 + $0xe08] ss:$16 sps:$4 sm:$0xff]   ;;  %v6466_v0 = vld [vmem:[%s8847_s4 + $0xdec] ss:$16 sps:$4 sm:$0xff]  }
 0x297   :  { %v6469_v1 = vld [vmem:[%s8847_s4 + $0xfec] ss:$16 sps:$4 sm:$0xff]  }
 0x299   :  { %4148 = vmatpush2.bf16.msra.mxu1 %v6392_v2  ;;  %4189 = vmatpush2.bf16.msra.mxu0 %v6395_v3  ;;  %v6464_v2 = vld [vmem:[%s8847_s4 + $0xde8] ss:$16 sps:$4 sm:$0xff]  }
 0x29a   :  { %4149 = vmatprep.subr.bf16.mxu1 %v6400_v21  ;;  %4190 = vmatprep.subr.bf16.mxu0 %v6403_v9  ;;  %v6467_v3 = vld [vmem:[%s8847_s4 + $0xfe8] ss:$16 sps:$4 sm:$0xff]   ;;  %v6472_v21 = vld [vmem:[%s8847_s4 + $0xdcc] ss:$16 sps:$4 sm:$0xff]  }
 0x29b   :  { %v6475_v9 = vld [vmem:[%s8847_s4 + $0xfcc] ss:$16 sps:$4 sm:$0xff]  }
 0x29d   :  { %4150 = vmatpush2.bf16.msra.mxu1 %v6398_v10  ;;  %4191 = vmatpush2.bf16.msra.mxu0 %v6401_v8  ;;  %v6470_v10 = vld [vmem:[%s8847_s4 + $0xdc8] ss:$16 sps:$4 sm:$0xff]  }
 0x29e   :  { %4151 = vmatprep.subr.bf16.mxu1 %v6406_v54  ;;  %4192 = vmatprep.subr.bf16.mxu0 %v6409_v55  ;;  %v6473_v8 = vld [vmem:[%s8847_s4 + $0xfc8] ss:$16 sps:$4 sm:$0xff]   ;;  %v6478_v54 = vld [vmem:[%s8847_s4 + $0xdac] ss:$16 sps:$4 sm:$0xff]  }
 0x29f   :  { %v6481_v55 = vld [vmem:[%s8847_s4 + $0xfac] ss:$16 sps:$4 sm:$0xff]  }
 0x2a1   :  { %4152 = vmatpush2.bf16.msra.mxu1 %v6404_v14  ;;  %4193 = vmatpush2.bf16.msra.mxu0 %v6407_v17  ;;  %v6476_v14 = vld [vmem:[%s8847_s4 + $0xda8] ss:$16 sps:$4 sm:$0xff]  }
 0x2a2   :  { %4153 = vmatprep.subr.bf16.mxu1 %v6412_v18  ;;  %4194 = vmatprep.subr.bf16.mxu0 %v6415_v26  ;;  %v6479_v17 = vld [vmem:[%s8847_s4 + $0xfa8] ss:$16 sps:$4 sm:$0xff]   ;;  %v6484_v18 = vld [vmem:[%s8847_s4 + $0xd8c] ss:$16 sps:$4 sm:$0xff]  }
 0x2a3   :  { %v6487_v26 = vld [vmem:[%s8847_s4 + $0xf8c] ss:$16 sps:$4 sm:$0xff]  }
 0x2a5   :  { %4154 = vmatpush2.bf16.msra.mxu1 %v6410_v27  ;;  %4195 = vmatpush2.bf16.msra.mxu0 %v6413_v46  ;;  %v6482_v27 = vld [vmem:[%s8847_s4 + $0xd88] ss:$16 sps:$4 sm:$0xff]  }
 0x2a6   :  { %4205 = vmatprep.subr.bf16.mxu1 %v6418_v52  ;;  %4246 = vmatprep.subr.bf16.mxu0 %v6421_v58  ;;  %v6485_v46 = vld [vmem:[%s8847_s4 + $0xf88] ss:$16 sps:$4 sm:$0xff]   ;;  %v6490_v52 = vld [vmem:[%s8847_s4 + $0xd6c] ss:$16 sps:$4 sm:$0xff]  }
 0x2a7   :  { %v6493_v58 = vld [vmem:[%s8847_s4 + $0xf6c] ss:$16 sps:$4 sm:$0xff]  }
 0x2a8   :  { %v3911_v31 = vpop.f32.mrf.mxu1  ;;  %v3952_v32 = vpop.f32.mrf.mxu0  ;;  %4156 = vmatmul.mubr.bf16.vlgmr.msra.gmra.mxu1 %v7534_v15  ;;  %4197 = vmatmul.mubr.bf16.vlgmr.msra.gmra.mxu0 %v7538_v16  ;;  %v6430_v15 = vld [vmem:[%s8847_s4 + $0xcac] ss:$16 sps:$4 sm:$0xff]  }
 0x2a9   :  { %v3912_v33 = vadd.f32 %v3911_v31, %v8187_v6  ;;  %4206 = vmatpush1.bf16.msra.mxu1 %v6416_v59  ;;  %4247 = vmatpush1.bf16.msra.mxu0 %v6419_v47  ;;  %v6433_v16 = vld [vmem:[%s8847_s4 + $0xeac] ss:$16 sps:$4 sm:$0xff]   ;;  %v6488_v59 = vld [vmem:[%s8847_s4 + $0xd68] ss:$16 sps:$4 sm:$0xff]  }
 0x2aa   :  { %v8383_v36 = vpop.f32.mrf.mxu1  ;;  %v8385_v37 = vpop.f32.mrf.mxu0  ;;  %4207 = vmatprep.subr.bf16.mxu1 %v6424_v23  ;;  %4248 = vmatprep.subr.bf16.mxu0 %v6427_v24  ;;  %v6491_v47 = vld [vmem:[%s8847_s4 + $0xf68] ss:$16 sps:$4 sm:$0xff]   ;;  %v6496_v23 = vld [vmem:[%s8847_s4 + $0xd4c] ss:$16 sps:$4 sm:$0xff]  }
 0x2ab   :  { %v8393_v6 = vadd.f32 %v3952_v32, %v3912_v33  ;;  %4237 = vmatprep.mubr.bf16.mxu1 %v7552_v19  ;;  %4278 = vmatprep.mubr.bf16.mxu0 %v7554_v20  ;;  %v6436_v19 = vld [vmem:[%s8847_s4 + $0xc8c] ss:$16 sps:$4 sm:$0xff]   ;;  %v3914_v31 = vadd.f32 %v8383_v36, %v8192_v25  ;;  %v4295_v32 = vsub.s32 1, %v6861_v7  ;;  %v6494_v33 = vld [vmem:[%s8847_s4 + $0xd48] ss:$16 sps:$4 sm:$0xff]  }
 0x2ac   :  { %v3915_v40 = vpop.f32.mrf.mxu1  ;;  %v3956_v41 = vpop.f32.mrf.mxu0  ;;  %v6439_v20 = vld [vmem:[%s8847_s4 + $0xe8c] ss:$16 sps:$4 sm:$0xff]  }
 0x2ad   :  { %4208 = vmatpush1.bf16.msra.mxu1 %v6422_v34  ;;  %4249 = vmatpush1.bf16.msra.mxu0 %v6425_v35  ;;  %v6499_v24 = vld [vmem:[%s8847_s4 + $0xf4c] ss:$16 sps:$4 sm:$0xff]   ;;  %v6497_v34 = vld [vmem:[%s8847_s4 + $0xf48] ss:$16 sps:$4 sm:$0xff]   ;;  %v8541_v35 = vld [vmem:[%s8849_s6] sm:$0xf] }
 0x2ae   :  { %v3916_v44 = vpop.f32.mrf.mxu1  ;;  %v3957_v45 = vpop.f32.mrf.mxu0  ;;  %4209 = vmatprep.subr.bf16.mxu1 %v6430_v15  ;;  %4250 = vmatprep.subr.bf16.mxu0 %v6433_v16  ;;  %v6502_v25 = vld [vmem:[%s8847_s4 + $0xd2c] ss:$16 sps:$4 sm:$0xff]   ;;  %v3955_v15 = vadd.f32 %v8385_v37, %v3914_v31  ;;  %v4296_v16 = vrot.slane %v8541_v35, %v4295_v32  ;;  %v6500_v40 = vld [vmem:[%s8847_s4 + $0xd28] ss:$16 sps:$4 sm:$0xff]  }
 0x2af   :  { %v6505_v36 = vld [vmem:[%s8847_s4 + $0xf2c] ss:$16 sps:$4 sm:$0xff]   ;;  %v6503_v41 = vld [vmem:[%s8847_s4 + $0xf28] ss:$16 sps:$4 sm:$0xff]  }
 0x2b0   :  { %v6508_v37 = vld [vmem:[%s8847_s4 + $0xd0c] ss:$16 sps:$4 sm:$0xff]   ;;  %v6506_v44 = vld [vmem:[%s8847_s4 + $0xd08] ss:$16 sps:$4 sm:$0xff]  }
 0x2b1   :  { %4210 = vmatpush1.bf16.msra.mxu1 %v6428_v11  ;;  %4251 = vmatpush1.bf16.msra.mxu0 %v6431_v12  ;;  %v6511_v11 = vld [vmem:[%s8847_s4 + $0xf0c] ss:$16 sps:$4 sm:$0xff]   ;;  %v4310_v12 = vadd.f32 %v4296_v16, %v3955_v15  ;;  %v6509_v45 = vld [vmem:[%s8847_s4 + $0xf08] ss:$16 sps:$4 sm:$0xff]   ;;  %s6624_s4 = scalar_lea.vmem %s4987_s23, 32 }
 0x2b2   :  { %4211 = vmatprep.subr.bf16.mxu1 %v6436_v19  ;;  %4252 = vmatprep.subr.bf16.mxu0 %v6439_v20  ;;  %v6514_v19 = vld [vmem:[%s8850_s7 + $0x74] ss:$8 sps:$4 sm:$0xff]   ;;  %v6541_v31 = vld [vmem:[%s8850_s7 + $0xe4] ss:$8 sps:$4 sm:$0xff]   ;;  %v6542_v16 = vld [vmem:[%s8850_s7 + $0xd0] ss:$8 sps:$4 sm:$0xff]   ;;  %p6625_p0 = scmp.ne.s32.totalorder %s4987_s23, %s6624_s4  ;;  %p6630_p2 = scmp.lt.s32.totalorder %s6624_s4, %s6624_s4 }
 0x2b3   :  { %v4314_v20 = vmax.f32 %v4310_v12, 0.0  ;;  %v6586_v15 = vld [vmem:[%s8850_s7 + $0x1f4] ss:$8 sps:$4 sm:$0xff]   ;;  %v6587_v12 = vld [vmem:[%s8850_s7 + $0x1e0] ss:$8 sps:$4 sm:$0xff]  }
 0x2b4   :  { %p6631_p3 = por %p6630_p2, %p6629_p1 }
 0x2b5   :  { %4212 = vmatpush1.bf16.msra.mxu1 %v6434_v48  ;;  %4253 = vmatpush1.bf16.msra.mxu0 %v6437_v38  ;;  %v6512_v48 = vld [vmem:[%s8850_s7 + $0x70] ss:$8 sps:$4 sm:$0xff]   ;;  %v6517_v38 = vld [vmem:[%s8850_s7 + $0x64] ss:$8 sps:$4 sm:$0xff]  }
 0x2b6   :  { %4213 = vmatprep.subr.bf16.mxu1 %v6442_v39  ;;  %4254 = vmatprep.subr.bf16.mxu0 %v6445_v49  ;;  %v4318_v39 = vpack.c.bf16 %v4314_v20, %v4314_v20  ;;  %v6590_v20 = vld [vmem:[%s8850_s7 + $0x1d0] ss:$8 sps:$4 sm:$0xff]   ;;  %p6632_p4 = pnand %p6631_p3, %p6625_p0 }
 0x2b9   :  { %4214 = vmatpush1.bf16.msra.mxu1 %v6440_v50  ;;  %4255 = vmatpush1.bf16.msra.mxu0 %v6443_v51 }
 0x2ba   :  { %4215 = vmatprep.subr.bf16.mxu1 %v6448_v53  ;;  %4256 = vmatprep.subr.bf16.mxu0 %v6451_v28  ;;  %v6515_v53 = vld [vmem:[%s8850_s7 + $0x60] ss:$8 sps:$4 sm:$0xff]  }
 0x2bd   :  { %4216 = vmatpush1.bf16.msra.mxu1 %v6446_v29  ;;  %4257 = vmatpush1.bf16.msra.mxu0 %v6449_v13  ;;  %v6520_v13 = vld [vmem:[%s8850_s7 + $0x54] ss:$8 sps:$4 sm:$0xff]  }
 0x2be   :  { %4217 = vmatprep.subr.bf16.mxu1 %v6454_v42  ;;  %4258 = vmatprep.subr.bf16.mxu0 %v6457_v43 }
 0x2c1   :  { %4218 = vmatpush1.bf16.msra.mxu1 %v6452_v4  ;;  %4259 = vmatpush1.bf16.msra.mxu0 %v6455_v5  ;;  %v6518_v4 = vld [vmem:[%s8850_s7 + $0x50] ss:$8 sps:$4 sm:$0xff]  }
 0x2c2   :  { %4219 = vmatprep.subr.bf16.mxu1 %v6460_v60  ;;  %4260 = vmatprep.subr.bf16.mxu0 %v6463_v61  ;;  %v6523_v61 = vld [vmem:[%s8850_s7 + $0x44] ss:$8 sps:$4 sm:$0xff]  }
 0x2c5   :  { %4220 = vmatpush1.bf16.msra.mxu1 %v6458_v62  ;;  %4261 = vmatpush1.bf16.msra.mxu0 %v6461_v63  ;;  %v6562_v62 = vld [vmem:[%s8850_s7 + $0x174] ss:$8 sps:$4 sm:$0xff]   ;;  %v6565_v63 = vld [vmem:[%s8850_s7 + $0x164] ss:$8 sps:$4 sm:$0xff]  }
 0x2c6   :  { %4221 = vmatprep.subr.bf16.mxu1 %v6466_v0  ;;  %4262 = vmatprep.subr.bf16.mxu0 %v6469_v1  ;;  %v6521_v0 = vld [vmem:[%s8850_s7 + $0x40] ss:$8 sps:$4 sm:$0xff]  }
 0x2c7   :  { %v6563_v1 = vld [vmem:[%s8850_s7 + $0x160] ss:$8 sps:$4 sm:$0xff]  }
 0x2c9   :  { %4222 = vmatpush2.bf16.msra.mxu1 %v6464_v2  ;;  %4263 = vmatpush2.bf16.msra.mxu0 %v6467_v3  ;;  %v6526_v2 = vld [vmem:[%s8850_s7 + $0x34] ss:$8 sps:$4 sm:$0xff]  }
 0x2ca   :  { %4223 = vmatprep.subr.bf16.mxu1 %v6472_v21  ;;  %4264 = vmatprep.subr.bf16.mxu0 %v6475_v9  ;;  %v6568_v3 = vld [vmem:[%s8850_s7 + $0x154] ss:$8 sps:$4 sm:$0xff]   ;;  %v6524_v21 = vld [vmem:[%s8850_s7 + $0x30] ss:$8 sps:$4 sm:$0xff]  }
 0x2cb   :  { %v6566_v9 = vld [vmem:[%s8850_s7 + $0x150] ss:$8 sps:$4 sm:$0xff]  }
 0x2cd   :  { %4224 = vmatpush2.bf16.msra.mxu1 %v6470_v10  ;;  %4265 = vmatpush2.bf16.msra.mxu0 %v6473_v8  ;;  %v6529_v10 = vld [vmem:[%s8850_s7 + $0x24] ss:$8 sps:$4 sm:$0xff]  }
 0x2ce   :  { %4225 = vmatprep.subr.bf16.mxu1 %v6478_v54  ;;  %4266 = vmatprep.subr.bf16.mxu0 %v6481_v55  ;;  %v6571_v8 = vld [vmem:[%s8850_s7 + $0x144] ss:$8 sps:$4 sm:$0xff]   ;;  %v6527_v54 = vld [vmem:[%s8850_s7 + $0x20] ss:$8 sps:$4 sm:$0xff]  }
 0x2cf   :  { %v6569_v55 = vld [vmem:[%s8850_s7 + $0x140] ss:$8 sps:$4 sm:$0xff]  }
 0x2d1   :  { %4226 = vmatpush2.bf16.msra.mxu1 %v6476_v14  ;;  %4267 = vmatpush2.bf16.msra.mxu0 %v6479_v17  ;;  %v6532_v14 = vld [vmem:[%s8850_s7 + $0x14] ss:$8 sps:$4 sm:$0xff]  }
 0x2d2   :  { %4227 = vmatprep.subr.bf16.mxu1 %v6484_v18  ;;  %4268 = vmatprep.subr.bf16.mxu0 %v6487_v26  ;;  %v6574_v17 = vld [vmem:[%s8850_s7 + $0x134] ss:$8 sps:$4 sm:$0xff]   ;;  %v6530_v18 = vld [vmem:[%s8850_s7 + $0x10] ss:$8 sps:$4 sm:$0xff]  }
 0x2d3   :  { %v6572_v26 = vld [vmem:[%s8850_s7 + $0x130] ss:$8 sps:$4 sm:$0xff]  }
 0x2d5   :  { %4228 = vmatpush2.bf16.msra.mxu1 %v6482_v27  ;;  %4269 = vmatpush2.bf16.msra.mxu0 %v6485_v46  ;;  %v6535_v27 = vld [vmem:[%s8850_s7 + $0x4] ss:$8 sps:$4 sm:$0xff]  }
 0x2d6   :  { %4229 = vmatprep.subr.bf16.mxu1 %v6490_v52  ;;  %4270 = vmatprep.subr.bf16.mxu0 %v6493_v58  ;;  %v6577_v46 = vld [vmem:[%s8850_s7 + $0x124] ss:$8 sps:$4 sm:$0xff]   ;;  %v6533_v52 = vld [vmem:[%s8850_s7] ss:$8 sps:$4 sm:$0xff]  }
 0x2d7   :  { %v6575_v58 = vld [vmem:[%s8850_s7 + $0x120] ss:$8 sps:$4 sm:$0xff]  }
 0x2d9   :  { %4230 = vmatpush2.bf16.msra.mxu1 %v6488_v59  ;;  %4271 = vmatpush2.bf16.msra.mxu0 %v6491_v47  ;;  %v6538_v59 = vld [vmem:[%s8850_s7 + $0xf4] ss:$8 sps:$4 sm:$0xff]  }
 0x2da   :  { %4231 = vmatprep.subr.bf16.mxu1 %v6496_v23  ;;  %4272 = vmatprep.subr.bf16.mxu0 %v6499_v24  ;;  %v6580_v47 = vld [vmem:[%s8850_s7 + $0x114] ss:$8 sps:$4 sm:$0xff]   ;;  %v6536_v23 = vld [vmem:[%s8850_s7 + $0xf0] ss:$8 sps:$4 sm:$0xff]  }
 0x2db   :  { %v6578_v24 = vld [vmem:[%s8850_s7 + $0x110] ss:$8 sps:$4 sm:$0xff]  }
 0x2dd   :  { %4232 = vmatpush2.bf16.msra.mxu1 %v6494_v33  ;;  %4273 = vmatpush2.bf16.msra.mxu0 %v6497_v34  ;;  %v6583_v33 = vld [vmem:[%s8850_s7 + $0x104] ss:$8 sps:$4 sm:$0xff]   ;;  %v6539_v34 = vld [vmem:[%s8850_s7 + $0xe0] ss:$8 sps:$4 sm:$0xff]  }
 0x2de   :  { %4233 = vmatprep.subr.bf16.mxu1 %v6502_v25  ;;  %4274 = vmatprep.subr.bf16.mxu0 %v6505_v36  ;;  %v6581_v25 = vld [vmem:[%s8850_s7 + $0x100] ss:$8 sps:$4 sm:$0xff]   ;;  %v6544_v36 = vld [vmem:[%s8850_s7 + $0xd4] ss:$8 sps:$4 sm:$0xff]  }
 0x2e1   :  { %4234 = vmatpush2.bf16.msra.mxu1 %v6500_v40  ;;  %4275 = vmatpush2.bf16.msra.mxu0 %v6503_v41  ;;  %v6584_v40 = vld [vmem:[%s8850_s7 + $0x1f0] ss:$8 sps:$4 sm:$0xff]   ;;  %v6547_v41 = vld [vmem:[%s8850_s7 + $0xc4] ss:$8 sps:$4 sm:$0xff]  }
 0x2e2   :  { %4235 = vmatprep.subr.bf16.mxu1 %v6508_v37  ;;  %4276 = vmatprep.subr.bf16.mxu0 %v6511_v11  ;;  %v6589_v37 = vld [vmem:[%s8850_s7 + $0x1e4] ss:$8 sps:$4 sm:$0xff]   ;;  %v6545_v11 = vld [vmem:[%s8850_s7 + $0xc0] ss:$8 sps:$4 sm:$0xff]  }
 0x2e5   :  { %4236 = vmatpush2.bf16.msra.mxu1 %v6506_v44  ;;  %4277 = vmatpush2.bf16.msra.mxu0 %v6509_v45  ;;  %v6550_v44 = vld [vmem:[%s8850_s7 + $0xb4] ss:$8 sps:$4 sm:$0xff]  }
 0x2e6   :  { %4717 = vmatprep.subr.bf16.mxu1 %v6514_v19  ;;  %4758 = vmatprep.subr.bf16.mxu0 %v6562_v62  ;;  %v6592_v45 = vld [vmem:[%s8850_s7 + $0x1d4] ss:$8 sps:$4 sm:$0xff]   ;;  %v6548_v19 = vld [vmem:[%s8850_s7 + $0xb0] ss:$8 sps:$4 sm:$0xff]   ;;  %v6599_v62 = vld [vmem:[%s8850_s7 + $0x1a0] ss:$8 sps:$4 sm:$0xff]  }
 0x2e8   :  { %v3993_v49 = vpop.f32.mrf.mxu1  ;;  %v4034_v50 = vpop.f32.mrf.mxu0  ;;  %4238 = vmatmul.mubr.bf16.vlgmr.msra.gmra.mxu1 %v7750_v56  ;;  %4279 = vmatmul.mubr.bf16.vlgmr.msra.gmra.mxu0 %v7754_v57 }
 0x2e9   :  { %v3994_v51 = vadd.f32 %v3993_v49, %v7560_v22  ;;  %4718 = vmatpush1.bf16.msra.mxu1 %v6512_v48  ;;  %4749 = vmatprep.mubr.bf16.mxu1 %v4318_v39  ;;  %v4291_v48 = vsub.s32 0, %v6861_v7  ;;  %v6595_v39 = vld [vmem:[%s8850_s7 + $0x1c4] ss:$8 sps:$4 sm:$0xff]   ;;  %v6551_v49 = vld [vmem:[%s8850_s7 + $0xa0] ss:$8 sps:$4 sm:$0xff]  }
 0x2ea   :  { %v3995_v28 = vpop.f32.mrf.mxu1  ;;  %v4036_v29 = vpop.f32.mrf.mxu0  ;;  %4719 = vmatprep.subr.bf16.mxu1 %v6517_v38  ;;  %v6553_v38 = vld [vmem:[%s8850_s7 + $0xa4] ss:$8 sps:$4 sm:$0xff]  }
 0x2eb   :  { %v8589_v42 = vadd.f32 %v4034_v50, %v3994_v51  ;;  %v3996_v56 = vadd.f32 %v3995_v28, %v7570_v30  ;;  %v6560_v30 = vld [vmem:[%s8850_s7 + $0x170] ss:$8 sps:$4 sm:$0xff]   ;;  %v6593_v50 = vld [vmem:[%s8850_s7 + $0x1c0] ss:$8 sps:$4 sm:$0xff]   ;;  %v4292_v51 = vrot.slane %v8541_v35, %v4291_v48  ;;  %v6598_v28 = vld [vmem:[%s8850_s7 + $0x1b4] ss:$8 sps:$4 sm:$0xff]  }
 0x2ec   :  { %v3997_v57 = vpop.f32.mrf.mxu1  ;;  %v4038_v43 = vpop.f32.mrf.mxu0  ;;  %4759 = vmatpush1.bf16.msra.mxu0 %v6560_v30 }
 0x2ed   :  { %v8592_v22 = vadd.f32 %v4036_v29, %v3996_v56  ;;  %4720 = vmatpush1.bf16.msra.mxu1 %v6515_v53  ;;  %4760 = vmatprep.subr.bf16.mxu0 %v6565_v63  ;;  %v6556_v53 = vld [vmem:[%s8850_s7 + $0x94] ss:$8 sps:$4 sm:$0xff]   ;;  %v6554_v29 = vld [vmem:[%s8850_s7 + $0x90] ss:$8 sps:$4 sm:$0xff]   ;;  %v4309_v56 = vadd.f32 %v4292_v51, %v8393_v6  ;;  %v6559_v57 = vld [vmem:[%s8850_s7 + $0x84] ss:$8 sps:$4 sm:$0xff]  }
 0x2ee   :  { %v3998_v5 = vpop.f32.mrf.mxu1  ;;  %v4039_v60 = vpop.f32.mrf.mxu0  ;;  %4721 = vmatprep.subr.bf16.mxu1 %v6520_v13  ;;  %v6596_v13 = vld [vmem:[%s8850_s7 + $0x1b0] ss:$8 sps:$4 sm:$0xff]   ;;  %v6557_v43 = vld [vmem:[%s8850_s7 + $0x80] ss:$8 sps:$4 sm:$0xff]   ;;  %v6601_v6 = vld [vmem:[%s8850_s7 + $0x1a4] ss:$8 sps:$4 sm:$0xff]  }
 0x2f0   :  { %4761 = vmatpush1.bf16.msra.mxu0 %v6563_v1 }
 0x2f1   :  { %4722 = vmatpush1.bf16.msra.mxu1 %v6518_v4  ;;  %4762 = vmatprep.subr.bf16.mxu0 %v6568_v3  ;;  %v4313_v4 = vmax.f32 %v4309_v56, 0.0 }
 0x2f2   :  { %4723 = vmatprep.subr.bf16.mxu1 %v6523_v61 }
 0x2f3   :  { %v4317_v5 = vpack.c.bf16 %v4313_v4, %v4313_v4 }
 0x2f4   :  { %4763 = vmatpush1.bf16.msra.mxu0 %v6566_v9  ;;  %v6604_v9 = vld [vmem:[%s8850_s7 + $0x194] ss:$8 sps:$4 sm:$0xff]  }
 0x2f5   :  { %4724 = vmatpush1.bf16.msra.mxu1 %v6521_v0  ;;  %4764 = vmatprep.subr.bf16.mxu0 %v6571_v8 }
 0x2f6   :  { %4725 = vmatprep.subr.bf16.mxu1 %v6526_v2 }
 0x2f8   :  { %4765 = vmatpush1.bf16.msra.mxu0 %v6569_v55  ;;  %v6605_v55 = vld [vmem:[%s8850_s7 + $0x180] ss:$8 sps:$4 sm:$0xff]  }
 0x2f9   :  { %4726 = vmatpush1.bf16.msra.mxu1 %v6524_v21  ;;  %4766 = vmatprep.subr.bf16.mxu0 %v6574_v17 }
 0x2fa   :  { %4727 = vmatprep.subr.bf16.mxu1 %v6529_v10 }
 0x2fc   :  { %4767 = vmatpush1.bf16.msra.mxu0 %v6572_v26 }
 0x2fd   :  { %4728 = vmatpush1.bf16.msra.mxu1 %v6527_v54  ;;  %4768 = vmatprep.subr.bf16.mxu0 %v6577_v46 }
 0x2fe   :  { %4729 = vmatprep.subr.bf16.mxu1 %v6532_v14 }
 0x300   :  { %4769 = vmatpush1.bf16.msra.mxu0 %v6575_v58 }
 0x301   :  { %4730 = vmatpush1.bf16.msra.mxu1 %v6530_v18  ;;  %4770 = vmatprep.subr.bf16.mxu0 %v6580_v47 }
 0x302   :  { %4731 = vmatprep.subr.bf16.mxu1 %v6535_v27 }
 0x304   :  { %4771 = vmatpush1.bf16.msra.mxu0 %v6578_v24  ;;  %v6609_v24 = vld [vmem:[%s8852_s9 + $0x38] sm:$0xff]  }
 0x305   :  { %4732 = vmatpush1.bf16.msra.mxu1 %v6533_v52  ;;  %4772 = vmatprep.subr.bf16.mxu0 %v6583_v33  ;;  %v6611_v33 = vld [vmem:[%s8852_s9 + $0x30] sm:$0xff]  }
 0x306   :  { %4733 = vmatprep.subr.bf16.mxu1 %v6538_v59 }
 0x308   :  { %4773 = vmatpush1.bf16.msra.mxu0 %v6581_v25  ;;  %v6613_v25 = vld [vmem:[%s8852_s9 + $0x28] sm:$0xff]  }
 0x309   :  { %4734 = vmatpush2.bf16.msra.mxu1 %v6536_v23  ;;  %4774 = vmatprep.subr.bf16.mxu0 %v6586_v15  ;;  %v6608_v23 = vld [vmem:[%s8852_s9 + $0x78] sm:$0xff]   ;;  %v6615_v15 = vld [vmem:[%s8852_s9 + $0x20] sm:$0xff]  }
 0x30a   :  { %4735 = vmatprep.subr.bf16.mxu1 %v6541_v31  ;;  %v6610_v31 = vld [vmem:[%s8852_s9 + $0x70] sm:$0xff]  }
 0x30c   :  { %4775 = vmatpush2.bf16.msra.mxu0 %v6584_v40  ;;  %v6617_v40 = vld [vmem:[%s8852_s9 + $0x18] sm:$0xff]  }
 0x30d   :  { %4736 = vmatpush2.bf16.msra.mxu1 %v6539_v34  ;;  %4776 = vmatprep.subr.bf16.mxu0 %v6589_v37  ;;  %v6612_v34 = vld [vmem:[%s8852_s9 + $0x68] sm:$0xff]   ;;  %v6619_v37 = vld [vmem:[%s8852_s9 + $0x10] sm:$0xff]  }
 0x30e   :  { %4737 = vmatprep.subr.bf16.mxu1 %v6544_v36  ;;  %v6614_v36 = vld [vmem:[%s8852_s9 + $0x60] sm:$0xff]  }
 0x310   :  { %4777 = vmatpush2.bf16.msra.mxu0 %v6587_v12  ;;  %v4299_v12 = vsub.s32 2, %v6861_v7 }
 0x311   :  { %4738 = vmatpush2.bf16.msra.mxu1 %v6542_v16  ;;  %4778 = vmatprep.subr.bf16.mxu0 %v6592_v45  ;;  %v6616_v16 = vld [vmem:[%s8852_s9 + $0x58] sm:$0xff]  }
 0x312   :  { %4739 = vmatprep.subr.bf16.mxu1 %v6547_v41  ;;  %v6618_v41 = vld [vmem:[%s8852_s9 + $0x50] sm:$0xff]  }
 0x314   :  { %4779 = vmatpush2.bf16.msra.mxu0 %v6590_v20 }
 0x315   :  { %4740 = vmatpush2.bf16.msra.mxu1 %v6545_v11  ;;  %4780 = vmatprep.subr.bf16.mxu0 %v6595_v39  ;;  %v4300_v39 = vrot.slane %v8541_v35, %v4299_v12 }
 0x316   :  { %4741 = vmatprep.subr.bf16.mxu1 %v6550_v44  ;;  %v4303_v44 = vsub.s32 3, %v6861_v7  ;;  %v5611_v7 = vld [vmem:[%s8853_s10] ss:$0 sm:$0xff] }
 0x318   :  { %4781 = vmatpush2.bf16.msra.mxu0 %v6593_v50 }
 0x319   :  { %4742 = vmatpush2.bf16.msra.mxu1 %v6548_v19  ;;  %4782 = vmatprep.subr.bf16.mxu0 %v6598_v28  ;;  %v4304_v28 = vrot.slane %v8541_v35, %v4303_v44  ;;  %v6620_v35 = vld [vmem:[%s8852_s9 + $0x48] sm:$0xff]  }
 0x31a   :  { %4743 = vmatprep.subr.bf16.mxu1 %v6553_v38 }
 0x31c   :  { %4783 = vmatpush2.bf16.msra.mxu0 %v6596_v13 }
 0x31d   :  { %4744 = vmatpush2.bf16.msra.mxu1 %v6551_v49  ;;  %4784 = vmatprep.subr.bf16.mxu0 %v6601_v6 }
 0x31e   :  { %4745 = vmatprep.subr.bf16.mxu1 %v6556_v53 }
 0x320   :  { %4785 = vmatpush2.bf16.msra.mxu0 %v6599_v62 }
 0x321   :  { %4746 = vmatpush2.bf16.msra.mxu1 %v6554_v29  ;;  %4786 = vmatprep.subr.bf16.mxu0 %v6604_v9  ;;  %v4385_v9 = vld [vmem:[%s8851_s8] sm:$0x3] }
 0x322   :  { %4747 = vmatprep.subr.bf16.mxu1 %v6559_v57 }
 0x325   :  { %4748 = vmatpush2.bf16.msra.mxu1 %v6557_v43 }
 0x326   :  { %5637 = vmatprep.subr.bf16.mxu1 %v6608_v23 }
 0x328   :  { %v4075_v60 = vpop.f32.mrf.mxu1  ;;  %v4116_v61 = vpop.f32.mrf.mxu0  ;;  %4750 = vmatmul.mubr.bf16.vlgmr.msra.gmra.mxu1 %v4317_v5 }
 0x329   :  { %v4076_v30 = vadd.f32 %v4075_v60, %v8589_v42  ;;  %v6602_v42 = vld [vmem:[%s8850_s7 + $0x190] ss:$8 sps:$4 sm:$0xff]   ;;  %5638 = vmatpush3.bf16.msra.mxu1 %v6609_v24 }
 0x32a   :  { %v4077_v63 = vpop.f32.mrf.mxu1  ;;  %v4118_v0 = vpop.f32.mrf.mxu0  ;;  %4787 = vmatpush2.bf16.msra.mxu0 %v6602_v42  ;;  %5639 = vmatprep.subr.bf16.mxu1 %v6610_v31  ;;  %v4394_v42 = vrot.slane %v4385_v9, %v4295_v32 }
 0x32b   :  { %v4117_v1 = vadd.f32 %v4116_v61, %v4076_v30  ;;  %v4078_v2 = vadd.f32 %v4077_v63, %v8592_v22  ;;  %v6607_v22 = vld [vmem:[%s8850_s7 + $0x184] ss:$8 sps:$4 sm:$0xff]  }
 0x32c   :  { %v4079_v3 = vpop.f32.mrf.mxu1  ;;  %v4120_v21 = vpop.f32.mrf.mxu0  ;;  %4788 = vmatprep.subr.bf16.mxu0 %v6607_v22 }
 0x32d   :  { %v4119_v10 = vadd.f32 %v4118_v0, %v4078_v2  ;;  %5640 = vmatpush3.bf16.msra.mxu1 %v6611_v33  ;;  %v6621_v2 = vld [vmem:[%s8852_s9 + $0x8] sm:$0xff]   ;;  %v6622_v3 = vld [vmem:[%s8852_s9 + $0x40] sm:$0xff]  }
 0x32e   :  { %v4080_v8 = vpop.f32.mrf.mxu1  ;;  %v4121_v54 = vpop.f32.mrf.mxu0  ;;  %4789 = vmatpush2.bf16.msra.mxu0 %v6605_v55  ;;  %5641 = vmatprep.subr.bf16.mxu1 %v6612_v34  ;;  %v6623_v21 = vld [vmem:[%s8852_s9] sm:$0xff]  }
 0x331   :  { %5642 = vmatpush3.bf16.msra.mxu1 %v6613_v25 }
 0x332   :  { %5643 = vmatprep.subr.bf16.mxu1 %v6614_v36 }
 0x335   :  { %5644 = vmatpush3.bf16.msra.mxu1 %v6615_v15 }
 0x336   :  { %5645 = vmatprep.subr.bf16.mxu1 %v6616_v16 }
 0x339   :  { %5646 = vmatpush3.bf16.msra.mxu1 %v6617_v40 }
 0x33a   :  { %5647 = vmatprep.subr.bf16.mxu1 %v6618_v41 }
 0x33d   :  { %5648 = vmatpush3.bf16.msra.mxu1 %v6619_v37 }
 0x33e   :  { %5649 = vmatprep.subr.bf16.mxu1 %v6620_v35 }
 0x341   :  { %5650 = vmatpush3.bf16.msra.mxu1 %v6621_v2 }
 0x342   :  { %5651 = vmatprep.subr.bf16.mxu1 %v6622_v3 }
 0x345   :  { %5652 = vmatpush3.bf16.msra.mxu1 %v6623_v21 }
 0x368   :  { %v4157_v14 = vpop.f32.mrf.mxu1  ;;  %v4198_v17 = vpop.f32.mrf.mxu0 }
 0x369   :  { %v4158_v18 = vadd.f32 %v4157_v14, %v4117_v1 }
 0x36a   :  { %v4159_v26 = vpop.f32.mrf.mxu1  ;;  %v4200_v27 = vpop.f32.mrf.mxu0 }
 0x36b   :  { %v4199_v46 = vadd.f32 %v4198_v17, %v4158_v18  ;;  %v4160_v11 = vadd.f32 %v4159_v26, %v4119_v10  ;;  %v4390_v10 = vrot.slane %v4385_v9, %v4291_v48 }
 0x36c   :  { %v4161_v52 = vpop.f32.mrf.mxu1  ;;  %v4202_v58 = vpop.f32.mrf.mxu0 }
 0x36d   :  { %v4201_v20 = vadd.f32 %v4200_v27, %v4160_v11 }
 0x36e   :  { %v4162_v59 = vpop.f32.mrf.mxu1  ;;  %v4203_v47 = vpop.f32.mrf.mxu0 }
 0x3a8   :  { %v4239_v45 = vpop.f32.mrf.mxu1  ;;  %v4280_v19 = vpop.f32.mrf.mxu0 }
 0x3a9   :  { %v4240_v38 = vadd.f32 %v4239_v45, %v4199_v46 }
 0x3aa   :  { %v4241_v49 = vpop.f32.mrf.mxu1  ;;  %v4282_v50 = vpop.f32.mrf.mxu0 }
 0x3ab   :  { %v4281_v51 = vadd.f32 %v4280_v19, %v4240_v38  ;;  %v4242_v53 = vadd.f32 %v4241_v49, %v4201_v20 }
 0x3ac   :  { %v4243_v29 = vpop.f32.mrf.mxu1  ;;  %v4284_v13 = vpop.f32.mrf.mxu0 }
 0x3ad   :  { %v4311_v56 = vadd.f32 %v4300_v39, %v4281_v51  ;;  %v4283_v57 = vadd.f32 %v4282_v50, %v4242_v53 }
 0x3ae   :  { %v4244_v43 = vpop.f32.mrf.mxu1  ;;  %v4285_v4 = vpop.f32.mrf.mxu0 }
 0x3af   :  { %v4312_v5 = vadd.f32 %v4304_v28, %v4283_v57  ;;  %v4315_v60 = vmax.f32 %v4311_v56, 0.0 }
 0x3b1   :  { %v4316_v61 = vmax.f32 %v4312_v5, 0.0  ;;  %v4319_v30 = vpack.c.bf16 %v4315_v60, %v4315_v60 }
 0x3b3   :  { %v4320_v6 = vpack.c.bf16 %v4316_v61, %v4316_v61 }
 0x3b5   :  { %4790 = vmatprep.mubr.bf16.mxu0 %v4320_v6 }
 0x3b6   :  { %4791 = vmatmul.mubr.bf16.vlgmr.msra.gmra.mxu0 %v4319_v30 }
 0x3e8   :  { %v4751_v62 = vpop.f32.mrf.mxu1 }
 0x3e9   :  { %v4752_v8 = vadd.f32 %v4751_v62, %v4390_v10 }
 0x3ea   :  { %v4753_v63 = vpop.f32.mrf.mxu1 }
 0x3eb   :  { %v4754_v22 = vadd.f32 %v4753_v63, %v4394_v42 }
 0x3ec   :  { %v4755_v0 = vpop.f32.mrf.mxu1 }
 0x3ee   :  { %v4756_v1 = vpop.f32.mrf.mxu1 }
 0x476   :  { %v4792_v54 = vpop.f32.mrf.mxu0 }
 0x477   :  { %v4793_v55 = vadd.f32 %v4792_v54, %v4752_v8 }
 0x478   :  { %v4794_v14 = vpop.f32.mrf.mxu0 }
 0x479   :  { %v4795_v17 = vadd.f32 %v4794_v14, %v4754_v22  ;;  %v4799_v18 = vmax.f32 %v4793_v55, 0.0 }
 0x47a   :  { %v4796_v26 = vpop.f32.mrf.mxu0 }
 0x47b   :  { %v4800_v27 = vmax.f32 %v4795_v17, 0.0  ;;  %v4801_v58 = vpack.c.bf16 %v4799_v18, %v4799_v18 }
 0x47c   :  { %v4797_v46 = vpop.f32.mrf.mxu0 }
 0x47d   :  { %v4802_v52 = vpack.c.bf16 %v4800_v27, %v4800_v27 }
 0x47f   :  { %4970 = vmatprep.mubr.bf16.mxu1 %v4802_v52 }
 0x480   :  { %4971 = vmatmul.mubr.bf16.vlgmr.msra.gmra.mxu1 %v4801_v58 }
 0x540   :  { %v5653_v59 = vpop.f32.mrf.mxu1 }
 0x542   :  { %v5654_v32 = vpop.f32.mrf.mxu1 }
 0x543   :  { %v5655_v48 = vadd.f32 %v5654_v32, %v5653_v59 }
 0x544   :  { %v5656_v47 = vpop.f32.mrf.mxu1 }
 0x545   :  { %v4973_v23 = vadd.f32 %v5655_v48, %v5611_v7 }
 0x546   :  { %v5657_v24 = vpop.f32.mrf.mxu1 }
 0x547   :  { %4979 = vst.msk [vmem:[#allocation2] sm:$0x3] %vm4978_vm2, %v4973_v23 }
 0x548   :  { %6635 = shalt.err (!%p6632_p4)
}
 0x549   :  { %4989 = dma.vmem_to_hbm [thread:$0]  %s4987_s23, 32, %s8854_s11, [#allocation3]  }
 0x54a   :  { %6644 = dma.done.wait [#allocation3], 32  }
 0x54b   :  { %6645 = vsyncadd [#allocation3], 4294967264 }
 0x54c   :  { %4993 = vsyncpa [#allocation3], 1 }

</bundles_post_ra>
